<compile_context>
chip_gen: v5e
topology: v5e:2x2
jax: 0.10.0
libtpu: 0.0.40
codegen_flags: <defaults>
</compile_context>

<pallas_src>
import functools

import jax
import jax.numpy as jnp
from jax.experimental import pallas as pl
from jax.experimental.pallas import tpu as pltpu


def _st_kernel(grid_ref, flow_ref, img_ref, out_ref, *, D, H, W, TS):
    S = D * H * W
    img = img_ref[0]                              # (C, S)  resident across tiles
    coords = grid_ref[...] + flow_ref[0]          # (3, TS) sample coords (d,h,w)

    # Packed (sublane-dense) floor / fractional-weight computation.
    c0f = jnp.floor(coords)
    c0 = c0f.astype(jnp.int32)                    # (3, TS)
    frac = coords - c0f                           # (3, TS)
    w_hi = frac
    w_lo = 1.0 - frac

    d0 = c0[0:1]
    h0 = c0[1:2]
    w0 = c0[2:3]                                  # (1, TS) each
    base = d0 * (H * W) + h0 * W + w0             # flat index of (d0,h0,w0)

    # Per-axis in-bounds masks for the +0 / +1 corners (zeros padding).
    vld_d = ((d0 >= 0) & (d0 < D), (d0 >= -1) & (d0 < D - 1))
    vld_h = ((h0 >= 0) & (h0 < H), (h0 >= -1) & (h0 < H - 1))
    vld_w = ((w0 >= 0) & (w0 < W), (w0 >= -1) & (w0 < W - 1))
    wgt_d = (w_lo[0:1], w_hi[0:1])
    wgt_h = (w_lo[1:2], w_hi[1:2])
    wgt_w = (w_lo[2:3], w_hi[2:3])

    # Source-voxel row index for the (S, TS) interpolation matrix.
    row = jax.lax.broadcasted_iota(jnp.int32, (S, TS), 0)

    # Fold all 8 corner contributions into one interpolation matrix: the 8
    # corner flat indices of a given output point are distinct, so the
    # per-corner one-hot slabs never collide and can be summed up front.
    interp = jnp.zeros((S, TS), jnp.float32)
    for dd in (0, 1):
        for hh in (0, 1):
            for ww in (0, 1):
                wt = (wgt_d[dd] * wgt_h[hh] * wgt_w[ww]
                      * (vld_d[dd] & vld_h[hh] & vld_w[ww]).astype(jnp.float32))
                flat = base + (dd * (H * W) + hh * W + ww)      # (1, TS)
                interp = interp + jnp.where(row == flat, wt, 0.0)

    # Single MXU contraction: (C, S) @ (S, TS) -> (C, TS)
    out_ref[0] = jnp.dot(img, interp,
                         preferred_element_type=jnp.float32).astype(out_ref.dtype)


def _pick_lane_tile(S):
    # Largest lane tile (multiple of 128) dividing S, capped so the (S, TS)
    # interpolation-matrix slab stays within a few MiB of VMEM (v7x-safe).
    for ts in (512, 256, 128):
        if S % ts == 0 and S * ts * 4 <= (8 << 20):
            return ts
    for ts in (256, 128):
        if S % ts == 0:
            return ts
    return S  # tiny/odd S: single full-extent tile


def register_st_model(img, flow):
    """img: (N, C, D, H, W) f32, flow: (N, 3, D, H, W) f32 -> (N, C, D, H, W)."""
    N, C, D, H, W = img.shape
    assert flow.shape == (N, 3, D, H, W)
    S = D * H * W

    # Tiny batch-shared identity grid (3, S); flow is consumed directly, so no
    # extra (N, 3, S) coordinate array is ever written to HBM.
    dg = jax.lax.broadcasted_iota(jnp.float32, (D, H, W), 0)
    hg = jax.lax.broadcasted_iota(jnp.float32, (D, H, W), 1)
    wg = jax.lax.broadcasted_iota(jnp.float32, (D, H, W), 2)
    grid_flat = jnp.stack([dg, hg, wg], axis=0).reshape(3, S)
    flow_f = flow.reshape(N, 3, S).astype(jnp.float32)
    img_f = img.reshape(N, C, S).astype(jnp.float32)

    TS = _pick_lane_tile(S)
    nt = S // TS

    # VMEM budget: double-buffered img/grid/flow/out blocks + a few live
    # (S, TS) slabs + headroom; clamp to [32 MiB, 64 MiB] (v7x physical).
    est = (4 * (2 * C * S + 2 * 3 * TS + 2 * 3 * TS + 2 * C * TS)
           + 4 * (4 * S * TS) + (2 << 20))
    vmem_limit = min(max(est, 32 << 20), 64 << 20)

    kernel = functools.partial(_st_kernel, D=D, H=H, W=W, TS=TS)
    out = pl.pallas_call(
        kernel,
        out_shape=jax.ShapeDtypeStruct((N, C, S), jnp.float32),
        grid_spec=pltpu.PrefetchScalarGridSpec(
            num_scalar_prefetch=0,
            grid=(N, nt),
            in_specs=[
                # Batch-shared identity grid, per-tile slice.
                pl.BlockSpec((3, TS), lambda n, t: (0, t)),
                # Per-tile slice of the flow field.
                pl.BlockSpec((1, 3, TS), lambda n, t: (n, 0, t)),
                # Full image resident across lane tiles of one batch element.
                pl.BlockSpec((1, C, S), lambda n, t: (n, 0, 0)),
            ],
            out_specs=pl.BlockSpec((1, C, TS), lambda n, t: (n, 0, t)),
        ),
        compiler_params=pltpu.CompilerParams(
            dimension_semantics=("parallel", "parallel"),
            vmem_limit_bytes=vmem_limit),
    )(grid_flat, flow_f, img_f)
    return out.reshape(N, C, D, H, W)


def _reference(img, flow):
    """Pure-JAX trilinear grid_sample(align_corners=True, padding='zeros')."""
    N, C, D, H, W = img.shape
    dg, hg, wg = jnp.meshgrid(jnp.arange(D), jnp.arange(H), jnp.arange(W),
                              indexing="ij")
    cd = dg[None].astype(jnp.float32) + flow[:, 0]
    ch = hg[None].astype(jnp.float32) + flow[:, 1]
    cw = wg[None].astype(jnp.float32) + flow[:, 2]
    d0 = jnp.floor(cd); h0 = jnp.floor(ch); w0 = jnp.floor(cw)
    td = cd - d0; th = ch - h0; tw = cw - w0
    d0 = d0.astype(jnp.int32); h0 = h0.astype(jnp.int32); w0 = w0.astype(jnp.int32)
    img_flat = img.reshape(N, C, D * H * W)
    out = jnp.zeros((N, C, D, H, W), jnp.float32)
    for dd in (0, 1):
        di = d0 + dd
        wdv = td if dd == 1 else (1.0 - td)
        vd = (di >= 0) & (di < D)
        for hh in (0, 1):
            hi = h0 + hh
            whv = th if hh == 1 else (1.0 - th)
            vh = (hi >= 0) & (hi < H)
            for ww in (0, 1):
                wi = w0 + ww
                wwv = tw if ww == 1 else (1.0 - tw)
                vw = (wi >= 0) & (wi < W)
                wt = wdv * whv * wwv * (vd & vh & vw).astype(jnp.float32)
                flat = (jnp.clip(di, 0, D - 1) * H * W
                        + jnp.clip(hi, 0, H - 1) * W
                        + jnp.clip(wi, 0, W - 1)).reshape(N, 1, -1)
                gathered = jnp.take_along_axis(
                    img_flat, jnp.broadcast_to(flat, (N, C, D * H * W)), axis=2)
                out = out + gathered.reshape(N, C, D, H, W) * wt[:, None]
    return out


if __name__ == "__main__":
    # Small shapes consistent with the 3-D (D, H, W) module.
    N, C, D, H, W = 2, 3, 4, 8, 16
    key = jax.random.PRNGKey(0)
    k_img, k_flow = jax.random.split(key)
    img = jax.random.normal(k_img, (N, C, D, H, W), dtype=jnp.float32)
    flow = 2.0 * jax.random.normal(k_flow, (N, 3, D, H, W), dtype=jnp.float32)

    out = register_st_model(img, flow)
    jax.block_until_ready(out)

    ref = _reference(img, flow)
    assert out.shape == (N, C, D, H, W)
    assert jnp.allclose(out, ref, atol=1e-4, rtol=1e-4), (
        float(jnp.max(jnp.abs(out - ref))))
    print("KERNEL_OK")
</pallas_src>

<mosaic_0001>
module attributes {stable_mosaic.version = 11 : i64} {
  func.func @_st_kernel(%arg0: i32, %arg1: i32, %arg2: memref<3x512xf32, #tpu.memory_space<vmem>>, %arg3: memref<1x3x512xf32, #tpu.memory_space<vmem>>, %arg4: memref<1x3x512xf32, #tpu.memory_space<vmem>>, %arg5: memref<1x3x512xf32, #tpu.memory_space<vmem>>) attributes {dimension_semantics = [#tpu.dimension_semantics<parallel>, #tpu.dimension_semantics<parallel>], iteration_bounds = array<i64: 2, 1>, scalar_prefetch = 0 : i64, scratch_operands = 0 : i64, tpu.core_type = #tpu.core_type<tc>, window_params = [{transform_indices = @transform_0, window_bounds = array<i64: 3, 512>}, {transform_indices = @transform_1, window_bounds = array<i64: 1, 3, 512>}, {transform_indices = @transform_2, window_bounds = array<i64: 1, 3, 512>}, {transform_indices = @transform_3, window_bounds = array<i64: 1, 3, 512>}]} {
    %c0 = arith.constant 0 : index
    %c0_0 = arith.constant 0 : index
    %c0_1 = arith.constant 0 : index
    %0 = vector.load %arg4[%c0, %c0_0, %c0_1] : memref<1x3x512xf32, #tpu.memory_space<vmem>>, vector<1x3x512xf32>
    %1 = vector.shape_cast %0 : vector<1x3x512xf32> to vector<3x512xf32>
    %c0_2 = arith.constant 0 : index
    %c0_3 = arith.constant 0 : index
    %2 = vector.load %arg2[%c0_2, %c0_3] : memref<3x512xf32, #tpu.memory_space<vmem>>, vector<3x512xf32>
    %c0_4 = arith.constant 0 : index
    %c0_5 = arith.constant 0 : index
    %c0_6 = arith.constant 0 : index
    %3 = vector.load %arg3[%c0_4, %c0_5, %c0_6] : memref<1x3x512xf32, #tpu.memory_space<vmem>>, vector<1x3x512xf32>
    %4 = vector.shape_cast %3 : vector<1x3x512xf32> to vector<3x512xf32>
    %5 = arith.addf %2, %4 : vector<3x512xf32>
    %6 = math.floor %5 : vector<3x512xf32>
    %7 = arith.fptosi %6 : vector<3x512xf32> to vector<3x512xi32>
    %8 = arith.subf %5, %6 : vector<3x512xf32>
    %cst = arith.constant 1.000000e+00 : f32
    %9 = vector.broadcast %cst : f32 to vector<3x512xf32>
    %10 = arith.subf %9, %8 : vector<3x512xf32>
    %11 = vector.extract_strided_slice %7 {offsets = [0, 0], sizes = [1, 512], strides = [1, 1]} : vector<3x512xi32> to vector<1x512xi32>
    %12 = vector.extract_strided_slice %7 {offsets = [1, 0], sizes = [1, 512], strides = [1, 1]} : vector<3x512xi32> to vector<1x512xi32>
    %13 = vector.extract_strided_slice %7 {offsets = [2, 0], sizes = [1, 512], strides = [1, 1]} : vector<3x512xi32> to vector<1x512xi32>
    %c128_i32 = arith.constant 128 : i32
    %14 = vector.broadcast %c128_i32 : i32 to vector<1x512xi32>
    %15 = arith.muli %11, %14 : vector<1x512xi32>
    %c16_i32 = arith.constant 16 : i32
    %16 = vector.broadcast %c16_i32 : i32 to vector<1x512xi32>
    %17 = arith.muli %12, %16 : vector<1x512xi32>
    %18 = arith.addi %15, %17 : vector<1x512xi32>
    %19 = arith.addi %18, %13 : vector<1x512xi32>
    %c0_i32 = arith.constant 0 : i32
    %20 = vector.broadcast %c0_i32 : i32 to vector<1x512xi32>
    %21 = arith.cmpi sge, %11, %20 : vector<1x512xi32>
    %c4_i32 = arith.constant 4 : i32
    %22 = vector.broadcast %c4_i32 : i32 to vector<1x512xi32>
    %23 = arith.cmpi slt, %11, %22 : vector<1x512xi32>
    %24 = arith.andi %21, %23 : vector<1x512xi1>
    %c-1_i32 = arith.constant -1 : i32
    %25 = vector.broadcast %c-1_i32 : i32 to vector<1x512xi32>
    %26 = arith.cmpi sge, %11, %25 : vector<1x512xi32>
    %c3_i32 = arith.constant 3 : i32
    %27 = vector.broadcast %c3_i32 : i32 to vector<1x512xi32>
    %28 = arith.cmpi slt, %11, %27 : vector<1x512xi32>
    %29 = arith.andi %26, %28 : vector<1x512xi1>
    %c0_i32_7 = arith.constant 0 : i32
    %30 = vector.broadcast %c0_i32_7 : i32 to vector<1x512xi32>
    %31 = arith.cmpi sge, %12, %30 : vector<1x512xi32>
    %c8_i32 = arith.constant 8 : i32
    %32 = vector.broadcast %c8_i32 : i32 to vector<1x512xi32>
    %33 = arith.cmpi slt, %12, %32 : vector<1x512xi32>
    %34 = arith.andi %31, %33 : vector<1x512xi1>
    %c-1_i32_8 = arith.constant -1 : i32
    %35 = vector.broadcast %c-1_i32_8 : i32 to vector<1x512xi32>
    %36 = arith.cmpi sge, %12, %35 : vector<1x512xi32>
    %c7_i32 = arith.constant 7 : i32
    %37 = vector.broadcast %c7_i32 : i32 to vector<1x512xi32>
    %38 = arith.cmpi slt, %12, %37 : vector<1x512xi32>
    %39 = arith.andi %36, %38 : vector<1x512xi1>
    %c0_i32_9 = arith.constant 0 : i32
    %40 = vector.broadcast %c0_i32_9 : i32 to vector<1x512xi32>
    %41 = arith.cmpi sge, %13, %40 : vector<1x512xi32>
    %c16_i32_10 = arith.constant 16 : i32
    %42 = vector.broadcast %c16_i32_10 : i32 to vector<1x512xi32>
    %43 = arith.cmpi slt, %13, %42 : vector<1x512xi32>
    %44 = arith.andi %41, %43 : vector<1x512xi1>
    %c-1_i32_11 = arith.constant -1 : i32
    %45 = vector.broadcast %c-1_i32_11 : i32 to vector<1x512xi32>
    %46 = arith.cmpi sge, %13, %45 : vector<1x512xi32>
    %c15_i32 = arith.constant 15 : i32
    %47 = vector.broadcast %c15_i32 : i32 to vector<1x512xi32>
    %48 = arith.cmpi slt, %13, %47 : vector<1x512xi32>
    %49 = arith.andi %46, %48 : vector<1x512xi1>
    %50 = vector.extract_strided_slice %10 {offsets = [0, 0], sizes = [1, 512], strides = [1, 1]} : vector<3x512xf32> to vector<1x512xf32>
    %51 = vector.extract_strided_slice %8 {offsets = [0, 0], sizes = [1, 512], strides = [1, 1]} : vector<3x512xf32> to vector<1x512xf32>
    %52 = vector.extract_strided_slice %10 {offsets = [1, 0], sizes = [1, 512], strides = [1, 1]} : vector<3x512xf32> to vector<1x512xf32>
    %53 = vector.extract_strided_slice %8 {offsets = [1, 0], sizes = [1, 512], strides = [1, 1]} : vector<3x512xf32> to vector<1x512xf32>
    %54 = vector.extract_strided_slice %10 {offsets = [2, 0], sizes = [1, 512], strides = [1, 1]} : vector<3x512xf32> to vector<1x512xf32>
    %55 = vector.extract_strided_slice %8 {offsets = [2, 0], sizes = [1, 512], strides = [1, 1]} : vector<3x512xf32> to vector<1x512xf32>
    %56 = tpu.iota {dimensions = array<i32: 0>} : vector<512x512xi32>
    %cst_12 = arith.constant 0.000000e+00 : f32
    %57 = vector.broadcast %cst_12 : f32 to vector<512x512xf32>
    %58 = arith.mulf %50, %52 : vector<1x512xf32>
    %59 = arith.mulf %58, %54 : vector<1x512xf32>
    %60 = arith.andi %24, %34 : vector<1x512xi1>
    %61 = arith.andi %60, %44 : vector<1x512xi1>
    %62 = arith.extui %61 : vector<1x512xi1> to vector<1x512xi32>
    %63 = arith.sitofp %62 : vector<1x512xi32> to vector<1x512xf32>
    %64 = arith.mulf %59, %63 : vector<1x512xf32>
    %c0_i32_13 = arith.constant 0 : i32
    %65 = vector.broadcast %c0_i32_13 : i32 to vector<1x512xi32>
    %66 = arith.addi %19, %65 : vector<1x512xi32>
    %67 = vector.broadcast %66 : vector<1x512xi32> to vector<512x512xi32>
    %68 = arith.cmpi eq, %56, %67 : vector<512x512xi32>
    %cst_14 = arith.constant 0.000000e+00 : f32
    %69 = vector.shape_cast %64 : vector<1x512xf32> to vector<1x512xf32>
    %70 = vector.broadcast %69 : vector<1x512xf32> to vector<512x512xf32>
    %71 = vector.broadcast %cst_14 : f32 to vector<512x512xf32>
    %72 = arith.select %68, %70, %71 : vector<512x512xi1>, vector<512x512xf32>
    %73 = arith.addf %57, %72 : vector<512x512xf32>
    %74 = arith.mulf %50, %52 : vector<1x512xf32>
    %75 = arith.mulf %74, %55 : vector<1x512xf32>
    %76 = arith.andi %24, %34 : vector<1x512xi1>
    %77 = arith.andi %76, %49 : vector<1x512xi1>
    %78 = arith.extui %77 : vector<1x512xi1> to vector<1x512xi32>
    %79 = arith.sitofp %78 : vector<1x512xi32> to vector<1x512xf32>
    %80 = arith.mulf %75, %79 : vector<1x512xf32>
    %c1_i32 = arith.constant 1 : i32
    %81 = vector.broadcast %c1_i32 : i32 to vector<1x512xi32>
    %82 = arith.addi %19, %81 : vector<1x512xi32>
    %83 = vector.broadcast %82 : vector<1x512xi32> to vector<512x512xi32>
    %84 = arith.cmpi eq, %56, %83 : vector<512x512xi32>
    %cst_15 = arith.constant 0.000000e+00 : f32
    %85 = vector.shape_cast %80 : vector<1x512xf32> to vector<1x512xf32>
    %86 = vector.broadcast %85 : vector<1x512xf32> to vector<512x512xf32>
    %87 = vector.broadcast %cst_15 : f32 to vector<512x512xf32>
    %88 = arith.select %84, %86, %87 : vector<512x512xi1>, vector<512x512xf32>
    %89 = arith.addf %73, %88 : vector<512x512xf32>
    %90 = arith.mulf %50, %53 : vector<1x512xf32>
    %91 = arith.mulf %90, %54 : vector<1x512xf32>
    %92 = arith.andi %24, %39 : vector<1x512xi1>
    %93 = arith.andi %92, %44 : vector<1x512xi1>
    %94 = arith.extui %93 : vector<1x512xi1> to vector<1x512xi32>
    %95 = arith.sitofp %94 : vector<1x512xi32> to vector<1x512xf32>
    %96 = arith.mulf %91, %95 : vector<1x512xf32>
    %c16_i32_16 = arith.constant 16 : i32
    %97 = vector.broadcast %c16_i32_16 : i32 to vector<1x512xi32>
    %98 = arith.addi %19, %97 : vector<1x512xi32>
    %99 = vector.broadcast %98 : vector<1x512xi32> to vector<512x512xi32>
    %100 = arith.cmpi eq, %56, %99 : vector<512x512xi32>
    %cst_17 = arith.constant 0.000000e+00 : f32
    %101 = vector.shape_cast %96 : vector<1x512xf32> to vector<1x512xf32>
    %102 = vector.broadcast %101 : vector<1x512xf32> to vector<512x512xf32>
    %103 = vector.broadcast %cst_17 : f32 to vector<512x512xf32>
    %104 = arith.select %100, %102, %103 : vector<512x512xi1>, vector<512x512xf32>
    %105 = arith.addf %89, %104 : vector<512x512xf32>
    %106 = arith.mulf %50, %53 : vector<1x512xf32>
    %107 = arith.mulf %106, %55 : vector<1x512xf32>
    %108 = arith.andi %24, %39 : vector<1x512xi1>
    %109 = arith.andi %108, %49 : vector<1x512xi1>
    %110 = arith.extui %109 : vector<1x512xi1> to vector<1x512xi32>
    %111 = arith.sitofp %110 : vector<1x512xi32> to vector<1x512xf32>
    %112 = arith.mulf %107, %111 : vector<1x512xf32>
    %c17_i32 = arith.constant 17 : i32
    %113 = vector.broadcast %c17_i32 : i32 to vector<1x512xi32>
    %114 = arith.addi %19, %113 : vector<1x512xi32>
    %115 = vector.broadcast %114 : vector<1x512xi32> to vector<512x512xi32>
    %116 = arith.cmpi eq, %56, %115 : vector<512x512xi32>
    %cst_18 = arith.constant 0.000000e+00 : f32
    %117 = vector.shape_cast %112 : vector<1x512xf32> to vector<1x512xf32>
    %118 = vector.broadcast %117 : vector<1x512xf32> to vector<512x512xf32>
    %119 = vector.broadcast %cst_18 : f32 to vector<512x512xf32>
    %120 = arith.select %116, %118, %119 : vector<512x512xi1>, vector<512x512xf32>
    %121 = arith.addf %105, %120 : vector<512x512xf32>
    %122 = arith.mulf %51, %52 : vector<1x512xf32>
    %123 = arith.mulf %122, %54 : vector<1x512xf32>
    %124 = arith.andi %29, %34 : vector<1x512xi1>
    %125 = arith.andi %124, %44 : vector<1x512xi1>
    %126 = arith.extui %125 : vector<1x512xi1> to vector<1x512xi32>
    %127 = arith.sitofp %126 : vector<1x512xi32> to vector<1x512xf32>
    %128 = arith.mulf %123, %127 : vector<1x512xf32>
    %c128_i32_19 = arith.constant 128 : i32
    %129 = vector.broadcast %c128_i32_19 : i32 to vector<1x512xi32>
    %130 = arith.addi %19, %129 : vector<1x512xi32>
    %131 = vector.broadcast %130 : vector<1x512xi32> to vector<512x512xi32>
    %132 = arith.cmpi eq, %56, %131 : vector<512x512xi32>
    %cst_20 = arith.constant 0.000000e+00 : f32
    %133 = vector.shape_cast %128 : vector<1x512xf32> to vector<1x512xf32>
    %134 = vector.broadcast %133 : vector<1x512xf32> to vector<512x512xf32>
    %135 = vector.broadcast %cst_20 : f32 to vector<512x512xf32>
    %136 = arith.select %132, %134, %135 : vector<512x512xi1>, vector<512x512xf32>
    %137 = arith.addf %121, %136 : vector<512x512xf32>
    %138 = arith.mulf %51, %52 : vector<1x512xf32>
    %139 = arith.mulf %138, %55 : vector<1x512xf32>
    %140 = arith.andi %29, %34 : vector<1x512xi1>
    %141 = arith.andi %140, %49 : vector<1x512xi1>
    %142 = arith.extui %141 : vector<1x512xi1> to vector<1x512xi32>
    %143 = arith.sitofp %142 : vector<1x512xi32> to vector<1x512xf32>
    %144 = arith.mulf %139, %143 : vector<1x512xf32>
    %c129_i32 = arith.constant 129 : i32
    %145 = vector.broadcast %c129_i32 : i32 to vector<1x512xi32>
    %146 = arith.addi %19, %145 : vector<1x512xi32>
    %147 = vector.broadcast %146 : vector<1x512xi32> to vector<512x512xi32>
    %148 = arith.cmpi eq, %56, %147 : vector<512x512xi32>
    %cst_21 = arith.constant 0.000000e+00 : f32
    %149 = vector.shape_cast %144 : vector<1x512xf32> to vector<1x512xf32>
    %150 = vector.broadcast %149 : vector<1x512xf32> to vector<512x512xf32>
    %151 = vector.broadcast %cst_21 : f32 to vector<512x512xf32>
    %152 = arith.select %148, %150, %151 : vector<512x512xi1>, vector<512x512xf32>
    %153 = arith.addf %137, %152 : vector<512x512xf32>
    %154 = arith.mulf %51, %53 : vector<1x512xf32>
    %155 = arith.mulf %154, %54 : vector<1x512xf32>
    %156 = arith.andi %29, %39 : vector<1x512xi1>
    %157 = arith.andi %156, %44 : vector<1x512xi1>
    %158 = arith.extui %157 : vector<1x512xi1> to vector<1x512xi32>
    %159 = arith.sitofp %158 : vector<1x512xi32> to vector<1x512xf32>
    %160 = arith.mulf %155, %159 : vector<1x512xf32>
    %c144_i32 = arith.constant 144 : i32
    %161 = vector.broadcast %c144_i32 : i32 to vector<1x512xi32>
    %162 = arith.addi %19, %161 : vector<1x512xi32>
    %163 = vector.broadcast %162 : vector<1x512xi32> to vector<512x512xi32>
    %164 = arith.cmpi eq, %56, %163 : vector<512x512xi32>
    %cst_22 = arith.constant 0.000000e+00 : f32
    %165 = vector.shape_cast %160 : vector<1x512xf32> to vector<1x512xf32>
    %166 = vector.broadcast %165 : vector<1x512xf32> to vector<512x512xf32>
    %167 = vector.broadcast %cst_22 : f32 to vector<512x512xf32>
    %168 = arith.select %164, %166, %167 : vector<512x512xi1>, vector<512x512xf32>
    %169 = arith.addf %153, %168 : vector<512x512xf32>
    %170 = arith.mulf %51, %53 : vector<1x512xf32>
    %171 = arith.mulf %170, %55 : vector<1x512xf32>
    %172 = arith.andi %29, %39 : vector<1x512xi1>
    %173 = arith.andi %172, %49 : vector<1x512xi1>
    %174 = arith.extui %173 : vector<1x512xi1> to vector<1x512xi32>
    %175 = arith.sitofp %174 : vector<1x512xi32> to vector<1x512xf32>
    %176 = arith.mulf %171, %175 : vector<1x512xf32>
    %c145_i32 = arith.constant 145 : i32
    %177 = vector.broadcast %c145_i32 : i32 to vector<1x512xi32>
    %178 = arith.addi %19, %177 : vector<1x512xi32>
    %179 = vector.broadcast %178 : vector<1x512xi32> to vector<512x512xi32>
    %180 = arith.cmpi eq, %56, %179 : vector<512x512xi32>
    %cst_23 = arith.constant 0.000000e+00 : f32
    %181 = vector.shape_cast %176 : vector<1x512xf32> to vector<1x512xf32>
    %182 = vector.broadcast %181 : vector<1x512xf32> to vector<512x512xf32>
    %183 = vector.broadcast %cst_23 : f32 to vector<512x512xf32>
    %184 = arith.select %180, %182, %183 : vector<512x512xi1>, vector<512x512xf32>
    %185 = arith.addf %169, %184 : vector<512x512xf32>
    %cst_24 = arith.constant dense<0.000000e+00> : vector<3x512xf32>
    %186 = tpu.matmul %1, %185, %cst_24 {dimension_numbers = #tpu.dot_dimension_numbers<[1], [0], [0], [1], [0, 0, 1, 1], [], []>} : vector<3x512xf32>, vector<512x512xf32>, vector<3x512xf32> -> vector<3x512xf32>
    %c0_25 = arith.constant 0 : index
    %c0_26 = arith.constant 0 : index
    %c0_27 = arith.constant 0 : index
    %187 = vector.load %arg5[%c0_25, %c0_26, %c0_27] : memref<1x3x512xf32, #tpu.memory_space<vmem>>, vector<1x3x512xf32>
    %188 = vector.shape_cast %187 : vector<1x3x512xf32> to vector<3x512xf32>
    %189 = vector.shape_cast %186 : vector<3x512xf32> to vector<1x3x512xf32>
    tpu.vector_store %arg5[%c0_25, %c0_26, %c0_27], %189 {strides = array<i32>} : memref<1x3x512xf32, #tpu.memory_space<vmem>>, vector<1x3x512xf32>,
    return
  }
  func.func @transform_0(%arg0: i32, %arg1: i32) -> (i32, i32) {
    %c0_i32 = arith.constant 0 : i32
    %c0_i32_0 = arith.constant 0 : i32
    return %c0_i32, %arg1 : i32, i32
  }
  func.func @transform_1(%arg0: i32, %arg1: i32) -> (i32, i32, i32) {
    %c0_i32 = arith.constant 0 : i32
    %c0_i32_0 = arith.constant 0 : i32
    return %arg0, %c0_i32, %arg1 : i32, i32, i32
  }
  func.func @transform_2(%arg0: i32, %arg1: i32) -> (i32, i32, i32) {
    %c0_i32 = arith.constant 0 : i32
    %c0_i32_0 = arith.constant 0 : i32
    %c0_i32_1 = arith.constant 0 : i32
    return %arg0, %c0_i32, %c0_i32_0 : i32, i32, i32
  }
  func.func @transform_3(%arg0: i32, %arg1: i32) -> (i32, i32, i32) {
    %c0_i32 = arith.constant 0 : i32
    %c0_i32_0 = arith.constant 0 : i32
    return %arg0, %c0_i32, %arg1 : i32, i32, i32
  }
}

</mosaic_0001>

<bundles_post_ra>
// kernel: tpu_custom_call.1
= control target key start
LH: loop header
LB: loop body
LE: loop exit
PB: predicated region body
PF: predicated region fallthrough
CT: control target
= control target key end

     0   :  { %s7459_s12 = smov 0   ;;  %s7461_s13 = smov 0   ;;  %s14634_s0 = inlined_call_operand.vmem [shape: f32[3,512], index: 0, kind: input, shape index: {}]   ;;  %s14635_s1 = inlined_call_operand.vmem [shape: f32[2,3,512], index: 1, kind: input, shape index: {}]   ;;  %s14636_s2 = inlined_call_operand.vmem [shape: f32[2,3,512], index: 2, kind: input, shape index: {}]   ;;  %s14637_s3 = inlined_call_operand.vmem [shape: f32[2,3,512], index: 3, kind: output, shape index: {}]  }
   0x1   :  { %s7463_s14 = smov 0  }
   0x2 LB: > { %s25_s15 = sadd.s32 1, %s7431_s13  ;;  %p7332_p0 = scmp.ge.s32.totalorder %s7435_s14, 1  ;;  %s7435_s14 = sphi %s7463_s14, %s13_s14   ;;  %s7431_s13 = sphi %s7461_s13, %s15131_s13   ;;  %s7427_s12 = sphi %s7459_s12, %s15130_s12  }
   0x3   : > { %p27_p1 = scmp.ge.s32.totalorder %s25_s15, 2  ;;  %p179_p2 = scmp.lt.s32.totalorder %s7435_s14, 3 }
   0x5   : > { %s15133_s15 = smov (%p27_p1, %s25_s15), 0  ;;  %p180_p3 = pnand %p7332_p0, %p179_p2 }
   0x7   : > { %183 = sbr.rel (%p180_p3) target bundleno = 1725 (0x6bd), region = 32 }
   0xc   : > { %p228_p4 = scmp.lt.s32.totalorder %s7427_s12, 1  ;;  %v254_v0 = vld [vmem:[%s14634_s0] sm:$0x77]  ;;  %v312_v1 = vlaneseq  ;;  %v255_v2 = vld [vmem:[%s14634_s0 + $0x8] sm:$0x77]  ;;  %v14640_v30 = vmov 0  }
   0xd   : > { %v14638_v57 = vmov 0.0  }
   0xe   : > { %s15135_s12 = smov (!%p228_p4, %s7427_s12), 1  ;;  %v7489_v6 = vshrl.u32 %v312_v1, 7 }
   0xf   : > { %s7477_s16 = sshll.u32 %s15135_s12, 4 }
  0x10   : > { %s235_s21 = scalar_lea.vmem %s14635_s1, %s7477_s16  ;;  %v7496_v11 = vadd.s32 376, %v7489_v6  ;;  %v7499_v12 = vadd.s32 368, %v7489_v6  ;;  %v7502_v13 = vadd.s32 504, %v7489_v6  ;;  %v7520_v27 = vadd.s32 120, %v7489_v6  ;;  %s10411_s26 = scalar_lea.vmem %s14636_s2, %s7477_s16 }
  0x11   : > { %v256_v3 = vld [vmem:[%s235_s21] sm:$0x77]  ;;  %v257_v4 = vld [vmem:[%s235_s21 + $0x8] sm:$0x77]  ;;  %s250_s29 = scalar_lea.vmem %s14637_s3, %s7477_s16 }
  0x12   : > { %v258_v5 = vadd.f32 %v256_v3, %v254_v0  ;;  %v7491_v7 = vadd.f32 %v257_v4, %v255_v2  ;;  %14863 = vst [vmem:[#allocation2_spill] sm:$0xff] %v7496_v11 }
  0x14   : > { %v260_v8 = vfloor.f32 %v258_v5 }
  0x16   : > { %v7373_v9 = vcvt.f32.s32 %v260_v8  ;;  %v7493_v10 = vsub.f32 %v258_v5, %v260_v8 }
  0x18   : > { %v266_v15 = vsub.f32 1.0, %v7493_v10  ;;  %v268_v16 = vmul.u32 128, %v7373_v9  ;;  %v270_v17 = vmul.u32 16, %v7373_v9  ;;  %v7341_v18 = vrot.slane %v7373_v9, 10 }
  0x19   : > { %vm284_vm0 = vcmp.ge.s32.totalorder %v7373_v9, 0  ;;  %vm286_vm1 = vcmp.lt.s32.totalorder %v7373_v9, 4  ;;  %vm292_vm2 = vcmp.lt.s32.totalorder %v7373_v9, 3  ;;  %vm290_vm4 = vcmp.ge.s32.totalorder %v7373_v9, 4294967295 }
  0x1a   : > { %v7339_v19 = vrot.slane %v270_v17, 9  ;;  %vm7507_vm3 = vmand %vm284_vm0, %vm286_vm1  ;;  %vm296_vm5 = vcmp.lt.s32.totalorder %v7373_v9, 8  ;;  %vm300_vm6 = vcmp.lt.s32.totalorder %v7373_v9, 7  ;;  %vm304_vm8 = vcmp.lt.s32.totalorder %v7373_v9, 16 }
  0x1b   : > { %vm7512_vm7 = vmand %vm290_vm4, %vm292_vm2  ;;  %v379_v22 = vrot.slane %v266_v15, 5  ;;  %v387_v23 = vrot.slane %v266_v15, 6  ;;  %v1213_v24 = vrot.slane %v7493_v10, 6  ;;  %vm308_vm10 = vcmp.lt.s32.totalorder %v7373_v9, 15 }
  0x1c   : > { %v276_v25 = vadd.s32 %v7339_v19, %v268_v16  ;;  %vm298_vm9 = vmand %vm284_vm0, %vm296_vm5  ;;  %v2029_v26 = vrot.slane %v7493_v10, 5 }
  0x1d   : > { %vm302_vm11 = vmand %vm290_vm4, %vm300_vm6  ;;  %v380_v28 = vrot.slane %v379_v22, 4  ;;  %v7523_v29 = vrot.slane %v387_v23, 4  ;;  %v395_v31 = vsel %vm298_vm9, 1, %v14640_v30  ;;  %v7526_v32 = vrot.slane %v1213_v24, 4 }
  0x1e   : > { %v7528_v33 = vadd.s32 %v7341_v18, %v276_v25  ;;  %vm306_vm12 = vmand %vm284_vm0, %vm304_vm8  ;;  %v7343_v34 = vrot.slane %v395_v31, 9  ;;  %v7532_v35 = vrot.slane %v2029_v26, 4  ;;  %v2039_v36 = vsel %vm302_vm11, 1, %v14640_v30 }
  0x1f   : > { %vm310_vm13 = vmand %vm290_vm4, %vm308_vm10  ;;  %v385_v37 = vmul.f32 %v380_v28, %v266_v15  ;;  %v405_v38 = vsel %vm306_vm12, 1, %v14640_v30  ;;  %v7353_v39 = vrot.slane %v2039_v36, 9  ;;  %v3651_v40 = vmul.f32 %v380_v28, %v7493_v10 }
  0x20   : > { %vm7538_vm14 = vcmp.ne.s32.totalorder %v7343_v34, 0  ;;  %v7345_v42 = vrot.slane %v405_v38, 10  ;;  %v421_v43 = vperm.slane %v7528_v33, 0  ;;  %v1221_v44 = vsel %vm310_vm13, 1, %v14640_v30 }
  0x21   : > { %v393_v45 = vmul.f32 %v7523_v29, %v385_v37  ;;  %vm403_vm15 = vmand %vm7507_vm3, %vm7538_vm14  ;;  %v1219_v46 = vmul.f32 %v7526_v32, %v385_v37  ;;  %v7349_v47 = vrot.slane %v1221_v44, 10  ;;  %v7551_v48 = vadd.s32 1, %v7528_v33 }
  0x22   : > { %vm7553_vm0 = vcmp.ne.s32.totalorder %v7345_v42, 0  ;;  %v7557_v50 = vperm.slane %v421_v43, 0  ;;  %v2035_v51 = vmul.f32 %v7532_v35, %v266_v15  ;;  %vm7560_vm1 = vcmp.ne.s32.totalorder %v7353_v39, 0  ;;  %vm3655_vm2 = vmand %vm7512_vm7, %vm7538_vm14 }
  0x23   : > { %vm413_vm4 = vmand %vm403_vm15, %vm7553_vm0  ;;  %vm7575_vm5 = vcmp.ne.s32.totalorder %v7349_v47, 0  ;;  %v1239_v54 = vperm.slane %v7551_v48, 0  ;;  %v7581_v55 = vadd.s32 16, %v7528_v33  ;;  %v7584_v56 = vadd.s32 17, %v7528_v33 }
  0x24   : > { %v7347_v58 = vsel %vm413_vm4, 1.0, %v14638_v57  ;;  %vm617_vm6 = vcmp.eq.s32.totalorder %v7496_v11, %v7557_v50  ;;  %vm1229_vm8 = vmand %vm403_vm15, %vm7575_vm5  ;;  %v2037_v59 = vmul.f32 %v2035_v51, %v7523_v29  ;;  %v2849_v60 = vmul.f32 %v2035_v51, %v7526_v32 }
  0x25   : > { %v7598_v61 = vmul.f32 %v7347_v58, %v393_v45  ;;  %v7351_v62 = vsel %vm1229_vm8, 1.0, %v14638_v57  ;;  %v7601_v63 = vperm.slane %v1239_v54, 0  ;;  %vm2047_vm9 = vmand %vm7507_vm3, %vm7560_vm1  ;;  %v2059_v0 = vperm.slane %v7581_v55, 0 }
  0x26   : > { %v7608_v1 = vmul.f32 %v7351_v62, %v1219_v46  ;;  %vm2049_vm10 = vmand %vm2047_vm9, %vm7553_vm0  ;;  %v2861_v2 = vperm.slane %v7584_v56, 0  ;;  %v3653_v3 = vmul.f32 %v3651_v40, %v7523_v29  ;;  %v7615_v4 = vadd.s32 128, %v7528_v33 }
  0x27   : > { %v687_v5 = vperm.slane %v7598_v61, 0  ;;  %vm1435_vm11 = vcmp.eq.s32.totalorder %v7496_v11, %v7601_v63  ;;  %v7355_v8 = vsel %vm2049_vm10, 1.0, %v14638_v57  ;;  %v7621_v9 = vperm.slane %v2059_v0, 0  ;;  %vm2851_vm3 = vmand %vm2047_vm9, %vm7575_vm5 }
  0x28   : > { %v1505_v15 = vperm.slane %v7608_v1, 0  ;;  %v7626_v16 = vmul.f32 %v7355_v8, %v2037_v59  ;;  %v7357_v17 = vsel %vm2851_vm3, 1.0, %v14638_v57  ;;  %v7629_v18 = vperm.slane %v2861_v2, 0  ;;  %vm3657_vm12 = vmand %vm3655_vm2, %vm7553_vm0 }
  0x29   : > { %v7638_v19 = vperm.slane %v687_v5, 0  ;;  %vm2255_vm13 = vcmp.eq.s32.totalorder %v7496_v11, %v7621_v9  ;;  %v7642_v20 = vmul.f32 %v7357_v17, %v2849_v60  ;;  %v7359_v22 = vsel %vm3657_vm12, 1.0, %v14638_v57  ;;  %vm4459_vm15 = vmand %vm3655_vm2, %vm7575_vm5 }
  0x2a   : > { %v7652_v23 = vperm.slane %v1505_v15, 0  ;;  %v2325_v24 = vperm.slane %v7626_v16, 0  ;;  %vm3057_vm4 = vcmp.eq.s32.totalorder %v7496_v11, %v7629_v18  ;;  %v7657_v25 = vmul.f32 %v7359_v22, %v3653_v3  ;;  %vm5263_vm8 = vmand %vm7512_vm7, %vm7560_vm1 }
  0x2b   : > { %v887_v26 = vsel %vm617_vm6, %v7638_v19, 0.0  ;;  %v3127_v28 = vperm.slane %v7642_v20, 0  ;;  %v3667_v31 = vperm.slane %v7615_v4, 0  ;;  %v4457_v34 = vmul.f32 %v3651_v40, %v7526_v32  ;;  %vm5265_vm14 = vmand %vm5263_vm8, %vm7553_vm0 }
  0x2c   : > { %v1705_v36 = vsel %vm1435_vm11, %v7652_v23, 0.0  ;;  %v7674_v37 = vperm.slane %v2325_v24, 0  ;;  %v3933_v38 = vperm.slane %v7657_v25, 0  ;;  %v7361_v39 = vsel %vm4459_vm15, 1.0, %v14638_v57  ;;  %vm6067_vm2 = vmand %vm5263_vm8, %vm7575_vm5 }
  0x2d   : > { %v1961_v41 = vadd.f32 %v1705_v36, %v887_v26  ;;  %v7678_v42 = vperm.slane %v3127_v28, 0  ;;  %v7680_v43 = vperm.slane %v3667_v31, 0  ;;  %v7682_v44 = vmul.f32 %v7361_v39, %v4457_v34 }
  0x2e   : > { %v2525_v40 = vsel %vm2255_vm13, %v7674_v37, 0.0  ;;  %v7695_v45 = vperm.slane %v3933_v38, 0  ;;  %v7698_v46 = vadd.s32 129, %v7528_v33  ;;  %v5259_v47 = vmul.f32 %v7532_v35, %v7493_v10 }
  0x2f   : > { %v2781_v49 = vadd.f32 %v2525_v40, %v1961_v41  ;;  %v3327_v51 = vsel %vm3057_vm4, %v7678_v42, 0.0  ;;  %vm3863_vm0 = vcmp.eq.s32.totalorder %v7496_v11, %v7680_v43  ;;  %v4735_v54 = vperm.slane %v7682_v44, 0 }
  0x30   : > { %v4133_v10 = vsel %vm3863_vm0, %v7695_v45, 0.0  ;;  %v4469_v35 = vperm.slane %v7698_v46, 0  ;;  %v5261_v58 = vmul.f32 %v5259_v47, %v7523_v29  ;;  %v7363_v59 = vsel %vm5265_vm14, 1.0, %v14638_v57 }
  0x31   : > { %v3583_v60 = vadd.f32 %v3327_v51, %v2781_v49  ;;  %v7720_v62 = vperm.slane %v4735_v54, 0  ;;  %v7723_v0 = vadd.s32 144, %v7528_v33  ;;  %v6065_v21 = vmul.f32 %v5259_v47, %v7526_v32 }
  0x32   : > { %v7726_v53 = vperm.slane %v4469_v35, 0  ;;  %v7728_v52 = vmul.f32 %v7363_v59, %v5261_v58  ;;  %v7365_v2 = vsel %vm6067_vm2, 1.0, %v14638_v57  ;;  %v7732_v3 = vadd.s32 145, %v7528_v33 }
  0x33   : > { %v4389_v29 = vadd.f32 %v4133_v10, %v3583_v60  ;;  %v5275_v5 = vperm.slane %v7723_v0, 0  ;;  %v7735_v8 = vmul.f32 %v7365_v2, %v6065_v21  ;;  %vm613_vm7 = vcmp.eq.s32.totalorder %v7499_v12, %v7557_v50 }
  0x34   : > { %vm4665_vm1 = vcmp.eq.s32.totalorder %v7496_v11, %v7726_v53  ;;  %v5541_v32 = vperm.slane %v7728_v52, 0  ;;  %v6077_v15 = vperm.slane %v7732_v3, 0  ;;  %v883_v17 = vsel %vm613_vm7, %v7638_v19, 0.0 }
  0x35   : > { %v4935_v22 = vsel %vm4665_vm1, %v7720_v62, 0.0  ;;  %v7745_v24 = vperm.slane %v5275_v5, 0  ;;  %v6343_v26 = vperm.slane %v7735_v8, 0  ;;  %vm1431_vm5 = vcmp.eq.s32.totalorder %v7499_v12, %v7601_v63 }
  0x36   : > { %v5191_v28 = vadd.f32 %v4935_v22, %v4389_v29  ;;  %v7750_v31 = vperm.slane %v5541_v32, 0  ;;  %v7752_v34 = vperm.slane %v6077_v15, 0  ;;  %v1701_v36 = vsel %vm1431_vm5, %v7652_v23, 0.0 }
  0x37   : > { %vm5471_vm6 = vcmp.eq.s32.totalorder %v7496_v11, %v7745_v24  ;;  %v7757_v38 = vperm.slane %v6343_v26, 0  ;;  %v1957_v39 = vadd.f32 %v1701_v36, %v883_v17  ;;  %vm2251_vm9 = vcmp.eq.s32.totalorder %v7499_v12, %v7621_v9 }
  0x38   : > { %v5741_v41 = vsel %vm5471_vm6, %v7750_v31, 0.0  ;;  %vm6273_vm10 = vcmp.eq.s32.totalorder %v7496_v11, %v7752_v34  ;;  %v2521_v40 = vsel %vm2251_vm9, %v7674_v37, 0.0  ;;  %vm3053_vm11 = vcmp.eq.s32.totalorder %v7499_v12, %v7629_v18 }
  0x39   : > { %v5997_v47 = vadd.f32 %v5741_v41, %v5191_v28  ;;  %v6543_v49 = vsel %vm6273_vm10, %v7757_v38, 0.0  ;;  %v2777_v51 = vadd.f32 %v2521_v40, %v1957_v39  ;;  %v3323_v54 = vsel %vm3053_vm11, %v7678_v42, 0.0 }
  0x3a   : > { %vm3859_vm3 = vcmp.eq.s32.totalorder %v7499_v12, %v7680_v43  ;;  %vm4661_vm12 = vcmp.eq.s32.totalorder %v7499_v12, %v7726_v53  ;;  %vm5467_vm13 = vcmp.eq.s32.totalorder %v7499_v12, %v7745_v24  ;;  %vm6269_vm15 = vcmp.eq.s32.totalorder %v7499_v12, %v7752_v34 }
  0x3b   : > { %v6799_v10 = vadd.f32 %v6543_v49, %v5997_v47  ;;  %v3579_v35 = vadd.f32 %v3323_v54, %v2777_v51  ;;  %v4129_v58 = vsel %vm3859_vm3, %v7695_v45, 0.0  ;;  %v4931_v59 = vsel %vm4661_vm12, %v7720_v62, 0.0 }
  0x3c   : > { %v5737_v60 = vsel %vm5467_vm13, %v7750_v31, 0.0  ;;  %v6539_v21 = vsel %vm6269_vm15, %v7757_v38, 0.0  ;;  %vm681_vm4 = vcmp.eq.s32.totalorder %v7502_v13, %v7557_v50  ;;  %vm1499_vm8 = vcmp.eq.s32.totalorder %v7502_v13, %v7601_v63 }
  0x3d   : > { %6920 = vmatpush.msra.mxu2 %v6799_v10  ;;  %v4385_v2 = vadd.f32 %v4129_v58, %v3579_v35  ;;  %v951_v29 = vsel %vm681_vm4, %v7638_v19, 0.0  ;;  %v1769_v5 = vsel %vm1499_vm8, %v7652_v23, 0.0  ;;  %vm2319_vm14 = vcmp.eq.s32.totalorder %v7502_v13, %v7621_v9 }
  0x3e   : > { %v2025_v32 = vadd.f32 %v1769_v5, %v951_v29  ;;  %v2589_v15 = vsel %vm2319_vm14, %v7674_v37, 0.0  ;;  %vm3121_vm0 = vcmp.eq.s32.totalorder %v7502_v13, %v7629_v18  ;;  %vm3927_vm2 = vcmp.eq.s32.totalorder %v7502_v13, %v7680_v43 }
  0x3f   : > { %v5187_v17 = vadd.f32 %v4931_v59, %v4385_v2  ;;  %v3391_v22 = vsel %vm3121_vm0, %v7678_v42, 0.0  ;;  %v4197_v26 = vsel %vm3927_vm2, %v7695_v45, 0.0  ;;  %vm4729_vm7 = vcmp.eq.s32.totalorder %v7502_v13, %v7726_v53 }
  0x40   : > { %v2845_v28 = vadd.f32 %v2589_v15, %v2025_v32  ;;  %v4999_v36 = vsel %vm4729_vm7, %v7720_v62, 0.0  ;;  %vm5535_vm1 = vcmp.eq.s32.totalorder %v7502_v13, %v7745_v24  ;;  %vm6337_vm5 = vcmp.eq.s32.totalorder %v7502_v13, %v7752_v34 }
  0x41   : > { %v5993_v39 = vadd.f32 %v5737_v60, %v5187_v17  ;;  %v5805_v41 = vsel %vm5535_vm1, %v7750_v31, 0.0  ;;  %v6607_v40 = vsel %vm6337_vm5, %v7757_v38, 0.0  ;;  %vm489_vm6 = vcmp.eq.s32.totalorder %v7520_v27, %v7557_v50 }
  0x42   : > { %v3647_v47 = vadd.f32 %v3391_v22, %v2845_v28  ;;  %v759_v49 = vsel %vm489_vm6, %v7638_v19, 0.0  ;;  %vm1307_vm9 = vcmp.eq.s32.totalorder %v7520_v27, %v7601_v63  ;;  %vm2127_vm10 = vcmp.eq.s32.totalorder %v7520_v27, %v7621_v9 }
  0x43   : > { %v6795_v51 = vadd.f32 %v6539_v21, %v5993_v39  ;;  %v1577_v54 = vsel %vm1307_vm9, %v7652_v23, 0.0  ;;  %v2397_v10 = vsel %vm2127_vm10, %v7674_v37, 0.0  ;;  %vm2929_vm11 = vcmp.eq.s32.totalorder %v7520_v27, %v7629_v18 }
  0x44   : > { %v4453_v35 = vadd.f32 %v4197_v26, %v3647_v47  ;;  %v1833_v58 = vadd.f32 %v1577_v54, %v759_v49  ;;  %v3199_v59 = vsel %vm2929_vm11, %v7678_v42, 0.0  ;;  %vm3735_vm3 = vcmp.eq.s32.totalorder %v7520_v27, %v7680_v43 }
  0x45   : > { %6921 = vmatpush.msra.mxu2 %v6795_v51  ;;  %v4005_v60 = vsel %vm3735_vm3, %v7695_v45, 0.0  ;;  %vm4537_vm12 = vcmp.eq.s32.totalorder %v7520_v27, %v7726_v53  ;;  %vm5343_vm13 = vcmp.eq.s32.totalorder %v7520_v27, %v7745_v24  ;;  %vm6145_vm15 = vcmp.eq.s32.totalorder %v7520_v27, %v7752_v34 }
  0x46   : > { %v5255_v21 = vadd.f32 %v4999_v36, %v4453_v35  ;;  %v2653_v2 = vadd.f32 %v2397_v10, %v1833_v58  ;;  %v4807_v29 = vsel %vm4537_vm12, %v7720_v62, 0.0  ;;  %v5613_v5 = vsel %vm5343_vm13, %v7750_v31, 0.0 }
  0x47   : > { %v6415_v32 = vsel %vm6145_vm15, %v7757_v38, 0.0  ;;  %v7830_v15 = vadd.s32 248, %v7489_v6  ;;  %v7833_v17 = vadd.s32 360, %v7489_v6  ;;  %v7836_v22 = vadd.s32 496, %v7489_v6 }
  0x48   : > { %v6061_v26 = vadd.f32 %v5805_v41, %v5255_v21  ;;  %v3455_v28 = vadd.f32 %v3199_v59, %v2653_v2  ;;  %v7839_v36 = vadd.s32 112, %v7489_v6  ;;  %v7842_v39 = vadd.s32 240, %v7489_v6 }
  0x49   : > { %vm553_vm4 = vcmp.eq.s32.totalorder %v7830_v15, %v7557_v50  ;;  %vm1371_vm8 = vcmp.eq.s32.totalorder %v7830_v15, %v7601_v63  ;;  %vm2191_vm14 = vcmp.eq.s32.totalorder %v7830_v15, %v7621_v9  ;;  %vm2993_vm0 = vcmp.eq.s32.totalorder %v7830_v15, %v7629_v18 }
  0x4a   : > { %14876 = vst [vmem:[#allocation3_spill] sm:$0xff] %v7842_v39  ;;  %v6863_v41 = vadd.f32 %v6607_v40, %v6061_v26  ;;  %v4261_v47 = vadd.f32 %v4005_v60, %v3455_v28  ;;  %v823_v49 = vsel %vm553_vm4, %v7638_v19, 0.0  ;;  %v1641_v51 = vsel %vm1371_vm8, %v7652_v23, 0.0 }
  0x4b   : > { %v1897_v54 = vadd.f32 %v1641_v51, %v823_v49  ;;  %v2461_v10 = vsel %vm2191_vm14, %v7674_v37, 0.0  ;;  %v3263_v35 = vsel %vm2993_vm0, %v7678_v42, 0.0  ;;  %vm3799_vm2 = vcmp.eq.s32.totalorder %v7830_v15, %v7680_v43 }
  0x4c   : > { %6940 = vmatpush.msra.mxu3 %v6863_v41  ;;  %v5063_v58 = vadd.f32 %v4807_v29, %v4261_v47  ;;  %v4069_v59 = vsel %vm3799_vm2, %v7695_v45, 0.0  ;;  %vm4601_vm7 = vcmp.eq.s32.totalorder %v7830_v15, %v7726_v53  ;;  %vm5407_vm1 = vcmp.eq.s32.totalorder %v7830_v15, %v7745_v24 }
  0x4d   : > { %v2717_v40 = vadd.f32 %v2461_v10, %v1897_v54  ;;  %v4871_v60 = vsel %vm4601_vm7, %v7720_v62, 0.0  ;;  %v5677_v21 = vsel %vm5407_vm1, %v7750_v31, 0.0  ;;  %vm6209_vm5 = vcmp.eq.s32.totalorder %v7830_v15, %v7752_v34 }
  0x4e   : > { %v5869_v2 = vadd.f32 %v5613_v5, %v5063_v58  ;;  %v6479_v26 = vsel %vm6209_vm5, %v7757_v38, 0.0  ;;  %vm609_vm6 = vcmp.eq.s32.totalorder %v7833_v17, %v7557_v50  ;;  %vm1427_vm9 = vcmp.eq.s32.totalorder %v7833_v17, %v7601_v63 }
  0x4f   : > { %v3519_v29 = vadd.f32 %v3263_v35, %v2717_v40  ;;  %v879_v28 = vsel %vm609_vm6, %v7638_v19, 0.0  ;;  %v1697_v41 = vsel %vm1427_vm9, %v7652_v23, 0.0  ;;  %vm2247_vm10 = vcmp.eq.s32.totalorder %v7833_v17, %v7621_v9 }
  0x50   : > { %v6671_v47 = vadd.f32 %v6415_v32, %v5869_v2  ;;  %v1953_v49 = vadd.f32 %v1697_v41, %v879_v28  ;;  %v2517_v5 = vsel %vm2247_vm10, %v7674_v37, 0.0  ;;  %vm3049_vm11 = vcmp.eq.s32.totalorder %v7833_v17, %v7629_v18 }
  0x51   : > { %v4325_v51 = vadd.f32 %v4069_v59, %v3519_v29  ;;  %v3319_v54 = vsel %vm3049_vm11, %v7678_v42, 0.0  ;;  %vm3855_vm3 = vcmp.eq.s32.totalorder %v7833_v17, %v7680_v43  ;;  %vm4657_vm12 = vcmp.eq.s32.totalorder %v7833_v17, %v7726_v53 }
  0x52   : > { %6880 = vmatpush.msra.mxu0 %v6671_v47  ;;  %v2773_v10 = vadd.f32 %v2517_v5, %v1953_v49  ;;  %v4125_v35 = vsel %vm3855_vm3, %v7695_v45, 0.0  ;;  %v4927_v32 = vsel %vm4657_vm12, %v7720_v62, 0.0  ;;  %vm5463_vm13 = vcmp.eq.s32.totalorder %v7833_v17, %v7745_v24 }
  0x53   : > { %v5127_v58 = vadd.f32 %v4871_v60, %v4325_v51  ;;  %v5733_v59 = vsel %vm5463_vm13, %v7750_v31, 0.0  ;;  %vm6265_vm15 = vcmp.eq.s32.totalorder %v7833_v17, %v7752_v34  ;;  %vm677_vm4 = vcmp.eq.s32.totalorder %v7836_v22, %v7557_v50 }
  0x54   : > { %v3575_v40 = vadd.f32 %v3319_v54, %v2773_v10  ;;  %v6535_v2 = vsel %vm6265_vm15, %v7757_v38, 0.0  ;;  %v947_v29 = vsel %vm677_vm4, %v7638_v19, 0.0  ;;  %vm1495_vm8 = vcmp.eq.s32.totalorder %v7836_v22, %v7601_v63 }
  0x55   : > { %v5933_v28 = vadd.f32 %v5677_v21, %v5127_v58  ;;  %v1765_v41 = vsel %vm1495_vm8, %v7652_v23, 0.0  ;;  %vm2315_vm14 = vcmp.eq.s32.totalorder %v7836_v22, %v7621_v9  ;;  %vm3117_vm0 = vcmp.eq.s32.totalorder %v7836_v22, %v7629_v18 }
  0x56   : > { %v4381_v60 = vadd.f32 %v4125_v35, %v3575_v40  ;;  %v2021_v47 = vadd.f32 %v1765_v41, %v947_v29  ;;  %v2585_v49 = vsel %vm2315_vm14, %v7674_v37, 0.0  ;;  %v3387_v5 = vsel %vm3117_vm0, %v7678_v42, 0.0 }
  0x57   : > { %v6735_v51 = vadd.f32 %v6479_v26, %v5933_v28  ;;  %vm3923_vm2 = vcmp.eq.s32.totalorder %v7836_v22, %v7680_v43  ;;  %vm4725_vm7 = vcmp.eq.s32.totalorder %v7836_v22, %v7726_v53  ;;  %vm5531_vm1 = vcmp.eq.s32.totalorder %v7836_v22, %v7745_v24 }
  0x58   : > { %v5183_v21 = vadd.f32 %v4927_v32, %v4381_v60  ;;  %v2841_v54 = vadd.f32 %v2585_v49, %v2021_v47  ;;  %v4193_v10 = vsel %vm3923_vm2, %v7695_v45, 0.0  ;;  %v4995_v35 = vsel %vm4725_vm7, %v7720_v62, 0.0 }
  0x59   : > { %6900 = vmatpush.msra.mxu1 %v6735_v51  ;;  %v5801_v58 = vsel %vm5531_vm1, %v7750_v31, 0.0  ;;  %vm6333_vm5 = vcmp.eq.s32.totalorder %v7836_v22, %v7752_v34  ;;  %vm485_vm6 = vcmp.eq.s32.totalorder %v7839_v36, %v7557_v50  ;;  %vm1303_vm9 = vcmp.eq.s32.totalorder %v7839_v36, %v7601_v63 }
  0x5a   : > { %v5989_v26 = vadd.f32 %v5733_v59, %v5183_v21  ;;  %v3643_v40 = vadd.f32 %v3387_v5, %v2841_v54  ;;  %v6603_v32 = vsel %vm6333_vm5, %v7757_v38, 0.0  ;;  %v755_v29 = vsel %vm485_vm6, %v7638_v19, 0.0 }
  0x5b   : > { %v1573_v28 = vsel %vm1303_vm9, %v7652_v23, 0.0  ;;  %vm2123_vm10 = vcmp.eq.s32.totalorder %v7839_v36, %v7621_v9  ;;  %vm2925_vm11 = vcmp.eq.s32.totalorder %v7839_v36, %v7629_v18  ;;  %vm3731_vm3 = vcmp.eq.s32.totalorder %v7839_v36, %v7680_v43 }
  0x5c   : > { %v6791_v41 = vadd.f32 %v6535_v2, %v5989_v26  ;;  %v4449_v60 = vadd.f32 %v4193_v10, %v3643_v40  ;;  %v1829_v47 = vadd.f32 %v1573_v28, %v755_v29  ;;  %v2393_v59 = vsel %vm2123_vm10, %v7674_v37, 0.0 }
  0x5d   : > { %v3195_v49 = vsel %vm2925_vm11, %v7678_v42, 0.0  ;;  %v4001_v5 = vsel %vm3731_vm3, %v7695_v45, 0.0  ;;  %vm4533_vm12 = vcmp.eq.s32.totalorder %v7839_v36, %v7726_v53  ;;  %vm5339_vm13 = vcmp.eq.s32.totalorder %v7839_v36, %v7745_v24 }
  0x5e   : > { %6922 = vmatpush.msra.mxu2 %v6791_v41  ;;  %v5251_v51 = vadd.f32 %v4995_v35, %v4449_v60  ;;  %v2649_v21 = vadd.f32 %v2393_v59, %v1829_v47  ;;  %v4803_v54 = vsel %vm4533_vm12, %v7720_v62, 0.0  ;;  %v5609_v2 = vsel %vm5339_vm13, %v7750_v31, 0.0 }
  0x5f   : > { %vm6141_vm15 = vcmp.eq.s32.totalorder %v7839_v36, %v7752_v34  ;;  %vm549_vm4 = vcmp.eq.s32.totalorder %v7842_v39, %v7557_v50  ;;  %vm1367_vm8 = vcmp.eq.s32.totalorder %v7842_v39, %v7601_v63  ;;  %vm2187_vm14 = vcmp.eq.s32.totalorder %v7842_v39, %v7621_v9 }
  0x60   : > { %v6057_v10 = vadd.f32 %v5801_v58, %v5251_v51  ;;  %v3451_v26 = vadd.f32 %v3195_v49, %v2649_v21  ;;  %v6411_v35 = vsel %vm6141_vm15, %v7757_v38, 0.0  ;;  %v819_v40 = vsel %vm549_vm4, %v7638_v19, 0.0 }
  0x61   : > { %v1637_v29 = vsel %vm1367_vm8, %v7652_v23, 0.0  ;;  %v2457_v28 = vsel %vm2187_vm14, %v7674_v37, 0.0  ;;  %vm2989_vm0 = vcmp.eq.s32.totalorder %v7842_v39, %v7629_v18  ;;  %vm3795_vm2 = vcmp.eq.s32.totalorder %v7842_v39, %v7680_v43 }
  0x62   : > { %v6859_v41 = vadd.f32 %v6603_v32, %v6057_v10  ;;  %v4257_v60 = vadd.f32 %v4001_v5, %v3451_v26  ;;  %v1893_v47 = vadd.f32 %v1637_v29, %v819_v40  ;;  %v3259_v58 = vsel %vm2989_vm0, %v7678_v42, 0.0 }
  0x63   : > { %v4065_v59 = vsel %vm3795_vm2, %v7695_v45, 0.0  ;;  %vm4597_vm7 = vcmp.eq.s32.totalorder %v7842_v39, %v7726_v53  ;;  %vm5403_vm1 = vcmp.eq.s32.totalorder %v7842_v39, %v7745_v24  ;;  %vm6205_vm5 = vcmp.eq.s32.totalorder %v7842_v39, %v7752_v34 }
  0x64   : > { %6941 = vmatpush.msra.mxu3 %v6859_v41  ;;  %v5059_v49 = vadd.f32 %v4803_v54, %v4257_v60  ;;  %v2713_v51 = vadd.f32 %v2457_v28, %v1893_v47  ;;  %v4867_v32 = vsel %vm4597_vm7, %v7720_v62, 0.0  ;;  %v5673_v5 = vsel %vm5403_vm1, %v7750_v31, 0.0 }
  0x65   : > { %v6475_v21 = vsel %vm6205_vm5, %v7757_v38, 0.0  ;;  %v7965_v10 = vadd.s32 352, %v7489_v6  ;;  %v7968_v26 = vadd.s32 488, %v7489_v6  ;;  %v7971_v40 = vadd.s32 104, %v7489_v6 }
  0x66   : > { %v5865_v29 = vadd.f32 %v5609_v2, %v5059_v49  ;;  %v3515_v57 = vadd.f32 %v3259_v58, %v2713_v51  ;;  %v7974_v54 = vadd.s32 232, %v7489_v6  ;;  %v7977_v28 = vadd.s32 344, %v7489_v6 }
  0x67   : > { %14877 = vst [vmem:[#allocation4_spill] sm:$0xff] %v7965_v10  ;;  %vm605_vm6 = vcmp.eq.s32.totalorder %v7965_v10, %v7557_v50  ;;  %vm1423_vm9 = vcmp.eq.s32.totalorder %v7965_v10, %v7601_v63  ;;  %vm2243_vm10 = vcmp.eq.s32.totalorder %v7965_v10, %v7621_v9  ;;  %vm3045_vm11 = vcmp.eq.s32.totalorder %v7965_v10, %v7629_v18 }
  0x68   : > { %14878 = vst [vmem:[#allocation5_spill] sm:$0xff] %v7968_v26  ;;  %v6667_v2 = vadd.f32 %v6411_v35, %v5865_v29  ;;  %v4321_v41 = vadd.f32 %v4065_v59, %v3515_v57  ;;  %v875_v60 = vsel %vm605_vm6, %v7638_v19, 0.0  ;;  %v1693_v47 = vsel %vm1423_vm9, %v7652_v23, 0.0 }
  0x69   : > { %14879 = vst [vmem:[#allocation6_spill] sm:$0xff] %v7971_v40  ;;  %v1949_v58 = vadd.f32 %v1693_v47, %v875_v60  ;;  %v2513_v49 = vsel %vm2243_vm10, %v7674_v37, 0.0  ;;  %v3315_v51 = vsel %vm3045_vm11, %v7678_v42, 0.0  ;;  %vm3851_vm3 = vcmp.eq.s32.totalorder %v7965_v10, %v7680_v43 }
  0x6a   : > { %14880 = vst [vmem:[#allocation7_spill] sm:$0xff] %v7974_v54  ;;  %6881 = vmatpush.msra.mxu0 %v6667_v2  ;;  %v5123_v30 = vadd.f32 %v4867_v32, %v4321_v41  ;;  %v4121_v14 = vsel %vm3851_vm3, %v7695_v45, 0.0  ;;  %vm4653_vm12 = vcmp.eq.s32.totalorder %v7965_v10, %v7726_v53  ;;  %vm5459_vm13 = vcmp.eq.s32.totalorder %v7965_v10, %v7745_v24 }
  0x6b   : > { %14881 = vst [vmem:[#allocation8_spill] sm:$0xff] %v7977_v28  ;;  %v2769_v57 = vadd.f32 %v2513_v49, %v1949_v58  ;;  %v4923_v35 = vsel %vm4653_vm12, %v7720_v62, 0.0  ;;  %v5729_v59 = vsel %vm5459_vm13, %v7750_v31, 0.0  ;;  %vm6261_vm15 = vcmp.eq.s32.totalorder %v7965_v10, %v7752_v34 }
  0x6c   : > { %v5929_v29 = vadd.f32 %v5673_v5, %v5123_v30  ;;  %v6531_v2 = vsel %vm6261_vm15, %v7757_v38, 0.0  ;;  %vm673_vm4 = vcmp.eq.s32.totalorder %v7968_v26, %v7557_v50  ;;  %vm1491_vm8 = vcmp.eq.s32.totalorder %v7968_v26, %v7601_v63 }
  0x6d   : > { %v3571_v32 = vadd.f32 %v3315_v51, %v2769_v57  ;;  %v943_v41 = vsel %vm673_vm4, %v7638_v19, 0.0  ;;  %v1761_v60 = vsel %vm1491_vm8, %v7652_v23, 0.0  ;;  %vm2311_vm14 = vcmp.eq.s32.totalorder %v7968_v26, %v7621_v9 }
  0x6e   : > { %v6731_v47 = vadd.f32 %v6475_v21, %v5929_v29  ;;  %v2017_v58 = vadd.f32 %v1761_v60, %v943_v41  ;;  %v2581_v30 = vsel %vm2311_vm14, %v7674_v37, 0.0  ;;  %vm3113_vm0 = vcmp.eq.s32.totalorder %v7968_v26, %v7629_v18 }
  0x6f   : > { %v4377_v5 = vadd.f32 %v4121_v14, %v3571_v32  ;;  %v3383_v49 = vsel %vm3113_vm0, %v7678_v42, 0.0  ;;  %vm3919_vm2 = vcmp.eq.s32.totalorder %v7968_v26, %v7680_v43  ;;  %vm4721_vm7 = vcmp.eq.s32.totalorder %v7968_v26, %v7726_v53 }
  0x70   : > { %6901 = vmatpush.msra.mxu1 %v6731_v47  ;;  %v2837_v51 = vadd.f32 %v2581_v30, %v2017_v58  ;;  %v4189_v57 = vsel %vm3919_vm2, %v7695_v45, 0.0  ;;  %v4991_v21 = vsel %vm4721_vm7, %v7720_v62, 0.0  ;;  %vm5527_vm1 = vcmp.eq.s32.totalorder %v7968_v26, %v7745_v24 }
  0x71   : > { %v5179_v29 = vadd.f32 %v4923_v35, %v4377_v5  ;;  %v5797_v14 = vsel %vm5527_vm1, %v7750_v31, 0.0  ;;  %vm6329_vm5 = vcmp.eq.s32.totalorder %v7968_v26, %v7752_v34  ;;  %vm481_vm6 = vcmp.eq.s32.totalorder %v7971_v40, %v7557_v50 }
  0x72   : > { %v3639_v32 = vadd.f32 %v3383_v49, %v2837_v51  ;;  %v6599_v41 = vsel %vm6329_vm5, %v7757_v38, 0.0  ;;  %v751_v60 = vsel %vm481_vm6, %v7638_v19, 0.0  ;;  %vm1299_vm9 = vcmp.eq.s32.totalorder %v7971_v40, %v7601_v63 }
  0x73   : > { %v5985_v47 = vadd.f32 %v5729_v59, %v5179_v29  ;;  %v1569_v58 = vsel %vm1299_vm9, %v7652_v23, 0.0  ;;  %vm2119_vm10 = vcmp.eq.s32.totalorder %v7971_v40, %v7621_v9  ;;  %vm2921_vm11 = vcmp.eq.s32.totalorder %v7971_v40, %v7629_v18 }
  0x74   : > { %v4445_v35 = vadd.f32 %v4189_v57, %v3639_v32  ;;  %v1825_v30 = vadd.f32 %v1569_v58, %v751_v60  ;;  %v2389_v5 = vsel %vm2119_vm10, %v7674_v37, 0.0  ;;  %v3191_v49 = vsel %vm2921_vm11, %v7678_v42, 0.0 }
  0x75   : > { %v6787_v51 = vadd.f32 %v6531_v2, %v5985_v47  ;;  %vm3727_vm3 = vcmp.eq.s32.totalorder %v7971_v40, %v7680_v43  ;;  %vm4529_vm12 = vcmp.eq.s32.totalorder %v7971_v40, %v7726_v53  ;;  %vm5335_vm13 = vcmp.eq.s32.totalorder %v7971_v40, %v7745_v24 }
  0x76   : > { %v5247_v59 = vadd.f32 %v4991_v21, %v4445_v35  ;;  %v2645_v29 = vadd.f32 %v2389_v5, %v1825_v30  ;;  %v3997_v26 = vsel %vm3727_vm3, %v7695_v45, 0.0  ;;  %v4799_v57 = vsel %vm4529_vm12, %v7720_v62, 0.0 }
  0x77   : > { %6923 = vmatpush.msra.mxu2 %v6787_v51  ;;  %v5605_v32 = vsel %vm5335_vm13, %v7750_v31, 0.0  ;;  %vm6137_vm15 = vcmp.eq.s32.totalorder %v7971_v40, %v7752_v34  ;;  %vm545_vm4 = vcmp.eq.s32.totalorder %v7974_v54, %v7557_v50  ;;  %vm1363_vm8 = vcmp.eq.s32.totalorder %v7974_v54, %v7601_v63 }
  0x78   : > { %v6053_v2 = vadd.f32 %v5797_v14, %v5247_v59  ;;  %v3447_v60 = vadd.f32 %v3191_v49, %v2645_v29  ;;  %v6407_v21 = vsel %vm6137_vm15, %v7757_v38, 0.0  ;;  %v815_v47 = vsel %vm545_vm4, %v7638_v19, 0.0 }
  0x79   : > { %v1633_v58 = vsel %vm1363_vm8, %v7652_v23, 0.0  ;;  %vm2183_vm14 = vcmp.eq.s32.totalorder %v7974_v54, %v7621_v9  ;;  %vm2985_vm0 = vcmp.eq.s32.totalorder %v7974_v54, %v7629_v18  ;;  %vm3791_vm2 = vcmp.eq.s32.totalorder %v7974_v54, %v7680_v43 }
  0x7a   : > { %v6855_v35 = vadd.f32 %v6599_v41, %v6053_v2  ;;  %v4253_v30 = vadd.f32 %v3997_v26, %v3447_v60  ;;  %v1889_v5 = vadd.f32 %v1633_v58, %v815_v47  ;;  %v2453_v14 = vsel %vm2183_vm14, %v7674_v37, 0.0 }
  0x7b   : > { %v3255_v49 = vsel %vm2985_vm0, %v7678_v42, 0.0  ;;  %v4061_v51 = vsel %vm3791_vm2, %v7695_v45, 0.0  ;;  %vm4593_vm7 = vcmp.eq.s32.totalorder %v7974_v54, %v7726_v53  ;;  %vm5399_vm1 = vcmp.eq.s32.totalorder %v7974_v54, %v7745_v24 }
  0x7c   : > { %6942 = vmatpush.msra.mxu3 %v6855_v35  ;;  %v5055_v59 = vadd.f32 %v4799_v57, %v4253_v30  ;;  %v2709_v29 = vadd.f32 %v2453_v14, %v1889_v5  ;;  %v4863_v40 = vsel %vm4593_vm7, %v7720_v62, 0.0  ;;  %v5669_v26 = vsel %vm5399_vm1, %v7750_v31, 0.0 }
  0x7d   : > { %vm6201_vm5 = vcmp.eq.s32.totalorder %v7974_v54, %v7752_v34  ;;  %vm601_vm6 = vcmp.eq.s32.totalorder %v7977_v28, %v7557_v50  ;;  %vm1419_vm9 = vcmp.eq.s32.totalorder %v7977_v28, %v7601_v63  ;;  %vm2239_vm10 = vcmp.eq.s32.totalorder %v7977_v28, %v7621_v9 }
  0x7e   : > { %v5861_v41 = vadd.f32 %v5605_v32, %v5055_v59  ;;  %v3511_v2 = vadd.f32 %v3255_v49, %v2709_v29  ;;  %v6471_v57 = vsel %vm6201_vm5, %v7757_v38, 0.0  ;;  %v871_v60 = vsel %vm601_vm6, %v7638_v19, 0.0 }
  0x7f   : > { %v1689_v47 = vsel %vm1419_vm9, %v7652_v23, 0.0  ;;  %v2509_v58 = vsel %vm2239_vm10, %v7674_v37, 0.0  ;;  %vm3041_vm11 = vcmp.eq.s32.totalorder %v7977_v28, %v7629_v18  ;;  %vm3847_vm3 = vcmp.eq.s32.totalorder %v7977_v28, %v7680_v43 }
  0x80   : > { %v6663_v35 = vadd.f32 %v6407_v21, %v5861_v41  ;;  %v4317_v30 = vadd.f32 %v4061_v51, %v3511_v2  ;;  %v1945_v5 = vadd.f32 %v1689_v47, %v871_v60  ;;  %v3311_v32 = vsel %vm3041_vm11, %v7678_v42, 0.0 }
  0x81   : > { %v4117_v14 = vsel %vm3847_vm3, %v7695_v45, 0.0  ;;  %vm4649_vm12 = vcmp.eq.s32.totalorder %v7977_v28, %v7726_v53  ;;  %vm5455_vm13 = vcmp.eq.s32.totalorder %v7977_v28, %v7745_v24  ;;  %vm6257_vm15 = vcmp.eq.s32.totalorder %v7977_v28, %v7752_v34 }
  0x82   : > { %6882 = vmatpush.msra.mxu0 %v6663_v35  ;;  %v5119_v49 = vadd.f32 %v4863_v40, %v4317_v30  ;;  %v2765_v59 = vadd.f32 %v2509_v58, %v1945_v5  ;;  %v4919_v21 = vsel %vm4649_vm12, %v7720_v62, 0.0  ;;  %v5725_v51 = vsel %vm5455_vm13, %v7750_v31, 0.0 }
  0x83   : > { %v6527_v29 = vsel %vm6257_vm15, %v7757_v38, 0.0  ;;  %v8100_v41 = vadd.s32 480, %v7489_v6  ;;  %v8103_v2 = vadd.s32 96, %v7489_v6  ;;  %v8106_v60 = vadd.s32 224, %v7489_v6 }
  0x84   : > { %v5925_v47 = vadd.f32 %v5669_v26, %v5119_v49  ;;  %v3567_v28 = vadd.f32 %v3311_v32, %v2765_v59  ;;  %v8109_v40 = vadd.s32 336, %v7489_v6  ;;  %v8112_v58 = vadd.s32 472, %v7489_v6 }
  0x85   : > { %14882 = vst [vmem:[#allocation9_spill] sm:$0xff] %v8100_v41  ;;  %vm669_vm4 = vcmp.eq.s32.totalorder %v8100_v41, %v7557_v50  ;;  %vm1487_vm8 = vcmp.eq.s32.totalorder %v8100_v41, %v7601_v63  ;;  %vm2307_vm14 = vcmp.eq.s32.totalorder %v8100_v41, %v7621_v9  ;;  %vm3109_vm0 = vcmp.eq.s32.totalorder %v8100_v41, %v7629_v18 }
  0x86   : > { %14883 = vst [vmem:[#allocation10_spill] sm:$0xff] %v8103_v2  ;;  %v6727_v26 = vadd.f32 %v6471_v57, %v5925_v47  ;;  %v4373_v35 = vadd.f32 %v4117_v14, %v3567_v28  ;;  %v939_v30 = vsel %vm669_vm4, %v7638_v19, 0.0  ;;  %v1757_v5 = vsel %vm1487_vm8, %v7652_v23, 0.0 }
  0x87   : > { %14884 = vst [vmem:[#allocation11_spill] sm:$0xff] %v8106_v60  ;;  %v2013_v32 = vadd.f32 %v1757_v5, %v939_v30  ;;  %v2577_v49 = vsel %vm2307_vm14, %v7674_v37, 0.0  ;;  %v3379_v59 = vsel %vm3109_vm0, %v7678_v42, 0.0  ;;  %vm3915_vm2 = vcmp.eq.s32.totalorder %v8100_v41, %v7680_v43 }
  0x88   : > { %14885 = vst [vmem:[#allocation12_spill] sm:$0xff] %v8109_v40  ;;  %6902 = vmatpush.msra.mxu1 %v6727_v26  ;;  %v5175_v54 = vadd.f32 %v4919_v21, %v4373_v35  ;;  %v4185_v10 = vsel %vm3915_vm2, %v7695_v45, 0.0  ;;  %vm4717_vm7 = vcmp.eq.s32.totalorder %v8100_v41, %v7726_v53  ;;  %vm5523_vm1 = vcmp.eq.s32.totalorder %v8100_v41, %v7745_v24 }
  0x89   : > { %14886 = vst [vmem:[#allocation13_spill] sm:$0xff] %v8112_v58  ;;  %v2833_v28 = vadd.f32 %v2577_v49, %v2013_v32  ;;  %v4987_v57 = vsel %vm4717_vm7, %v7720_v62, 0.0  ;;  %v5793_v14 = vsel %vm5523_vm1, %v7750_v31, 0.0  ;;  %vm6325_vm5 = vcmp.eq.s32.totalorder %v8100_v41, %v7752_v34 }
  0x8a   : > { %v5981_v47 = vadd.f32 %v5725_v51, %v5175_v54  ;;  %v6595_v26 = vsel %vm6325_vm5, %v7757_v38, 0.0  ;;  %vm477_vm6 = vcmp.eq.s32.totalorder %v8103_v2, %v7557_v50  ;;  %vm1295_vm9 = vcmp.eq.s32.totalorder %v8103_v2, %v7601_v63 }
  0x8b   : > { %v3635_v21 = vadd.f32 %v3379_v59, %v2833_v28  ;;  %v747_v35 = vsel %vm477_vm6, %v7638_v19, 0.0  ;;  %v1565_v30 = vsel %vm1295_vm9, %v7652_v23, 0.0  ;;  %vm2115_vm10 = vcmp.eq.s32.totalorder %v8103_v2, %v7621_v9 }
  0x8c   : > { %v6783_v5 = vadd.f32 %v6527_v29, %v5981_v47  ;;  %v1821_v32 = vadd.f32 %v1565_v30, %v747_v35  ;;  %v2385_v54 = vsel %vm2115_vm10, %v7674_v37, 0.0  ;;  %vm2917_vm11 = vcmp.eq.s32.totalorder %v8103_v2, %v7629_v18 }
  0x8d   : > { %v4441_v51 = vadd.f32 %v4185_v10, %v3635_v21  ;;  %v3187_v49 = vsel %vm2917_vm11, %v7678_v42, 0.0  ;;  %vm3723_vm3 = vcmp.eq.s32.totalorder %v8103_v2, %v7680_v43  ;;  %vm4525_vm12 = vcmp.eq.s32.totalorder %v8103_v2, %v7726_v53 }
  0x8e   : > { %6924 = vmatpush.msra.mxu2 %v6783_v5  ;;  %v2641_v59 = vadd.f32 %v2385_v54, %v1821_v32  ;;  %v3993_v28 = vsel %vm3723_vm3, %v7695_v45, 0.0  ;;  %v4795_v29 = vsel %vm4525_vm12, %v7720_v62, 0.0  ;;  %vm5331_vm13 = vcmp.eq.s32.totalorder %v8103_v2, %v7745_v24 }
  0x8f   : > { %v5243_v47 = vadd.f32 %v4987_v57, %v4441_v51  ;;  %v5601_v10 = vsel %vm5331_vm13, %v7750_v31, 0.0  ;;  %vm6133_vm15 = vcmp.eq.s32.totalorder %v8103_v2, %v7752_v34  ;;  %vm541_vm4 = vcmp.eq.s32.totalorder %v8106_v60, %v7557_v50 }
  0x90   : > { %v3443_v21 = vadd.f32 %v3187_v49, %v2641_v59  ;;  %v6403_v35 = vsel %vm6133_vm15, %v7757_v38, 0.0  ;;  %v811_v30 = vsel %vm541_vm4, %v7638_v19, 0.0  ;;  %vm1359_vm8 = vcmp.eq.s32.totalorder %v8106_v60, %v7601_v63 }
  0x91   : > { %v6049_v5 = vadd.f32 %v5793_v14, %v5243_v47  ;;  %v1629_v32 = vsel %vm1359_vm8, %v7652_v23, 0.0  ;;  %vm2179_vm14 = vcmp.eq.s32.totalorder %v8106_v60, %v7621_v9  ;;  %vm2981_vm0 = vcmp.eq.s32.totalorder %v8106_v60, %v7629_v18 }
  0x92   : > { %v4249_v57 = vadd.f32 %v3993_v28, %v3443_v21  ;;  %v1885_v54 = vadd.f32 %v1629_v32, %v811_v30  ;;  %v2449_v51 = vsel %vm2179_vm14, %v7674_v37, 0.0  ;;  %v3251_v49 = vsel %vm2981_vm0, %v7678_v42, 0.0 }
  0x93   : > { %v6851_v59 = vadd.f32 %v6595_v26, %v6049_v5  ;;  %vm3787_vm2 = vcmp.eq.s32.totalorder %v8106_v60, %v7680_v43  ;;  %vm4589_vm7 = vcmp.eq.s32.totalorder %v8106_v60, %v7726_v53  ;;  %vm5395_vm1 = vcmp.eq.s32.totalorder %v8106_v60, %v7745_v24 }
  0x94   : > { %v5051_v14 = vadd.f32 %v4795_v29, %v4249_v57  ;;  %v2705_v47 = vadd.f32 %v2449_v51, %v1885_v54  ;;  %v4057_v2 = vsel %vm3787_vm2, %v7695_v45, 0.0  ;;  %v4859_v28 = vsel %vm4589_vm7, %v7720_v62, 0.0 }
  0x95   : > { %6943 = vmatpush.msra.mxu3 %v6851_v59  ;;  %v5665_v21 = vsel %vm5395_vm1, %v7750_v31, 0.0  ;;  %vm6197_vm5 = vcmp.eq.s32.totalorder %v8106_v60, %v7752_v34  ;;  %vm597_vm6 = vcmp.eq.s32.totalorder %v8109_v40, %v7557_v50  ;;  %vm1415_vm9 = vcmp.eq.s32.totalorder %v8109_v40, %v7601_v63 }
  0x96   : > { %v5857_v26 = vadd.f32 %v5601_v10, %v5051_v14  ;;  %v3507_v30 = vadd.f32 %v3251_v49, %v2705_v47  ;;  %v6467_v29 = vsel %vm6197_vm5, %v7757_v38, 0.0  ;;  %v867_v5 = vsel %vm597_vm6, %v7638_v19, 0.0 }
  0x97   : > { %v1685_v32 = vsel %vm1415_vm9, %v7652_v23, 0.0  ;;  %vm2235_vm10 = vcmp.eq.s32.totalorder %v8109_v40, %v7621_v9  ;;  %vm3037_vm11 = vcmp.eq.s32.totalorder %v8109_v40, %v7629_v18  ;;  %vm3843_vm3 = vcmp.eq.s32.totalorder %v8109_v40, %v7680_v43 }
  0x98   : > { %v6659_v57 = vadd.f32 %v6403_v35, %v5857_v26  ;;  %v4313_v54 = vadd.f32 %v4057_v2, %v3507_v30  ;;  %v1941_v51 = vadd.f32 %v1685_v32, %v867_v5  ;;  %v2505_v10 = vsel %vm2235_vm10, %v7674_v37, 0.0 }
  0x99   : > { %v3307_v49 = vsel %vm3037_vm11, %v7678_v42, 0.0  ;;  %v4113_v59 = vsel %vm3843_vm3, %v7695_v45, 0.0  ;;  %vm4645_vm12 = vcmp.eq.s32.totalorder %v8109_v40, %v7726_v53  ;;  %vm5451_vm13 = vcmp.eq.s32.totalorder %v8109_v40, %v7745_v24 }
  0x9a   : > { %6883 = vmatpush.msra.mxu0 %v6659_v57  ;;  %v5115_v14 = vadd.f32 %v4859_v28, %v4313_v54  ;;  %v2761_v47 = vadd.f32 %v2505_v10, %v1941_v51  ;;  %v4915_v60 = vsel %vm4645_vm12, %v7720_v62, 0.0  ;;  %v5721_v2 = vsel %vm5451_vm13, %v7750_v31, 0.0 }
  0x9b   : > { %vm6253_vm15 = vcmp.eq.s32.totalorder %v8109_v40, %v7752_v34  ;;  %vm665_vm4 = vcmp.eq.s32.totalorder %v8112_v58, %v7557_v50  ;;  %vm1483_vm8 = vcmp.eq.s32.totalorder %v8112_v58, %v7601_v63  ;;  %vm2303_vm14 = vcmp.eq.s32.totalorder %v8112_v58, %v7621_v9 }
  0x9c   : > { %v5921_v35 = vadd.f32 %v5665_v21, %v5115_v14  ;;  %v3563_v26 = vadd.f32 %v3307_v49, %v2761_v47  ;;  %v6523_v28 = vsel %vm6253_vm15, %v7757_v38, 0.0  ;;  %v935_v30 = vsel %vm665_vm4, %v7638_v19, 0.0 }
  0x9d   : > { %v1753_v5 = vsel %vm1483_vm8, %v7652_v23, 0.0  ;;  %v2573_v32 = vsel %vm2303_vm14, %v7674_v37, 0.0  ;;  %vm3105_vm0 = vcmp.eq.s32.totalorder %v8112_v58, %v7629_v18  ;;  %vm3911_vm2 = vcmp.eq.s32.totalorder %v8112_v58, %v7680_v43 }
  0x9e   : > { %v6723_v57 = vadd.f32 %v6467_v29, %v5921_v35  ;;  %v4369_v54 = vadd.f32 %v4113_v59, %v3563_v26  ;;  %v2009_v51 = vadd.f32 %v1753_v5, %v935_v30  ;;  %v3375_v21 = vsel %vm3105_vm0, %v7678_v42, 0.0 }
  0x9f   : > { %v4181_v10 = vsel %vm3911_vm2, %v7695_v45, 0.0  ;;  %vm4713_vm7 = vcmp.eq.s32.totalorder %v8112_v58, %v7726_v53  ;;  %vm5519_vm1 = vcmp.eq.s32.totalorder %v8112_v58, %v7745_v24  ;;  %vm6321_vm5 = vcmp.eq.s32.totalorder %v8112_v58, %v7752_v34 }
  0xa0   : > { %6903 = vmatpush.msra.mxu1 %v6723_v57  ;;  %v5171_v49 = vadd.f32 %v4915_v60, %v4369_v54  ;;  %v2829_v14 = vadd.f32 %v2573_v32, %v2009_v51  ;;  %v4983_v29 = vsel %vm4713_vm7, %v7720_v62, 0.0  ;;  %v5789_v59 = vsel %vm5519_vm1, %v7750_v31, 0.0 }
  0xa1   : > { %v6591_v47 = vsel %vm6321_vm5, %v7757_v38, 0.0  ;;  %v8235_v35 = vadd.s32 88, %v7489_v6  ;;  %v8238_v26 = vadd.s32 216, %v7489_v6  ;;  %v8241_v30 = vadd.s32 328, %v7489_v6 }
  0xa2   : > { %v5977_v5 = vadd.f32 %v5721_v2, %v5171_v49  ;;  %v3631_v58 = vadd.f32 %v3375_v21, %v2829_v14  ;;  %v8244_v60 = vadd.s32 464, %v7489_v6  ;;  %v8247_v32 = vadd.s32 80, %v7489_v6 }
  0xa3   : > { %14887 = vst [vmem:[#allocation14_spill] sm:$0xff] %v8235_v35  ;;  %vm473_vm6 = vcmp.eq.s32.totalorder %v8235_v35, %v7557_v50  ;;  %vm1291_vm9 = vcmp.eq.s32.totalorder %v8235_v35, %v7601_v63  ;;  %vm2111_vm10 = vcmp.eq.s32.totalorder %v8235_v35, %v7621_v9  ;;  %vm2913_vm11 = vcmp.eq.s32.totalorder %v8235_v35, %v7629_v18 }
  0xa4   : > { %14888 = vst [vmem:[#allocation15_spill] sm:$0xff] %v8238_v26  ;;  %v6779_v2 = vadd.f32 %v6523_v28, %v5977_v5  ;;  %v4437_v57 = vadd.f32 %v4181_v10, %v3631_v58  ;;  %v743_v54 = vsel %vm473_vm6, %v7638_v19, 0.0  ;;  %v1561_v51 = vsel %vm1291_vm9, %v7652_v23, 0.0 }
  0xa5   : > { %14889 = vst [vmem:[#allocation16_spill] sm:$0xff] %v8241_v30  ;;  %v1817_v21 = vadd.f32 %v1561_v51, %v743_v54  ;;  %v2381_v49 = vsel %vm2111_vm10, %v7674_v37, 0.0  ;;  %v3183_v14 = vsel %vm2913_vm11, %v7678_v42, 0.0  ;;  %vm3719_vm3 = vcmp.eq.s32.totalorder %v8235_v35, %v7680_v43 }
  0xa6   : > { %14890 = vst [vmem:[#allocation17_spill] sm:$0xff] %v8244_v60  ;;  %6925 = vmatpush.msra.mxu2 %v6779_v2  ;;  %v5239_v40 = vadd.f32 %v4983_v29, %v4437_v57  ;;  %v3989_v41 = vsel %vm3719_vm3, %v7695_v45, 0.0  ;;  %vm4521_vm12 = vcmp.eq.s32.totalorder %v8235_v35, %v7726_v53  ;;  %vm5327_vm13 = vcmp.eq.s32.totalorder %v8235_v35, %v7745_v24 }
  0xa7   : > { %14891 = vst [vmem:[#allocation18_spill] sm:$0xff] %v8247_v32  ;;  %v2637_v58 = vadd.f32 %v2381_v49, %v1817_v21  ;;  %v4791_v28 = vsel %vm4521_vm12, %v7720_v62, 0.0  ;;  %v5597_v10 = vsel %vm5327_vm13, %v7750_v31, 0.0  ;;  %vm6129_vm15 = vcmp.eq.s32.totalorder %v8235_v35, %v7752_v34 }
  0xa8   : > { %v6045_v5 = vadd.f32 %v5789_v59, %v5239_v40  ;;  %v6399_v2 = vsel %vm6129_vm15, %v7757_v38, 0.0  ;;  %vm537_vm4 = vcmp.eq.s32.totalorder %v8238_v26, %v7557_v50  ;;  %vm1355_vm8 = vcmp.eq.s32.totalorder %v8238_v26, %v7601_v63 }
  0xa9   : > { %v3439_v29 = vadd.f32 %v3183_v14, %v2637_v58  ;;  %v807_v57 = vsel %vm537_vm4, %v7638_v19, 0.0  ;;  %v1625_v54 = vsel %vm1355_vm8, %v7652_v23, 0.0  ;;  %vm2175_vm14 = vcmp.eq.s32.totalorder %v8238_v26, %v7621_v9 }
  0xaa   : > { %v6847_v51 = vadd.f32 %v6591_v47, %v6045_v5  ;;  %v1881_v21 = vadd.f32 %v1625_v54, %v807_v57  ;;  %v2445_v40 = vsel %vm2175_vm14, %v7674_v37, 0.0  ;;  %vm2977_vm0 = vcmp.eq.s32.totalorder %v8238_v26, %v7629_v18 }
  0xab   : > { %v4245_v59 = vadd.f32 %v3989_v41, %v3439_v29  ;;  %v3247_v49 = vsel %vm2977_vm0, %v7678_v42, 0.0  ;;  %vm3783_vm2 = vcmp.eq.s32.totalorder %v8238_v26, %v7680_v43  ;;  %vm4585_vm7 = vcmp.eq.s32.totalorder %v8238_v26, %v7726_v53 }
  0xac   : > { %6944 = vmatpush.msra.mxu3 %v6847_v51  ;;  %v2701_v14 = vadd.f32 %v2445_v40, %v1881_v21  ;;  %v4053_v58 = vsel %vm3783_vm2, %v7695_v45, 0.0  ;;  %v4855_v47 = vsel %vm4585_vm7, %v7720_v62, 0.0  ;;  %vm5391_vm1 = vcmp.eq.s32.totalorder %v8238_v26, %v7745_v24 }
  0xad   : > { %v5047_v5 = vadd.f32 %v4791_v28, %v4245_v59  ;;  %v5661_v41 = vsel %vm5391_vm1, %v7750_v31, 0.0  ;;  %vm6193_vm5 = vcmp.eq.s32.totalorder %v8238_v26, %v7752_v34  ;;  %vm593_vm6 = vcmp.eq.s32.totalorder %v8241_v30, %v7557_v50 }
  0xae   : > { %v3503_v29 = vadd.f32 %v3247_v49, %v2701_v14  ;;  %v6463_v57 = vsel %vm6193_vm5, %v7757_v38, 0.0  ;;  %v863_v54 = vsel %vm593_vm6, %v7638_v19, 0.0  ;;  %vm1411_vm9 = vcmp.eq.s32.totalorder %v8241_v30, %v7601_v63 }
  0xaf   : > { %v5853_v51 = vadd.f32 %v5597_v10, %v5047_v5  ;;  %v1681_v21 = vsel %vm1411_vm9, %v7652_v23, 0.0  ;;  %vm2231_vm10 = vcmp.eq.s32.totalorder %v8241_v30, %v7621_v9  ;;  %vm3033_vm11 = vcmp.eq.s32.totalorder %v8241_v30, %v7629_v18 }
  0xb0   : > { %v4309_v28 = vadd.f32 %v4053_v58, %v3503_v29  ;;  %v1937_v40 = vadd.f32 %v1681_v21, %v863_v54  ;;  %v2501_v59 = vsel %vm2231_vm10, %v7674_v37, 0.0  ;;  %v3303_v49 = vsel %vm3033_vm11, %v7678_v42, 0.0 }
  0xb1   : > { %v6655_v14 = vadd.f32 %v6399_v2, %v5853_v51  ;;  %vm3839_vm3 = vcmp.eq.s32.totalorder %v8241_v30, %v7680_v43  ;;  %vm4641_vm12 = vcmp.eq.s32.totalorder %v8241_v30, %v7726_v53  ;;  %vm5447_vm13 = vcmp.eq.s32.totalorder %v8241_v30, %v7745_v24 }
  0xb2   : > { %v5111_v10 = vadd.f32 %v4855_v47, %v4309_v28  ;;  %v2757_v5 = vadd.f32 %v2501_v59, %v1937_v40  ;;  %v4109_v26 = vsel %vm3839_vm3, %v7695_v45, 0.0  ;;  %v4911_v58 = vsel %vm4641_vm12, %v7720_v62, 0.0 }
  0xb3   : > { %6884 = vmatpush.msra.mxu0 %v6655_v14  ;;  %v5717_v29 = vsel %vm5447_vm13, %v7750_v31, 0.0  ;;  %vm6249_vm15 = vcmp.eq.s32.totalorder %v8241_v30, %v7752_v34  ;;  %vm661_vm4 = vcmp.eq.s32.totalorder %v8244_v60, %v7557_v50  ;;  %vm1479_vm8 = vcmp.eq.s32.totalorder %v8244_v60, %v7601_v63 }
  0xb4   : > { %v5917_v2 = vadd.f32 %v5661_v41, %v5111_v10  ;;  %v3559_v54 = vadd.f32 %v3303_v49, %v2757_v5  ;;  %v6519_v47 = vsel %vm6249_vm15, %v7757_v38, 0.0  ;;  %v931_v51 = vsel %vm661_vm4, %v7638_v19, 0.0 }
  0xb5   : > { %v1749_v21 = vsel %vm1479_vm8, %v7652_v23, 0.0  ;;  %vm2299_vm14 = vcmp.eq.s32.totalorder %v8244_v60, %v7621_v9  ;;  %vm3101_vm0 = vcmp.eq.s32.totalorder %v8244_v60, %v7629_v18  ;;  %vm3907_vm2 = vcmp.eq.s32.totalorder %v8244_v60, %v7680_v43 }
  0xb6   : > { %v6719_v28 = vadd.f32 %v6463_v57, %v5917_v2  ;;  %v4365_v40 = vadd.f32 %v4109_v26, %v3559_v54  ;;  %v2005_v59 = vadd.f32 %v1749_v21, %v931_v51  ;;  %v2569_v41 = vsel %vm2299_vm14, %v7674_v37, 0.0 }
  0xb7   : > { %v3371_v49 = vsel %vm3101_vm0, %v7678_v42, 0.0  ;;  %v4177_v14 = vsel %vm3907_vm2, %v7695_v45, 0.0  ;;  %vm4709_vm7 = vcmp.eq.s32.totalorder %v8244_v60, %v7726_v53  ;;  %vm5515_vm1 = vcmp.eq.s32.totalorder %v8244_v60, %v7745_v24 }
  0xb8   : > { %6904 = vmatpush.msra.mxu1 %v6719_v28  ;;  %v5167_v10 = vadd.f32 %v4911_v58, %v4365_v40  ;;  %v2825_v5 = vadd.f32 %v2569_v41, %v2005_v59  ;;  %v4979_v30 = vsel %vm4709_vm7, %v7720_v62, 0.0  ;;  %v5785_v26 = vsel %vm5515_vm1, %v7750_v31, 0.0 }
  0xb9   : > { %vm6317_vm5 = vcmp.eq.s32.totalorder %v8244_v60, %v7752_v34  ;;  %vm469_vm6 = vcmp.eq.s32.totalorder %v8247_v32, %v7557_v50  ;;  %vm1287_vm9 = vcmp.eq.s32.totalorder %v8247_v32, %v7601_v63  ;;  %vm2107_vm10 = vcmp.eq.s32.totalorder %v8247_v32, %v7621_v9 }
  0xba   : > { %v5973_v57 = vadd.f32 %v5717_v29, %v5167_v10  ;;  %v3627_v2 = vadd.f32 %v3371_v49, %v2825_v5  ;;  %v6587_v58 = vsel %vm6317_vm5, %v7757_v38, 0.0  ;;  %v739_v54 = vsel %vm469_vm6, %v7638_v19, 0.0 }
  0xbb   : > { %v1557_v51 = vsel %vm1287_vm9, %v7652_v23, 0.0  ;;  %v2377_v21 = vsel %vm2107_vm10, %v7674_v37, 0.0  ;;  %vm2909_vm11 = vcmp.eq.s32.totalorder %v8247_v32, %v7629_v18  ;;  %vm3715_vm3 = vcmp.eq.s32.totalorder %v8247_v32, %v7680_v43 }
  0xbc   : > { %v6775_v28 = vadd.f32 %v6519_v47, %v5973_v57  ;;  %v4433_v40 = vadd.f32 %v4177_v14, %v3627_v2  ;;  %v1813_v59 = vadd.f32 %v1557_v51, %v739_v54  ;;  %v3179_v29 = vsel %vm2909_vm11, %v7678_v42, 0.0 }
  0xbd   : > { %v3985_v41 = vsel %vm3715_vm3, %v7695_v45, 0.0  ;;  %vm4517_vm12 = vcmp.eq.s32.totalorder %v8247_v32, %v7726_v53  ;;  %vm5323_vm13 = vcmp.eq.s32.totalorder %v8247_v32, %v7745_v24  ;;  %vm6125_vm15 = vcmp.eq.s32.totalorder %v8247_v32, %v7752_v34 }
  0xbe   : > { %6926 = vmatpush.msra.mxu2 %v6775_v28  ;;  %v5235_v49 = vadd.f32 %v4979_v30, %v4433_v40  ;;  %v2633_v10 = vadd.f32 %v2377_v21, %v1813_v59  ;;  %v4787_v47 = vsel %vm4517_vm12, %v7720_v62, 0.0  ;;  %v5593_v14 = vsel %vm5323_vm13, %v7750_v31, 0.0 }
  0xbf   : > { %v6395_v5 = vsel %vm6125_vm15, %v7757_v38, 0.0  ;;  %v8370_v57 = vadd.s32 208, %v7489_v6  ;;  %v8373_v2 = vadd.s32 320, %v7489_v6  ;;  %v8376_v54 = vadd.s32 456, %v7489_v6 }
  0xc0   : > { %v6041_v51 = vadd.f32 %v5785_v26, %v5235_v49  ;;  %v3435_v32 = vadd.f32 %v3179_v29, %v2633_v10  ;;  %v8379_v30 = vadd.s32 72, %v7489_v6  ;;  %v8382_v21 = vadd.s32 200, %v7489_v6 }
  0xc1   : > { %14892 = vst [vmem:[#allocation19_spill] sm:$0xff] %v8370_v57  ;;  %vm533_vm4 = vcmp.eq.s32.totalorder %v8370_v57, %v7557_v50  ;;  %vm1351_vm8 = vcmp.eq.s32.totalorder %v8370_v57, %v7601_v63  ;;  %vm2171_vm14 = vcmp.eq.s32.totalorder %v8370_v57, %v7621_v9  ;;  %vm2973_vm0 = vcmp.eq.s32.totalorder %v8370_v57, %v7629_v18 }
  0xc2   : > { %14893 = vst [vmem:[#allocation20_spill] sm:$0xff] %v8373_v2  ;;  %v6843_v26 = vadd.f32 %v6587_v58, %v6041_v51  ;;  %v4241_v28 = vadd.f32 %v3985_v41, %v3435_v32  ;;  %v803_v40 = vsel %vm533_vm4, %v7638_v19, 0.0  ;;  %v1621_v59 = vsel %vm1351_vm8, %v7652_v23, 0.0 }
  0xc3   : > { %14894 = vst [vmem:[#allocation21_spill] sm:$0xff] %v8376_v54  ;;  %v1877_v29 = vadd.f32 %v1621_v59, %v803_v40  ;;  %v2441_v49 = vsel %vm2171_vm14, %v7674_v37, 0.0  ;;  %v3243_v10 = vsel %vm2973_vm0, %v7678_v42, 0.0  ;;  %vm3779_vm2 = vcmp.eq.s32.totalorder %v8370_v57, %v7680_v43 }
  0xc4   : > { %14895 = vst [vmem:[#allocation22_spill] sm:$0xff] %v8379_v30  ;;  %6945 = vmatpush.msra.mxu3 %v6843_v26  ;;  %v5043_v60 = vadd.f32 %v4787_v47, %v4241_v28  ;;  %v4049_v35 = vsel %vm3779_vm2, %v7695_v45, 0.0  ;;  %vm4581_vm7 = vcmp.eq.s32.totalorder %v8370_v57, %v7726_v53  ;;  %vm5387_vm1 = vcmp.eq.s32.totalorder %v8370_v57, %v7745_v24 }
  0xc5   : > { %14896 = vst [vmem:[#allocation23_spill] sm:$0xff] %v8382_v21  ;;  %v2697_v32 = vadd.f32 %v2441_v49, %v1877_v29  ;;  %v4851_v58 = vsel %vm4581_vm7, %v7720_v62, 0.0  ;;  %v5657_v41 = vsel %vm5387_vm1, %v7750_v31, 0.0  ;;  %vm6189_vm5 = vcmp.eq.s32.totalorder %v8370_v57, %v7752_v34 }
  0xc6   : > { %v5849_v51 = vadd.f32 %v5593_v14, %v5043_v60  ;;  %v6459_v26 = vsel %vm6189_vm5, %v7757_v38, 0.0  ;;  %vm589_vm6 = vcmp.eq.s32.totalorder %v8373_v2, %v7557_v50  ;;  %vm1407_vm9 = vcmp.eq.s32.totalorder %v8373_v2, %v7601_v63 }
  0xc7   : > { %v3499_v47 = vadd.f32 %v3243_v10, %v2697_v32  ;;  %v859_v28 = vsel %vm589_vm6, %v7638_v19, 0.0  ;;  %v1677_v40 = vsel %vm1407_vm9, %v7652_v23, 0.0  ;;  %vm2227_vm10 = vcmp.eq.s32.totalorder %v8373_v2, %v7621_v9 }
  0xc8   : > { %v6651_v59 = vadd.f32 %v6395_v5, %v5849_v51  ;;  %v1933_v29 = vadd.f32 %v1677_v40, %v859_v28  ;;  %v2497_v60 = vsel %vm2227_vm10, %v7674_v37, 0.0  ;;  %vm3029_vm11 = vcmp.eq.s32.totalorder %v8373_v2, %v7629_v18 }
  0xc9   : > { %v4305_v14 = vadd.f32 %v4049_v35, %v3499_v47  ;;  %v3299_v49 = vsel %vm3029_vm11, %v7678_v42, 0.0  ;;  %vm3835_vm3 = vcmp.eq.s32.totalorder %v8373_v2, %v7680_v43  ;;  %vm4637_vm12 = vcmp.eq.s32.totalorder %v8373_v2, %v7726_v53 }
  0xca   : > { %6885 = vmatpush.msra.mxu0 %v6651_v59  ;;  %v2753_v10 = vadd.f32 %v2497_v60, %v1933_v29  ;;  %v4105_v32 = vsel %vm3835_vm3, %v7695_v45, 0.0  ;;  %v4907_v5 = vsel %vm4637_vm12, %v7720_v62, 0.0  ;;  %vm5443_vm13 = vcmp.eq.s32.totalorder %v8373_v2, %v7745_v24 }
  0xcb   : > { %v5107_v51 = vadd.f32 %v4851_v58, %v4305_v14  ;;  %v5713_v35 = vsel %vm5443_vm13, %v7750_v31, 0.0  ;;  %vm6245_vm15 = vcmp.eq.s32.totalorder %v8373_v2, %v7752_v34  ;;  %vm657_vm4 = vcmp.eq.s32.totalorder %v8376_v54, %v7557_v50 }
  0xcc   : > { %v3555_v47 = vadd.f32 %v3299_v49, %v2753_v10  ;;  %v6515_v28 = vsel %vm6245_vm15, %v7757_v38, 0.0  ;;  %v927_v40 = vsel %vm657_vm4, %v7638_v19, 0.0  ;;  %vm1475_vm8 = vcmp.eq.s32.totalorder %v8376_v54, %v7601_v63 }
  0xcd   : > { %v5913_v59 = vadd.f32 %v5657_v41, %v5107_v51  ;;  %v1745_v29 = vsel %vm1475_vm8, %v7652_v23, 0.0  ;;  %vm2295_vm14 = vcmp.eq.s32.totalorder %v8376_v54, %v7621_v9  ;;  %vm3097_vm0 = vcmp.eq.s32.totalorder %v8376_v54, %v7629_v18 }
  0xce   : > { %v4361_v58 = vadd.f32 %v4105_v32, %v3555_v47  ;;  %v2001_v60 = vadd.f32 %v1745_v29, %v927_v40  ;;  %v2565_v14 = vsel %vm2295_vm14, %v7674_v37, 0.0  ;;  %v3367_v49 = vsel %vm3097_vm0, %v7678_v42, 0.0 }
  0xcf   : > { %v6715_v10 = vadd.f32 %v6459_v26, %v5913_v59  ;;  %vm3903_vm2 = vcmp.eq.s32.totalorder %v8376_v54, %v7680_v43  ;;  %vm4705_vm7 = vcmp.eq.s32.totalorder %v8376_v54, %v7726_v53  ;;  %vm5511_vm1 = vcmp.eq.s32.totalorder %v8376_v54, %v7745_v24 }
  0xd0   : > { %v5163_v41 = vadd.f32 %v4907_v5, %v4361_v58  ;;  %v2821_v51 = vadd.f32 %v2565_v14, %v2001_v60  ;;  %v4173_v2 = vsel %vm3903_vm2, %v7695_v45, 0.0  ;;  %v4975_v32 = vsel %vm4705_vm7, %v7720_v62, 0.0 }
  0xd1   : > { %6905 = vmatpush.msra.mxu1 %v6715_v10  ;;  %v5781_v47 = vsel %vm5511_vm1, %v7750_v31, 0.0  ;;  %vm6313_vm5 = vcmp.eq.s32.totalorder %v8376_v54, %v7752_v34  ;;  %vm465_vm6 = vcmp.eq.s32.totalorder %v8379_v30, %v7557_v50  ;;  %vm1283_vm9 = vcmp.eq.s32.totalorder %v8379_v30, %v7601_v63 }
  0xd2   : > { %v5969_v26 = vadd.f32 %v5713_v35, %v5163_v41  ;;  %v3623_v40 = vadd.f32 %v3367_v49, %v2821_v51  ;;  %v6583_v5 = vsel %vm6313_vm5, %v7757_v38, 0.0  ;;  %v735_v59 = vsel %vm465_vm6, %v7638_v19, 0.0 }
  0xd3   : > { %v1553_v29 = vsel %vm1283_vm9, %v7652_v23, 0.0  ;;  %vm2103_vm10 = vcmp.eq.s32.totalorder %v8379_v30, %v7621_v9  ;;  %vm2905_vm11 = vcmp.eq.s32.totalorder %v8379_v30, %v7629_v18  ;;  %vm3711_vm3 = vcmp.eq.s32.totalorder %v8379_v30, %v7680_v43 }
  0xd4   : > { %v6771_v58 = vadd.f32 %v6515_v28, %v5969_v26  ;;  %v4429_v60 = vadd.f32 %v4173_v2, %v3623_v40  ;;  %v1809_v14 = vadd.f32 %v1553_v29, %v735_v59  ;;  %v2373_v35 = vsel %vm2103_vm10, %v7674_v37, 0.0 }
  0xd5   : > { %v3175_v49 = vsel %vm2905_vm11, %v7678_v42, 0.0  ;;  %v3981_v10 = vsel %vm3711_vm3, %v7695_v45, 0.0  ;;  %vm4513_vm12 = vcmp.eq.s32.totalorder %v8379_v30, %v7726_v53  ;;  %vm5319_vm13 = vcmp.eq.s32.totalorder %v8379_v30, %v7745_v24 }
  0xd6   : > { %6927 = vmatpush.msra.mxu2 %v6771_v58  ;;  %v5231_v41 = vadd.f32 %v4975_v32, %v4429_v60  ;;  %v2629_v51 = vadd.f32 %v2373_v35, %v1809_v14  ;;  %v4783_v54 = vsel %vm4513_vm12, %v7720_v62, 0.0  ;;  %v5589_v2 = vsel %vm5319_vm13, %v7750_v31, 0.0 }
  0xd7   : > { %vm6121_vm15 = vcmp.eq.s32.totalorder %v8379_v30, %v7752_v34  ;;  %vm529_vm4 = vcmp.eq.s32.totalorder %v8382_v21, %v7557_v50  ;;  %vm1347_vm8 = vcmp.eq.s32.totalorder %v8382_v21, %v7601_v63  ;;  %vm2167_vm14 = vcmp.eq.s32.totalorder %v8382_v21, %v7621_v9 }
  0xd8   : > { %v6037_v28 = vadd.f32 %v5781_v47, %v5231_v41  ;;  %v3431_v26 = vadd.f32 %v3175_v49, %v2629_v51  ;;  %v6391_v32 = vsel %vm6121_vm15, %v7757_v38, 0.0  ;;  %v799_v40 = vsel %vm529_vm4, %v7638_v19, 0.0 }
  0xd9   : > { %v1617_v59 = vsel %vm1347_vm8, %v7652_v23, 0.0  ;;  %v2437_v29 = vsel %vm2167_vm14, %v7674_v37, 0.0  ;;  %vm2969_vm0 = vcmp.eq.s32.totalorder %v8382_v21, %v7629_v18  ;;  %vm3775_vm2 = vcmp.eq.s32.totalorder %v8382_v21, %v7680_v43 }
  0xda   : > { %v6839_v58 = vadd.f32 %v6583_v5, %v6037_v28  ;;  %v4237_v60 = vadd.f32 %v3981_v10, %v3431_v26  ;;  %v1873_v14 = vadd.f32 %v1617_v59, %v799_v40  ;;  %v3239_v47 = vsel %vm2969_vm0, %v7678_v42, 0.0 }
  0xdb   : > { %v4045_v35 = vsel %vm3775_vm2, %v7695_v45, 0.0  ;;  %vm4577_vm7 = vcmp.eq.s32.totalorder %v8382_v21, %v7726_v53  ;;  %vm5383_vm1 = vcmp.eq.s32.totalorder %v8382_v21, %v7745_v24  ;;  %vm6185_vm5 = vcmp.eq.s32.totalorder %v8382_v21, %v7752_v34 }
  0xdc   : > { %6946 = vmatpush.msra.mxu3 %v6839_v58  ;;  %v5039_v49 = vadd.f32 %v4783_v54, %v4237_v60  ;;  %v2693_v41 = vadd.f32 %v2437_v29, %v1873_v14  ;;  %v4847_v5 = vsel %vm4577_vm7, %v7720_v62, 0.0  ;;  %v5653_v10 = vsel %vm5383_vm1, %v7750_v31, 0.0 }
  0xdd   : > { %v6455_v51 = vsel %vm6185_vm5, %v7757_v38, 0.0  ;;  %v8505_v28 = vadd.s32 312, %v7489_v6  ;;  %v8508_v26 = vadd.s32 448, %v7489_v6  ;;  %v8511_v40 = vadd.s32 64, %v7489_v6 }
  0xde   : > { %v5845_v59 = vadd.f32 %v5589_v2, %v5039_v49  ;;  %v3495_v21 = vadd.f32 %v3239_v47, %v2693_v41  ;;  %v8514_v54 = vadd.s32 192, %v7489_v6  ;;  %v8517_v29 = vadd.s32 304, %v7489_v6 }
  0xdf   : > { %14897 = vst [vmem:[#allocation24_spill] sm:$0xff] %v8505_v28  ;;  %vm585_vm6 = vcmp.eq.s32.totalorder %v8505_v28, %v7557_v50  ;;  %vm1403_vm9 = vcmp.eq.s32.totalorder %v8505_v28, %v7601_v63  ;;  %vm2223_vm10 = vcmp.eq.s32.totalorder %v8505_v28, %v7621_v9  ;;  %vm3025_vm11 = vcmp.eq.s32.totalorder %v8505_v28, %v7629_v18 }
  0xe0   : > { %14898 = vst [vmem:[#allocation25_spill] sm:$0xff] %v8508_v26  ;;  %v6647_v2 = vadd.f32 %v6391_v32, %v5845_v59  ;;  %v4301_v58 = vadd.f32 %v4045_v35, %v3495_v21  ;;  %v855_v60 = vsel %vm585_vm6, %v7638_v19, 0.0  ;;  %v1673_v14 = vsel %vm1403_vm9, %v7652_v23, 0.0 }
  0xe1   : > { %14899 = vst [vmem:[#allocation26_spill] sm:$0xff] %v8511_v40  ;;  %v1929_v47 = vadd.f32 %v1673_v14, %v855_v60  ;;  %v2493_v49 = vsel %vm2223_vm10, %v7674_v37, 0.0  ;;  %v3295_v41 = vsel %vm3025_vm11, %v7678_v42, 0.0  ;;  %vm3831_vm3 = vcmp.eq.s32.totalorder %v8505_v28, %v7680_v43 }
  0xe2   : > { %14900 = vst [vmem:[#allocation27_spill] sm:$0xff] %v8514_v54  ;;  %6886 = vmatpush.msra.mxu0 %v6647_v2  ;;  %v5103_v30 = vadd.f32 %v4847_v5, %v4301_v58  ;;  %v4101_v57 = vsel %vm3831_vm3, %v7695_v45, 0.0  ;;  %vm4633_vm12 = vcmp.eq.s32.totalorder %v8505_v28, %v7726_v53  ;;  %vm5439_vm13 = vcmp.eq.s32.totalorder %v8505_v28, %v7745_v24 }
  0xe3   : > { %14901 = vst [vmem:[#allocation28_spill] sm:$0xff] %v8517_v29  ;;  %v2749_v21 = vadd.f32 %v2493_v49, %v1929_v47  ;;  %v4903_v32 = vsel %vm4633_vm12, %v7720_v62, 0.0  ;;  %v5709_v35 = vsel %vm5439_vm13, %v7750_v31, 0.0  ;;  %vm6241_vm15 = vcmp.eq.s32.totalorder %v8505_v28, %v7752_v34 }
  0xe4   : > { %v5909_v59 = vadd.f32 %v5653_v10, %v5103_v30  ;;  %v6511_v2 = vsel %vm6241_vm15, %v7757_v38, 0.0  ;;  %vm653_vm4 = vcmp.eq.s32.totalorder %v8508_v26, %v7557_v50  ;;  %vm1471_vm8 = vcmp.eq.s32.totalorder %v8508_v26, %v7601_v63 }
  0xe5   : > { %v3551_v5 = vadd.f32 %v3295_v41, %v2749_v21  ;;  %v923_v58 = vsel %vm653_vm4, %v7638_v19, 0.0  ;;  %v1741_v60 = vsel %vm1471_vm8, %v7652_v23, 0.0  ;;  %vm2291_vm14 = vcmp.eq.s32.totalorder %v8508_v26, %v7621_v9 }
  0xe6   : > { %v6711_v14 = vadd.f32 %v6455_v51, %v5909_v59  ;;  %v1997_v47 = vadd.f32 %v1741_v60, %v923_v58  ;;  %v2561_v30 = vsel %vm2291_vm14, %v7674_v37, 0.0  ;;  %vm3093_vm0 = vcmp.eq.s32.totalorder %v8508_v26, %v7629_v18 }
  0xe7   : > { %v4357_v10 = vadd.f32 %v4101_v57, %v3551_v5  ;;  %v3363_v49 = vsel %vm3093_vm0, %v7678_v42, 0.0  ;;  %vm3899_vm2 = vcmp.eq.s32.totalorder %v8508_v26, %v7680_v43  ;;  %vm4701_vm7 = vcmp.eq.s32.totalorder %v8508_v26, %v7726_v53 }
  0xe8   : > { %6906 = vmatpush.msra.mxu1 %v6711_v14  ;;  %v2817_v41 = vadd.f32 %v2561_v30, %v1997_v47  ;;  %v4169_v21 = vsel %vm3899_vm2, %v7695_v45, 0.0  ;;  %v4971_v51 = vsel %vm4701_vm7, %v7720_v62, 0.0  ;;  %vm5507_vm1 = vcmp.eq.s32.totalorder %v8508_v26, %v7745_v24 }
  0xe9   : > { %v5159_v59 = vadd.f32 %v4903_v32, %v4357_v10  ;;  %v5777_v57 = vsel %vm5507_vm1, %v7750_v31, 0.0  ;;  %vm6309_vm5 = vcmp.eq.s32.totalorder %v8508_v26, %v7752_v34  ;;  %vm461_vm6 = vcmp.eq.s32.totalorder %v8511_v40, %v7557_v50 }
  0xea   : > { %v3619_v5 = vadd.f32 %v3363_v49, %v2817_v41  ;;  %v6579_v58 = vsel %vm6309_vm5, %v7757_v38, 0.0  ;;  %v731_v60 = vsel %vm461_vm6, %v7638_v19, 0.0  ;;  %vm1279_vm9 = vcmp.eq.s32.totalorder %v8511_v40, %v7601_v63 }
  0xeb   : > { %v5965_v14 = vadd.f32 %v5709_v35, %v5159_v59  ;;  %v1549_v47 = vsel %vm1279_vm9, %v7652_v23, 0.0  ;;  %vm2099_vm10 = vcmp.eq.s32.totalorder %v8511_v40, %v7621_v9  ;;  %vm2901_vm11 = vcmp.eq.s32.totalorder %v8511_v40, %v7629_v18 }
  0xec   : > { %v4425_v32 = vadd.f32 %v4169_v21, %v3619_v5  ;;  %v1805_v30 = vadd.f32 %v1549_v47, %v731_v60  ;;  %v2369_v10 = vsel %vm2099_vm10, %v7674_v37, 0.0  ;;  %v3171_v49 = vsel %vm2901_vm11, %v7678_v42, 0.0 }
  0xed   : > { %v6767_v41 = vadd.f32 %v6511_v2, %v5965_v14  ;;  %vm3707_vm3 = vcmp.eq.s32.totalorder %v8511_v40, %v7680_v43  ;;  %vm4509_vm12 = vcmp.eq.s32.totalorder %v8511_v40, %v7726_v53  ;;  %vm5315_vm13 = vcmp.eq.s32.totalorder %v8511_v40, %v7745_v24 }
  0xee   : > { %v5227_v35 = vadd.f32 %v4971_v51, %v4425_v32  ;;  %v2625_v59 = vadd.f32 %v2369_v10, %v1805_v30  ;;  %v3977_v26 = vsel %vm3707_vm3, %v7695_v45, 0.0  ;;  %v4779_v21 = vsel %vm4509_vm12, %v7720_v62, 0.0 }
  0xef   : > { %6928 = vmatpush.msra.mxu2 %v6767_v41  ;;  %v5585_v5 = vsel %vm5315_vm13, %v7750_v31, 0.0  ;;  %vm6117_vm15 = vcmp.eq.s32.totalorder %v8511_v40, %v7752_v34  ;;  %vm525_vm4 = vcmp.eq.s32.totalorder %v8514_v54, %v7557_v50  ;;  %vm1343_vm8 = vcmp.eq.s32.totalorder %v8514_v54, %v7601_v63 }
  0xf0   : > { %v6033_v2 = vadd.f32 %v5777_v57, %v5227_v35  ;;  %v3427_v60 = vadd.f32 %v3171_v49, %v2625_v59  ;;  %v6387_v51 = vsel %vm6117_vm15, %v7757_v38, 0.0  ;;  %v795_v14 = vsel %vm525_vm4, %v7638_v19, 0.0 }
  0xf1   : > { %v1613_v47 = vsel %vm1343_vm8, %v7652_v23, 0.0  ;;  %vm2163_vm14 = vcmp.eq.s32.totalorder %v8514_v54, %v7621_v9  ;;  %vm2965_vm0 = vcmp.eq.s32.totalorder %v8514_v54, %v7629_v18  ;;  %vm3771_vm2 = vcmp.eq.s32.totalorder %v8514_v54, %v7680_v43 }
  0xf2   : > { %v6835_v32 = vadd.f32 %v6579_v58, %v6033_v2  ;;  %v4233_v30 = vadd.f32 %v3977_v26, %v3427_v60  ;;  %v1869_v10 = vadd.f32 %v1613_v47, %v795_v14  ;;  %v2433_v57 = vsel %vm2163_vm14, %v7674_v37, 0.0 }
  0xf3   : > { %v3235_v49 = vsel %vm2965_vm0, %v7678_v42, 0.0  ;;  %v4041_v41 = vsel %vm3771_vm2, %v7695_v45, 0.0  ;;  %vm4573_vm7 = vcmp.eq.s32.totalorder %v8514_v54, %v7726_v53  ;;  %vm5379_vm1 = vcmp.eq.s32.totalorder %v8514_v54, %v7745_v24 }
  0xf4   : > { %6947 = vmatpush.msra.mxu3 %v6835_v32  ;;  %v5035_v35 = vadd.f32 %v4779_v21, %v4233_v30  ;;  %v2689_v59 = vadd.f32 %v2433_v57, %v1869_v10  ;;  %v4843_v40 = vsel %vm4573_vm7, %v7720_v62, 0.0  ;;  %v5649_v26 = vsel %vm5379_vm1, %v7750_v31, 0.0 }
  0xf5   : > { %vm6181_vm5 = vcmp.eq.s32.totalorder %v8514_v54, %v7752_v34  ;;  %vm581_vm6 = vcmp.eq.s32.totalorder %v8517_v29, %v7557_v50  ;;  %vm1399_vm9 = vcmp.eq.s32.totalorder %v8517_v29, %v7601_v63  ;;  %vm2219_vm10 = vcmp.eq.s32.totalorder %v8517_v29, %v7621_v9 }
  0xf6   : > { %v5841_v58 = vadd.f32 %v5585_v5, %v5035_v35  ;;  %v3491_v2 = vadd.f32 %v3235_v49, %v2689_v59  ;;  %v6451_v21 = vsel %vm6181_vm5, %v7757_v38, 0.0  ;;  %v851_v60 = vsel %vm581_vm6, %v7638_v19, 0.0 }
  0xf7   : > { %v1669_v14 = vsel %vm1399_vm9, %v7652_v23, 0.0  ;;  %v2489_v47 = vsel %vm2219_vm10, %v7674_v37, 0.0  ;;  %vm3021_vm11 = vcmp.eq.s32.totalorder %v8517_v29, %v7629_v18  ;;  %vm3827_vm3 = vcmp.eq.s32.totalorder %v8517_v29, %v7680_v43 }
  0xf8   : > { %v6643_v32 = vadd.f32 %v6387_v51, %v5841_v58  ;;  %v4297_v30 = vadd.f32 %v4041_v41, %v3491_v2  ;;  %v1925_v10 = vadd.f32 %v1669_v14, %v851_v60  ;;  %v3291_v5 = vsel %vm3021_vm11, %v7678_v42, 0.0 }
  0xf9   : > { %v4097_v57 = vsel %vm3827_vm3, %v7695_v45, 0.0  ;;  %vm4629_vm12 = vcmp.eq.s32.totalorder %v8517_v29, %v7726_v53  ;;  %vm5435_vm13 = vcmp.eq.s32.totalorder %v8517_v29, %v7745_v24  ;;  %vm6237_vm15 = vcmp.eq.s32.totalorder %v8517_v29, %v7752_v34 }
  0xfa   : > { %6887 = vmatpush.msra.mxu0 %v6643_v32  ;;  %v5099_v49 = vadd.f32 %v4843_v40, %v4297_v30  ;;  %v2745_v35 = vadd.f32 %v2489_v47, %v1925_v10  ;;  %v4899_v51 = vsel %vm4629_vm12, %v7720_v62, 0.0  ;;  %v5705_v41 = vsel %vm5435_vm13, %v7750_v31, 0.0 }
  0xfb   : > { %v6507_v59 = vsel %vm6237_vm15, %v7757_v38, 0.0  ;;  %v8640_v58 = vadd.s32 440, %v7489_v6  ;;  %v8643_v2 = vadd.s32 56, %v7489_v6  ;;  %v8646_v60 = vadd.s32 184, %v7489_v6 }
  0xfc   : > { %v5905_v14 = vadd.f32 %v5649_v26, %v5099_v49  ;;  %v3547_v29 = vadd.f32 %v3291_v5, %v2745_v35  ;;  %v8649_v40 = vadd.s32 296, %v7489_v6  ;;  %v8652_v47 = vadd.s32 432, %v7489_v6 }
  0xfd   : > { %14902 = vst [vmem:[#allocation29_spill] sm:$0xff] %v8640_v58  ;;  %vm649_vm4 = vcmp.eq.s32.totalorder %v8640_v58, %v7557_v50  ;;  %vm1467_vm8 = vcmp.eq.s32.totalorder %v8640_v58, %v7601_v63  ;;  %vm2287_vm14 = vcmp.eq.s32.totalorder %v8640_v58, %v7621_v9  ;;  %vm3089_vm0 = vcmp.eq.s32.totalorder %v8640_v58, %v7629_v18 }
  0xfe   : > { %14903 = vst [vmem:[#allocation30_spill] sm:$0xff] %v8643_v2  ;;  %v6707_v26 = vadd.f32 %v6451_v21, %v5905_v14  ;;  %v4353_v32 = vadd.f32 %v4097_v57, %v3547_v29  ;;  %v919_v30 = vsel %vm649_vm4, %v7638_v19, 0.0  ;;  %v1737_v10 = vsel %vm1467_vm8, %v7652_v23, 0.0 }
  0xff   : > { %14904 = vst [vmem:[#allocation31_spill] sm:$0xff] %v8646_v60  ;;  %v1993_v5 = vadd.f32 %v1737_v10, %v919_v30  ;;  %v2557_v49 = vsel %vm2287_vm14, %v7674_v37, 0.0  ;;  %v3359_v35 = vsel %vm3089_vm0, %v7678_v42, 0.0  ;;  %vm3895_vm2 = vcmp.eq.s32.totalorder %v8640_v58, %v7680_v43 }
 0x100   : > { %14905 = vst [vmem:[#allocation32_spill] sm:$0xff] %v8649_v40  ;;  %6907 = vmatpush.msra.mxu1 %v6707_v26  ;;  %v5155_v54 = vadd.f32 %v4899_v51, %v4353_v32  ;;  %v4165_v28 = vsel %vm3895_vm2, %v7695_v45, 0.0  ;;  %vm4697_vm7 = vcmp.eq.s32.totalorder %v8640_v58, %v7726_v53  ;;  %vm5503_vm1 = vcmp.eq.s32.totalorder %v8640_v58, %v7745_v24 }
 0x101   : > { %14906 = vst [vmem:[#allocation33_spill] sm:$0xff] %v8652_v47  ;;  %v2813_v29 = vadd.f32 %v2557_v49, %v1993_v5  ;;  %v4967_v21 = vsel %vm4697_vm7, %v7720_v62, 0.0  ;;  %v5773_v57 = vsel %vm5503_vm1, %v7750_v31, 0.0  ;;  %vm6305_vm5 = vcmp.eq.s32.totalorder %v8640_v58, %v7752_v34 }
 0x102   : > { %v5961_v14 = vadd.f32 %v5705_v41, %v5155_v54  ;;  %v6575_v26 = vsel %vm6305_vm5, %v7757_v38, 0.0  ;;  %vm457_vm6 = vcmp.eq.s32.totalorder %v8643_v2, %v7557_v50  ;;  %vm1275_vm9 = vcmp.eq.s32.totalorder %v8643_v2, %v7601_v63 }
 0x103   : > { %v3615_v51 = vadd.f32 %v3359_v35, %v2813_v29  ;;  %v727_v32 = vsel %vm457_vm6, %v7638_v19, 0.0  ;;  %v1545_v30 = vsel %vm1275_vm9, %v7652_v23, 0.0  ;;  %vm2095_vm10 = vcmp.eq.s32.totalorder %v8643_v2, %v7621_v9 }
 0x104   : > { %v6763_v10 = vadd.f32 %v6507_v59, %v5961_v14  ;;  %v1801_v5 = vadd.f32 %v1545_v30, %v727_v32  ;;  %v2365_v54 = vsel %vm2095_vm10, %v7674_v37, 0.0  ;;  %vm2897_vm11 = vcmp.eq.s32.totalorder %v8643_v2, %v7629_v18 }
 0x105   : > { %v4421_v41 = vadd.f32 %v4165_v28, %v3615_v51  ;;  %v3167_v49 = vsel %vm2897_vm11, %v7678_v42, 0.0  ;;  %vm3703_vm3 = vcmp.eq.s32.totalorder %v8643_v2, %v7680_v43  ;;  %vm4505_vm12 = vcmp.eq.s32.totalorder %v8643_v2, %v7726_v53 }
 0x106   : > { %6929 = vmatpush.msra.mxu2 %v6763_v10  ;;  %v2621_v35 = vadd.f32 %v2365_v54, %v1801_v5  ;;  %v3973_v29 = vsel %vm3703_vm3, %v7695_v45, 0.0  ;;  %v4775_v59 = vsel %vm4505_vm12, %v7720_v62, 0.0  ;;  %vm5311_vm13 = vcmp.eq.s32.totalorder %v8643_v2, %v7745_v24 }
 0x107   : > { %v5223_v14 = vadd.f32 %v4967_v21, %v4421_v41  ;;  %v5581_v28 = vsel %vm5311_vm13, %v7750_v31, 0.0  ;;  %vm6113_vm15 = vcmp.eq.s32.totalorder %v8643_v2, %v7752_v34  ;;  %vm521_vm4 = vcmp.eq.s32.totalorder %v8646_v60, %v7557_v50 }
 0x108   : > { %v3423_v51 = vadd.f32 %v3167_v49, %v2621_v35  ;;  %v6383_v32 = vsel %vm6113_vm15, %v7757_v38, 0.0  ;;  %v791_v30 = vsel %vm521_vm4, %v7638_v19, 0.0  ;;  %vm1339_vm8 = vcmp.eq.s32.totalorder %v8646_v60, %v7601_v63 }
 0x109   : > { %v6029_v10 = vadd.f32 %v5773_v57, %v5223_v14  ;;  %v1609_v5 = vsel %vm1339_vm8, %v7652_v23, 0.0  ;;  %vm2159_vm14 = vcmp.eq.s32.totalorder %v8646_v60, %v7621_v9  ;;  %vm2961_vm0 = vcmp.eq.s32.totalorder %v8646_v60, %v7629_v18 }
 0x10a   : > { %v4229_v21 = vadd.f32 %v3973_v29, %v3423_v51  ;;  %v1865_v54 = vadd.f32 %v1609_v5, %v791_v30  ;;  %v2429_v41 = vsel %vm2159_vm14, %v7674_v37, 0.0  ;;  %v3231_v49 = vsel %vm2961_vm0, %v7678_v42, 0.0 }
 0x10b   : > { %v6831_v35 = vadd.f32 %v6575_v26, %v6029_v10  ;;  %vm3767_vm2 = vcmp.eq.s32.totalorder %v8646_v60, %v7680_v43  ;;  %vm4569_vm7 = vcmp.eq.s32.totalorder %v8646_v60, %v7726_v53  ;;  %vm5375_vm1 = vcmp.eq.s32.totalorder %v8646_v60, %v7745_v24 }
 0x10c   : > { %v5031_v57 = vadd.f32 %v4775_v59, %v4229_v21  ;;  %v2685_v14 = vadd.f32 %v2429_v41, %v1865_v54  ;;  %v4037_v2 = vsel %vm3767_vm2, %v7695_v45, 0.0  ;;  %v4839_v29 = vsel %vm4569_vm7, %v7720_v62, 0.0 }
 0x10d   : > { %6948 = vmatpush.msra.mxu3 %v6831_v35  ;;  %v5645_v51 = vsel %vm5375_vm1, %v7750_v31, 0.0  ;;  %vm6177_vm5 = vcmp.eq.s32.totalorder %v8646_v60, %v7752_v34  ;;  %vm577_vm6 = vcmp.eq.s32.totalorder %v8649_v40, %v7557_v50  ;;  %vm1395_vm9 = vcmp.eq.s32.totalorder %v8649_v40, %v7601_v63 }
 0x10e   : > { %v5837_v26 = vadd.f32 %v5581_v28, %v5031_v57  ;;  %v3487_v30 = vadd.f32 %v3231_v49, %v2685_v14  ;;  %v6447_v59 = vsel %vm6177_vm5, %v7757_v38, 0.0  ;;  %v847_v10 = vsel %vm577_vm6, %v7638_v19, 0.0 }
 0x10f   : > { %v1665_v5 = vsel %vm1395_vm9, %v7652_v23, 0.0  ;;  %vm2215_vm10 = vcmp.eq.s32.totalorder %v8649_v40, %v7621_v9  ;;  %vm3017_vm11 = vcmp.eq.s32.totalorder %v8649_v40, %v7629_v18  ;;  %vm3823_vm3 = vcmp.eq.s32.totalorder %v8649_v40, %v7680_v43 }
 0x110   : > { %v6639_v21 = vadd.f32 %v6383_v32, %v5837_v26  ;;  %v4293_v54 = vadd.f32 %v4037_v2, %v3487_v30  ;;  %v1921_v41 = vadd.f32 %v1665_v5, %v847_v10  ;;  %v2485_v28 = vsel %vm2215_vm10, %v7674_v37, 0.0 }
 0x111   : > { %v3287_v49 = vsel %vm3017_vm11, %v7678_v42, 0.0  ;;  %v4093_v35 = vsel %vm3823_vm3, %v7695_v45, 0.0  ;;  %vm4625_vm12 = vcmp.eq.s32.totalorder %v8649_v40, %v7726_v53  ;;  %vm5431_vm13 = vcmp.eq.s32.totalorder %v8649_v40, %v7745_v24 }
 0x112   : > { %6888 = vmatpush.msra.mxu0 %v6639_v21  ;;  %v5095_v57 = vadd.f32 %v4839_v29, %v4293_v54  ;;  %v2741_v14 = vadd.f32 %v2485_v28, %v1921_v41  ;;  %v4895_v60 = vsel %vm4625_vm12, %v7720_v62, 0.0  ;;  %v5701_v2 = vsel %vm5431_vm13, %v7750_v31, 0.0 }
 0x113   : > { %vm6233_vm15 = vcmp.eq.s32.totalorder %v8649_v40, %v7752_v34  ;;  %vm645_vm4 = vcmp.eq.s32.totalorder %v8652_v47, %v7557_v50  ;;  %vm1463_vm8 = vcmp.eq.s32.totalorder %v8652_v47, %v7601_v63  ;;  %vm2283_vm14 = vcmp.eq.s32.totalorder %v8652_v47, %v7621_v9 }
 0x114   : > { %v5901_v32 = vadd.f32 %v5645_v51, %v5095_v57  ;;  %v3543_v26 = vadd.f32 %v3287_v49, %v2741_v14  ;;  %v6503_v29 = vsel %vm6233_vm15, %v7757_v38, 0.0  ;;  %v915_v30 = vsel %vm645_vm4, %v7638_v19, 0.0 }
 0x115   : > { %v1733_v10 = vsel %vm1463_vm8, %v7652_v23, 0.0  ;;  %v2553_v5 = vsel %vm2283_vm14, %v7674_v37, 0.0  ;;  %vm3085_vm0 = vcmp.eq.s32.totalorder %v8652_v47, %v7629_v18  ;;  %vm3891_vm2 = vcmp.eq.s32.totalorder %v8652_v47, %v7680_v43 }
 0x116   : > { %v6703_v21 = vadd.f32 %v6447_v59, %v5901_v32  ;;  %v4349_v54 = vadd.f32 %v4093_v35, %v3543_v26  ;;  %v1989_v41 = vadd.f32 %v1733_v10, %v915_v30  ;;  %v3355_v51 = vsel %vm3085_vm0, %v7678_v42, 0.0 }
 0x117   : > { %v4161_v28 = vsel %vm3891_vm2, %v7695_v45, 0.0  ;;  %vm4693_vm7 = vcmp.eq.s32.totalorder %v8652_v47, %v7726_v53  ;;  %vm5499_vm1 = vcmp.eq.s32.totalorder %v8652_v47, %v7745_v24  ;;  %vm6301_vm5 = vcmp.eq.s32.totalorder %v8652_v47, %v7752_v34 }
 0x118   : > { %6908 = vmatpush.msra.mxu1 %v6703_v21  ;;  %v5151_v49 = vadd.f32 %v4895_v60, %v4349_v54  ;;  %v2809_v57 = vadd.f32 %v2553_v5, %v1989_v41  ;;  %v4963_v59 = vsel %vm4693_vm7, %v7720_v62, 0.0  ;;  %v5769_v35 = vsel %vm5499_vm1, %v7750_v31, 0.0 }
 0x119   : > { %v6571_v14 = vsel %vm6301_vm5, %v7757_v38, 0.0  ;;  %v8775_v32 = vadd.s32 48, %v7489_v6  ;;  %v8778_v26 = vadd.s32 176, %v7489_v6  ;;  %v8781_v30 = vadd.s32 288, %v7489_v6 }
 0x11a   : > { %v5957_v10 = vadd.f32 %v5701_v2, %v5151_v49  ;;  %v3611_v47 = vadd.f32 %v3355_v51, %v2809_v57  ;;  %v8784_v60 = vadd.s32 424, %v7489_v6  ;;  %v8787_v5 = vadd.s32 40, %v7489_v6 }
 0x11b   : > { %14907 = vst [vmem:[#allocation34_spill] sm:$0xff] %v8775_v32  ;;  %vm453_vm6 = vcmp.eq.s32.totalorder %v8775_v32, %v7557_v50  ;;  %vm1271_vm9 = vcmp.eq.s32.totalorder %v8775_v32, %v7601_v63  ;;  %vm2091_vm10 = vcmp.eq.s32.totalorder %v8775_v32, %v7621_v9  ;;  %vm2893_vm11 = vcmp.eq.s32.totalorder %v8775_v32, %v7629_v18 }
 0x11c   : > { %14908 = vst [vmem:[#allocation35_spill] sm:$0xff] %v8778_v26  ;;  %v6759_v2 = vadd.f32 %v6503_v29, %v5957_v10  ;;  %v4417_v21 = vadd.f32 %v4161_v28, %v3611_v47  ;;  %v723_v54 = vsel %vm453_vm6, %v7638_v19, 0.0  ;;  %v1541_v41 = vsel %vm1271_vm9, %v7652_v23, 0.0 }
 0x11d   : > { %14909 = vst [vmem:[#allocation36_spill] sm:$0xff] %v8781_v30  ;;  %v1797_v51 = vadd.f32 %v1541_v41, %v723_v54  ;;  %v2361_v49 = vsel %vm2091_vm10, %v7674_v37, 0.0  ;;  %v3163_v57 = vsel %vm2893_vm11, %v7678_v42, 0.0  ;;  %vm3699_vm3 = vcmp.eq.s32.totalorder %v8775_v32, %v7680_v43 }
 0x11e   : > { %14910 = vst [vmem:[#allocation37_spill] sm:$0xff] %v8784_v60  ;;  %6930 = vmatpush.msra.mxu2 %v6759_v2  ;;  %v5219_v40 = vadd.f32 %v4963_v59, %v4417_v21  ;;  %v3969_v58 = vsel %vm3699_vm3, %v7695_v45, 0.0  ;;  %vm4501_vm12 = vcmp.eq.s32.totalorder %v8775_v32, %v7726_v53  ;;  %vm5307_vm13 = vcmp.eq.s32.totalorder %v8775_v32, %v7745_v24 }
 0x11f   : > { %14911 = vst [vmem:[#allocation38_spill] sm:$0xff] %v8787_v5  ;;  %v2617_v47 = vadd.f32 %v2361_v49, %v1797_v51  ;;  %v4771_v29 = vsel %vm4501_vm12, %v7720_v62, 0.0  ;;  %v5577_v28 = vsel %vm5307_vm13, %v7750_v31, 0.0  ;;  %vm6109_vm15 = vcmp.eq.s32.totalorder %v8775_v32, %v7752_v34 }
 0x120   : > { %v6025_v10 = vadd.f32 %v5769_v35, %v5219_v40  ;;  %v6379_v2 = vsel %vm6109_vm15, %v7757_v38, 0.0  ;;  %vm517_vm4 = vcmp.eq.s32.totalorder %v8778_v26, %v7557_v50  ;;  %vm1335_vm8 = vcmp.eq.s32.totalorder %v8778_v26, %v7601_v63 }
 0x121   : > { %v3419_v59 = vadd.f32 %v3163_v57, %v2617_v47  ;;  %v787_v21 = vsel %vm517_vm4, %v7638_v19, 0.0  ;;  %v1605_v54 = vsel %vm1335_vm8, %v7652_v23, 0.0  ;;  %vm2155_vm14 = vcmp.eq.s32.totalorder %v8778_v26, %v7621_v9 }
 0x122   : > { %v6827_v41 = vadd.f32 %v6571_v14, %v6025_v10  ;;  %v1861_v51 = vadd.f32 %v1605_v54, %v787_v21  ;;  %v2425_v40 = vsel %vm2155_vm14, %v7674_v37, 0.0  ;;  %vm2957_vm0 = vcmp.eq.s32.totalorder %v8778_v26, %v7629_v18 }
 0x123   : > { %v4225_v35 = vadd.f32 %v3969_v58, %v3419_v59  ;;  %v3227_v49 = vsel %vm2957_vm0, %v7678_v42, 0.0  ;;  %vm3763_vm2 = vcmp.eq.s32.totalorder %v8778_v26, %v7680_v43  ;;  %vm4565_vm7 = vcmp.eq.s32.totalorder %v8778_v26, %v7726_v53 }
 0x124   : > { %6949 = vmatpush.msra.mxu3 %v6827_v41  ;;  %v2681_v57 = vadd.f32 %v2425_v40, %v1861_v51  ;;  %v4033_v47 = vsel %vm3763_vm2, %v7695_v45, 0.0  ;;  %v4835_v14 = vsel %vm4565_vm7, %v7720_v62, 0.0  ;;  %vm5371_vm1 = vcmp.eq.s32.totalorder %v8778_v26, %v7745_v24 }
 0x125   : > { %v5027_v10 = vadd.f32 %v4771_v29, %v4225_v35  ;;  %v5641_v58 = vsel %vm5371_vm1, %v7750_v31, 0.0  ;;  %vm6173_vm5 = vcmp.eq.s32.totalorder %v8778_v26, %v7752_v34  ;;  %vm573_vm6 = vcmp.eq.s32.totalorder %v8781_v30, %v7557_v50 }
 0x126   : > { %v3483_v59 = vadd.f32 %v3227_v49, %v2681_v57  ;;  %v6443_v21 = vsel %vm6173_vm5, %v7757_v38, 0.0  ;;  %v843_v54 = vsel %vm573_vm6, %v7638_v19, 0.0  ;;  %vm1391_vm9 = vcmp.eq.s32.totalorder %v8781_v30, %v7601_v63 }
 0x127   : > { %v5833_v41 = vadd.f32 %v5577_v28, %v5027_v10  ;;  %v1661_v51 = vsel %vm1391_vm9, %v7652_v23, 0.0  ;;  %vm2211_vm10 = vcmp.eq.s32.totalorder %v8781_v30, %v7621_v9  ;;  %vm3013_vm11 = vcmp.eq.s32.totalorder %v8781_v30, %v7629_v18 }
 0x128   : > { %v4289_v29 = vadd.f32 %v4033_v47, %v3483_v59  ;;  %v1917_v40 = vadd.f32 %v1661_v51, %v843_v54  ;;  %v2481_v35 = vsel %vm2211_vm10, %v7674_v37, 0.0  ;;  %v3283_v49 = vsel %vm3013_vm11, %v7678_v42, 0.0 }
 0x129   : > { %v6635_v57 = vadd.f32 %v6379_v2, %v5833_v41  ;;  %vm3819_vm3 = vcmp.eq.s32.totalorder %v8781_v30, %v7680_v43  ;;  %vm4621_vm12 = vcmp.eq.s32.totalorder %v8781_v30, %v7726_v53  ;;  %vm5427_vm13 = vcmp.eq.s32.totalorder %v8781_v30, %v7745_v24 }
 0x12a   : > { %v5091_v28 = vadd.f32 %v4835_v14, %v4289_v29  ;;  %v2737_v10 = vadd.f32 %v2481_v35, %v1917_v40  ;;  %v4089_v26 = vsel %vm3819_vm3, %v7695_v45, 0.0  ;;  %v4891_v47 = vsel %vm4621_vm12, %v7720_v62, 0.0 }
 0x12b   : > { %6889 = vmatpush.msra.mxu0 %v6635_v57  ;;  %v5697_v59 = vsel %vm5427_vm13, %v7750_v31, 0.0  ;;  %vm6229_vm15 = vcmp.eq.s32.totalorder %v8781_v30, %v7752_v34  ;;  %vm641_vm4 = vcmp.eq.s32.totalorder %v8784_v60, %v7557_v50  ;;  %vm1459_vm8 = vcmp.eq.s32.totalorder %v8784_v60, %v7601_v63 }
 0x12c   : > { %v5897_v2 = vadd.f32 %v5641_v58, %v5091_v28  ;;  %v3539_v54 = vadd.f32 %v3283_v49, %v2737_v10  ;;  %v6499_v14 = vsel %vm6229_vm15, %v7757_v38, 0.0  ;;  %v911_v41 = vsel %vm641_vm4, %v7638_v19, 0.0 }
 0x12d   : > { %v1729_v51 = vsel %vm1459_vm8, %v7652_v23, 0.0  ;;  %vm2279_vm14 = vcmp.eq.s32.totalorder %v8784_v60, %v7621_v9  ;;  %vm3081_vm0 = vcmp.eq.s32.totalorder %v8784_v60, %v7629_v18  ;;  %vm3887_vm2 = vcmp.eq.s32.totalorder %v8784_v60, %v7680_v43 }
 0x12e   : > { %v6699_v29 = vadd.f32 %v6443_v21, %v5897_v2  ;;  %v4345_v40 = vadd.f32 %v4089_v26, %v3539_v54  ;;  %v1985_v35 = vadd.f32 %v1729_v51, %v911_v41  ;;  %v2549_v58 = vsel %vm2279_vm14, %v7674_v37, 0.0 }
 0x12f   : > { %v3351_v49 = vsel %vm3081_vm0, %v7678_v42, 0.0  ;;  %v4157_v57 = vsel %vm3887_vm2, %v7695_v45, 0.0  ;;  %vm4689_vm7 = vcmp.eq.s32.totalorder %v8784_v60, %v7726_v53  ;;  %vm5495_vm1 = vcmp.eq.s32.totalorder %v8784_v60, %v7745_v24 }
 0x130   : > { %6909 = vmatpush.msra.mxu1 %v6699_v29  ;;  %v5147_v28 = vadd.f32 %v4891_v47, %v4345_v40  ;;  %v2805_v10 = vadd.f32 %v2549_v58, %v1985_v35  ;;  %v4959_v30 = vsel %vm4689_vm7, %v7720_v62, 0.0  ;;  %v5765_v26 = vsel %vm5495_vm1, %v7750_v31, 0.0 }
 0x131   : > { %vm6297_vm5 = vcmp.eq.s32.totalorder %v8784_v60, %v7752_v34  ;;  %vm449_vm6 = vcmp.eq.s32.totalorder %v8787_v5, %v7557_v50  ;;  %vm1267_vm9 = vcmp.eq.s32.totalorder %v8787_v5, %v7601_v63  ;;  %vm2087_vm10 = vcmp.eq.s32.totalorder %v8787_v5, %v7621_v9 }
 0x132   : > { %v5953_v21 = vadd.f32 %v5697_v59, %v5147_v28  ;;  %v3607_v2 = vadd.f32 %v3351_v49, %v2805_v10  ;;  %v6567_v47 = vsel %vm6297_vm5, %v7757_v38, 0.0  ;;  %v719_v54 = vsel %vm449_vm6, %v7638_v19, 0.0 }
 0x133   : > { %v1537_v41 = vsel %vm1267_vm9, %v7652_v23, 0.0  ;;  %v2357_v51 = vsel %vm2087_vm10, %v7674_v37, 0.0  ;;  %vm2889_vm11 = vcmp.eq.s32.totalorder %v8787_v5, %v7629_v18  ;;  %vm3695_vm3 = vcmp.eq.s32.totalorder %v8787_v5, %v7680_v43 }
 0x134   : > { %v6755_v29 = vadd.f32 %v6499_v14, %v5953_v21  ;;  %v4413_v40 = vadd.f32 %v4157_v57, %v3607_v2  ;;  %v1793_v35 = vadd.f32 %v1537_v41, %v719_v54  ;;  %v3159_v59 = vsel %vm2889_vm11, %v7678_v42, 0.0 }
 0x135   : > { %v3965_v58 = vsel %vm3695_vm3, %v7695_v45, 0.0  ;;  %vm4497_vm12 = vcmp.eq.s32.totalorder %v8787_v5, %v7726_v53  ;;  %vm5303_vm13 = vcmp.eq.s32.totalorder %v8787_v5, %v7745_v24  ;;  %vm6105_vm15 = vcmp.eq.s32.totalorder %v8787_v5, %v7752_v34 }
 0x136   : > { %6931 = vmatpush.msra.mxu2 %v6755_v29  ;;  %v5215_v49 = vadd.f32 %v4959_v30, %v4413_v40  ;;  %v2613_v28 = vadd.f32 %v2357_v51, %v1793_v35  ;;  %v4767_v14 = vsel %vm4497_vm12, %v7720_v62, 0.0  ;;  %v5573_v57 = vsel %vm5303_vm13, %v7750_v31, 0.0 }
 0x137   : > { %v6375_v10 = vsel %vm6105_vm15, %v7757_v38, 0.0  ;;  %v8910_v21 = vadd.s32 168, %v7489_v6  ;;  %v8913_v2 = vadd.s32 280, %v7489_v6  ;;  %v8916_v54 = vadd.s32 416, %v7489_v6 }
 0x138   : > { %v6021_v41 = vadd.f32 %v5765_v26, %v5215_v49  ;;  %v3415_v5 = vadd.f32 %v3159_v59, %v2613_v28  ;;  %v8919_v30 = vadd.s32 32, %v7489_v6  ;;  %v8922_v51 = vadd.s32 160, %v7489_v6 }
 0x139   : > { %14912 = vst [vmem:[#allocation39_spill] sm:$0xff] %v8910_v21  ;;  %vm513_vm4 = vcmp.eq.s32.totalorder %v8910_v21, %v7557_v50  ;;  %vm1331_vm8 = vcmp.eq.s32.totalorder %v8910_v21, %v7601_v63  ;;  %vm2151_vm14 = vcmp.eq.s32.totalorder %v8910_v21, %v7621_v9  ;;  %vm2953_vm0 = vcmp.eq.s32.totalorder %v8910_v21, %v7629_v18 }
 0x13a   : > { %14913 = vst [vmem:[#allocation40_spill] sm:$0xff] %v8913_v2  ;;  %v6823_v26 = vadd.f32 %v6567_v47, %v6021_v41  ;;  %v4221_v29 = vadd.f32 %v3965_v58, %v3415_v5  ;;  %v783_v40 = vsel %vm513_vm4, %v7638_v19, 0.0  ;;  %v1601_v35 = vsel %vm1331_vm8, %v7652_v23, 0.0 }
 0x13b   : > { %14914 = vst [vmem:[#allocation41_spill] sm:$0xff] %v8916_v54  ;;  %v1857_v59 = vadd.f32 %v1601_v35, %v783_v40  ;;  %v2421_v49 = vsel %vm2151_vm14, %v7674_v37, 0.0  ;;  %v3223_v28 = vsel %vm2953_vm0, %v7678_v42, 0.0  ;;  %vm3759_vm2 = vcmp.eq.s32.totalorder %v8910_v21, %v7680_v43 }
 0x13c   : > { %14915 = vst [vmem:[#allocation42_spill] sm:$0xff] %v8919_v30  ;;  %6950 = vmatpush.msra.mxu3 %v6823_v26  ;;  %v5023_v60 = vadd.f32 %v4767_v14, %v4221_v29  ;;  %v4029_v32 = vsel %vm3759_vm2, %v7695_v45, 0.0  ;;  %vm4561_vm7 = vcmp.eq.s32.totalorder %v8910_v21, %v7726_v53  ;;  %vm5367_vm1 = vcmp.eq.s32.totalorder %v8910_v21, %v7745_v24 }
 0x13d   : > { %14916 = vst [vmem:[#allocation43_spill] sm:$0xff] %v8922_v51  ;;  %v2677_v5 = vadd.f32 %v2421_v49, %v1857_v59  ;;  %v4831_v47 = vsel %vm4561_vm7, %v7720_v62, 0.0  ;;  %v5637_v58 = vsel %vm5367_vm1, %v7750_v31, 0.0  ;;  %vm6169_vm5 = vcmp.eq.s32.totalorder %v8910_v21, %v7752_v34 }
 0x13e   : > { %v5829_v41 = vadd.f32 %v5573_v57, %v5023_v60  ;;  %v6439_v26 = vsel %vm6169_vm5, %v7757_v38, 0.0  ;;  %vm569_vm6 = vcmp.eq.s32.totalorder %v8913_v2, %v7557_v50  ;;  %vm1387_vm9 = vcmp.eq.s32.totalorder %v8913_v2, %v7601_v63 }
 0x13f   : > { %v3479_v14 = vadd.f32 %v3223_v28, %v2677_v5  ;;  %v839_v29 = vsel %vm569_vm6, %v7638_v19, 0.0  ;;  %v1657_v40 = vsel %vm1387_vm9, %v7652_v23, 0.0  ;;  %vm2207_vm10 = vcmp.eq.s32.totalorder %v8913_v2, %v7621_v9 }
 0x140   : > { %v6631_v35 = vadd.f32 %v6375_v10, %v5829_v41  ;;  %v1913_v59 = vadd.f32 %v1657_v40, %v839_v29  ;;  %v2477_v60 = vsel %vm2207_vm10, %v7674_v37, 0.0  ;;  %vm3009_vm11 = vcmp.eq.s32.totalorder %v8913_v2, %v7629_v18 }
 0x141   : > { %v4285_v57 = vadd.f32 %v4029_v32, %v3479_v14  ;;  %v3279_v49 = vsel %vm3009_vm11, %v7678_v42, 0.0  ;;  %vm3815_vm3 = vcmp.eq.s32.totalorder %v8913_v2, %v7680_v43  ;;  %vm4617_vm12 = vcmp.eq.s32.totalorder %v8913_v2, %v7726_v53 }
 0x142   : > { %6890 = vmatpush.msra.mxu0 %v6631_v35  ;;  %v2733_v28 = vadd.f32 %v2477_v60, %v1913_v59  ;;  %v4085_v5 = vsel %vm3815_vm3, %v7695_v45, 0.0  ;;  %v4887_v10 = vsel %vm4617_vm12, %v7720_v62, 0.0  ;;  %vm5423_vm13 = vcmp.eq.s32.totalorder %v8913_v2, %v7745_v24 }
 0x143   : > { %v5087_v41 = vadd.f32 %v4831_v47, %v4285_v57  ;;  %v5693_v32 = vsel %vm5423_vm13, %v7750_v31, 0.0  ;;  %vm6225_vm15 = vcmp.eq.s32.totalorder %v8913_v2, %v7752_v34  ;;  %vm637_vm4 = vcmp.eq.s32.totalorder %v8916_v54, %v7557_v50 }
 0x144   : > { %v3535_v14 = vadd.f32 %v3279_v49, %v2733_v28  ;;  %v6495_v29 = vsel %vm6225_vm15, %v7757_v38, 0.0  ;;  %v907_v40 = vsel %vm637_vm4, %v7638_v19, 0.0  ;;  %vm1455_vm8 = vcmp.eq.s32.totalorder %v8916_v54, %v7601_v63 }
 0x145   : > { %v5893_v35 = vadd.f32 %v5637_v58, %v5087_v41  ;;  %v1725_v59 = vsel %vm1455_vm8, %v7652_v23, 0.0  ;;  %vm2275_vm14 = vcmp.eq.s32.totalorder %v8916_v54, %v7621_v9  ;;  %vm3077_vm0 = vcmp.eq.s32.totalorder %v8916_v54, %v7629_v18 }
 0x146   : > { %v4341_v47 = vadd.f32 %v4085_v5, %v3535_v14  ;;  %v1981_v60 = vadd.f32 %v1725_v59, %v907_v40  ;;  %v2545_v57 = vsel %vm2275_vm14, %v7674_v37, 0.0  ;;  %v3347_v49 = vsel %vm3077_vm0, %v7678_v42, 0.0 }
 0x147   : > { %v6695_v28 = vadd.f32 %v6439_v26, %v5893_v35  ;;  %vm3883_vm2 = vcmp.eq.s32.totalorder %v8916_v54, %v7680_v43  ;;  %vm4685_vm7 = vcmp.eq.s32.totalorder %v8916_v54, %v7726_v53  ;;  %vm5491_vm1 = vcmp.eq.s32.totalorder %v8916_v54, %v7745_v24 }
 0x148   : > { %v5143_v58 = vadd.f32 %v4887_v10, %v4341_v47  ;;  %v2801_v41 = vadd.f32 %v2545_v57, %v1981_v60  ;;  %v4153_v2 = vsel %vm3883_vm2, %v7695_v45, 0.0  ;;  %v4955_v5 = vsel %vm4685_vm7, %v7720_v62, 0.0 }
 0x149   : > { %6910 = vmatpush.msra.mxu1 %v6695_v28  ;;  %v5761_v14 = vsel %vm5491_vm1, %v7750_v31, 0.0  ;;  %vm6293_vm5 = vcmp.eq.s32.totalorder %v8916_v54, %v7752_v34  ;;  %vm445_vm6 = vcmp.eq.s32.totalorder %v8919_v30, %v7557_v50  ;;  %vm1263_vm9 = vcmp.eq.s32.totalorder %v8919_v30, %v7601_v63 }
 0x14a   : > { %v5949_v26 = vadd.f32 %v5693_v32, %v5143_v58  ;;  %v3603_v40 = vadd.f32 %v3347_v49, %v2801_v41  ;;  %v6563_v10 = vsel %vm6293_vm5, %v7757_v38, 0.0  ;;  %v715_v35 = vsel %vm445_vm6, %v7638_v19, 0.0 }
 0x14b   : > { %v1533_v59 = vsel %vm1263_vm9, %v7652_v23, 0.0  ;;  %vm2083_vm10 = vcmp.eq.s32.totalorder %v8919_v30, %v7621_v9  ;;  %vm2885_vm11 = vcmp.eq.s32.totalorder %v8919_v30, %v7629_v18  ;;  %vm3691_vm3 = vcmp.eq.s32.totalorder %v8919_v30, %v7680_v43 }
 0x14c   : > { %v6751_v47 = vadd.f32 %v6495_v29, %v5949_v26  ;;  %v4409_v60 = vadd.f32 %v4153_v2, %v3603_v40  ;;  %v1789_v57 = vadd.f32 %v1533_v59, %v715_v35  ;;  %v2353_v32 = vsel %vm2083_vm10, %v7674_v37, 0.0 }
 0x14d   : > { %v3155_v49 = vsel %vm2885_vm11, %v7678_v42, 0.0  ;;  %v3961_v28 = vsel %vm3691_vm3, %v7695_v45, 0.0  ;;  %vm4493_vm12 = vcmp.eq.s32.totalorder %v8919_v30, %v7726_v53  ;;  %vm5299_vm13 = vcmp.eq.s32.totalorder %v8919_v30, %v7745_v24 }
 0x14e   : > { %6932 = vmatpush.msra.mxu2 %v6751_v47  ;;  %v5211_v58 = vadd.f32 %v4955_v5, %v4409_v60  ;;  %v2609_v41 = vadd.f32 %v2353_v32, %v1789_v57  ;;  %v4763_v54 = vsel %vm4493_vm12, %v7720_v62, 0.0  ;;  %v5569_v2 = vsel %vm5299_vm13, %v7750_v31, 0.0 }
 0x14f   : > { %vm6101_vm15 = vcmp.eq.s32.totalorder %v8919_v30, %v7752_v34  ;;  %vm509_vm4 = vcmp.eq.s32.totalorder %v8922_v51, %v7557_v50  ;;  %vm1327_vm8 = vcmp.eq.s32.totalorder %v8922_v51, %v7601_v63  ;;  %vm2147_vm14 = vcmp.eq.s32.totalorder %v8922_v51, %v7621_v9 }
 0x150   : > { %v6017_v29 = vadd.f32 %v5761_v14, %v5211_v58  ;;  %v3411_v26 = vadd.f32 %v3155_v49, %v2609_v41  ;;  %v6371_v5 = vsel %vm6101_vm15, %v7757_v38, 0.0  ;;  %v779_v40 = vsel %vm509_vm4, %v7638_v19, 0.0 }
 0x151   : > { %v1597_v35 = vsel %vm1327_vm8, %v7652_v23, 0.0  ;;  %v2417_v59 = vsel %vm2147_vm14, %v7674_v37, 0.0  ;;  %vm2949_vm0 = vcmp.eq.s32.totalorder %v8922_v51, %v7629_v18  ;;  %vm3755_vm2 = vcmp.eq.s32.totalorder %v8922_v51, %v7680_v43 }
 0x152   : > { %v6819_v47 = vadd.f32 %v6563_v10, %v6017_v29  ;;  %v4217_v60 = vadd.f32 %v3961_v28, %v3411_v26  ;;  %v1853_v57 = vadd.f32 %v1597_v35, %v779_v40  ;;  %v3219_v14 = vsel %vm2949_vm0, %v7678_v42, 0.0 }
 0x153   : > { %v4025_v32 = vsel %vm3755_vm2, %v7695_v45, 0.0  ;;  %vm4557_vm7 = vcmp.eq.s32.totalorder %v8922_v51, %v7726_v53  ;;  %vm5363_vm1 = vcmp.eq.s32.totalorder %v8922_v51, %v7745_v24  ;;  %vm6165_vm5 = vcmp.eq.s32.totalorder %v8922_v51, %v7752_v34 }
 0x154   : > { %6951 = vmatpush.msra.mxu3 %v6819_v47  ;;  %v5019_v49 = vadd.f32 %v4763_v54, %v4217_v60  ;;  %v2673_v58 = vadd.f32 %v2417_v59, %v1853_v57  ;;  %v4827_v10 = vsel %vm4557_vm7, %v7720_v62, 0.0  ;;  %v5633_v28 = vsel %vm5363_vm1, %v7750_v31, 0.0 }
 0x155   : > { %v6435_v41 = vsel %vm6165_vm5, %v7757_v38, 0.0  ;;  %v9045_v29 = vadd.s32 272, %v7489_v6  ;;  %v9048_v26 = vadd.s32 408, %v7489_v6  ;;  %v9051_v40 = vadd.s32 24, %v7489_v6 }
 0x156   : > { %v5825_v35 = vadd.f32 %v5569_v2, %v5019_v49  ;;  %v3475_v51 = vadd.f32 %v3219_v14, %v2673_v58  ;;  %v9054_v54 = vadd.s32 152, %v7489_v6  ;;  %v9057_v59 = vadd.s32 264, %v7489_v6 }
 0x157   : > { %14917 = vst [vmem:[#allocation44_spill] sm:$0xff] %v9045_v29  ;;  %vm565_vm6 = vcmp.eq.s32.totalorder %v9045_v29, %v7557_v50  ;;  %vm1383_vm9 = vcmp.eq.s32.totalorder %v9045_v29, %v7601_v63  ;;  %vm2203_vm10 = vcmp.eq.s32.totalorder %v9045_v29, %v7621_v9  ;;  %vm3005_vm11 = vcmp.eq.s32.totalorder %v9045_v29, %v7629_v18 }
 0x158   : > { %14918 = vst [vmem:[#allocation45_spill] sm:$0xff] %v9048_v26  ;;  %v6627_v2 = vadd.f32 %v6371_v5, %v5825_v35  ;;  %v4281_v47 = vadd.f32 %v4025_v32, %v3475_v51  ;;  %v835_v60 = vsel %vm565_vm6, %v7638_v19, 0.0  ;;  %v1653_v57 = vsel %vm1383_vm9, %v7652_v23, 0.0 }
 0x159   : > { %14919 = vst [vmem:[#allocation46_spill] sm:$0xff] %v9051_v40  ;;  %v1909_v14 = vadd.f32 %v1653_v57, %v835_v60  ;;  %v2473_v49 = vsel %vm2203_vm10, %v7674_v37, 0.0  ;;  %v3275_v58 = vsel %vm3005_vm11, %v7678_v42, 0.0  ;;  %vm3811_vm3 = vcmp.eq.s32.totalorder %v9045_v29, %v7680_v43 }
 0x15a   : > { %14920 = vst [vmem:[#allocation47_spill] sm:$0xff] %v9054_v54  ;;  %6891 = vmatpush.msra.mxu0 %v6627_v2  ;;  %v5083_v30 = vadd.f32 %v4827_v10, %v4281_v47  ;;  %v4081_v21 = vsel %vm3811_vm3, %v7695_v45, 0.0  ;;  %vm4613_vm12 = vcmp.eq.s32.totalorder %v9045_v29, %v7726_v53  ;;  %vm5419_vm13 = vcmp.eq.s32.totalorder %v9045_v29, %v7745_v24 }
 0x15b   : > { %14921 = vst [vmem:[#allocation48_spill] sm:$0xff] %v9057_v59  ;;  %v2729_v51 = vadd.f32 %v2473_v49, %v1909_v14  ;;  %v4883_v5 = vsel %vm4613_vm12, %v7720_v62, 0.0  ;;  %v5689_v32 = vsel %vm5419_vm13, %v7750_v31, 0.0  ;;  %vm6221_vm15 = vcmp.eq.s32.totalorder %v9045_v29, %v7752_v34 }
 0x15c   : > { %v5889_v35 = vadd.f32 %v5633_v28, %v5083_v30  ;;  %v6491_v2 = vsel %vm6221_vm15, %v7757_v38, 0.0  ;;  %vm633_vm4 = vcmp.eq.s32.totalorder %v9048_v26, %v7557_v50  ;;  %vm1451_vm8 = vcmp.eq.s32.totalorder %v9048_v26, %v7601_v63 }
 0x15d   : > { %v3531_v10 = vadd.f32 %v3275_v58, %v2729_v51  ;;  %v903_v47 = vsel %vm633_vm4, %v7638_v19, 0.0  ;;  %v1721_v60 = vsel %vm1451_vm8, %v7652_v23, 0.0  ;;  %vm2271_vm14 = vcmp.eq.s32.totalorder %v9048_v26, %v7621_v9 }
 0x15e   : > { %v6691_v57 = vadd.f32 %v6435_v41, %v5889_v35  ;;  %v1977_v14 = vadd.f32 %v1721_v60, %v903_v47  ;;  %v2541_v30 = vsel %vm2271_vm14, %v7674_v37, 0.0  ;;  %vm3073_vm0 = vcmp.eq.s32.totalorder %v9048_v26, %v7629_v18 }
 0x15f   : > { %v4337_v28 = vadd.f32 %v4081_v21, %v3531_v10  ;;  %v3343_v49 = vsel %vm3073_vm0, %v7678_v42, 0.0  ;;  %vm3879_vm2 = vcmp.eq.s32.totalorder %v9048_v26, %v7680_v43  ;;  %vm4681_vm7 = vcmp.eq.s32.totalorder %v9048_v26, %v7726_v53 }
 0x160   : > { %6911 = vmatpush.msra.mxu1 %v6691_v57  ;;  %v2797_v58 = vadd.f32 %v2541_v30, %v1977_v14  ;;  %v4149_v51 = vsel %vm3879_vm2, %v7695_v45, 0.0  ;;  %v4951_v41 = vsel %vm4681_vm7, %v7720_v62, 0.0  ;;  %vm5487_vm1 = vcmp.eq.s32.totalorder %v9048_v26, %v7745_v24 }
 0x161   : > { %v5139_v35 = vadd.f32 %v4883_v5, %v4337_v28  ;;  %v5757_v21 = vsel %vm5487_vm1, %v7750_v31, 0.0  ;;  %vm6289_vm5 = vcmp.eq.s32.totalorder %v9048_v26, %v7752_v34  ;;  %vm441_vm6 = vcmp.eq.s32.totalorder %v9051_v40, %v7557_v50 }
 0x162   : > { %v3599_v10 = vadd.f32 %v3343_v49, %v2797_v58  ;;  %v6559_v47 = vsel %vm6289_vm5, %v7757_v38, 0.0  ;;  %v711_v60 = vsel %vm441_vm6, %v7638_v19, 0.0  ;;  %vm1259_vm9 = vcmp.eq.s32.totalorder %v9051_v40, %v7601_v63 }
 0x163   : > { %v5945_v57 = vadd.f32 %v5689_v32, %v5139_v35  ;;  %v1529_v14 = vsel %vm1259_vm9, %v7652_v23, 0.0  ;;  %vm2079_vm10 = vcmp.eq.s32.totalorder %v9051_v40, %v7621_v9  ;;  %vm2881_vm11 = vcmp.eq.s32.totalorder %v9051_v40, %v7629_v18 }
 0x164   : > { %v4405_v5 = vadd.f32 %v4149_v51, %v3599_v10  ;;  %v1785_v30 = vadd.f32 %v1529_v14, %v711_v60  ;;  %v2349_v28 = vsel %vm2079_vm10, %v7674_v37, 0.0  ;;  %v3151_v49 = vsel %vm2881_vm11, %v7678_v42, 0.0 }
 0x165   : > { %v6747_v58 = vadd.f32 %v6491_v2, %v5945_v57  ;;  %vm3687_vm3 = vcmp.eq.s32.totalorder %v9051_v40, %v7680_v43  ;;  %vm4489_vm12 = vcmp.eq.s32.totalorder %v9051_v40, %v7726_v53  ;;  %vm5295_vm13 = vcmp.eq.s32.totalorder %v9051_v40, %v7745_v24 }
 0x166   : > { %v5207_v32 = vadd.f32 %v4951_v41, %v4405_v5  ;;  %v2605_v35 = vadd.f32 %v2349_v28, %v1785_v30  ;;  %v3957_v26 = vsel %vm3687_vm3, %v7695_v45, 0.0  ;;  %v4759_v51 = vsel %vm4489_vm12, %v7720_v62, 0.0 }
 0x167   : > { %6933 = vmatpush.msra.mxu2 %v6747_v58  ;;  %v5565_v10 = vsel %vm5295_vm13, %v7750_v31, 0.0  ;;  %vm6097_vm15 = vcmp.eq.s32.totalorder %v9051_v40, %v7752_v34  ;;  %vm505_vm4 = vcmp.eq.s32.totalorder %v9054_v54, %v7557_v50  ;;  %vm1323_vm8 = vcmp.eq.s32.totalorder %v9054_v54, %v7601_v63 }
 0x168   : > { %v6013_v2 = vadd.f32 %v5757_v21, %v5207_v32  ;;  %v3407_v60 = vadd.f32 %v3151_v49, %v2605_v35  ;;  %v6367_v41 = vsel %vm6097_vm15, %v7757_v38, 0.0  ;;  %v775_v57 = vsel %vm505_vm4, %v7638_v19, 0.0 }
 0x169   : > { %v1593_v14 = vsel %vm1323_vm8, %v7652_v23, 0.0  ;;  %vm2143_vm14 = vcmp.eq.s32.totalorder %v9054_v54, %v7621_v9  ;;  %vm2945_vm0 = vcmp.eq.s32.totalorder %v9054_v54, %v7629_v18  ;;  %vm3751_vm2 = vcmp.eq.s32.totalorder %v9054_v54, %v7680_v43 }
 0x16a   : > { %v6815_v5 = vadd.f32 %v6559_v47, %v6013_v2  ;;  %v4213_v30 = vadd.f32 %v3957_v26, %v3407_v60  ;;  %v1849_v28 = vadd.f32 %v1593_v14, %v775_v57  ;;  %v2413_v21 = vsel %vm2143_vm14, %v7674_v37, 0.0 }
 0x16b   : > { %v3215_v49 = vsel %vm2945_vm0, %v7678_v42, 0.0  ;;  %v4021_v58 = vsel %vm3751_vm2, %v7695_v45, 0.0  ;;  %vm4553_vm7 = vcmp.eq.s32.totalorder %v9054_v54, %v7726_v53  ;;  %vm5359_vm1 = vcmp.eq.s32.totalorder %v9054_v54, %v7745_v24 }
 0x16c   : > { %6952 = vmatpush.msra.mxu3 %v6815_v5  ;;  %v5015_v32 = vadd.f32 %v4759_v51, %v4213_v30  ;;  %v2669_v35 = vadd.f32 %v2413_v21, %v1849_v28  ;;  %v4823_v40 = vsel %vm4553_vm7, %v7720_v62, 0.0  ;;  %v5629_v26 = vsel %vm5359_vm1, %v7750_v31, 0.0 }
 0x16d   : > { %vm6161_vm5 = vcmp.eq.s32.totalorder %v9054_v54, %v7752_v34  ;;  %vm561_vm6 = vcmp.eq.s32.totalorder %v9057_v59, %v7557_v50  ;;  %vm1379_vm9 = vcmp.eq.s32.totalorder %v9057_v59, %v7601_v63  ;;  %vm2199_vm10 = vcmp.eq.s32.totalorder %v9057_v59, %v7621_v9 }
 0x16e   : > { %v5821_v47 = vadd.f32 %v5565_v10, %v5015_v32  ;;  %v3471_v2 = vadd.f32 %v3215_v49, %v2669_v35  ;;  %v6431_v51 = vsel %vm6161_vm5, %v7757_v38, 0.0  ;;  %v831_v60 = vsel %vm561_vm6, %v7638_v19, 0.0 }
 0x16f   : > { %v1649_v57 = vsel %vm1379_vm9, %v7652_v23, 0.0  ;;  %v2469_v14 = vsel %vm2199_vm10, %v7674_v37, 0.0  ;;  %vm3001_vm11 = vcmp.eq.s32.totalorder %v9057_v59, %v7629_v18  ;;  %vm3807_vm3 = vcmp.eq.s32.totalorder %v9057_v59, %v7680_v43 }
 0x170   : > { %v6623_v5 = vadd.f32 %v6367_v41, %v5821_v47  ;;  %v4277_v30 = vadd.f32 %v4021_v58, %v3471_v2  ;;  %v1905_v28 = vadd.f32 %v1649_v57, %v831_v60  ;;  %v3271_v10 = vsel %vm3001_vm11, %v7678_v42, 0.0 }
 0x171   : > { %v4077_v21 = vsel %vm3807_vm3, %v7695_v45, 0.0  ;;  %vm4609_vm12 = vcmp.eq.s32.totalorder %v9057_v59, %v7726_v53  ;;  %vm5415_vm13 = vcmp.eq.s32.totalorder %v9057_v59, %v7745_v24  ;;  %vm6217_vm15 = vcmp.eq.s32.totalorder %v9057_v59, %v7752_v34 }
 0x172   : > { %6892 = vmatpush.msra.mxu0 %v6623_v5  ;;  %v5079_v49 = vadd.f32 %v4823_v40, %v4277_v30  ;;  %v2725_v32 = vadd.f32 %v2469_v14, %v1905_v28  ;;  %v4879_v41 = vsel %vm4609_vm12, %v7720_v62, 0.0  ;;  %v5685_v58 = vsel %vm5415_vm13, %v7750_v31, 0.0 }
 0x173   : > { %v6487_v35 = vsel %vm6217_vm15, %v7757_v38, 0.0  ;;  %v9180_v47 = vadd.s32 400, %v7489_v6  ;;  %v9183_v2 = vadd.s32 16, %v7489_v6  ;;  %v9186_v60 = vadd.s32 144, %v7489_v6 }
 0x174   : > { %v5885_v57 = vadd.f32 %v5629_v26, %v5079_v49  ;;  %v3527_v59 = vadd.f32 %v3271_v10, %v2725_v32  ;;  %v9189_v40 = vadd.s32 256, %v7489_v6  ;;  %v9192_v14 = vadd.s32 392, %v7489_v6 }
 0x175   : > { %14922 = vst [vmem:[#allocation49_spill] sm:$0xff] %v9180_v47  ;;  %vm629_vm4 = vcmp.eq.s32.totalorder %v9180_v47, %v7557_v50  ;;  %vm1447_vm8 = vcmp.eq.s32.totalorder %v9180_v47, %v7601_v63  ;;  %vm2267_vm14 = vcmp.eq.s32.totalorder %v9180_v47, %v7621_v9  ;;  %vm3069_vm0 = vcmp.eq.s32.totalorder %v9180_v47, %v7629_v18 }
 0x176   : > { %14923 = vst [vmem:[#allocation50_spill] sm:$0xff] %v9183_v2  ;;  %v6687_v26 = vadd.f32 %v6431_v51, %v5885_v57  ;;  %v4333_v5 = vadd.f32 %v4077_v21, %v3527_v59  ;;  %v899_v30 = vsel %vm629_vm4, %v7638_v19, 0.0  ;;  %v1717_v28 = vsel %vm1447_vm8, %v7652_v23, 0.0 }
 0x177   : > { %14924 = vst [vmem:[#allocation51_spill] sm:$0xff] %v9186_v60  ;;  %v1973_v10 = vadd.f32 %v1717_v28, %v899_v30  ;;  %v2537_v49 = vsel %vm2267_vm14, %v7674_v37, 0.0  ;;  %v3339_v32 = vsel %vm3069_vm0, %v7678_v42, 0.0  ;;  %vm3875_vm2 = vcmp.eq.s32.totalorder %v9180_v47, %v7680_v43 }
 0x178   : > { %14925 = vst [vmem:[#allocation52_spill] sm:$0xff] %v9189_v40  ;;  %6912 = vmatpush.msra.mxu1 %v6687_v26  ;;  %v5135_v54 = vadd.f32 %v4879_v41, %v4333_v5  ;;  %v4145_v29 = vsel %vm3875_vm2, %v7695_v45, 0.0  ;;  %vm4677_vm7 = vcmp.eq.s32.totalorder %v9180_v47, %v7726_v53  ;;  %vm5483_vm1 = vcmp.eq.s32.totalorder %v9180_v47, %v7745_v24 }
 0x179   : > { %14926 = vst [vmem:[#allocation53_spill] sm:$0xff] %v9192_v14  ;;  %v2793_v59 = vadd.f32 %v2537_v49, %v1973_v10  ;;  %v4947_v51 = vsel %vm4677_vm7, %v7720_v62, 0.0  ;;  %v5753_v21 = vsel %vm5483_vm1, %v7750_v31, 0.0  ;;  %vm6285_vm5 = vcmp.eq.s32.totalorder %v9180_v47, %v7752_v34 }
 0x17a   : > { %v5941_v57 = vadd.f32 %v5685_v58, %v5135_v54  ;;  %v6555_v26 = vsel %vm6285_vm5, %v7757_v38, 0.0  ;;  %vm437_vm6 = vcmp.eq.s32.totalorder %v9183_v2, %v7557_v50  ;;  %vm1255_vm9 = vcmp.eq.s32.totalorder %v9183_v2, %v7601_v63 }
 0x17b   : > { %v3595_v41 = vadd.f32 %v3339_v32, %v2793_v59  ;;  %v707_v5 = vsel %vm437_vm6, %v7638_v19, 0.0  ;;  %v1525_v30 = vsel %vm1255_vm9, %v7652_v23, 0.0  ;;  %vm2075_vm10 = vcmp.eq.s32.totalorder %v9183_v2, %v7621_v9 }
 0x17c   : > { %v6743_v28 = vadd.f32 %v6487_v35, %v5941_v57  ;;  %v1781_v10 = vadd.f32 %v1525_v30, %v707_v5  ;;  %v2345_v54 = vsel %vm2075_vm10, %v7674_v37, 0.0  ;;  %vm2877_vm11 = vcmp.eq.s32.totalorder %v9183_v2, %v7629_v18 }
 0x17d   : > { %v4401_v58 = vadd.f32 %v4145_v29, %v3595_v41  ;;  %v3147_v49 = vsel %vm2877_vm11, %v7678_v42, 0.0  ;;  %vm3683_vm3 = vcmp.eq.s32.totalorder %v9183_v2, %v7680_v43  ;;  %vm4485_vm12 = vcmp.eq.s32.totalorder %v9183_v2, %v7726_v53 }
 0x17e   : > { %6934 = vmatpush.msra.mxu2 %v6743_v28  ;;  %v2601_v32 = vadd.f32 %v2345_v54, %v1781_v10  ;;  %v3953_v59 = vsel %vm3683_vm3, %v7695_v45, 0.0  ;;  %v4755_v35 = vsel %vm4485_vm12, %v7720_v62, 0.0  ;;  %vm5291_vm13 = vcmp.eq.s32.totalorder %v9183_v2, %v7745_v24 }
 0x17f   : > { %v5203_v57 = vadd.f32 %v4947_v51, %v4401_v58  ;;  %v5561_v29 = vsel %vm5291_vm13, %v7750_v31, 0.0  ;;  %vm6093_vm15 = vcmp.eq.s32.totalorder %v9183_v2, %v7752_v34  ;;  %vm501_vm4 = vcmp.eq.s32.totalorder %v9186_v60, %v7557_v50 }
 0x180   : > { %v3403_v41 = vadd.f32 %v3147_v49, %v2601_v32  ;;  %v6363_v5 = vsel %vm6093_vm15, %v7757_v38, 0.0  ;;  %v771_v30 = vsel %vm501_vm4, %v7638_v19, 0.0  ;;  %vm1319_vm8 = vcmp.eq.s32.totalorder %v9186_v60, %v7601_v63 }
 0x181   : > { %v6009_v28 = vadd.f32 %v5753_v21, %v5203_v57  ;;  %v1589_v10 = vsel %vm1319_vm8, %v7652_v23, 0.0  ;;  %vm2139_vm14 = vcmp.eq.s32.totalorder %v9186_v60, %v7621_v9  ;;  %vm2941_vm0 = vcmp.eq.s32.totalorder %v9186_v60, %v7629_v18 }
 0x182   : > { %v4209_v51 = vadd.f32 %v3953_v59, %v3403_v41  ;;  %v1845_v54 = vadd.f32 %v1589_v10, %v771_v30  ;;  %v2409_v58 = vsel %vm2139_vm14, %v7674_v37, 0.0  ;;  %v3211_v49 = vsel %vm2941_vm0, %v7678_v42, 0.0 }
 0x183   : > { %v6811_v32 = vadd.f32 %v6555_v26, %v6009_v28  ;;  %vm3747_vm2 = vcmp.eq.s32.totalorder %v9186_v60, %v7680_v43  ;;  %vm4549_vm7 = vcmp.eq.s32.totalorder %v9186_v60, %v7726_v53  ;;  %vm5355_vm1 = vcmp.eq.s32.totalorder %v9186_v60, %v7745_v24 }
 0x184   : > { %v5011_v21 = vadd.f32 %v4755_v35, %v4209_v51  ;;  %v2665_v57 = vadd.f32 %v2409_v58, %v1845_v54  ;;  %v4017_v2 = vsel %vm3747_vm2, %v7695_v45, 0.0  ;;  %v4819_v59 = vsel %vm4549_vm7, %v7720_v62, 0.0 }
 0x185   : > { %6953 = vmatpush.msra.mxu3 %v6811_v32  ;;  %v5625_v41 = vsel %vm5355_vm1, %v7750_v31, 0.0  ;;  %vm6157_vm5 = vcmp.eq.s32.totalorder %v9186_v60, %v7752_v34  ;;  %vm557_vm6 = vcmp.eq.s32.totalorder %v9189_v40, %v7557_v50  ;;  %vm1375_vm9 = vcmp.eq.s32.totalorder %v9189_v40, %v7601_v63 }
 0x186   : > { %v5817_v26 = vadd.f32 %v5561_v29, %v5011_v21  ;;  %v3467_v30 = vadd.f32 %v3211_v49, %v2665_v57  ;;  %v6427_v35 = vsel %vm6157_vm5, %v7757_v38, 0.0  ;;  %v827_v28 = vsel %vm557_vm6, %v7638_v19, 0.0 }
 0x187   : > { %v1645_v10 = vsel %vm1375_vm9, %v7652_v23, 0.0  ;;  %vm2195_vm10 = vcmp.eq.s32.totalorder %v9189_v40, %v7621_v9  ;;  %vm2997_vm11 = vcmp.eq.s32.totalorder %v9189_v40, %v7629_v18  ;;  %vm3803_vm3 = vcmp.eq.s32.totalorder %v9189_v40, %v7680_v43 }
 0x188   : > { %v6619_v51 = vadd.f32 %v6363_v5, %v5817_v26  ;;  %v4273_v54 = vadd.f32 %v4017_v2, %v3467_v30  ;;  %v1901_v58 = vadd.f32 %v1645_v10, %v827_v28  ;;  %v2465_v29 = vsel %vm2195_vm10, %v7674_v37, 0.0 }
 0x189   : > { %v3267_v49 = vsel %vm2997_vm11, %v7678_v42, 0.0  ;;  %v4073_v32 = vsel %vm3803_vm3, %v7695_v45, 0.0  ;;  %vm4605_vm12 = vcmp.eq.s32.totalorder %v9189_v40, %v7726_v53  ;;  %vm5411_vm13 = vcmp.eq.s32.totalorder %v9189_v40, %v7745_v24 }
 0x18a   : > { %6893 = vmatpush.msra.mxu0 %v6619_v51  ;;  %v5075_v21 = vadd.f32 %v4819_v59, %v4273_v54  ;;  %v2721_v57 = vadd.f32 %v2465_v29, %v1901_v58  ;;  %v4875_v60 = vsel %vm4605_vm12, %v7720_v62, 0.0  ;;  %v5681_v2 = vsel %vm5411_vm13, %v7750_v31, 0.0 }
 0x18b   : > { %vm6213_vm15 = vcmp.eq.s32.totalorder %v9189_v40, %v7752_v34  ;;  %vm625_vm4 = vcmp.eq.s32.totalorder %v9192_v14, %v7557_v50  ;;  %vm1443_vm8 = vcmp.eq.s32.totalorder %v9192_v14, %v7601_v63  ;;  %vm2263_vm14 = vcmp.eq.s32.totalorder %v9192_v14, %v7621_v9 }
 0x18c   : > { %v5881_v5 = vadd.f32 %v5625_v41, %v5075_v21  ;;  %v3523_v26 = vadd.f32 %v3267_v49, %v2721_v57  ;;  %v6483_v59 = vsel %vm6213_vm15, %v7757_v38, 0.0  ;;  %v895_v30 = vsel %vm625_vm4, %v7638_v19, 0.0 }
 0x18d   : > { %v1713_v28 = vsel %vm1443_vm8, %v7652_v23, 0.0  ;;  %v2533_v10 = vsel %vm2263_vm14, %v7674_v37, 0.0  ;;  %vm3065_vm0 = vcmp.eq.s32.totalorder %v9192_v14, %v7629_v18  ;;  %vm3871_vm2 = vcmp.eq.s32.totalorder %v9192_v14, %v7680_v43 }
 0x18e   : > { %v6683_v51 = vadd.f32 %v6427_v35, %v5881_v5  ;;  %v4329_v54 = vadd.f32 %v4073_v32, %v3523_v26  ;;  %v1969_v58 = vadd.f32 %v1713_v28, %v895_v30  ;;  %v3335_v41 = vsel %vm3065_vm0, %v7678_v42, 0.0 }
 0x18f   : > { %v4141_v29 = vsel %vm3871_vm2, %v7695_v45, 0.0  ;;  %vm4673_vm7 = vcmp.eq.s32.totalorder %v9192_v14, %v7726_v53  ;;  %vm5479_vm1 = vcmp.eq.s32.totalorder %v9192_v14, %v7745_v24  ;;  %vm6281_vm5 = vcmp.eq.s32.totalorder %v9192_v14, %v7752_v34 }
 0x190   : > { %6913 = vmatpush.msra.mxu1 %v6683_v51  ;;  %v5131_v49 = vadd.f32 %v4875_v60, %v4329_v54  ;;  %v2789_v21 = vadd.f32 %v2533_v10, %v1969_v58  ;;  %v4943_v35 = vsel %vm4673_vm7, %v7720_v62, 0.0  ;;  %v5749_v32 = vsel %vm5479_vm1, %v7750_v31, 0.0 }
 0x191   : > { %v6551_v57 = vsel %vm6281_vm5, %v7757_v38, 0.0  ;;  %v422_v5 = vperm.slane %v7528_v33, 4  ;;  %v688_v26 = vperm.slane %v7598_v61, 4  ;;  %v1240_v30 = vperm.slane %v7551_v48, 4 }
 0x192   : > { %v5937_v28 = vadd.f32 %v5681_v2, %v5131_v49  ;;  %v3591_v40 = vadd.f32 %v3335_v41, %v2789_v21  ;;  %v1506_v47 = vperm.slane %v7608_v1, 4  ;;  %v2060_v51 = vperm.slane %v7581_v55, 4 }
 0x193   : > { %v9319_v60 = vperm.slane %v422_v5, 0  ;;  %v9321_v10 = vperm.slane %v688_v26, 0  ;;  %v9323_v54 = vperm.slane %v1240_v30, 0  ;;  %v2326_v58 = vperm.slane %v7626_v16, 4 }
 0x194   : > { %v6739_v14 = vadd.f32 %v6483_v59, %v5937_v28  ;;  %v4397_v33 = vadd.f32 %v4141_v29, %v3591_v40  ;;  %v9326_v39 = vperm.slane %v1506_v47, 0  ;;  %v9328_v61 = vperm.slane %v2060_v51, 0 }
 0x195   : > { %vm618_vm6 = vcmp.eq.s32.totalorder %v7496_v11, %v9319_v60  ;;  %vm1436_vm9 = vcmp.eq.s32.totalorder %v7496_v11, %v9323_v54  ;;  %v9334_v48 = vperm.slane %v2326_v58, 0  ;;  %v2862_v55 = vperm.slane %v7584_v56, 4 }
 0x196   : > { %6935 = vmatpush.msra.mxu2 %v6739_v14  ;;  %v5199_v1 = vadd.f32 %v4943_v35, %v4397_v33  ;;  %v888_v16 = vsel %vm618_vm6, %v9321_v10, 0.0  ;;  %v1706_v40 = vsel %vm1436_vm9, %v9326_v39, 0.0  ;;  %vm2256_vm10 = vcmp.eq.s32.totalorder %v7496_v11, %v9328_v61 }
 0x197   : > { %v1962_v47 = vadd.f32 %v1706_v40, %v888_v16  ;;  %v2526_v2 = vsel %vm2256_vm10, %v9334_v48, 0.0  ;;  %v9342_v59 = vperm.slane %v2862_v55, 0  ;;  %v3128_v41 = vperm.slane %v7642_v20, 4 }
 0x198   : > { %v6005_v29 = vadd.f32 %v5749_v32, %v5199_v1  ;;  %v3668_v49 = vperm.slane %v7615_v4, 4  ;;  %v3934_v56 = vperm.slane %v7657_v25, 4  ;;  %v4470_v14 = vperm.slane %v7698_v46, 4 }
 0x199   : > { %v2782_v21 = vadd.f32 %v2526_v2, %v1962_v47  ;;  %vm3058_vm11 = vcmp.eq.s32.totalorder %v7496_v11, %v9342_v59  ;;  %v9350_v35 = vperm.slane %v3128_v41, 0  ;;  %v4736_v5 = vperm.slane %v7682_v44, 4 }
 0x19a   : > { %v6807_v26 = vadd.f32 %v6551_v57, %v6005_v29  ;;  %v9353_v30 = vperm.slane %v3668_v49, 0  ;;  %v9355_v28 = vperm.slane %v3934_v56, 0  ;;  %v9357_v20 = vperm.slane %v4470_v14, 0 }
 0x19b   : > { %v3328_v4 = vsel %vm3058_vm11, %v9350_v35, 0.0  ;;  %v9360_v25 = vperm.slane %v4736_v5, 0  ;;  %v5276_v46 = vperm.slane %v7723_v0, 4  ;;  %v5542_v32 = vperm.slane %v7728_v52, 4 }
 0x19c   : > { %6954 = vmatpush.msra.mxu3 %v6807_v26  ;;  %v3584_v51 = vadd.f32 %v3328_v4, %v2782_v21  ;;  %vm3864_vm3 = vcmp.eq.s32.totalorder %v7496_v11, %v9353_v30  ;;  %vm4666_vm12 = vcmp.eq.s32.totalorder %v7496_v11, %v9357_v20  ;;  %v6078_v44 = vperm.slane %v7732_v3, 4 }
 0x19d   : > { %v4134_v57 = vsel %vm3864_vm3, %v9355_v28, 0.0  ;;  %v4936_v58 = vsel %vm4666_vm12, %v9360_v25, 0.0  ;;  %v9371_v33 = vperm.slane %v5276_v46, 0  ;;  %v9373_v55 = vperm.slane %v5542_v32, 0 }
 0x19e   : > { %v4390_v0 = vadd.f32 %v4134_v57, %v3584_v51  ;;  %v9375_v52 = vperm.slane %v6078_v44, 0  ;;  %v6344_v1 = vperm.slane %v7735_v8, 4  ;;  %v9379_v16 = vadd.s32 8, %v7489_v6 }
 0x19f   : > { %v14928_v40 = vfloor.f32 %v7491_v7  ;;  %vm5472_vm13 = vcmp.eq.s32.totalorder %v7496_v11, %v9371_v33  ;;  %v9388_v3 = vadd.s32 136, %v7489_v6  ;;  %v9410_v26 = vadd.s32 384, %v7489_v6 }
 0x1a0   : > { %14927 = vst [vmem:[#allocation54_spill] sm:$0xff] %v9379_v16  ;;  %v5192_v2 = vadd.f32 %v4936_v58, %v4390_v0  ;;  %v5742_v41 = vsel %vm5472_vm13, %v9373_v55, 0.0  ;;  %vm6274_vm15 = vcmp.eq.s32.totalorder %v7496_v11, %v9375_v52  ;;  %v9393_v8 = vperm.slane %v6344_v1, 0 }
 0x1a1   : > { %v9383_v47 = vcvt.f32.s32 %v14928_v40  ;;  %14929 = vst [vmem:[#allocation55_spill] sm:$0xff] %v9388_v3  ;;  %vm433_vm4 = vcmp.eq.s32.totalorder %v9379_v16, %v7557_v50  ;;  %vm1251_vm8 = vcmp.eq.s32.totalorder %v9379_v16, %v7601_v63  ;;  %vm2071_vm14 = vcmp.eq.s32.totalorder %v9379_v16, %v7621_v9 }
 0x1a2   : > { %vm2873_vm0 = vcmp.eq.s32.totalorder %v9379_v16, %v7629_v18  ;;  %v5998_v29 = vadd.f32 %v5742_v41, %v5192_v2  ;;  %v6544_v49 = vsel %vm6274_vm15, %v9393_v8, 0.0  ;;  %v703_v56 = vsel %vm433_vm4, %v7638_v19, 0.0  ;;  %14930 = vst [vmem:[#allocation56_spill] sm:$0xff] %v9410_v26 }
 0x1a3   : > { %v1521_v14 = vsel %vm1251_vm8, %v7652_v23, 0.0  ;;  %v2341_v5 = vsel %vm2071_vm14, %v7674_v37, 0.0  ;;  %vm3679_vm2 = vcmp.eq.s32.totalorder %v9379_v16, %v7680_v43  ;;  %v3143_v46 = vsel %vm2873_vm0, %v7678_v42, 0.0 }
 0x1a4   : > { %v1777_v21 = vadd.f32 %v1521_v14, %v703_v56  ;;  %v6800_v4 = vadd.f32 %v6544_v49, %v5998_v29  ;;  %vm4481_vm7 = vcmp.eq.s32.totalorder %v9379_v16, %v7726_v53  ;;  %vm5287_vm1 = vcmp.eq.s32.totalorder %v9379_v16, %v7745_v24 }
 0x1a5   : > { %v3949_v51 = vsel %vm3679_vm2, %v7695_v45, 0.0  ;;  %v4751_v44 = vsel %vm4481_vm7, %v7720_v62, 0.0  ;;  %v5557_v57 = vsel %vm5287_vm1, %v7750_v31, 0.0  ;;  %vm6089_vm5 = vcmp.eq.s32.totalorder %v9379_v16, %v7752_v34 }
 0x1a6   : > { %v2597_v32 = vadd.f32 %v2341_v5, %v1777_v21  ;;  %7000 = vmatpush.msrb.mxu2 %v6800_v4  ;;  %vm497_vm6 = vcmp.eq.s32.totalorder %v9388_v3, %v7557_v50  ;;  %vm1315_vm9 = vcmp.eq.s32.totalorder %v9388_v3, %v7601_v63  ;;  %vm2135_vm10 = vcmp.eq.s32.totalorder %v9388_v3, %v7621_v9 }
 0x1a7   : > { %vm614_vm11 = vcmp.eq.s32.totalorder %v7499_v12, %v9319_v60  ;;  %v767_v0 = vsel %vm497_vm6, %v7638_v19, 0.0  ;;  %v1585_v1 = vsel %vm1315_vm9, %v7652_v23, 0.0  ;;  %v2405_v40 = vsel %vm2135_vm10, %v7674_v37, 0.0 }
 0x1a8   : > { %v3399_v58 = vadd.f32 %v3143_v46, %v2597_v32  ;;  %v1841_v2 = vadd.f32 %v1585_v1, %v767_v0  ;;  %vm2937_vm3 = vcmp.eq.s32.totalorder %v9388_v3, %v7629_v18  ;;  %vm3743_vm12 = vcmp.eq.s32.totalorder %v9388_v3, %v7680_v43 }
 0x1a9   : > { %vm4545_vm13 = vcmp.eq.s32.totalorder %v9388_v3, %v7726_v53  ;;  %v6359_v29 = vsel %vm6089_vm5, %v7757_v38, 0.0  ;;  %v3207_v49 = vsel %vm2937_vm3, %v7678_v42, 0.0  ;;  %v4013_v56 = vsel %vm3743_vm12, %v7695_v45, 0.0 }
 0x1aa   : > { %v4205_v41 = vadd.f32 %v3949_v51, %v3399_v58  ;;  %v2661_v14 = vadd.f32 %v2405_v40, %v1841_v2  ;;  %vm5351_vm15 = vcmp.eq.s32.totalorder %v9388_v3, %v7745_v24  ;;  %vm6153_vm4 = vcmp.eq.s32.totalorder %v9388_v3, %v7752_v34 }
 0x1ab   : > { %vm621_vm8 = vcmp.eq.s32.totalorder %v9410_v26, %v7557_v50  ;;  %v4815_v5 = vsel %vm4545_vm13, %v7720_v62, 0.0  ;;  %v5621_v4 = vsel %vm5351_vm15, %v7750_v31, 0.0  ;;  %vm1439_vm14 = vcmp.eq.s32.totalorder %v9410_v26, %v7601_v63 }
 0x1ac   : > { %v5007_v21 = vadd.f32 %v4751_v44, %v4205_v41  ;;  %v891_v46 = vsel %vm621_vm8, %v7638_v19, 0.0  ;;  %v3463_v32 = vadd.f32 %v3207_v49, %v2661_v14  ;;  %vm2259_vm0 = vcmp.eq.s32.totalorder %v9410_v26, %v7621_v9 }
 0x1ad   : > { %vm3061_vm2 = vcmp.eq.s32.totalorder %v9410_v26, %v7629_v18  ;;  %v6423_v58 = vsel %vm6153_vm4, %v7757_v38, 0.0  ;;  %v1709_v44 = vsel %vm1439_vm14, %v7652_v23, 0.0  ;;  %v2529_v0 = vsel %vm2259_vm0, %v7674_v37, 0.0 }
 0x1ae   : > { %v5813_v51 = vadd.f32 %v5557_v57, %v5007_v21  ;;  %v4269_v1 = vadd.f32 %v4013_v56, %v3463_v32  ;;  %v1965_v40 = vadd.f32 %v1709_v44, %v891_v46  ;;  %vm3867_vm7 = vcmp.eq.s32.totalorder %v9410_v26, %v7680_v43 }
 0x1af   : > { %vm4669_vm1 = vcmp.eq.s32.totalorder %v9410_v26, %v7726_v53  ;;  %v3331_v41 = vsel %vm3061_vm2, %v7678_v42, 0.0  ;;  %v4137_v49 = vsel %vm3867_vm7, %v7695_v45, 0.0  ;;  %vm5475_vm5 = vcmp.eq.s32.totalorder %v9410_v26, %v7745_v24 }
 0x1b0   : > { %v6615_v2 = vadd.f32 %v6359_v29, %v5813_v51  ;;  %v5071_v57 = vadd.f32 %v4815_v5, %v4269_v1  ;;  %v2785_v14 = vadd.f32 %v2529_v0, %v1965_v40  ;;  %v4939_v21 = vsel %vm4669_vm1, %v7720_v62, 0.0 }
 0x1b1   : > { %v5745_v56 = vsel %vm5475_vm5, %v7750_v31, 0.0  ;;  %vm6277_vm6 = vcmp.eq.s32.totalorder %v9410_v26, %v7752_v34  ;;  %v884_v29 = vsel %vm614_vm11, %v9321_v10, 0.0  ;;  %vm1432_vm9 = vcmp.eq.s32.totalorder %v7499_v12, %v9323_v54 }
 0x1b2   : > { %6894 = vmatpush.msra.mxu0 %v6615_v2  ;;  %vm2252_vm10 = vcmp.eq.s32.totalorder %v7499_v12, %v9328_v61  ;;  %v5877_v5 = vadd.f32 %v5621_v4, %v5071_v57  ;;  %v3587_v46 = vadd.f32 %v3331_v41, %v2785_v14  ;;  %v1702_v32 = vsel %vm1432_vm9, %v9326_v39, 0.0 }
 0x1b3   : > { %v2522_v51 = vsel %vm2252_vm10, %v9334_v48, 0.0  ;;  %v1958_v44 = vadd.f32 %v1702_v32, %v884_v29  ;;  %vm3054_vm3 = vcmp.eq.s32.totalorder %v7499_v12, %v9342_v59  ;;  %vm3860_vm12 = vcmp.eq.s32.totalorder %v7499_v12, %v9353_v30 }
 0x1b4   : > { %vm4662_vm11 = vcmp.eq.s32.totalorder %v7499_v12, %v9357_v20  ;;  %v6679_v0 = vadd.f32 %v6423_v58, %v5877_v5  ;;  %v4393_v1 = vadd.f32 %v4137_v49, %v3587_v46  ;;  %v6547_v40 = vsel %vm6277_vm6, %v7757_v38, 0.0 }
 0x1b5   : > { %v3324_v4 = vsel %vm3054_vm3, %v9350_v35, 0.0  ;;  %v2778_v2 = vadd.f32 %v2522_v51, %v1958_v44  ;;  %v4130_v41 = vsel %vm3860_vm12, %v9355_v28, 0.0  ;;  %v4932_v57 = vsel %vm4662_vm11, %v9360_v25, 0.0 }
 0x1b6   : > { %vm5468_vm13 = vcmp.eq.s32.totalorder %v7499_v12, %v9371_v33  ;;  %6914 = vmatpush.msra.mxu1 %v6679_v0  ;;  %v5195_v14 = vadd.f32 %v4939_v21, %v4393_v1  ;;  %vm6270_vm15 = vcmp.eq.s32.totalorder %v7499_v12, %v9375_v52  ;;  %vm682_vm4 = vcmp.eq.s32.totalorder %v7502_v13, %v9319_v60 }
 0x1b7   : > { %v5738_v29 = vsel %vm5468_vm13, %v9373_v55, 0.0  ;;  %v3580_v58 = vadd.f32 %v3324_v4, %v2778_v2  ;;  %v952_v49 = vsel %vm682_vm4, %v9321_v10, 0.0  ;;  %vm1500_vm8 = vcmp.eq.s32.totalorder %v7502_v13, %v9323_v54 }
 0x1b8   : > { %vm2320_vm14 = vcmp.eq.s32.totalorder %v7502_v13, %v9328_v61  ;;  %v6001_v5 = vadd.f32 %v5745_v56, %v5195_v14  ;;  %v1770_v21 = vsel %vm1500_vm8, %v9326_v39, 0.0  ;;  %vm3122_vm0 = vcmp.eq.s32.totalorder %v7502_v13, %v9342_v59 }
 0x1b9   : > { %v2590_v46 = vsel %vm2320_vm14, %v9334_v48, 0.0  ;;  %v4386_v32 = vadd.f32 %v4130_v41, %v3580_v58  ;;  %v6540_v51 = vsel %vm6270_vm15, %v9393_v8, 0.0  ;;  %v2026_v44 = vadd.f32 %v1770_v21, %v952_v49 }
 0x1ba   : > { %vm3928_vm2 = vcmp.eq.s32.totalorder %v7502_v13, %v9353_v30  ;;  %v6803_v0 = vadd.f32 %v6547_v40, %v6001_v5  ;;  %v3392_v1 = vsel %vm3122_vm0, %v9350_v35, 0.0  ;;  %vm4730_vm7 = vcmp.eq.s32.totalorder %v7502_v13, %v9357_v20 }
 0x1bb   : > { %vm5536_vm1 = vcmp.eq.s32.totalorder %v7502_v13, %v9371_v33  ;;  %v5188_v56 = vadd.f32 %v4932_v57, %v4386_v32  ;;  %v2846_v4 = vadd.f32 %v2590_v46, %v2026_v44  ;;  %v4198_v2 = vsel %vm3928_vm2, %v9355_v28, 0.0 }
 0x1bc   : > { %v5000_v41 = vsel %vm4730_vm7, %v9360_v25, 0.0  ;;  %6955 = vmatpush.msra.mxu3 %v6803_v0  ;;  %vm6338_vm5 = vcmp.eq.s32.totalorder %v7502_v13, %v9375_v52  ;;  %vm429_vm6 = vcmp.eq.s32.totalorder %v7489_v6, %v7557_v50  ;;  %vm1247_vm9 = vcmp.eq.s32.totalorder %v7489_v6, %v7601_v63 }
 0x1bd   : > { %vm2067_vm10 = vcmp.eq.s32.totalorder %v7489_v6, %v7621_v9  ;;  %v5994_v40 = vadd.f32 %v5738_v29, %v5188_v56  ;;  %v3648_v57 = vadd.f32 %v3392_v1, %v2846_v4  ;;  %v5806_v14 = vsel %vm5536_vm1, %v9373_v55, 0.0 }
 0x1be   : > { %v699_v58 = vsel %vm429_vm6, %v7638_v19, 0.0  ;;  %v1517_v49 = vsel %vm1247_vm9, %v7652_v23, 0.0  ;;  %v2337_v5 = vsel %vm2067_vm10, %v7674_v37, 0.0  ;;  %vm2869_vm3 = vcmp.eq.s32.totalorder %v7489_v6, %v7629_v18 }
 0x1bf   : > { %vm3675_vm12 = vcmp.eq.s32.totalorder %v7489_v6, %v7680_v43  ;;  %v6796_v21 = vadd.f32 %v6540_v51, %v5994_v40  ;;  %v4454_v46 = vadd.f32 %v4198_v2, %v3648_v57  ;;  %v6608_v32 = vsel %vm6338_vm5, %v9393_v8, 0.0 }
 0x1c0   : > { %v1773_v29 = vadd.f32 %v1517_v49, %v699_v58  ;;  %v3139_v44 = vsel %vm2869_vm3, %v7678_v42, 0.0  ;;  %vm4477_vm11 = vcmp.eq.s32.totalorder %v7489_v6, %v7726_v53  ;;  %vm5283_vm13 = vcmp.eq.s32.totalorder %v7489_v6, %v7745_v24 }
 0x1c1   : > { %vm6085_vm15 = vcmp.eq.s32.totalorder %v7489_v6, %v7752_v34  ;;  %7001 = vmatpush.msrb.mxu2 %v6796_v21  ;;  %v5256_v0 = vadd.f32 %v5000_v41, %v4454_v46  ;;  %v3945_v51 = vsel %vm3675_vm12, %v7695_v45, 0.0  ;;  %v4747_v56 = vsel %vm4477_vm11, %v7720_v62, 0.0 }
 0x1c2   : > { %v2593_v1 = vadd.f32 %v2337_v5, %v1773_v29  ;;  %v5553_v4 = vsel %vm5283_vm13, %v7750_v31, 0.0  ;;  %v6355_v2 = vsel %vm6085_vm15, %v7757_v38, 0.0  ;;  %v9547_v40 = vadd.s32 128, %v7489_v6 }
 0x1c3   : > { %vm490_vm4 = vcmp.eq.s32.totalorder %v7520_v27, %v9319_v60  ;;  %v6062_v57 = vadd.f32 %v5806_v14, %v5256_v0  ;;  %vm1308_vm8 = vcmp.eq.s32.totalorder %v7520_v27, %v9323_v54  ;;  %vm2128_vm10 = vcmp.eq.s32.totalorder %v7520_v27, %v9328_v61 }
 0x1c4   : > { %v3395_v58 = vadd.f32 %v3139_v44, %v2593_v1  ;;  %v760_v49 = vsel %vm490_vm4, %v9321_v10, 0.0  ;;  %vm493_vm14 = vcmp.eq.s32.totalorder %v9547_v40, %v7557_v50  ;;  %vm1311_vm0 = vcmp.eq.s32.totalorder %v9547_v40, %v7601_v63 }
 0x1c5   : > { %vm2131_vm2 = vcmp.eq.s32.totalorder %v9547_v40, %v7621_v9  ;;  %vm2933_vm7 = vcmp.eq.s32.totalorder %v9547_v40, %v7629_v18  ;;  %v6864_v41 = vadd.f32 %v6608_v32, %v6062_v57  ;;  %v763_v5 = vsel %vm493_vm14, %v7638_v19, 0.0 }
 0x1c6   : > { %v4201_v14 = vadd.f32 %v3945_v51, %v3395_v58  ;;  %v1581_v21 = vsel %vm1311_vm0, %v7652_v23, 0.0  ;;  %v2401_v29 = vsel %vm2131_vm2, %v7674_v37, 0.0  ;;  %vm3739_vm1 = vcmp.eq.s32.totalorder %v9547_v40, %v7680_v43 }
 0x1c7   : > { %v1837_v46 = vadd.f32 %v1581_v21, %v763_v5  ;;  %v1578_v50 = vsel %vm1308_vm8, %v9326_v39, 0.0  ;;  %7020 = vmatpush.msrb.mxu3 %v6864_v41  ;;  %v3203_v9 = vsel %vm2933_vm7, %v7678_v42, 0.0  ;;  %vm4541_vm5 = vcmp.eq.s32.totalorder %v9547_v40, %v7726_v53 }
 0x1c8   : > { %v5003_v63 = vadd.f32 %v4747_v56, %v4201_v14  ;;  %vm5347_vm6 = vcmp.eq.s32.totalorder %v9547_v40, %v7745_v24  ;;  %v4009_v19 = vsel %vm3739_vm1, %v7695_v45, 0.0  ;;  %v4811_v23 = vsel %vm4541_vm5, %v7720_v62, 0.0 }
 0x1c9   : > { %v2657_v18 = vadd.f32 %v2401_v29, %v1837_v46  ;;  %vm6149_vm9 = vcmp.eq.s32.totalorder %v9547_v40, %v7752_v34  ;;  %v5617_v43 = vsel %vm5347_vm6, %v7750_v31, 0.0  ;;  %v1834_v32 = vadd.f32 %v1578_v50, %v760_v49 }
 0x1ca   : > { %v5809_v37 = vadd.f32 %v5553_v4, %v5003_v63  ;;  %v2398_v53 = vsel %vm2128_vm10, %v9334_v48, 0.0  ;;  %vm2930_vm3 = vcmp.eq.s32.totalorder %v7520_v27, %v9342_v59  ;;  %vm3736_vm12 = vcmp.eq.s32.totalorder %v7520_v27, %v9353_v30 }
 0x1cb   : > { %v3459_v42 = vadd.f32 %v3203_v9, %v2657_v18  ;;  %v6419_v62 = vsel %vm6149_vm9, %v7757_v38, 0.0  ;;  %v2654_v24 = vadd.f32 %v2398_v53, %v1834_v32  ;;  %v3200_v34 = vsel %vm2930_vm3, %v9350_v35, 0.0 }
 0x1cc   : > { %v6611_v45 = vadd.f32 %v6355_v2, %v5809_v37  ;;  %v4006_v44 = vsel %vm3736_vm12, %v9355_v28, 0.0  ;;  %vm4538_vm11 = vcmp.eq.s32.totalorder %v7520_v27, %v9357_v20  ;;  %vm5344_vm13 = vcmp.eq.s32.totalorder %v7520_v27, %v9371_v33 }
 0x1cd   : > { %v4265_v31 = vadd.f32 %v4009_v19, %v3459_v42  ;;  %v3456_v0 = vadd.f32 %v3200_v34, %v2654_v24  ;;  %v4808_v1 = vsel %vm4538_vm11, %v9360_v25, 0.0  ;;  %v5614_v51 = vsel %vm5344_vm13, %v9373_v55, 0.0 }
 0x1ce   : > { %6895 = vmatpush.msra.mxu0 %v6611_v45  ;;  %vm6146_vm15 = vcmp.eq.s32.totalorder %v7520_v27, %v9375_v52  ;;  %vm554_vm4 = vcmp.eq.s32.totalorder %v7830_v15, %v9319_v60  ;;  %vm1372_vm8 = vcmp.eq.s32.totalorder %v7830_v15, %v9323_v54  ;;  %vm2192_vm14 = vcmp.eq.s32.totalorder %v7830_v15, %v9328_v61 }
 0x1cf   : > { %v5067_v38 = vadd.f32 %v4811_v23, %v4265_v31  ;;  %v4262_v56 = vadd.f32 %v4006_v44, %v3456_v0  ;;  %v824_v4 = vsel %vm554_vm4, %v9321_v10, 0.0  ;;  %v1642_v2 = vsel %vm1372_vm8, %v9326_v39, 0.0 }
 0x1d0   : > { %v2462_v57 = vsel %vm2192_vm14, %v9334_v48, 0.0  ;;  %v1898_v49 = vadd.f32 %v1642_v2, %v824_v4  ;;  %vm2994_vm0 = vcmp.eq.s32.totalorder %v7830_v15, %v9342_v59  ;;  %vm3800_vm2 = vcmp.eq.s32.totalorder %v7830_v15, %v9353_v30 }
 0x1d1   : > { %v5873_v58 = vadd.f32 %v5617_v43, %v5067_v38  ;;  %v5064_v41 = vadd.f32 %v4808_v1, %v4262_v56  ;;  %v6416_v14 = vsel %vm6146_vm15, %v9393_v8, 0.0  ;;  %v3264_v5 = vsel %vm2994_vm0, %v9350_v35, 0.0 }
 0x1d2   : > { %vm4602_vm7 = vcmp.eq.s32.totalorder %v7830_v15, %v9357_v20  ;;  %v2718_v46 = vadd.f32 %v2462_v57, %v1898_v49  ;;  %v4070_v29 = vsel %vm3800_vm2, %v9355_v28, 0.0  ;;  %vm5408_vm1 = vcmp.eq.s32.totalorder %v7830_v15, %v9371_v33 }
 0x1d3   : > { %v6675_v21 = vadd.f32 %v6419_v62, %v5873_v58  ;;  %v5870_v50 = vadd.f32 %v5614_v51, %v5064_v41  ;;  %v4872_v63 = vsel %vm4602_vm7, %v9360_v25, 0.0  ;;  %vm6210_vm5 = vcmp.eq.s32.totalorder %v7830_v15, %v9375_v52 }
 0x1d4   : > { %vm610_vm6 = vcmp.eq.s32.totalorder %v7833_v17, %v9319_v60  ;;  %v3520_v9 = vadd.f32 %v3264_v5, %v2718_v46  ;;  %v5678_v18 = vsel %vm5408_vm1, %v9373_v55, 0.0  ;;  %vm1428_vm9 = vcmp.eq.s32.totalorder %v7833_v17, %v9323_v54 }
 0x1d5   : > { %6915 = vmatpush.msra.mxu1 %v6675_v21  ;;  %v880_v19 = vsel %vm610_vm6, %v9321_v10, 0.0  ;;  %v6672_v23 = vadd.f32 %v6416_v14, %v5870_v50  ;;  %v1698_v37 = vsel %vm1428_vm9, %v9326_v39, 0.0  ;;  %vm2248_vm10 = vcmp.eq.s32.totalorder %v7833_v17, %v9328_v61 }
 0x1d6   : > { %vm3050_vm3 = vcmp.eq.s32.totalorder %v7833_v17, %v9342_v59  ;;  %v4326_v43 = vadd.f32 %v4070_v29, %v3520_v9  ;;  %v6480_v32 = vsel %vm6210_vm5, %v9393_v8, 0.0  ;;  %v1954_v42 = vadd.f32 %v1698_v37, %v880_v19 }
 0x1d7   : > { %v2518_v53 = vsel %vm2248_vm10, %v9334_v48, 0.0  ;;  %6960 = vmatpush.msrb.mxu0 %v6672_v23  ;;  %v3320_v45 = vsel %vm3050_vm3, %v9350_v35, 0.0  ;;  %vm3856_vm12 = vcmp.eq.s32.totalorder %v7833_v17, %v9353_v30  ;;  %vm4658_vm11 = vcmp.eq.s32.totalorder %v7833_v17, %v9357_v20 }
 0x1d8   : > { %vm5464_vm13 = vcmp.eq.s32.totalorder %v7833_v17, %v9371_v33  ;;  %v5128_v62 = vadd.f32 %v4872_v63, %v4326_v43  ;;  %v2774_v24 = vadd.f32 %v2518_v53, %v1954_v42  ;;  %v4126_v34 = vsel %vm3856_vm12, %v9355_v28, 0.0 }
 0x1d9   : > { %vm6266_vm15 = vcmp.eq.s32.totalorder %v7833_v17, %v9375_v52  ;;  %v4928_v31 = vsel %vm4658_vm11, %v9360_v25, 0.0  ;;  %v5734_v44 = vsel %vm5464_vm13, %v9373_v55, 0.0  ;;  %vm678_vm4 = vcmp.eq.s32.totalorder %v7836_v22, %v9319_v60 }
 0x1da   : > { %vm1496_vm8 = vcmp.eq.s32.totalorder %v7836_v22, %v9323_v54  ;;  %v5934_v0 = vadd.f32 %v5678_v18, %v5128_v62  ;;  %v3576_v1 = vadd.f32 %v3320_v45, %v2774_v24  ;;  %v948_v51 = vsel %vm678_vm4, %v9321_v10, 0.0  ;;  %v14931_v24 = vld [vmem:[#allocation3_spill] sm:$0xff] }
 0x1db   : > { %v1766_v38 = vsel %vm1496_vm8, %v9326_v39, 0.0  ;;  %vm2316_vm14 = vcmp.eq.s32.totalorder %v7836_v22, %v9328_v61  ;;  %vm3118_vm0 = vcmp.eq.s32.totalorder %v7836_v22, %v9342_v59  ;;  %vm3924_vm2 = vcmp.eq.s32.totalorder %v7836_v22, %v9353_v30 }
 0x1dc   : > { %v2022_v56 = vadd.f32 %v1766_v38, %v948_v51  ;;  %v6736_v4 = vadd.f32 %v6480_v32, %v5934_v0  ;;  %v4382_v2 = vadd.f32 %v4126_v34, %v3576_v1  ;;  %v2586_v57 = vsel %vm2316_vm14, %v9334_v48, 0.0 }
 0x1dd   : > { %v3388_v58 = vsel %vm3118_vm0, %v9350_v35, 0.0  ;;  %v6536_v49 = vsel %vm6266_vm15, %v9393_v8, 0.0  ;;  %vm4726_vm7 = vcmp.eq.s32.totalorder %v7836_v22, %v9357_v20  ;;  %vm5532_vm1 = vcmp.eq.s32.totalorder %v7836_v22, %v9371_v33 }
 0x1de   : > { %v2842_v41 = vadd.f32 %v2586_v57, %v2022_v56  ;;  %6980 = vmatpush.msrb.mxu1 %v6736_v4  ;;  %v5184_v14 = vadd.f32 %v4928_v31, %v4382_v2  ;;  %v4194_v5 = vsel %vm3924_vm2, %v9355_v28, 0.0  ;;  %v4996_v21 = vsel %vm4726_vm7, %v9360_v25, 0.0 }
 0x1df   : > { %v5802_v46 = vsel %vm5532_vm1, %v9373_v55, 0.0  ;;  %vm6334_vm5 = vcmp.eq.s32.totalorder %v7836_v22, %v9375_v52  ;;  %vm486_vm6 = vcmp.eq.s32.totalorder %v7839_v36, %v9319_v60  ;;  %vm1304_vm9 = vcmp.eq.s32.totalorder %v7839_v36, %v9323_v54 }
 0x1e0   : > { %v3644_v29 = vadd.f32 %v3388_v58, %v2842_v41  ;;  %v5990_v50 = vadd.f32 %v5734_v44, %v5184_v14  ;;  %v756_v63 = vsel %vm486_vm6, %v9321_v10, 0.0  ;;  %v1574_v9 = vsel %vm1304_vm9, %v9326_v39, 0.0 }
 0x1e1   : > { %vm2124_vm10 = vcmp.eq.s32.totalorder %v7839_v36, %v9328_v61  ;;  %v1830_v19 = vadd.f32 %v1574_v9, %v756_v63  ;;  %vm2926_vm3 = vcmp.eq.s32.totalorder %v7839_v36, %v9342_v59  ;;  %vm3732_vm12 = vcmp.eq.s32.totalorder %v7839_v36, %v9353_v30 }
 0x1e2   : > { %v4450_v18 = vadd.f32 %v4194_v5, %v3644_v29  ;;  %v2394_v23 = vsel %vm2124_vm10, %v9334_v48, 0.0  ;;  %v6792_v37 = vadd.f32 %v6536_v49, %v5990_v50  ;;  %v3196_v43 = vsel %vm2926_vm3, %v9350_v35, 0.0 }
 0x1e3   : > { %vm4534_vm11 = vcmp.eq.s32.totalorder %v7839_v36, %v9357_v20  ;;  %v6604_v42 = vsel %vm6334_vm5, %v9393_v8, 0.0  ;;  %v2650_v53 = vadd.f32 %v2394_v23, %v1830_v19  ;;  %v4002_v45 = vsel %vm3732_vm12, %v9355_v28, 0.0 }
 0x1e4   : > { %v5252_v32 = vadd.f32 %v4996_v21, %v4450_v18  ;;  %7002 = vmatpush.msrb.mxu2 %v6792_v37  ;;  %v4804_v62 = vsel %vm4534_vm11, %v9360_v25, 0.0  ;;  %vm5340_vm13 = vcmp.eq.s32.totalorder %v7839_v36, %v9371_v33  ;;  %vm550_vm15 = vcmp.eq.s32.totalorder %v14931_v24, %v9319_v60  ;;  %v14932_v21 = vld [vmem:[#allocation4_spill] sm:$0xff] }
 0x1e5   : > { %vm1368_vm4 = vcmp.eq.s32.totalorder %v14931_v24, %v9323_v54  ;;  %v3452_v31 = vadd.f32 %v3196_v43, %v2650_v53  ;;  %v5610_v44 = vsel %vm5340_vm13, %v9373_v55, 0.0  ;;  %vm6142_vm8 = vcmp.eq.s32.totalorder %v7839_v36, %v9375_v52 }
 0x1e6   : > { %v6058_v34 = vadd.f32 %v5802_v46, %v5252_v32  ;;  %v820_v0 = vsel %vm550_vm15, %v9321_v10, 0.0  ;;  %v1638_v1 = vsel %vm1368_vm4, %v9326_v39, 0.0  ;;  %vm2188_vm14 = vcmp.eq.s32.totalorder %v14931_v24, %v9328_v61 }
 0x1e7   : > { %vm2990_vm0 = vcmp.eq.s32.totalorder %v14931_v24, %v9342_v59  ;;  %v4258_v38 = vadd.f32 %v4002_v45, %v3452_v31  ;;  %v1894_v56 = vadd.f32 %v1638_v1, %v820_v0  ;;  %v2458_v4 = vsel %vm2188_vm14, %v9334_v48, 0.0 }
 0x1e8   : > { %v6860_v51 = vadd.f32 %v6604_v42, %v6058_v34  ;;  %v3260_v2 = vsel %vm2990_vm0, %v9350_v35, 0.0  ;;  %vm3796_vm2 = vcmp.eq.s32.totalorder %v14931_v24, %v9353_v30  ;;  %vm4598_vm7 = vcmp.eq.s32.totalorder %v14931_v24, %v9357_v20 }
 0x1e9   : > { %vm5404_vm1 = vcmp.eq.s32.totalorder %v14931_v24, %v9371_v33  ;;  %v5060_v57 = vadd.f32 %v4804_v62, %v4258_v38  ;;  %v6412_v58 = vsel %vm6142_vm8, %v9393_v8, 0.0  ;;  %v2714_v49 = vadd.f32 %v2458_v4, %v1894_v56  ;;  %v14933_v62 = vld [vmem:[#allocation5_spill] sm:$0xff] }
 0x1ea   : > { %7021 = vmatpush.msrb.mxu3 %v6860_v51  ;;  %v4066_v41 = vsel %vm3796_vm2, %v9355_v28, 0.0  ;;  %v4868_v14 = vsel %vm4598_vm7, %v9360_v25, 0.0  ;;  %v5674_v5 = vsel %vm5404_vm1, %v9373_v55, 0.0  ;;  %vm606_vm5 = vcmp.eq.s32.totalorder %v14932_v21, %v9319_v60 }
 0x1eb   : > { %vm1424_vm6 = vcmp.eq.s32.totalorder %v14932_v21, %v9323_v54  ;;  %v5866_v46 = vadd.f32 %v5610_v44, %v5060_v57  ;;  %v3516_v29 = vadd.f32 %v3260_v2, %v2714_v49  ;;  %vm6206_vm9 = vcmp.eq.s32.totalorder %v14931_v24, %v9375_v52 }
 0x1ec   : > { %v876_v50 = vsel %vm606_vm5, %v9321_v10, 0.0  ;;  %v1694_v63 = vsel %vm1424_vm6, %v9326_v39, 0.0  ;;  %vm2244_vm10 = vcmp.eq.s32.totalorder %v14932_v21, %v9328_v61  ;;  %vm3046_vm3 = vcmp.eq.s32.totalorder %v14932_v21, %v9342_v59 }
 0x1ed   : > { %vm3852_vm12 = vcmp.eq.s32.totalorder %v14932_v21, %v9353_v30  ;;  %v6668_v9 = vadd.f32 %v6412_v58, %v5866_v46  ;;  %v4322_v18 = vadd.f32 %v4066_v41, %v3516_v29  ;;  %v1950_v19 = vadd.f32 %v1694_v63, %v876_v50  ;;  %v14934_v46 = vld [vmem:[#allocation6_spill] sm:$0xff] }
 0x1ee   : > { %v2514_v23 = vsel %vm2244_vm10, %v9334_v48, 0.0  ;;  %v6476_v37 = vsel %vm6206_vm9, %v9393_v8, 0.0  ;;  %v3316_v43 = vsel %vm3046_vm3, %v9350_v35, 0.0  ;;  %vm4654_vm11 = vcmp.eq.s32.totalorder %v14932_v21, %v9357_v20 }
 0x1ef   : > { %vm5460_vm13 = vcmp.eq.s32.totalorder %v14932_v21, %v9371_v33  ;;  %6961 = vmatpush.msrb.mxu0 %v6668_v9  ;;  %v5124_v32 = vadd.f32 %v4868_v14, %v4322_v18  ;;  %v2770_v42 = vadd.f32 %v2514_v23, %v1950_v19  ;;  %v4122_v53 = vsel %vm3852_vm12, %v9355_v28, 0.0 }
 0x1f0   : > { %v4924_v45 = vsel %vm4654_vm11, %v9360_v25, 0.0  ;;  %vm6262_vm15 = vcmp.eq.s32.totalorder %v14932_v21, %v9375_v52  ;;  %vm674_vm4 = vcmp.eq.s32.totalorder %v14933_v62, %v9319_v60  ;;  %vm1492_vm8 = vcmp.eq.s32.totalorder %v14933_v62, %v9323_v54 }
 0x1f1   : > { %vm2312_vm14 = vcmp.eq.s32.totalorder %v14933_v62, %v9328_v61  ;;  %v5930_v34 = vadd.f32 %v5674_v5, %v5124_v32  ;;  %v3572_v31 = vadd.f32 %v3316_v43, %v2770_v42  ;;  %v5730_v44 = vsel %vm5460_vm13, %v9373_v55, 0.0 }
 0x1f2   : > { %v944_v0 = vsel %vm674_vm4, %v9321_v10, 0.0  ;;  %v1762_v1 = vsel %vm1492_vm8, %v9326_v39, 0.0  ;;  %v2582_v51 = vsel %vm2312_vm14, %v9334_v48, 0.0  ;;  %vm3114_vm0 = vcmp.eq.s32.totalorder %v14933_v62, %v9342_v59 }
 0x1f3   : > { %vm3920_vm2 = vcmp.eq.s32.totalorder %v14933_v62, %v9353_v30  ;;  %v6732_v38 = vadd.f32 %v6476_v37, %v5930_v34  ;;  %v4378_v56 = vadd.f32 %v4122_v53, %v3572_v31  ;;  %v6532_v4 = vsel %vm6262_vm15, %v9393_v8, 0.0 }
 0x1f4   : > { %v2018_v2 = vadd.f32 %v1762_v1, %v944_v0  ;;  %v3384_v57 = vsel %vm3114_vm0, %v9350_v35, 0.0  ;;  %v4190_v58 = vsel %vm3920_vm2, %v9355_v28, 0.0  ;;  %vm4722_vm7 = vcmp.eq.s32.totalorder %v14933_v62, %v9357_v20  ;;  %v14935_v0 = vld [vmem:[#allocation7_spill] sm:$0xff] }
 0x1f5   : > { %vm5528_vm1 = vcmp.eq.s32.totalorder %v14933_v62, %v9371_v33  ;;  %6981 = vmatpush.msrb.mxu1 %v6732_v38  ;;  %v5180_v49 = vadd.f32 %v4924_v45, %v4378_v56  ;;  %v4992_v14 = vsel %vm4722_vm7, %v9360_v25, 0.0  ;;  %vm6330_vm5 = vcmp.eq.s32.totalorder %v14933_v62, %v9375_v52 }
 0x1f6   : > { %v2838_v41 = vadd.f32 %v2582_v51, %v2018_v2  ;;  %v5798_v5 = vsel %vm5528_vm1, %v9373_v55, 0.0  ;;  %vm482_vm6 = vcmp.eq.s32.totalorder %v14934_v46, %v9319_v60  ;;  %vm1300_vm9 = vcmp.eq.s32.totalorder %v14934_v46, %v9323_v54 }
 0x1f7   : > { %vm2120_vm10 = vcmp.eq.s32.totalorder %v14934_v46, %v9328_v61  ;;  %v5986_v29 = vadd.f32 %v5730_v44, %v5180_v49  ;;  %v752_v63 = vsel %vm482_vm6, %v9321_v10, 0.0  ;;  %v1570_v9 = vsel %vm1300_vm9, %v9326_v39, 0.0 }
 0x1f8   : > { %v3640_v50 = vadd.f32 %v3384_v57, %v2838_v41  ;;  %v1826_v18 = vadd.f32 %v1570_v9, %v752_v63  ;;  %v2390_v19 = vsel %vm2120_vm10, %v9334_v48, 0.0  ;;  %vm2922_vm3 = vcmp.eq.s32.totalorder %v14934_v46, %v9342_v59  ;;  %v14936_v63 = vld [vmem:[#allocation8_spill] sm:$0xff] }
 0x1f9   : > { %vm3728_vm12 = vcmp.eq.s32.totalorder %v14934_v46, %v9353_v30  ;;  %v6788_v23 = vadd.f32 %v6532_v4, %v5986_v29  ;;  %v6600_v43 = vsel %vm6330_vm5, %v9393_v8, 0.0  ;;  %v3192_v32 = vsel %vm2922_vm3, %v9350_v35, 0.0 }
 0x1fa   : > { %v4446_v37 = vadd.f32 %v4190_v58, %v3640_v50  ;;  %v2646_v42 = vadd.f32 %v2390_v19, %v1826_v18  ;;  %v3998_v53 = vsel %vm3728_vm12, %v9355_v28, 0.0  ;;  %vm4530_vm11 = vcmp.eq.s32.totalorder %v14934_v46, %v9357_v20 }
 0x1fb   : > { %vm5336_vm13 = vcmp.eq.s32.totalorder %v14934_v46, %v9371_v33  ;;  %7003 = vmatpush.msrb.mxu2 %v6788_v23  ;;  %v4800_v34 = vsel %vm4530_vm11, %v9360_v25, 0.0  ;;  %vm6138_vm15 = vcmp.eq.s32.totalorder %v14934_v46, %v9375_v52  ;;  %vm546_vm4 = vcmp.eq.s32.totalorder %v14935_v0, %v9319_v60 }
 0x1fc   : > { %v5248_v45 = vadd.f32 %v4992_v14, %v4446_v37  ;;  %v5606_v31 = vsel %vm5336_vm13, %v9373_v55, 0.0  ;;  %v3448_v44 = vadd.f32 %v3192_v32, %v2646_v42  ;;  %vm1364_vm8 = vcmp.eq.s32.totalorder %v14935_v0, %v9323_v54 }
 0x1fd   : > { %vm2184_vm14 = vcmp.eq.s32.totalorder %v14935_v0, %v9328_v61  ;;  %v816_v51 = vsel %vm546_vm4, %v9321_v10, 0.0  ;;  %v1634_v38 = vsel %vm1364_vm8, %v9326_v39, 0.0  ;;  %vm2986_vm0 = vcmp.eq.s32.totalorder %v14935_v0, %v9342_v59 }
 0x1fe   : > { %v6054_v1 = vadd.f32 %v5798_v5, %v5248_v45  ;;  %v2454_v56 = vsel %vm2184_vm14, %v9334_v48, 0.0  ;;  %v4254_v4 = vadd.f32 %v3998_v53, %v3448_v44  ;;  %v1890_v2 = vadd.f32 %v1634_v38, %v816_v51  ;;  %v14937_v51 = vld [vmem:[#allocation9_spill] sm:$0xff] }
 0x1ff   : > { %vm3792_vm2 = vcmp.eq.s32.totalorder %v14935_v0, %v9353_v30  ;;  %v6408_v58 = vsel %vm6138_vm15, %v9393_v8, 0.0  ;;  %v3256_v49 = vsel %vm2986_vm0, %v9350_v35, 0.0  ;;  %vm4594_vm7 = vcmp.eq.s32.totalorder %v14935_v0, %v9357_v20 }
 0x200   : > { %v6856_v57 = vadd.f32 %v6600_v43, %v6054_v1  ;;  %v5056_v41 = vadd.f32 %v4800_v34, %v4254_v4  ;;  %v2710_v14 = vadd.f32 %v2454_v56, %v1890_v2  ;;  %v4062_v5 = vsel %vm3792_vm2, %v9355_v28, 0.0 }
 0x201   : > { %vm5400_vm1 = vcmp.eq.s32.totalorder %v14935_v0, %v9371_v33  ;;  %v4864_v29 = vsel %vm4594_vm7, %v9360_v25, 0.0  ;;  %vm602_vm5 = vcmp.eq.s32.totalorder %v14936_v63, %v9319_v60  ;;  %vm1420_vm6 = vcmp.eq.s32.totalorder %v14936_v63, %v9323_v54 }
 0x202   : > { %7022 = vmatpush.msrb.mxu3 %v6856_v57  ;;  %v5670_v50 = vsel %vm5400_vm1, %v9373_v55, 0.0  ;;  %v5862_v9 = vadd.f32 %v5606_v31, %v5056_v41  ;;  %v3512_v18 = vadd.f32 %v3256_v49, %v2710_v14  ;;  %vm6202_vm9 = vcmp.eq.s32.totalorder %v14935_v0, %v9375_v52 }
 0x203   : > { %v872_v19 = vsel %vm602_vm5, %v9321_v10, 0.0  ;;  %v1690_v23 = vsel %vm1420_vm6, %v9326_v39, 0.0  ;;  %vm2240_vm10 = vcmp.eq.s32.totalorder %v14936_v63, %v9328_v61  ;;  %vm3042_vm3 = vcmp.eq.s32.totalorder %v14936_v63, %v9342_v59 }
 0x204   : > { %vm3848_vm12 = vcmp.eq.s32.totalorder %v14936_v63, %v9353_v30  ;;  %v6664_v37 = vadd.f32 %v6408_v58, %v5862_v9  ;;  %v4318_v43 = vadd.f32 %v4062_v5, %v3512_v18  ;;  %v1946_v32 = vadd.f32 %v1690_v23, %v872_v19 }
 0x205   : > { %v2510_v42 = vsel %vm2240_vm10, %v9334_v48, 0.0  ;;  %v6472_v53 = vsel %vm6202_vm9, %v9393_v8, 0.0  ;;  %v3312_v45 = vsel %vm3042_vm3, %v9350_v35, 0.0  ;;  %vm4650_vm11 = vcmp.eq.s32.totalorder %v14936_v63, %v9357_v20 }
 0x206   : > { %vm5456_vm13 = vcmp.eq.s32.totalorder %v14936_v63, %v9371_v33  ;;  %6962 = vmatpush.msrb.mxu0 %v6664_v37  ;;  %v5120_v34 = vadd.f32 %v4864_v29, %v4318_v43  ;;  %v2766_v31 = vadd.f32 %v2510_v42, %v1946_v32  ;;  %v4118_v44 = vsel %vm3848_vm12, %v9355_v28, 0.0  ;;  %v14938_v37 = vld [vmem:[#allocation10_spill] sm:$0xff] }
 0x207   : > { %v4920_v1 = vsel %vm4650_vm11, %v9360_v25, 0.0  ;;  %vm6258_vm15 = vcmp.eq.s32.totalorder %v14936_v63, %v9375_v52  ;;  %vm670_vm4 = vcmp.eq.s32.totalorder %v14937_v51, %v9319_v60  ;;  %vm1488_vm8 = vcmp.eq.s32.totalorder %v14937_v51, %v9323_v54 }
 0x208   : > { %vm2308_vm14 = vcmp.eq.s32.totalorder %v14937_v51, %v9328_v61  ;;  %v5926_v38 = vadd.f32 %v5670_v50, %v5120_v34  ;;  %v3568_v56 = vadd.f32 %v3312_v45, %v2766_v31  ;;  %v5726_v4 = vsel %vm5456_vm13, %v9373_v55, 0.0 }
 0x209   : > { %v940_v2 = vsel %vm670_vm4, %v9321_v10, 0.0  ;;  %v1758_v57 = vsel %vm1488_vm8, %v9326_v39, 0.0  ;;  %v2578_v58 = vsel %vm2308_vm14, %v9334_v48, 0.0  ;;  %vm3110_vm0 = vcmp.eq.s32.totalorder %v14937_v51, %v9342_v59 }
 0x20a   : > { %vm3916_vm2 = vcmp.eq.s32.totalorder %v14937_v51, %v9353_v30  ;;  %v6728_v49 = vadd.f32 %v6472_v53, %v5926_v38  ;;  %v4374_v41 = vadd.f32 %v4118_v44, %v3568_v56  ;;  %v6528_v14 = vsel %vm6258_vm15, %v9393_v8, 0.0 }
 0x20b   : > { %v2014_v5 = vadd.f32 %v1758_v57, %v940_v2  ;;  %v3380_v29 = vsel %vm3110_vm0, %v9350_v35, 0.0  ;;  %v4186_v50 = vsel %vm3916_vm2, %v9355_v28, 0.0  ;;  %vm4718_vm7 = vcmp.eq.s32.totalorder %v14937_v51, %v9357_v20 }
 0x20c   : > { %vm5524_vm1 = vcmp.eq.s32.totalorder %v14937_v51, %v9371_v33  ;;  %6982 = vmatpush.msrb.mxu1 %v6728_v49  ;;  %v5176_v9 = vadd.f32 %v4920_v1, %v4374_v41  ;;  %v4988_v19 = vsel %vm4718_vm7, %v9360_v25, 0.0  ;;  %vm6326_vm5 = vcmp.eq.s32.totalorder %v14937_v51, %v9375_v52  ;;  %v14939_v41 = vld [vmem:[#allocation11_spill] sm:$0xff] }
 0x20d   : > { %v2834_v18 = vadd.f32 %v2578_v58, %v2014_v5  ;;  %v5794_v23 = vsel %vm5524_vm1, %v9373_v55, 0.0  ;;  %vm478_vm6 = vcmp.eq.s32.totalorder %v14938_v37, %v9319_v60  ;;  %vm1296_vm9 = vcmp.eq.s32.totalorder %v14938_v37, %v9323_v54 }
 0x20e   : > { %vm2116_vm10 = vcmp.eq.s32.totalorder %v14938_v37, %v9328_v61  ;;  %v5982_v43 = vadd.f32 %v5726_v4, %v5176_v9  ;;  %v748_v42 = vsel %vm478_vm6, %v9321_v10, 0.0  ;;  %v1566_v53 = vsel %vm1296_vm9, %v9326_v39, 0.0 }
 0x20f   : > { %v3636_v32 = vadd.f32 %v3380_v29, %v2834_v18  ;;  %v1822_v45 = vadd.f32 %v1566_v53, %v748_v42  ;;  %v2386_v34 = vsel %vm2116_vm10, %v9334_v48, 0.0  ;;  %vm2918_vm3 = vcmp.eq.s32.totalorder %v14938_v37, %v9342_v59 }
 0x210   : > { %vm3724_vm12 = vcmp.eq.s32.totalorder %v14938_v37, %v9353_v30  ;;  %v6784_v31 = vadd.f32 %v6528_v14, %v5982_v43  ;;  %v6596_v1 = vsel %vm6326_vm5, %v9393_v8, 0.0  ;;  %v3188_v38 = vsel %vm2918_vm3, %v9350_v35, 0.0 }
 0x211   : > { %v4442_v44 = vadd.f32 %v4186_v50, %v3636_v32  ;;  %v2642_v56 = vadd.f32 %v2386_v34, %v1822_v45  ;;  %v3994_v4 = vsel %vm3724_vm12, %v9355_v28, 0.0  ;;  %vm4526_vm11 = vcmp.eq.s32.totalorder %v14938_v37, %v9357_v20 }
 0x212   : > { %vm5332_vm13 = vcmp.eq.s32.totalorder %v14938_v37, %v9371_v33  ;;  %7004 = vmatpush.msrb.mxu2 %v6784_v31  ;;  %v4796_v57 = vsel %vm4526_vm11, %v9360_v25, 0.0  ;;  %vm6134_vm15 = vcmp.eq.s32.totalorder %v14938_v37, %v9375_v52  ;;  %vm542_vm4 = vcmp.eq.s32.totalorder %v14939_v41, %v9319_v60  ;;  %v14940_v31 = vld [vmem:[#allocation12_spill] sm:$0xff] }
 0x213   : > { %v5244_v2 = vadd.f32 %v4988_v19, %v4442_v44  ;;  %v5602_v58 = vsel %vm5332_vm13, %v9373_v55, 0.0  ;;  %v3444_v49 = vadd.f32 %v3188_v38, %v2642_v56  ;;  %vm1360_vm8 = vcmp.eq.s32.totalorder %v14939_v41, %v9323_v54 }
 0x214   : > { %vm2180_vm14 = vcmp.eq.s32.totalorder %v14939_v41, %v9328_v61  ;;  %v812_v5 = vsel %vm542_vm4, %v9321_v10, 0.0  ;;  %v1630_v29 = vsel %vm1360_vm8, %v9326_v39, 0.0  ;;  %vm2982_vm0 = vcmp.eq.s32.totalorder %v14939_v41, %v9342_v59 }
 0x215   : > { %v6050_v14 = vadd.f32 %v5794_v23, %v5244_v2  ;;  %v2450_v50 = vsel %vm2180_vm14, %v9334_v48, 0.0  ;;  %v4250_v9 = vadd.f32 %v3994_v4, %v3444_v49  ;;  %v1886_v18 = vadd.f32 %v1630_v29, %v812_v5 }
 0x216   : > { %vm3788_vm2 = vcmp.eq.s32.totalorder %v14939_v41, %v9353_v30  ;;  %v6404_v43 = vsel %vm6134_vm15, %v9393_v8, 0.0  ;;  %v3252_v32 = vsel %vm2982_vm0, %v9350_v35, 0.0  ;;  %vm4590_vm7 = vcmp.eq.s32.totalorder %v14939_v41, %v9357_v20 }
 0x217   : > { %v6852_v19 = vadd.f32 %v6596_v1, %v6050_v14  ;;  %v5052_v23 = vadd.f32 %v4796_v57, %v4250_v9  ;;  %v2706_v42 = vadd.f32 %v2450_v50, %v1886_v18  ;;  %v4058_v53 = vsel %vm3788_vm2, %v9355_v28, 0.0  ;;  %v14941_v18 = vld [vmem:[#allocation13_spill] sm:$0xff] }
 0x218   : > { %vm5396_vm1 = vcmp.eq.s32.totalorder %v14939_v41, %v9371_v33  ;;  %v4860_v45 = vsel %vm4590_vm7, %v9360_v25, 0.0  ;;  %vm598_vm5 = vcmp.eq.s32.totalorder %v14940_v31, %v9319_v60  ;;  %vm1416_vm6 = vcmp.eq.s32.totalorder %v14940_v31, %v9323_v54 }
 0x219   : > { %7023 = vmatpush.msrb.mxu3 %v6852_v19  ;;  %v5666_v34 = vsel %vm5396_vm1, %v9373_v55, 0.0  ;;  %v5858_v44 = vadd.f32 %v5602_v58, %v5052_v23  ;;  %v3508_v1 = vadd.f32 %v3252_v32, %v2706_v42  ;;  %vm6198_vm9 = vcmp.eq.s32.totalorder %v14939_v41, %v9375_v52 }
 0x21a   : > { %v868_v38 = vsel %vm598_vm5, %v9321_v10, 0.0  ;;  %v1686_v56 = vsel %vm1416_vm6, %v9326_v39, 0.0  ;;  %vm2236_vm10 = vcmp.eq.s32.totalorder %v14940_v31, %v9328_v61  ;;  %vm3038_vm3 = vcmp.eq.s32.totalorder %v14940_v31, %v9342_v59 }
 0x21b   : > { %vm3844_vm12 = vcmp.eq.s32.totalorder %v14940_v31, %v9353_v30  ;;  %v6660_v4 = vadd.f32 %v6404_v43, %v5858_v44  ;;  %v4314_v2 = vadd.f32 %v4058_v53, %v3508_v1  ;;  %v1942_v57 = vadd.f32 %v1686_v56, %v868_v38 }
 0x21c   : > { %v2506_v58 = vsel %vm2236_vm10, %v9334_v48, 0.0  ;;  %v6468_v49 = vsel %vm6198_vm9, %v9393_v8, 0.0  ;;  %v3308_v14 = vsel %vm3038_vm3, %v9350_v35, 0.0  ;;  %vm4646_vm11 = vcmp.eq.s32.totalorder %v14940_v31, %v9357_v20 }
 0x21d   : > { %vm5452_vm13 = vcmp.eq.s32.totalorder %v14940_v31, %v9371_v33  ;;  %6963 = vmatpush.msrb.mxu0 %v6660_v4  ;;  %v5116_v5 = vadd.f32 %v4860_v45, %v4314_v2  ;;  %v2762_v29 = vadd.f32 %v2506_v58, %v1942_v57  ;;  %v4114_v50 = vsel %vm3844_vm12, %v9355_v28, 0.0 }
 0x21e   : > { %v4916_v9 = vsel %vm4646_vm11, %v9360_v25, 0.0  ;;  %vm6254_vm15 = vcmp.eq.s32.totalorder %v14940_v31, %v9375_v52  ;;  %vm666_vm4 = vcmp.eq.s32.totalorder %v14941_v18, %v9319_v60  ;;  %vm1484_vm8 = vcmp.eq.s32.totalorder %v14941_v18, %v9323_v54 }
 0x21f   : > { %vm2304_vm14 = vcmp.eq.s32.totalorder %v14941_v18, %v9328_v61  ;;  %v5922_v19 = vadd.f32 %v5666_v34, %v5116_v5  ;;  %v3564_v43 = vadd.f32 %v3308_v14, %v2762_v29  ;;  %v5722_v32 = vsel %vm5452_vm13, %v9373_v55, 0.0 }
 0x220   : > { %v936_v23 = vsel %vm666_vm4, %v9321_v10, 0.0  ;;  %v1754_v42 = vsel %vm1484_vm8, %v9326_v39, 0.0  ;;  %v2574_v53 = vsel %vm2304_vm14, %v9334_v48, 0.0  ;;  %vm3106_vm0 = vcmp.eq.s32.totalorder %v14941_v18, %v9342_v59 }
 0x221   : > { %vm3912_vm2 = vcmp.eq.s32.totalorder %v14941_v18, %v9353_v30  ;;  %v6724_v45 = vadd.f32 %v6468_v49, %v5922_v19  ;;  %v4370_v44 = vadd.f32 %v4114_v50, %v3564_v43  ;;  %v6524_v1 = vsel %vm6254_vm15, %v9393_v8, 0.0  ;;  %v14942_v49 = vld [vmem:[#allocation14_spill] sm:$0xff] }
 0x222   : > { %v2010_v34 = vadd.f32 %v1754_v42, %v936_v23  ;;  %v3376_v38 = vsel %vm3106_vm0, %v9350_v35, 0.0  ;;  %v4182_v56 = vsel %vm3912_vm2, %v9355_v28, 0.0  ;;  %vm4714_vm7 = vcmp.eq.s32.totalorder %v14941_v18, %v9357_v20 }
 0x223   : > { %vm5520_vm1 = vcmp.eq.s32.totalorder %v14941_v18, %v9371_v33  ;;  %6983 = vmatpush.msrb.mxu1 %v6724_v45  ;;  %v5172_v4 = vadd.f32 %v4916_v9, %v4370_v44  ;;  %v4984_v57 = vsel %vm4714_vm7, %v9360_v25, 0.0  ;;  %vm6322_vm5 = vcmp.eq.s32.totalorder %v14941_v18, %v9375_v52 }
 0x224   : > { %v2830_v2 = vadd.f32 %v2574_v53, %v2010_v34  ;;  %v5790_v58 = vsel %vm5520_vm1, %v9373_v55, 0.0  ;;  %vm474_vm6 = vcmp.eq.s32.totalorder %v14942_v49, %v9319_v60  ;;  %vm1292_vm9 = vcmp.eq.s32.totalorder %v14942_v49, %v9323_v54 }
 0x225   : > { %vm2112_vm10 = vcmp.eq.s32.totalorder %v14942_v49, %v9328_v61  ;;  %v5978_v14 = vadd.f32 %v5722_v32, %v5172_v4  ;;  %v744_v29 = vsel %vm474_vm6, %v9321_v10, 0.0  ;;  %v1562_v50 = vsel %vm1292_vm9, %v9326_v39, 0.0 }
 0x226   : > { %v3632_v5 = vadd.f32 %v3376_v38, %v2830_v2  ;;  %v1818_v9 = vadd.f32 %v1562_v50, %v744_v29  ;;  %v2382_v19 = vsel %vm2112_vm10, %v9334_v48, 0.0  ;;  %vm2914_vm3 = vcmp.eq.s32.totalorder %v14942_v49, %v9342_v59 }
 0x227   : > { %vm3720_vm12 = vcmp.eq.s32.totalorder %v14942_v49, %v9353_v30  ;;  %v6780_v43 = vadd.f32 %v6524_v1, %v5978_v14  ;;  %v6592_v42 = vsel %vm6322_vm5, %v9393_v8, 0.0  ;;  %v3184_v32 = vsel %vm2914_vm3, %v9350_v35, 0.0 }
 0x228   : > { %v4438_v23 = vadd.f32 %v4182_v56, %v3632_v5  ;;  %v2638_v53 = vadd.f32 %v2382_v19, %v1818_v9  ;;  %v3990_v45 = vsel %vm3720_vm12, %v9355_v28, 0.0  ;;  %vm4522_vm11 = vcmp.eq.s32.totalorder %v14942_v49, %v9357_v20  ;;  %v14943_v56 = vld [vmem:[#allocation15_spill] sm:$0xff] }
 0x229   : > { %vm5328_vm13 = vcmp.eq.s32.totalorder %v14942_v49, %v9371_v33  ;;  %7005 = vmatpush.msrb.mxu2 %v6780_v43  ;;  %v4792_v34 = vsel %vm4522_vm11, %v9360_v25, 0.0  ;;  %vm6130_vm15 = vcmp.eq.s32.totalorder %v14942_v49, %v9375_v52  ;;  %vm538_vm4 = vcmp.eq.s32.totalorder %v14943_v56, %v9319_v60 }
 0x22a   : > { %v5240_v44 = vadd.f32 %v4984_v57, %v4438_v23  ;;  %v5598_v1 = vsel %vm5328_vm13, %v9373_v55, 0.0  ;;  %v3440_v38 = vadd.f32 %v3184_v32, %v2638_v53  ;;  %vm1356_vm8 = vcmp.eq.s32.totalorder %v14943_v56, %v9323_v54 }
 0x22b   : > { %vm2176_vm14 = vcmp.eq.s32.totalorder %v14943_v56, %v9328_v61  ;;  %v808_v2 = vsel %vm538_vm4, %v9321_v10, 0.0  ;;  %v1626_v57 = vsel %vm1356_vm8, %v9326_v39, 0.0  ;;  %vm2978_vm0 = vcmp.eq.s32.totalorder %v14943_v56, %v9342_v59 }
 0x22c   : > { %v6046_v4 = vadd.f32 %v5790_v58, %v5240_v44  ;;  %v2446_v14 = vsel %vm2176_vm14, %v9334_v48, 0.0  ;;  %v4246_v5 = vadd.f32 %v3990_v45, %v3440_v38  ;;  %v1882_v29 = vadd.f32 %v1626_v57, %v808_v2 }
 0x22d   : > { %vm3784_vm2 = vcmp.eq.s32.totalorder %v14943_v56, %v9353_v30  ;;  %v6400_v9 = vsel %vm6130_vm15, %v9393_v8, 0.0  ;;  %v3248_v19 = vsel %vm2978_vm0, %v9350_v35, 0.0  ;;  %vm4586_vm7 = vcmp.eq.s32.totalorder %v14943_v56, %v9357_v20 }
 0x22e   : > { %v6848_v50 = vadd.f32 %v6592_v42, %v6046_v4  ;;  %v5048_v58 = vadd.f32 %v4792_v34, %v4246_v5  ;;  %v2702_v43 = vadd.f32 %v2446_v14, %v1882_v29  ;;  %v4054_v23 = vsel %vm3784_vm2, %v9355_v28, 0.0  ;;  %v14944_v42 = vld [vmem:[#allocation16_spill] sm:$0xff] }
 0x22f   : > { %vm5392_vm1 = vcmp.eq.s32.totalorder %v14943_v56, %v9371_v33  ;;  %v4856_v32 = vsel %vm4586_vm7, %v9360_v25, 0.0  ;;  %vm594_vm5 = vcmp.eq.s32.totalorder %v14944_v42, %v9319_v60  ;;  %vm1412_vm6 = vcmp.eq.s32.totalorder %v14944_v42, %v9323_v54 }
 0x230   : > { %7024 = vmatpush.msrb.mxu3 %v6848_v50  ;;  %v5662_v53 = vsel %vm5392_vm1, %v9373_v55, 0.0  ;;  %v5854_v45 = vadd.f32 %v5598_v1, %v5048_v58  ;;  %v3504_v44 = vadd.f32 %v3248_v19, %v2702_v43  ;;  %vm6194_vm9 = vcmp.eq.s32.totalorder %v14943_v56, %v9375_v52  ;;  %v14945_v58 = vld [vmem:[#allocation17_spill] sm:$0xff] }
 0x231   : > { %v864_v34 = vsel %vm594_vm5, %v9321_v10, 0.0  ;;  %v1682_v38 = vsel %vm1412_vm6, %v9326_v39, 0.0  ;;  %vm2232_vm10 = vcmp.eq.s32.totalorder %v14944_v42, %v9328_v61  ;;  %vm3034_vm3 = vcmp.eq.s32.totalorder %v14944_v42, %v9342_v59 }
 0x232   : > { %vm3840_vm12 = vcmp.eq.s32.totalorder %v14944_v42, %v9353_v30  ;;  %v6656_v4 = vadd.f32 %v6400_v9, %v5854_v45  ;;  %v4310_v2 = vadd.f32 %v4054_v23, %v3504_v44  ;;  %v1938_v1 = vadd.f32 %v1682_v38, %v864_v34 }
 0x233   : > { %v2502_v57 = vsel %vm2232_vm10, %v9334_v48, 0.0  ;;  %v6464_v14 = vsel %vm6194_vm9, %v9393_v8, 0.0  ;;  %v3304_v5 = vsel %vm3034_vm3, %v9350_v35, 0.0  ;;  %vm4642_vm11 = vcmp.eq.s32.totalorder %v14944_v42, %v9357_v20 }
 0x234   : > { %vm5448_vm13 = vcmp.eq.s32.totalorder %v14944_v42, %v9371_v33  ;;  %6964 = vmatpush.msrb.mxu0 %v6656_v4  ;;  %v5112_v29 = vadd.f32 %v4856_v32, %v4310_v2  ;;  %v2758_v50 = vadd.f32 %v2502_v57, %v1938_v1  ;;  %v4110_v19 = vsel %vm3840_vm12, %v9355_v28, 0.0 }
 0x235   : > { %v4912_v9 = vsel %vm4642_vm11, %v9360_v25, 0.0  ;;  %vm6250_vm15 = vcmp.eq.s32.totalorder %v14944_v42, %v9375_v52  ;;  %vm662_vm4 = vcmp.eq.s32.totalorder %v14945_v58, %v9319_v60  ;;  %vm1480_vm8 = vcmp.eq.s32.totalorder %v14945_v58, %v9323_v54 }
 0x236   : > { %vm2300_vm14 = vcmp.eq.s32.totalorder %v14945_v58, %v9328_v61  ;;  %v5918_v43 = vadd.f32 %v5662_v53, %v5112_v29  ;;  %v3560_v23 = vadd.f32 %v3304_v5, %v2758_v50  ;;  %v5718_v32 = vsel %vm5448_vm13, %v9373_v55, 0.0 }
 0x237   : > { %v932_v45 = vsel %vm662_vm4, %v9321_v10, 0.0  ;;  %v1750_v44 = vsel %vm1480_vm8, %v9326_v39, 0.0  ;;  %v2570_v34 = vsel %vm2300_vm14, %v9334_v48, 0.0  ;;  %vm3102_vm0 = vcmp.eq.s32.totalorder %v14945_v58, %v9342_v59 }
 0x238   : > { %vm3908_vm2 = vcmp.eq.s32.totalorder %v14945_v58, %v9353_v30  ;;  %v6720_v38 = vadd.f32 %v6464_v14, %v5918_v43  ;;  %v4366_v4 = vadd.f32 %v4110_v19, %v3560_v23  ;;  %v6520_v2 = vsel %vm6250_vm15, %v9393_v8, 0.0  ;;  %v14946_v19 = vld [vmem:[#allocation18_spill] sm:$0xff] }
 0x239   : > { %v2006_v53 = vadd.f32 %v1750_v44, %v932_v45  ;;  %v3372_v1 = vsel %vm3102_vm0, %v9350_v35, 0.0  ;;  %v4178_v57 = vsel %vm3908_vm2, %v9355_v28, 0.0  ;;  %vm4710_vm7 = vcmp.eq.s32.totalorder %v14945_v58, %v9357_v20 }
 0x23a   : > { %vm5516_vm1 = vcmp.eq.s32.totalorder %v14945_v58, %v9371_v33  ;;  %6984 = vmatpush.msrb.mxu1 %v6720_v38  ;;  %v5168_v5 = vadd.f32 %v4912_v9, %v4366_v4  ;;  %v4980_v50 = vsel %vm4710_vm7, %v9360_v25, 0.0  ;;  %vm6318_vm5 = vcmp.eq.s32.totalorder %v14945_v58, %v9375_v52 }
 0x23b   : > { %v2826_v29 = vadd.f32 %v2570_v34, %v2006_v53  ;;  %v5786_v14 = vsel %vm5516_vm1, %v9373_v55, 0.0  ;;  %vm470_vm6 = vcmp.eq.s32.totalorder %v14946_v19, %v9319_v60  ;;  %vm1288_vm9 = vcmp.eq.s32.totalorder %v14946_v19, %v9323_v54 }
 0x23c   : > { %vm2108_vm10 = vcmp.eq.s32.totalorder %v14946_v19, %v9328_v61  ;;  %v5974_v43 = vadd.f32 %v5718_v32, %v5168_v5  ;;  %v740_v9 = vsel %vm470_vm6, %v9321_v10, 0.0  ;;  %v1558_v45 = vsel %vm1288_vm9, %v9326_v39, 0.0 }
 0x23d   : > { %v3628_v23 = vadd.f32 %v3372_v1, %v2826_v29  ;;  %v1814_v44 = vadd.f32 %v1558_v45, %v740_v9  ;;  %v2378_v34 = vsel %vm2108_vm10, %v9334_v48, 0.0  ;;  %vm2910_vm3 = vcmp.eq.s32.totalorder %v14946_v19, %v9342_v59 }
 0x23e   : > { %vm3716_vm12 = vcmp.eq.s32.totalorder %v14946_v19, %v9353_v30  ;;  %v6776_v38 = vadd.f32 %v6520_v2, %v5974_v43  ;;  %v6588_v53 = vsel %vm6318_vm5, %v9393_v8, 0.0  ;;  %v3180_v32 = vsel %vm2910_vm3, %v9350_v35, 0.0  ;;  %v14947_v43 = vld [vmem:[#allocation19_spill] sm:$0xff] }
 0x23f   : > { %v4434_v4 = vadd.f32 %v4178_v57, %v3628_v23  ;;  %v2634_v1 = vadd.f32 %v2378_v34, %v1814_v44  ;;  %v3986_v5 = vsel %vm3716_vm12, %v9355_v28, 0.0  ;;  %vm4518_vm11 = vcmp.eq.s32.totalorder %v14946_v19, %v9357_v20 }
 0x240   : > { %vm5324_vm13 = vcmp.eq.s32.totalorder %v14946_v19, %v9371_v33  ;;  %7006 = vmatpush.msrb.mxu2 %v6776_v38  ;;  %v4788_v9 = vsel %vm4518_vm11, %v9360_v25, 0.0  ;;  %vm6126_vm15 = vcmp.eq.s32.totalorder %v14946_v19, %v9375_v52  ;;  %vm534_vm4 = vcmp.eq.s32.totalorder %v14947_v43, %v9319_v60 }
 0x241   : > { %v5236_v29 = vadd.f32 %v4980_v50, %v4434_v4  ;;  %v5594_v2 = vsel %vm5324_vm13, %v9373_v55, 0.0  ;;  %v3436_v57 = vadd.f32 %v3180_v32, %v2634_v1  ;;  %vm1352_vm8 = vcmp.eq.s32.totalorder %v14947_v43, %v9323_v54 }
 0x242   : > { %vm2172_vm14 = vcmp.eq.s32.totalorder %v14947_v43, %v9328_v61  ;;  %v804_v50 = vsel %vm534_vm4, %v9321_v10, 0.0  ;;  %v1622_v45 = vsel %vm1352_vm8, %v9326_v39, 0.0  ;;  %vm2974_vm0 = vcmp.eq.s32.totalorder %v14947_v43, %v9342_v59 }
 0x243   : > { %v6042_v23 = vadd.f32 %v5786_v14, %v5236_v29  ;;  %v2442_v44 = vsel %vm2172_vm14, %v9334_v48, 0.0  ;;  %v4242_v34 = vadd.f32 %v3986_v5, %v3436_v57  ;;  %v1878_v38 = vadd.f32 %v1622_v45, %v804_v50 }
 0x244   : > { %vm3780_vm2 = vcmp.eq.s32.totalorder %v14947_v43, %v9353_v30  ;;  %v6396_v32 = vsel %vm6126_vm15, %v9393_v8, 0.0  ;;  %v3244_v1 = vsel %vm2974_vm0, %v9350_v35, 0.0  ;;  %vm4582_vm7 = vcmp.eq.s32.totalorder %v14947_v43, %v9357_v20 }
 0x245   : > { %v6844_v4 = vadd.f32 %v6588_v53, %v6042_v23  ;;  %v5044_v14 = vadd.f32 %v4788_v9, %v4242_v34  ;;  %v2698_v29 = vadd.f32 %v2442_v44, %v1878_v38  ;;  %v4050_v19 = vsel %vm3780_vm2, %v9355_v28, 0.0  ;;  %v14948_v53 = vld [vmem:[#allocation20_spill] sm:$0xff] }
 0x246   : > { %vm5388_vm1 = vcmp.eq.s32.totalorder %v14947_v43, %v9371_v33  ;;  %v4852_v5 = vsel %vm4582_vm7, %v9360_v25, 0.0  ;;  %vm590_vm5 = vcmp.eq.s32.totalorder %v14948_v53, %v9319_v60  ;;  %vm1408_vm6 = vcmp.eq.s32.totalorder %v14948_v53, %v9323_v54 }
 0x247   : > { %7025 = vmatpush.msrb.mxu3 %v6844_v4  ;;  %v5658_v57 = vsel %vm5388_vm1, %v9373_v55, 0.0  ;;  %v5850_v23 = vadd.f32 %v5594_v2, %v5044_v14  ;;  %v3500_v50 = vadd.f32 %v3244_v1, %v2698_v29  ;;  %vm6190_vm9 = vcmp.eq.s32.totalorder %v14947_v43, %v9375_v52 }
 0x248   : > { %v860_v9 = vsel %vm590_vm5, %v9321_v10, 0.0  ;;  %v1678_v45 = vsel %vm1408_vm6, %v9326_v39, 0.0  ;;  %vm2228_vm10 = vcmp.eq.s32.totalorder %v14948_v53, %v9328_v61  ;;  %vm3030_vm3 = vcmp.eq.s32.totalorder %v14948_v53, %v9342_v59 }
 0x249   : > { %vm3836_vm12 = vcmp.eq.s32.totalorder %v14948_v53, %v9353_v30  ;;  %v6652_v44 = vadd.f32 %v6396_v32, %v5850_v23  ;;  %v4306_v34 = vadd.f32 %v4050_v19, %v3500_v50  ;;  %v1934_v2 = vadd.f32 %v1678_v45, %v860_v9  ;;  %v14949_v32 = vld [vmem:[#allocation21_spill] sm:$0xff] }
 0x24a   : > { %v2498_v38 = vsel %vm2228_vm10, %v9334_v48, 0.0  ;;  %v6460_v4 = vsel %vm6190_vm9, %v9393_v8, 0.0  ;;  %v3300_v1 = vsel %vm3030_vm3, %v9350_v35, 0.0  ;;  %vm4638_vm11 = vcmp.eq.s32.totalorder %v14948_v53, %v9357_v20 }
 0x24b   : > { %vm5444_vm13 = vcmp.eq.s32.totalorder %v14948_v53, %v9371_v33  ;;  %6965 = vmatpush.msrb.mxu0 %v6652_v44  ;;  %v5108_v14 = vadd.f32 %v4852_v5, %v4306_v34  ;;  %v2754_v29 = vadd.f32 %v2498_v38, %v1934_v2  ;;  %v4106_v43 = vsel %vm3836_vm12, %v9355_v28, 0.0 }
 0x24c   : > { %v4908_v19 = vsel %vm4638_vm11, %v9360_v25, 0.0  ;;  %vm6246_vm15 = vcmp.eq.s32.totalorder %v14948_v53, %v9375_v52  ;;  %vm658_vm4 = vcmp.eq.s32.totalorder %v14949_v32, %v9319_v60  ;;  %vm1476_vm8 = vcmp.eq.s32.totalorder %v14949_v32, %v9323_v54 }
 0x24d   : > { %vm2296_vm14 = vcmp.eq.s32.totalorder %v14949_v32, %v9328_v61  ;;  %v5914_v23 = vadd.f32 %v5658_v57, %v5108_v14  ;;  %v3556_v50 = vadd.f32 %v3300_v1, %v2754_v29  ;;  %v5714_v5 = vsel %vm5444_vm13, %v9373_v55, 0.0 }
 0x24e   : > { %v928_v9 = vsel %vm658_vm4, %v9321_v10, 0.0  ;;  %v1746_v45 = vsel %vm1476_vm8, %v9326_v39, 0.0  ;;  %v2566_v44 = vsel %vm2296_vm14, %v9334_v48, 0.0  ;;  %vm3098_vm0 = vcmp.eq.s32.totalorder %v14949_v32, %v9342_v59 }
 0x24f   : > { %vm3904_vm2 = vcmp.eq.s32.totalorder %v14949_v32, %v9353_v30  ;;  %v6716_v34 = vadd.f32 %v6460_v4, %v5914_v23  ;;  %v4362_v2 = vadd.f32 %v4106_v43, %v3556_v50  ;;  %v6516_v38 = vsel %vm6246_vm15, %v9393_v8, 0.0  ;;  %v14950_v4 = vld [vmem:[#allocation22_spill] sm:$0xff] }
 0x250   : > { %v2002_v57 = vadd.f32 %v1746_v45, %v928_v9  ;;  %v3368_v1 = vsel %vm3098_vm0, %v9350_v35, 0.0  ;;  %v4174_v14 = vsel %vm3904_vm2, %v9355_v28, 0.0  ;;  %vm4706_vm7 = vcmp.eq.s32.totalorder %v14949_v32, %v9357_v20 }
 0x251   : > { %vm5512_vm1 = vcmp.eq.s32.totalorder %v14949_v32, %v9371_v33  ;;  %6985 = vmatpush.msrb.mxu1 %v6716_v34  ;;  %v5164_v29 = vadd.f32 %v4908_v19, %v4362_v2  ;;  %v4976_v58 = vsel %vm4706_vm7, %v9360_v25, 0.0  ;;  %vm6314_vm5 = vcmp.eq.s32.totalorder %v14949_v32, %v9375_v52 }
 0x252   : > { %v2822_v53 = vadd.f32 %v2566_v44, %v2002_v57  ;;  %v5782_v43 = vsel %vm5512_vm1, %v9373_v55, 0.0  ;;  %vm466_vm6 = vcmp.eq.s32.totalorder %v14950_v4, %v9319_v60  ;;  %vm1284_vm9 = vcmp.eq.s32.totalorder %v14950_v4, %v9323_v54 }
 0x253   : > { %vm2104_vm10 = vcmp.eq.s32.totalorder %v14950_v4, %v9328_v61  ;;  %v5970_v23 = vadd.f32 %v5714_v5, %v5164_v29  ;;  %v736_v19 = vsel %vm466_vm6, %v9321_v10, 0.0  ;;  %v1554_v9 = vsel %vm1284_vm9, %v9326_v39, 0.0 }
 0x254   : > { %v3624_v50 = vadd.f32 %v3368_v1, %v2822_v53  ;;  %v1810_v45 = vadd.f32 %v1554_v9, %v736_v19  ;;  %v2374_v44 = vsel %vm2104_vm10, %v9334_v48, 0.0  ;;  %vm2906_vm3 = vcmp.eq.s32.totalorder %v14950_v4, %v9342_v59 }
 0x255   : > { %vm3712_vm12 = vcmp.eq.s32.totalorder %v14950_v4, %v9353_v30  ;;  %v6772_v34 = vadd.f32 %v6516_v38, %v5970_v23  ;;  %v6584_v57 = vsel %vm6314_vm5, %v9393_v8, 0.0  ;;  %v3176_v5 = vsel %vm2906_vm3, %v9350_v35, 0.0  ;;  %v14951_v23 = vld [vmem:[#allocation23_spill] sm:$0xff] }
 0x256   : > { %v4430_v2 = vadd.f32 %v4174_v14, %v3624_v50  ;;  %v2630_v53 = vadd.f32 %v2374_v44, %v1810_v45  ;;  %v3982_v1 = vsel %vm3712_vm12, %v9355_v28, 0.0  ;;  %vm4514_vm11 = vcmp.eq.s32.totalorder %v14950_v4, %v9357_v20 }
 0x257   : > { %vm5320_vm13 = vcmp.eq.s32.totalorder %v14950_v4, %v9371_v33  ;;  %7007 = vmatpush.msrb.mxu2 %v6772_v34  ;;  %v4784_v19 = vsel %vm4514_vm11, %v9360_v25, 0.0  ;;  %vm6122_vm15 = vcmp.eq.s32.totalorder %v14950_v4, %v9375_v52  ;;  %vm530_vm4 = vcmp.eq.s32.totalorder %v14951_v23, %v9319_v60 }
 0x258   : > { %v5232_v29 = vadd.f32 %v4976_v58, %v4430_v2  ;;  %v5590_v38 = vsel %vm5320_vm13, %v9373_v55, 0.0  ;;  %v3432_v14 = vadd.f32 %v3176_v5, %v2630_v53  ;;  %vm1348_vm8 = vcmp.eq.s32.totalorder %v14951_v23, %v9323_v54 }
 0x259   : > { %vm2168_vm14 = vcmp.eq.s32.totalorder %v14951_v23, %v9328_v61  ;;  %v800_v58 = vsel %vm530_vm4, %v9321_v10, 0.0  ;;  %v1618_v9 = vsel %vm1348_vm8, %v9326_v39, 0.0  ;;  %vm2970_vm0 = vcmp.eq.s32.totalorder %v14951_v23, %v9342_v59 }
 0x25a   : > { %v6038_v50 = vadd.f32 %v5782_v43, %v5232_v29  ;;  %v2438_v45 = vsel %vm2168_vm14, %v9334_v48, 0.0  ;;  %v4238_v44 = vadd.f32 %v3982_v1, %v3432_v14  ;;  %v1874_v34 = vadd.f32 %v1618_v9, %v800_v58 }
 0x25b   : > { %vm3776_vm2 = vcmp.eq.s32.totalorder %v14951_v23, %v9353_v30  ;;  %v6392_v5 = vsel %vm6122_vm15, %v9393_v8, 0.0  ;;  %v3240_v53 = vsel %vm2970_vm0, %v9350_v35, 0.0  ;;  %vm4578_vm7 = vcmp.eq.s32.totalorder %v14951_v23, %v9357_v20 }
 0x25c   : > { %v6840_v2 = vadd.f32 %v6584_v57, %v6038_v50  ;;  %v5040_v43 = vadd.f32 %v4784_v19, %v4238_v44  ;;  %v2694_v29 = vadd.f32 %v2438_v45, %v1874_v34  ;;  %v4046_v4 = vsel %vm3776_vm2, %v9355_v28, 0.0  ;;  %v14952_v57 = vld [vmem:[#allocation24_spill] sm:$0xff] }
 0x25d   : > { %vm5384_vm1 = vcmp.eq.s32.totalorder %v14951_v23, %v9371_v33  ;;  %v4848_v1 = vsel %vm4578_vm7, %v9360_v25, 0.0  ;;  %vm586_vm5 = vcmp.eq.s32.totalorder %v14952_v57, %v9319_v60  ;;  %vm1404_vm6 = vcmp.eq.s32.totalorder %v14952_v57, %v9323_v54 }
 0x25e   : > { %7026 = vmatpush.msrb.mxu3 %v6840_v2  ;;  %v5654_v14 = vsel %vm5384_vm1, %v9373_v55, 0.0  ;;  %v5846_v50 = vadd.f32 %v5590_v38, %v5040_v43  ;;  %v3496_v58 = vadd.f32 %v3240_v53, %v2694_v29  ;;  %vm6186_vm9 = vcmp.eq.s32.totalorder %v14951_v23, %v9375_v52 }
 0x25f   : > { %v856_v19 = vsel %vm586_vm5, %v9321_v10, 0.0  ;;  %v1674_v9 = vsel %vm1404_vm6, %v9326_v39, 0.0  ;;  %vm2224_vm10 = vcmp.eq.s32.totalorder %v14952_v57, %v9328_v61  ;;  %vm3026_vm3 = vcmp.eq.s32.totalorder %v14952_v57, %v9342_v59 }
 0x260   : > { %vm3832_vm12 = vcmp.eq.s32.totalorder %v14952_v57, %v9353_v30  ;;  %v6648_v45 = vadd.f32 %v6392_v5, %v5846_v50  ;;  %v4302_v44 = vadd.f32 %v4046_v4, %v3496_v58  ;;  %v1930_v38 = vadd.f32 %v1674_v9, %v856_v19  ;;  %v14953_v5 = vld [vmem:[#allocation25_spill] sm:$0xff] }
 0x261   : > { %v2494_v34 = vsel %vm2224_vm10, %v9334_v48, 0.0  ;;  %v6456_v2 = vsel %vm6186_vm9, %v9393_v8, 0.0  ;;  %v3296_v53 = vsel %vm3026_vm3, %v9350_v35, 0.0  ;;  %vm4634_vm11 = vcmp.eq.s32.totalorder %v14952_v57, %v9357_v20 }
 0x262   : > { %vm5440_vm13 = vcmp.eq.s32.totalorder %v14952_v57, %v9371_v33  ;;  %6966 = vmatpush.msrb.mxu0 %v6648_v45  ;;  %v5104_v43 = vadd.f32 %v4848_v1, %v4302_v44  ;;  %v2750_v29 = vadd.f32 %v2494_v34, %v1930_v38  ;;  %v4102_v23 = vsel %vm3832_vm12, %v9355_v28, 0.0 }
 0x263   : > { %v4904_v4 = vsel %vm4634_vm11, %v9360_v25, 0.0  ;;  %vm6242_vm15 = vcmp.eq.s32.totalorder %v14952_v57, %v9375_v52  ;;  %vm654_vm4 = vcmp.eq.s32.totalorder %v14953_v5, %v9319_v60  ;;  %vm1472_vm8 = vcmp.eq.s32.totalorder %v14953_v5, %v9323_v54 }
 0x264   : > { %vm2292_vm14 = vcmp.eq.s32.totalorder %v14953_v5, %v9328_v61  ;;  %v5910_v50 = vadd.f32 %v5654_v14, %v5104_v43  ;;  %v3552_v58 = vadd.f32 %v3296_v53, %v2750_v29  ;;  %v5710_v1 = vsel %vm5440_vm13, %v9373_v55, 0.0 }
 0x265   : > { %v924_v19 = vsel %vm654_vm4, %v9321_v10, 0.0  ;;  %v1742_v9 = vsel %vm1472_vm8, %v9326_v39, 0.0  ;;  %v2562_v45 = vsel %vm2292_vm14, %v9334_v48, 0.0  ;;  %vm3094_vm0 = vcmp.eq.s32.totalorder %v14953_v5, %v9342_v59 }
 0x266   : > { %vm3900_vm2 = vcmp.eq.s32.totalorder %v14953_v5, %v9353_v30  ;;  %v6712_v44 = vadd.f32 %v6456_v2, %v5910_v50  ;;  %v4358_v38 = vadd.f32 %v4102_v23, %v3552_v58  ;;  %v6512_v34 = vsel %vm6242_vm15, %v9393_v8, 0.0  ;;  %v14954_v2 = vld [vmem:[#allocation26_spill] sm:$0xff] }
 0x267   : > { %v1998_v14 = vadd.f32 %v1742_v9, %v924_v19  ;;  %v3364_v53 = vsel %vm3094_vm0, %v9350_v35, 0.0  ;;  %v4170_v43 = vsel %vm3900_vm2, %v9355_v28, 0.0  ;;  %vm4702_vm7 = vcmp.eq.s32.totalorder %v14953_v5, %v9357_v20 }
 0x268   : > { %vm5508_vm1 = vcmp.eq.s32.totalorder %v14953_v5, %v9371_v33  ;;  %6986 = vmatpush.msrb.mxu1 %v6712_v44  ;;  %v5160_v29 = vadd.f32 %v4904_v4, %v4358_v38  ;;  %v4972_v32 = vsel %vm4702_vm7, %v9360_v25, 0.0  ;;  %vm6310_vm5 = vcmp.eq.s32.totalorder %v14953_v5, %v9375_v52 }
 0x269   : > { %v2818_v57 = vadd.f32 %v2562_v45, %v1998_v14  ;;  %v5778_v23 = vsel %vm5508_vm1, %v9373_v55, 0.0  ;;  %vm462_vm6 = vcmp.eq.s32.totalorder %v14954_v2, %v9319_v60  ;;  %vm1280_vm9 = vcmp.eq.s32.totalorder %v14954_v2, %v9323_v54 }
 0x26a   : > { %vm2100_vm10 = vcmp.eq.s32.totalorder %v14954_v2, %v9328_v61  ;;  %v5966_v50 = vadd.f32 %v5710_v1, %v5160_v29  ;;  %v732_v4 = vsel %vm462_vm6, %v9321_v10, 0.0  ;;  %v1550_v19 = vsel %vm1280_vm9, %v9326_v39, 0.0 }
 0x26b   : > { %v3620_v58 = vadd.f32 %v3364_v53, %v2818_v57  ;;  %v1806_v9 = vadd.f32 %v1550_v19, %v732_v4  ;;  %v2370_v45 = vsel %vm2100_vm10, %v9334_v48, 0.0  ;;  %vm2902_vm3 = vcmp.eq.s32.totalorder %v14954_v2, %v9342_v59 }
 0x26c   : > { %vm3708_vm12 = vcmp.eq.s32.totalorder %v14954_v2, %v9353_v30  ;;  %v6768_v44 = vadd.f32 %v6512_v34, %v5966_v50  ;;  %v6580_v14 = vsel %vm6310_vm5, %v9393_v8, 0.0  ;;  %v3172_v1 = vsel %vm2902_vm3, %v9350_v35, 0.0  ;;  %v14955_v50 = vld [vmem:[#allocation27_spill] sm:$0xff] }
 0x26d   : > { %v4426_v38 = vadd.f32 %v4170_v43, %v3620_v58  ;;  %v2626_v57 = vadd.f32 %v2370_v45, %v1806_v9  ;;  %v3978_v53 = vsel %vm3708_vm12, %v9355_v28, 0.0  ;;  %vm4510_vm11 = vcmp.eq.s32.totalorder %v14954_v2, %v9357_v20 }
 0x26e   : > { %vm5316_vm13 = vcmp.eq.s32.totalorder %v14954_v2, %v9371_v33  ;;  %7008 = vmatpush.msrb.mxu2 %v6768_v44  ;;  %v4780_v4 = vsel %vm4510_vm11, %v9360_v25, 0.0  ;;  %vm6118_vm15 = vcmp.eq.s32.totalorder %v14954_v2, %v9375_v52  ;;  %vm526_vm4 = vcmp.eq.s32.totalorder %v14955_v50, %v9319_v60 }
 0x26f   : > { %v5228_v29 = vadd.f32 %v4972_v32, %v4426_v38  ;;  %v5586_v34 = vsel %vm5316_vm13, %v9373_v55, 0.0  ;;  %v3428_v43 = vadd.f32 %v3172_v1, %v2626_v57  ;;  %vm1344_vm8 = vcmp.eq.s32.totalorder %v14955_v50, %v9323_v54 }
 0x270   : > { %vm2164_vm14 = vcmp.eq.s32.totalorder %v14955_v50, %v9328_v61  ;;  %v796_v32 = vsel %vm526_vm4, %v9321_v10, 0.0  ;;  %v1614_v19 = vsel %vm1344_vm8, %v9326_v39, 0.0  ;;  %vm2966_vm0 = vcmp.eq.s32.totalorder %v14955_v50, %v9342_v59 }
 0x271   : > { %v6034_v58 = vadd.f32 %v5778_v23, %v5228_v29  ;;  %v2434_v9 = vsel %vm2164_vm14, %v9334_v48, 0.0  ;;  %v4234_v45 = vadd.f32 %v3978_v53, %v3428_v43  ;;  %v1870_v44 = vadd.f32 %v1614_v19, %v796_v32 }
 0x272   : > { %vm3772_vm2 = vcmp.eq.s32.totalorder %v14955_v50, %v9353_v30  ;;  %v6388_v1 = vsel %vm6118_vm15, %v9393_v8, 0.0  ;;  %v3236_v57 = vsel %vm2966_vm0, %v9350_v35, 0.0  ;;  %vm4574_vm7 = vcmp.eq.s32.totalorder %v14955_v50, %v9357_v20 }
 0x273   : > { %v6836_v38 = vadd.f32 %v6580_v14, %v6034_v58  ;;  %v5036_v23 = vadd.f32 %v4780_v4, %v4234_v45  ;;  %v2690_v29 = vadd.f32 %v2434_v9, %v1870_v44  ;;  %v4042_v2 = vsel %vm3772_vm2, %v9355_v28, 0.0  ;;  %v14956_v14 = vld [vmem:[#allocation28_spill] sm:$0xff] }
 0x274   : > { %vm5380_vm1 = vcmp.eq.s32.totalorder %v14955_v50, %v9371_v33  ;;  %v4844_v53 = vsel %vm4574_vm7, %v9360_v25, 0.0  ;;  %vm582_vm5 = vcmp.eq.s32.totalorder %v14956_v14, %v9319_v60  ;;  %vm1400_vm6 = vcmp.eq.s32.totalorder %v14956_v14, %v9323_v54 }
 0x275   : > { %7027 = vmatpush.msrb.mxu3 %v6836_v38  ;;  %v5650_v43 = vsel %vm5380_vm1, %v9373_v55, 0.0  ;;  %v5842_v58 = vadd.f32 %v5586_v34, %v5036_v23  ;;  %v3492_v32 = vadd.f32 %v3236_v57, %v2690_v29  ;;  %vm6182_vm9 = vcmp.eq.s32.totalorder %v14955_v50, %v9375_v52 }
 0x276   : > { %v852_v4 = vsel %vm582_vm5, %v9321_v10, 0.0  ;;  %v1670_v19 = vsel %vm1400_vm6, %v9326_v39, 0.0  ;;  %vm2220_vm10 = vcmp.eq.s32.totalorder %v14956_v14, %v9328_v61  ;;  %vm3022_vm3 = vcmp.eq.s32.totalorder %v14956_v14, %v9342_v59 }
 0x277   : > { %vm3828_vm12 = vcmp.eq.s32.totalorder %v14956_v14, %v9353_v30  ;;  %v6644_v9 = vadd.f32 %v6388_v1, %v5842_v58  ;;  %v4298_v45 = vadd.f32 %v4042_v2, %v3492_v32  ;;  %v1926_v34 = vadd.f32 %v1670_v19, %v852_v4  ;;  %v14957_v1 = vld [vmem:[#allocation29_spill] sm:$0xff] }
 0x278   : > { %v2490_v44 = vsel %vm2220_vm10, %v9334_v48, 0.0  ;;  %v6452_v38 = vsel %vm6182_vm9, %v9393_v8, 0.0  ;;  %v3292_v57 = vsel %vm3022_vm3, %v9350_v35, 0.0  ;;  %vm4630_vm11 = vcmp.eq.s32.totalorder %v14956_v14, %v9357_v20 }
 0x279   : > { %vm5436_vm13 = vcmp.eq.s32.totalorder %v14956_v14, %v9371_v33  ;;  %6967 = vmatpush.msrb.mxu0 %v6644_v9  ;;  %v5100_v23 = vadd.f32 %v4844_v53, %v4298_v45  ;;  %v2746_v29 = vadd.f32 %v2490_v44, %v1926_v34  ;;  %v4098_v50 = vsel %vm3828_vm12, %v9355_v28, 0.0 }
 0x27a   : > { %v4900_v2 = vsel %vm4630_vm11, %v9360_v25, 0.0  ;;  %vm6238_vm15 = vcmp.eq.s32.totalorder %v14956_v14, %v9375_v52  ;;  %vm650_vm4 = vcmp.eq.s32.totalorder %v14957_v1, %v9319_v60  ;;  %vm1468_vm8 = vcmp.eq.s32.totalorder %v14957_v1, %v9323_v54 }
 0x27b   : > { %vm2288_vm14 = vcmp.eq.s32.totalorder %v14957_v1, %v9328_v61  ;;  %v5906_v58 = vadd.f32 %v5650_v43, %v5100_v23  ;;  %v3548_v32 = vadd.f32 %v3292_v57, %v2746_v29  ;;  %v5706_v53 = vsel %vm5436_vm13, %v9373_v55, 0.0 }
 0x27c   : > { %v920_v4 = vsel %vm650_vm4, %v9321_v10, 0.0  ;;  %v1738_v19 = vsel %vm1468_vm8, %v9326_v39, 0.0  ;;  %v2558_v9 = vsel %vm2288_vm14, %v9334_v48, 0.0  ;;  %vm3090_vm0 = vcmp.eq.s32.totalorder %v14957_v1, %v9342_v59 }
 0x27d   : > { %vm3896_vm2 = vcmp.eq.s32.totalorder %v14957_v1, %v9353_v30  ;;  %v6708_v45 = vadd.f32 %v6452_v38, %v5906_v58  ;;  %v4354_v34 = vadd.f32 %v4098_v50, %v3548_v32  ;;  %v6508_v44 = vsel %vm6238_vm15, %v9393_v8, 0.0  ;;  %v14958_v38 = vld [vmem:[#allocation30_spill] sm:$0xff] }
 0x27e   : > { %v1994_v43 = vadd.f32 %v1738_v19, %v920_v4  ;;  %v3360_v57 = vsel %vm3090_vm0, %v9350_v35, 0.0  ;;  %v4166_v23 = vsel %vm3896_vm2, %v9355_v28, 0.0  ;;  %vm4698_vm7 = vcmp.eq.s32.totalorder %v14957_v1, %v9357_v20 }
 0x27f   : > { %vm5504_vm1 = vcmp.eq.s32.totalorder %v14957_v1, %v9371_v33  ;;  %6987 = vmatpush.msrb.mxu1 %v6708_v45  ;;  %v5156_v29 = vadd.f32 %v4900_v2, %v4354_v34  ;;  %v4968_v5 = vsel %vm4698_vm7, %v9360_v25, 0.0  ;;  %vm6306_vm5 = vcmp.eq.s32.totalorder %v14957_v1, %v9375_v52 }
 0x280   : > { %v2814_v14 = vadd.f32 %v2558_v9, %v1994_v43  ;;  %v5774_v50 = vsel %vm5504_vm1, %v9373_v55, 0.0  ;;  %vm458_vm6 = vcmp.eq.s32.totalorder %v14958_v38, %v9319_v60  ;;  %vm1276_vm9 = vcmp.eq.s32.totalorder %v14958_v38, %v9323_v54 }
 0x281   : > { %vm2096_vm10 = vcmp.eq.s32.totalorder %v14958_v38, %v9328_v61  ;;  %v5962_v58 = vadd.f32 %v5706_v53, %v5156_v29  ;;  %v728_v2 = vsel %vm458_vm6, %v9321_v10, 0.0  ;;  %v1546_v4 = vsel %vm1276_vm9, %v9326_v39, 0.0 }
 0x282   : > { %v3616_v32 = vadd.f32 %v3360_v57, %v2814_v14  ;;  %v1802_v19 = vadd.f32 %v1546_v4, %v728_v2  ;;  %v2366_v9 = vsel %vm2096_vm10, %v9334_v48, 0.0  ;;  %vm2898_vm3 = vcmp.eq.s32.totalorder %v14958_v38, %v9342_v59 }
 0x283   : > { %vm3704_vm12 = vcmp.eq.s32.totalorder %v14958_v38, %v9353_v30  ;;  %v6764_v45 = vadd.f32 %v6508_v44, %v5962_v58  ;;  %v6576_v43 = vsel %vm6306_vm5, %v9393_v8, 0.0  ;;  %v3168_v53 = vsel %vm2898_vm3, %v9350_v35, 0.0  ;;  %v14959_v58 = vld [vmem:[#allocation31_spill] sm:$0xff] }
 0x284   : > { %v4422_v34 = vadd.f32 %v4166_v23, %v3616_v32  ;;  %v2622_v14 = vadd.f32 %v2366_v9, %v1802_v19  ;;  %v3974_v57 = vsel %vm3704_vm12, %v9355_v28, 0.0  ;;  %vm4506_vm11 = vcmp.eq.s32.totalorder %v14958_v38, %v9357_v20 }
 0x285   : > { %vm5312_vm13 = vcmp.eq.s32.totalorder %v14958_v38, %v9371_v33  ;;  %7009 = vmatpush.msrb.mxu2 %v6764_v45  ;;  %v4776_v2 = vsel %vm4506_vm11, %v9360_v25, 0.0  ;;  %vm6114_vm15 = vcmp.eq.s32.totalorder %v14958_v38, %v9375_v52  ;;  %vm522_vm4 = vcmp.eq.s32.totalorder %v14959_v58, %v9319_v60 }
 0x286   : > { %v5224_v29 = vadd.f32 %v4968_v5, %v4422_v34  ;;  %v5582_v44 = vsel %vm5312_vm13, %v9373_v55, 0.0  ;;  %v3424_v23 = vadd.f32 %v3168_v53, %v2622_v14  ;;  %vm1340_vm8 = vcmp.eq.s32.totalorder %v14959_v58, %v9323_v54 }
 0x287   : > { %vm2160_vm14 = vcmp.eq.s32.totalorder %v14959_v58, %v9328_v61  ;;  %v792_v5 = vsel %vm522_vm4, %v9321_v10, 0.0  ;;  %v1610_v4 = vsel %vm1340_vm8, %v9326_v39, 0.0  ;;  %vm2962_vm0 = vcmp.eq.s32.totalorder %v14959_v58, %v9342_v59 }
 0x288   : > { %v6030_v32 = vadd.f32 %v5774_v50, %v5224_v29  ;;  %v2430_v19 = vsel %vm2160_vm14, %v9334_v48, 0.0  ;;  %v4230_v9 = vadd.f32 %v3974_v57, %v3424_v23  ;;  %v1866_v45 = vadd.f32 %v1610_v4, %v792_v5  ;;  %v14960_v23 = vld [vmem:[#allocation32_spill] sm:$0xff] }
 0x289   : > { %vm3768_vm2 = vcmp.eq.s32.totalorder %v14959_v58, %v9353_v30  ;;  %v6384_v53 = vsel %vm6114_vm15, %v9393_v8, 0.0  ;;  %v3232_v14 = vsel %vm2962_vm0, %v9350_v35, 0.0  ;;  %vm4570_vm7 = vcmp.eq.s32.totalorder %v14959_v58, %v9357_v20 }
 0x28a   : > { %v6832_v34 = vadd.f32 %v6576_v43, %v6030_v32  ;;  %v5032_v50 = vadd.f32 %v4776_v2, %v4230_v9  ;;  %v2686_v29 = vadd.f32 %v2430_v19, %v1866_v45  ;;  %v4038_v38 = vsel %vm3768_vm2, %v9355_v28, 0.0 }
 0x28b   : > { %vm5376_vm1 = vcmp.eq.s32.totalorder %v14959_v58, %v9371_v33  ;;  %v4840_v57 = vsel %vm4570_vm7, %v9360_v25, 0.0  ;;  %vm578_vm5 = vcmp.eq.s32.totalorder %v14960_v23, %v9319_v60  ;;  %vm1396_vm6 = vcmp.eq.s32.totalorder %v14960_v23, %v9323_v54 }
 0x28c   : > { %7028 = vmatpush.msrb.mxu3 %v6832_v34  ;;  %v5646_v43 = vsel %vm5376_vm1, %v9373_v55, 0.0  ;;  %v5838_v32 = vadd.f32 %v5582_v44, %v5032_v50  ;;  %v3488_v2 = vadd.f32 %v3232_v14, %v2686_v29  ;;  %vm6178_vm9 = vcmp.eq.s32.totalorder %v14959_v58, %v9375_v52 }
 0x28d   : > { %v848_v5 = vsel %vm578_vm5, %v9321_v10, 0.0  ;;  %v1666_v4 = vsel %vm1396_vm6, %v9326_v39, 0.0  ;;  %vm2216_vm10 = vcmp.eq.s32.totalorder %v14960_v23, %v9328_v61  ;;  %vm3018_vm3 = vcmp.eq.s32.totalorder %v14960_v23, %v9342_v59 }
 0x28e   : > { %vm3824_vm12 = vcmp.eq.s32.totalorder %v14960_v23, %v9353_v30  ;;  %v6640_v19 = vadd.f32 %v6384_v53, %v5838_v32  ;;  %v4294_v9 = vadd.f32 %v4038_v38, %v3488_v2  ;;  %v1922_v44 = vadd.f32 %v1666_v4, %v848_v5  ;;  %v14961_v32 = vld [vmem:[#allocation33_spill] sm:$0xff]  ;;  %v253_v2 = vld [vmem:[%s10411_s26 + $0x8] sm:$0x77] }
 0x28f   : > { %v2486_v45 = vsel %vm2216_vm10, %v9334_v48, 0.0  ;;  %v6448_v34 = vsel %vm6178_vm9, %v9393_v8, 0.0  ;;  %v3288_v14 = vsel %vm3018_vm3, %v9350_v35, 0.0  ;;  %vm4626_vm11 = vcmp.eq.s32.totalorder %v14960_v23, %v9357_v20  ;;  %6871 = vst [vmem:[#allocation1 + $0x10] ss:$2 sm:$0xff] %v253_v2 }
 0x290   : > { %vm5432_vm13 = vcmp.eq.s32.totalorder %v14960_v23, %v9371_v33  ;;  %6968 = vmatpush.msrb.mxu0 %v6640_v19  ;;  %v5096_v38 = vadd.f32 %v4840_v57, %v4294_v9  ;;  %v2742_v53 = vadd.f32 %v2486_v45, %v1922_v44  ;;  %v4094_v50 = vsel %vm3824_vm12, %v9355_v28, 0.0 }
 0x291   : > { %v4896_v29 = vsel %vm4626_vm11, %v9360_v25, 0.0  ;;  %vm6234_vm15 = vcmp.eq.s32.totalorder %v14960_v23, %v9375_v52  ;;  %vm646_vm4 = vcmp.eq.s32.totalorder %v14961_v32, %v9319_v60  ;;  %vm1464_vm8 = vcmp.eq.s32.totalorder %v14961_v32, %v9323_v54 }
 0x292   : > { %vm2284_vm14 = vcmp.eq.s32.totalorder %v14961_v32, %v9328_v61  ;;  %v5902_v5 = vadd.f32 %v5646_v43, %v5096_v38  ;;  %v3544_v57 = vadd.f32 %v3288_v14, %v2742_v53  ;;  %v5702_v4 = vsel %vm5432_vm13, %v9373_v55, 0.0 }
 0x293   : > { %v916_v19 = vsel %vm646_vm4, %v9321_v10, 0.0  ;;  %v1734_v9 = vsel %vm1464_vm8, %v9326_v39, 0.0  ;;  %v2554_v44 = vsel %vm2284_vm14, %v9334_v48, 0.0  ;;  %vm3086_vm0 = vcmp.eq.s32.totalorder %v14961_v32, %v9342_v59 }
 0x294   : > { %vm3892_vm2 = vcmp.eq.s32.totalorder %v14961_v32, %v9353_v30  ;;  %v6704_v45 = vadd.f32 %v6448_v34, %v5902_v5  ;;  %v4350_v58 = vadd.f32 %v4094_v50, %v3544_v57  ;;  %v6504_v43 = vsel %vm6234_vm15, %v9393_v8, 0.0  ;;  %v14962_v57 = vld [vmem:[#allocation34_spill] sm:$0xff] }
 0x295   : > { %v1990_v14 = vadd.f32 %v1734_v9, %v916_v19  ;;  %v3356_v38 = vsel %vm3086_vm0, %v9350_v35, 0.0  ;;  %v4162_v53 = vsel %vm3892_vm2, %v9355_v28, 0.0  ;;  %vm4694_vm7 = vcmp.eq.s32.totalorder %v14961_v32, %v9357_v20 }
 0x296   : > { %vm5500_vm1 = vcmp.eq.s32.totalorder %v14961_v32, %v9371_v33  ;;  %6988 = vmatpush.msrb.mxu1 %v6704_v45  ;;  %v5152_v2 = vadd.f32 %v4896_v29, %v4350_v58  ;;  %v4964_v50 = vsel %vm4694_vm7, %v9360_v25, 0.0  ;;  %vm6302_vm5 = vcmp.eq.s32.totalorder %v14961_v32, %v9375_v52 }
 0x297   : > { %v2810_v34 = vadd.f32 %v2554_v44, %v1990_v14  ;;  %v5770_v5 = vsel %vm5500_vm1, %v9373_v55, 0.0  ;;  %vm454_vm6 = vcmp.eq.s32.totalorder %v14962_v57, %v9319_v60  ;;  %vm1272_vm9 = vcmp.eq.s32.totalorder %v14962_v57, %v9323_v54  ;;  %v10465_v14 = vld.sshfl [vmem:[#allocation1 + $0x10] sm:$0xff pattern:$0x75316420] }
 0x298   : > { %vm2092_vm10 = vcmp.eq.s32.totalorder %v14962_v57, %v9328_v61  ;;  %v5958_v19 = vadd.f32 %v5702_v4, %v5152_v2  ;;  %v724_v58 = vsel %vm454_vm6, %v9321_v10, 0.0  ;;  %v1542_v29 = vsel %vm1272_vm9, %v9326_v39, 0.0  ;;  %6936 = vmatmul.f32.vlgmr.msra.gmra.mxu2 %v10465_v14 }
 0x299   : > { %v3612_v9 = vadd.f32 %v3356_v38, %v2810_v34  ;;  %v1798_v44 = vadd.f32 %v1542_v29, %v724_v58  ;;  %v2362_v45 = vsel %vm2092_vm10, %v9334_v48, 0.0  ;;  %vm2894_vm3 = vcmp.eq.s32.totalorder %v14962_v57, %v9342_v59  ;;  %v14963_v58 = vld [vmem:[#allocation35_spill] sm:$0xff] }
 0x29a   : > { %vm3700_vm12 = vcmp.eq.s32.totalorder %v14962_v57, %v9353_v30  ;;  %v6760_v23 = vadd.f32 %v6504_v43, %v5958_v19  ;;  %v6572_v4 = vsel %vm6302_vm5, %v9393_v8, 0.0  ;;  %v3164_v38 = vsel %vm2894_vm3, %v9350_v35, 0.0 }
 0x29b   : > { %v4418_v1 = vadd.f32 %v4162_v53, %v3612_v9  ;;  %v2618_v2 = vadd.f32 %v2362_v45, %v1798_v44  ;;  %v3970_v34 = vsel %vm3700_vm12, %v9355_v28, 0.0  ;;  %vm4502_vm11 = vcmp.eq.s32.totalorder %v14962_v57, %v9357_v20 }
 0x29c   : > { %vm5308_vm13 = vcmp.eq.s32.totalorder %v14962_v57, %v9371_v33  ;;  %7010 = vmatpush.msrb.mxu2 %v6760_v23  ;;  %v4772_v53 = vsel %vm4502_vm11, %v9360_v25, 0.0  ;;  %vm6110_vm15 = vcmp.eq.s32.totalorder %v14962_v57, %v9375_v52  ;;  %vm518_vm4 = vcmp.eq.s32.totalorder %v14963_v58, %v9319_v60 }
 0x29d   : > { %v5220_v43 = vadd.f32 %v4964_v50, %v4418_v1  ;;  %v5578_v19 = vsel %vm5308_vm13, %v9373_v55, 0.0  ;;  %v3420_v9 = vadd.f32 %v3164_v38, %v2618_v2  ;;  %vm1336_vm8 = vcmp.eq.s32.totalorder %v14963_v58, %v9323_v54 }
 0x29e   : > { %vm2156_vm14 = vcmp.eq.s32.totalorder %v14963_v58, %v9328_v61  ;;  %v788_v1 = vsel %vm518_vm4, %v9321_v10, 0.0  ;;  %v1606_v23 = vsel %vm1336_vm8, %v9326_v39, 0.0  ;;  %vm2958_vm0 = vcmp.eq.s32.totalorder %v14963_v58, %v9342_v59 }
 0x29f   : > { %v6026_v29 = vadd.f32 %v5770_v5, %v5220_v43  ;;  %v2426_v50 = vsel %vm2156_vm14, %v9334_v48, 0.0  ;;  %v4226_v44 = vadd.f32 %v3970_v34, %v3420_v9  ;;  %v1862_v45 = vadd.f32 %v1606_v23, %v788_v1 }
 0x2a0   : > { %vm3764_vm2 = vcmp.eq.s32.totalorder %v14963_v58, %v9353_v30  ;;  %v6380_v2 = vsel %vm6110_vm15, %v9393_v8, 0.0  ;;  %v3228_v57 = vsel %vm2958_vm0, %v9350_v35, 0.0  ;;  %vm4566_vm7 = vcmp.eq.s32.totalorder %v14963_v58, %v9357_v20 }
 0x2a1   : > { %v6828_v38 = vadd.f32 %v6572_v4, %v6026_v29  ;;  %v5028_v5 = vadd.f32 %v4772_v53, %v4226_v44  ;;  %v2682_v43 = vadd.f32 %v2426_v50, %v1862_v45  ;;  %v4034_v32 = vsel %vm3764_vm2, %v9355_v28, 0.0  ;;  %v14964_v4 = vld [vmem:[#allocation36_spill] sm:$0xff] }
 0x2a2   : > { %vm5372_vm1 = vcmp.eq.s32.totalorder %v14963_v58, %v9371_v33  ;;  %v4836_v34 = vsel %vm4566_vm7, %v9360_v25, 0.0  ;;  %vm574_vm5 = vcmp.eq.s32.totalorder %v14964_v4, %v9319_v60  ;;  %vm1392_vm6 = vcmp.eq.s32.totalorder %v14964_v4, %v9323_v54 }
 0x2a3   : > { %7029 = vmatpush.msrb.mxu3 %v6828_v38  ;;  %v5642_v9 = vsel %vm5372_vm1, %v9373_v55, 0.0  ;;  %v5834_v29 = vadd.f32 %v5578_v19, %v5028_v5  ;;  %v3484_v1 = vadd.f32 %v3228_v57, %v2682_v43  ;;  %vm6174_vm9 = vcmp.eq.s32.totalorder %v14963_v58, %v9375_v52 }
 0x2a4   : > { %v844_v53 = vsel %vm574_vm5, %v9321_v10, 0.0  ;;  %v1662_v23 = vsel %vm1392_vm6, %v9326_v39, 0.0  ;;  %vm2212_vm10 = vcmp.eq.s32.totalorder %v14964_v4, %v9328_v61  ;;  %vm3014_vm3 = vcmp.eq.s32.totalorder %v14964_v4, %v9342_v59 }
 0x2a5   : > { %vm3820_vm12 = vcmp.eq.s32.totalorder %v14964_v4, %v9353_v30  ;;  %v6636_v50 = vadd.f32 %v6380_v2, %v5834_v29  ;;  %v4290_v44 = vadd.f32 %v4034_v32, %v3484_v1  ;;  %v1918_v19 = vadd.f32 %v1662_v23, %v844_v53  ;;  %v14965_v2 = vld [vmem:[#allocation37_spill] sm:$0xff] }
 0x2a6   : > { %v2482_v57 = vsel %vm2212_vm10, %v9334_v48, 0.0  ;;  %v6444_v45 = vsel %vm6174_vm9, %v9393_v8, 0.0  ;;  %v3284_v38 = vsel %vm3014_vm3, %v9350_v35, 0.0  ;;  %vm4622_vm11 = vcmp.eq.s32.totalorder %v14964_v4, %v9357_v20 }
 0x2a7   : > { %vm5428_vm13 = vcmp.eq.s32.totalorder %v14964_v4, %v9371_v33  ;;  %6969 = vmatpush.msrb.mxu0 %v6636_v50  ;;  %v5092_v5 = vadd.f32 %v4836_v34, %v4290_v44  ;;  %v2738_v43 = vadd.f32 %v2482_v57, %v1918_v19  ;;  %v4090_v58 = vsel %vm3820_vm12, %v9355_v28, 0.0 }
 0x2a8   : > { %v4892_v32 = vsel %vm4622_vm11, %v9360_v25, 0.0  ;;  %vm6230_vm15 = vcmp.eq.s32.totalorder %v14964_v4, %v9375_v52  ;;  %vm642_vm4 = vcmp.eq.s32.totalorder %v14965_v2, %v9319_v60  ;;  %vm1460_vm8 = vcmp.eq.s32.totalorder %v14965_v2, %v9323_v54 }
 0x2a9   : > { %vm2280_vm14 = vcmp.eq.s32.totalorder %v14965_v2, %v9328_v61  ;;  %v5898_v29 = vadd.f32 %v5642_v9, %v5092_v5  ;;  %v3540_v1 = vadd.f32 %v3284_v38, %v2738_v43  ;;  %v5698_v34 = vsel %vm5428_vm13, %v9373_v55, 0.0 }
 0x2aa   : > { %v912_v53 = vsel %vm642_vm4, %v9321_v10, 0.0  ;;  %v1730_v23 = vsel %vm1460_vm8, %v9326_v39, 0.0  ;;  %v2550_v50 = vsel %vm2280_vm14, %v9334_v48, 0.0  ;;  %vm3082_vm0 = vcmp.eq.s32.totalorder %v14965_v2, %v9342_v59 }
 0x2ab   : > { %vm3888_vm2 = vcmp.eq.s32.totalorder %v14965_v2, %v9353_v30  ;;  %v6700_v44 = vadd.f32 %v6444_v45, %v5898_v29  ;;  %v4346_v19 = vadd.f32 %v4090_v58, %v3540_v1  ;;  %v6500_v57 = vsel %vm6230_vm15, %v9393_v8, 0.0  ;;  %v14966_v45 = vld [vmem:[#allocation38_spill] sm:$0xff] }
 0x2ac   : > { %v1986_v9 = vadd.f32 %v1730_v23, %v912_v53  ;;  %v3352_v38 = vsel %vm3082_vm0, %v9350_v35, 0.0  ;;  %v4158_v5 = vsel %vm3888_vm2, %v9355_v28, 0.0  ;;  %vm4690_vm7 = vcmp.eq.s32.totalorder %v14965_v2, %v9357_v20 }
 0x2ad   : > { %vm5496_vm1 = vcmp.eq.s32.totalorder %v14965_v2, %v9371_v33  ;;  %6989 = vmatpush.msrb.mxu1 %v6700_v44  ;;  %v5148_v43 = vadd.f32 %v4892_v32, %v4346_v19  ;;  %v4960_v42 = vsel %vm4690_vm7, %v9360_v25, 0.0  ;;  %vm6298_vm5 = vcmp.eq.s32.totalorder %v14965_v2, %v9375_v52  ;;  %v6875_v44 = vld.sshfl [vmem:[#allocation1 + $0x18] sm:$0xff pattern:$0x75316420] }
 0x2ae   : > { %v2806_v4 = vadd.f32 %v2550_v50, %v1986_v9  ;;  %v5766_v58 = vsel %vm5496_vm1, %v9373_v55, 0.0  ;;  %vm450_vm6 = vcmp.eq.s32.totalorder %v14966_v45, %v9319_v60  ;;  %vm1268_vm9 = vcmp.eq.s32.totalorder %v14966_v45, %v9323_v54  ;;  %6956 = vmatmul.f32.vlgmr.msra.gmra.mxu3 %v6875_v44 }
 0x2af   : > { %vm2088_vm10 = vcmp.eq.s32.totalorder %v14966_v45, %v9328_v61  ;;  %v5954_v29 = vadd.f32 %v5698_v34, %v5148_v43  ;;  %v720_v32 = vsel %vm450_vm6, %v9321_v10, 0.0  ;;  %v1538_v53 = vsel %vm1268_vm9, %v9326_v39, 0.0 }
 0x2b0   : > { %v3608_v1 = vadd.f32 %v3352_v38, %v2806_v4  ;;  %v1794_v23 = vadd.f32 %v1538_v53, %v720_v32  ;;  %v2358_v50 = vsel %vm2088_vm10, %v9334_v48, 0.0  ;;  %vm2890_vm3 = vcmp.eq.s32.totalorder %v14966_v45, %v9342_v59  ;;  %v14967_v32 = vld [vmem:[#allocation39_spill] sm:$0xff] }
 0x2b1   : > { %vm3696_vm12 = vcmp.eq.s32.totalorder %v14966_v45, %v9353_v30  ;;  %v6756_v19 = vadd.f32 %v6500_v57, %v5954_v29  ;;  %v6568_v4 = vsel %vm6298_vm5, %v9393_v8, 0.0  ;;  %v3160_v34 = vsel %vm2890_vm3, %v9350_v35, 0.0 }
 0x2b2   : > { %v4414_v9 = vadd.f32 %v4158_v5, %v3608_v1  ;;  %v2614_v38 = vadd.f32 %v2358_v50, %v1794_v23  ;;  %v3966_v43 = vsel %vm3696_vm12, %v9355_v28, 0.0  ;;  %vm4498_vm11 = vcmp.eq.s32.totalorder %v14966_v45, %v9357_v20 }
 0x2b3   : > { %vm5304_vm13 = vcmp.eq.s32.totalorder %v14966_v45, %v9371_v33  ;;  %7011 = vmatpush.msrb.mxu2 %v6756_v19  ;;  %v4768_v5 = vsel %vm4498_vm11, %v9360_v25, 0.0  ;;  %vm6106_vm15 = vcmp.eq.s32.totalorder %v14966_v45, %v9375_v52  ;;  %vm514_vm4 = vcmp.eq.s32.totalorder %v14967_v32, %v9319_v60 }
 0x2b4   : > { %v5216_v57 = vadd.f32 %v4960_v42, %v4414_v9  ;;  %v5574_v29 = vsel %vm5304_vm13, %v9373_v55, 0.0  ;;  %v3416_v1 = vadd.f32 %v3160_v34, %v2614_v38  ;;  %vm1332_vm8 = vcmp.eq.s32.totalorder %v14967_v32, %v9323_v54 }
 0x2b5   : > { %vm2152_vm14 = vcmp.eq.s32.totalorder %v14967_v32, %v9328_v61  ;;  %v784_v42 = vsel %vm514_vm4, %v9321_v10, 0.0  ;;  %v1602_v23 = vsel %vm1332_vm8, %v9326_v39, 0.0  ;;  %vm2954_vm0 = vcmp.eq.s32.totalorder %v14967_v32, %v9342_v59 }
 0x2b6   : > { %v6022_v53 = vadd.f32 %v5766_v58, %v5216_v57  ;;  %v2422_v50 = vsel %vm2152_vm14, %v9334_v48, 0.0  ;;  %v4222_v44 = vadd.f32 %v3966_v43, %v3416_v1  ;;  %v1858_v19 = vadd.f32 %v1602_v23, %v784_v42 }
 0x2b7   : > { %vm3760_vm2 = vcmp.eq.s32.totalorder %v14967_v32, %v9353_v30  ;;  %v6376_v34 = vsel %vm6106_vm15, %v9393_v8, 0.0  ;;  %v3224_v38 = vsel %vm2954_vm0, %v9350_v35, 0.0  ;;  %vm4562_vm7 = vcmp.eq.s32.totalorder %v14967_v32, %v9357_v20 }
 0x2b8   : > { %v6824_v9 = vadd.f32 %v6568_v4, %v6022_v53  ;;  %v5024_v58 = vadd.f32 %v4768_v5, %v4222_v44  ;;  %v2678_v57 = vadd.f32 %v2422_v50, %v1858_v19  ;;  %v4030_v45 = vsel %vm3760_vm2, %v9355_v28, 0.0  ;;  %v14968_v4 = vld [vmem:[#allocation40_spill] sm:$0xff] }
 0x2b9   : > { %vm5368_vm1 = vcmp.eq.s32.totalorder %v14967_v32, %v9371_v33  ;;  %v4832_v43 = vsel %vm4562_vm7, %v9360_v25, 0.0  ;;  %vm570_vm5 = vcmp.eq.s32.totalorder %v14968_v4, %v9319_v60  ;;  %vm1388_vm6 = vcmp.eq.s32.totalorder %v14968_v4, %v9323_v54 }
 0x2ba   : > { %7030 = vmatpush.msrb.mxu3 %v6824_v9  ;;  %v5638_v1 = vsel %vm5368_vm1, %v9373_v55, 0.0  ;;  %v5830_v53 = vadd.f32 %v5574_v29, %v5024_v58  ;;  %v3480_v42 = vadd.f32 %v3224_v38, %v2678_v57  ;;  %vm6170_vm9 = vcmp.eq.s32.totalorder %v14967_v32, %v9375_v52 }
 0x2bb   : > { %v840_v5 = vsel %vm570_vm5, %v9321_v10, 0.0  ;;  %v1658_v23 = vsel %vm1388_vm6, %v9326_v39, 0.0  ;;  %vm2208_vm10 = vcmp.eq.s32.totalorder %v14968_v4, %v9328_v61  ;;  %vm3010_vm3 = vcmp.eq.s32.totalorder %v14968_v4, %v9342_v59 }
 0x2bc   : > { %vm3816_vm12 = vcmp.eq.s32.totalorder %v14968_v4, %v9353_v30  ;;  %v6632_v50 = vadd.f32 %v6376_v34, %v5830_v53  ;;  %v4286_v44 = vadd.f32 %v4030_v45, %v3480_v42  ;;  %v1914_v29 = vadd.f32 %v1658_v23, %v840_v5  ;;  %v14969_v53 = vld [vmem:[#allocation41_spill] sm:$0xff] }
 0x2bd   : > { %v2478_v19 = vsel %vm2208_vm10, %v9334_v48, 0.0  ;;  %v6440_v9 = vsel %vm6170_vm9, %v9393_v8, 0.0  ;;  %v3280_v38 = vsel %vm3010_vm3, %v9350_v35, 0.0  ;;  %vm4618_vm11 = vcmp.eq.s32.totalorder %v14968_v4, %v9357_v20  ;;  %v252_v42 = vld [vmem:[%s10411_s26] sm:$0x77] }
 0x2be   : > { %vm5424_vm13 = vcmp.eq.s32.totalorder %v14968_v4, %v9371_v33  ;;  %6970 = vmatpush.msrb.mxu0 %v6632_v50  ;;  %v5088_v58 = vadd.f32 %v4832_v43, %v4286_v44  ;;  %v2734_v57 = vadd.f32 %v2478_v19, %v1914_v29  ;;  %v4086_v34 = vsel %vm3816_vm12, %v9355_v28, 0.0  ;;  %6869 = vst [vmem:[#allocation1] ss:$2 sm:$0xff] %v252_v42 }
 0x2bf   : > { %v4888_v45 = vsel %vm4618_vm11, %v9360_v25, 0.0  ;;  %vm6226_vm15 = vcmp.eq.s32.totalorder %v14968_v4, %v9375_v52  ;;  %vm638_vm4 = vcmp.eq.s32.totalorder %v14969_v53, %v9319_v60  ;;  %vm1456_vm8 = vcmp.eq.s32.totalorder %v14969_v53, %v9323_v54 }
 0x2c0   : > { %vm2276_vm14 = vcmp.eq.s32.totalorder %v14969_v53, %v9328_v61  ;;  %v5894_v5 = vadd.f32 %v5638_v1, %v5088_v58  ;;  %v3536_v43 = vadd.f32 %v3280_v38, %v2734_v57  ;;  %v5694_v23 = vsel %vm5424_vm13, %v9373_v55, 0.0 }
 0x2c1   : > { %v908_v50 = vsel %vm638_vm4, %v9321_v10, 0.0  ;;  %v1726_v44 = vsel %vm1456_vm8, %v9326_v39, 0.0  ;;  %v2546_v29 = vsel %vm2276_vm14, %v9334_v48, 0.0  ;;  %vm3078_vm0 = vcmp.eq.s32.totalorder %v14969_v53, %v9342_v59 }
 0x2c2   : > { %vm3884_vm2 = vcmp.eq.s32.totalorder %v14969_v53, %v9353_v30  ;;  %v6696_v19 = vadd.f32 %v6440_v9, %v5894_v5  ;;  %v4342_v32 = vadd.f32 %v4086_v34, %v3536_v43  ;;  %v6496_v1 = vsel %vm6226_vm15, %v9393_v8, 0.0  ;;  %v14970_v43 = vld [vmem:[#allocation42_spill] sm:$0xff] }
 0x2c3   : > { %v1982_v38 = vadd.f32 %v1726_v44, %v908_v50  ;;  %v3348_v58 = vsel %vm3078_vm0, %v9350_v35, 0.0  ;;  %v4154_v57 = vsel %vm3884_vm2, %v9355_v28, 0.0  ;;  %vm4686_vm7 = vcmp.eq.s32.totalorder %v14969_v53, %v9357_v20 }
 0x2c4   : > { %vm5492_vm1 = vcmp.eq.s32.totalorder %v14969_v53, %v9371_v33  ;;  %6990 = vmatpush.msrb.mxu1 %v6696_v19  ;;  %v5144_v42 = vadd.f32 %v4888_v45, %v4342_v32  ;;  %v4956_v34 = vsel %vm4686_vm7, %v9360_v25, 0.0  ;;  %vm6294_vm5 = vcmp.eq.s32.totalorder %v14969_v53, %v9375_v52 }
 0x2c5   : > { %v2802_v9 = vadd.f32 %v2546_v29, %v1982_v38  ;;  %v5762_v5 = vsel %vm5492_vm1, %v9373_v55, 0.0  ;;  %vm446_vm6 = vcmp.eq.s32.totalorder %v14970_v43, %v9319_v60  ;;  %vm1264_vm9 = vcmp.eq.s32.totalorder %v14970_v43, %v9323_v54  ;;  %v6872_v38 = vld.sshfl [vmem:[#allocation1] sm:$0xff pattern:$0x75316420] }
 0x2c6   : > { %vm2084_vm10 = vcmp.eq.s32.totalorder %v14970_v43, %v9328_v61  ;;  %v5950_v50 = vadd.f32 %v5694_v23, %v5144_v42  ;;  %v716_v32 = vsel %vm446_vm6, %v9321_v10, 0.0  ;;  %v1534_v45 = vsel %vm1264_vm9, %v9326_v39, 0.0  ;;  %6896 = vmatmul.f32.vlgmr.msra.gmra.mxu0 %v6872_v38  ;;  %v6873_v42 = vld.sshfl [vmem:[#allocation1 + $0x8] sm:$0xff pattern:$0x75316420] }
 0x2c7   : > { %v3604_v44 = vadd.f32 %v3348_v58, %v2802_v9  ;;  %v1790_v29 = vadd.f32 %v1534_v45, %v716_v32  ;;  %v2354_v19 = vsel %vm2084_vm10, %v9334_v48, 0.0  ;;  %vm2886_vm3 = vcmp.eq.s32.totalorder %v14970_v43, %v9342_v59  ;;  %6916 = vmatmul.f32.vlgmr.msra.gmra.mxu1 %v6873_v42  ;;  %v14971_v45 = vld [vmem:[#allocation43_spill] sm:$0xff] }
 0x2c8   : > { %vm3692_vm12 = vcmp.eq.s32.totalorder %v14970_v43, %v9353_v30  ;;  %v6752_v4 = vadd.f32 %v6496_v1, %v5950_v50  ;;  %v6564_v23 = vsel %vm6294_vm5, %v9393_v8, 0.0  ;;  %v3156_v58 = vsel %vm2886_vm3, %v9350_v35, 0.0 }
 0x2c9   : > { %v4410_v2 = vadd.f32 %v4154_v57, %v3604_v44  ;;  %v2610_v9 = vadd.f32 %v2354_v19, %v1790_v29  ;;  %v3962_v32 = vsel %vm3692_vm12, %v9355_v28, 0.0  ;;  %vm4494_vm11 = vcmp.eq.s32.totalorder %v14970_v43, %v9357_v20 }
 0x2ca   : > { %vm5300_vm13 = vcmp.eq.s32.totalorder %v14970_v43, %v9371_v33  ;;  %7012 = vmatpush.msrb.mxu2 %v6752_v4  ;;  %v4764_v57 = vsel %vm4494_vm11, %v9360_v25, 0.0  ;;  %vm6102_vm15 = vcmp.eq.s32.totalorder %v14970_v43, %v9375_v52  ;;  %vm510_vm4 = vcmp.eq.s32.totalorder %v14971_v45, %v9319_v60 }
 0x2cb   : > { %v5212_v1 = vadd.f32 %v4956_v34, %v4410_v2  ;;  %v5570_v50 = vsel %vm5300_vm13, %v9373_v55, 0.0  ;;  %v3412_v44 = vadd.f32 %v3156_v58, %v2610_v9  ;;  %vm1328_vm8 = vcmp.eq.s32.totalorder %v14971_v45, %v9323_v54 }
 0x2cc   : > { %vm2148_vm14 = vcmp.eq.s32.totalorder %v14971_v45, %v9328_v61  ;;  %v780_v2 = vsel %vm510_vm4, %v9321_v10, 0.0  ;;  %v1598_v4 = vsel %vm1328_vm8, %v9326_v39, 0.0  ;;  %vm2950_vm0 = vcmp.eq.s32.totalorder %v14971_v45, %v9342_v59 }
 0x2cd   : > { %v6018_v29 = vadd.f32 %v5762_v5, %v5212_v1  ;;  %v2418_v34 = vsel %vm2148_vm14, %v9334_v48, 0.0  ;;  %v4218_v19 = vadd.f32 %v3962_v32, %v3412_v44  ;;  %v1854_v38 = vadd.f32 %v1598_v4, %v780_v2 }
 0x2ce   : > { %vm3756_vm2 = vcmp.eq.s32.totalorder %v14971_v45, %v9353_v30  ;;  %v6372_v42 = vsel %vm6102_vm15, %v9393_v8, 0.0  ;;  %v3220_v9 = vsel %vm2950_vm0, %v9350_v35, 0.0  ;;  %vm4558_vm7 = vcmp.eq.s32.totalorder %v14971_v45, %v9357_v20 }
 0x2cf   : > { %v6820_v58 = vadd.f32 %v6564_v23, %v6018_v29  ;;  %v5020_v5 = vadd.f32 %v4764_v57, %v4218_v19  ;;  %v2674_v1 = vadd.f32 %v2418_v34, %v1854_v38  ;;  %v4026_v43 = vsel %vm3756_vm2, %v9355_v28, 0.0  ;;  %v14972_v23 = vld [vmem:[#allocation44_spill] sm:$0xff] }
 0x2d0   : > { %vm5364_vm1 = vcmp.eq.s32.totalorder %v14971_v45, %v9371_v33  ;;  %v4828_v32 = vsel %vm4558_vm7, %v9360_v25, 0.0  ;;  %vm566_vm5 = vcmp.eq.s32.totalorder %v14972_v23, %v9319_v60  ;;  %vm1384_vm6 = vcmp.eq.s32.totalorder %v14972_v23, %v9323_v54 }
 0x2d1   : > { %7031 = vmatpush.msrb.mxu3 %v6820_v58  ;;  %v5634_v44 = vsel %vm5364_vm1, %v9373_v55, 0.0  ;;  %v5826_v29 = vadd.f32 %v5570_v50, %v5020_v5  ;;  %v3476_v2 = vadd.f32 %v3220_v9, %v2674_v1  ;;  %vm6166_vm9 = vcmp.eq.s32.totalorder %v14971_v45, %v9375_v52 }
 0x2d2   : > { %v836_v57 = vsel %vm566_vm5, %v9321_v10, 0.0  ;;  %v1654_v4 = vsel %vm1384_vm6, %v9326_v39, 0.0  ;;  %vm2204_vm10 = vcmp.eq.s32.totalorder %v14972_v23, %v9328_v61  ;;  %vm3006_vm3 = vcmp.eq.s32.totalorder %v14972_v23, %v9342_v59 }
 0x2d3   : > { %vm3812_vm12 = vcmp.eq.s32.totalorder %v14972_v23, %v9353_v30  ;;  %v6628_v34 = vadd.f32 %v6372_v42, %v5826_v29  ;;  %v4282_v19 = vadd.f32 %v4026_v43, %v3476_v2  ;;  %v1910_v50 = vadd.f32 %v1654_v4, %v836_v57  ;;  %v14973_v42 = vld [vmem:[#allocation45_spill] sm:$0xff] }
 0x2d4   : > { %v2474_v38 = vsel %vm2204_vm10, %v9334_v48, 0.0  ;;  %v6436_v58 = vsel %vm6166_vm9, %v9393_v8, 0.0  ;;  %v3276_v9 = vsel %vm3006_vm3, %v9350_v35, 0.0  ;;  %vm4614_vm11 = vcmp.eq.s32.totalorder %v14972_v23, %v9357_v20 }
 0x2d5   : > { %vm5420_vm13 = vcmp.eq.s32.totalorder %v14972_v23, %v9371_v33  ;;  %6971 = vmatpush.msrb.mxu0 %v6628_v34  ;;  %v5084_v5 = vadd.f32 %v4828_v32, %v4282_v19  ;;  %v2730_v1 = vadd.f32 %v2474_v38, %v1910_v50  ;;  %v4082_v45 = vsel %vm3812_vm12, %v9355_v28, 0.0 }
 0x2d6   : > { %v4884_v43 = vsel %vm4614_vm11, %v9360_v25, 0.0  ;;  %vm6222_vm15 = vcmp.eq.s32.totalorder %v14972_v23, %v9375_v52  ;;  %vm634_vm4 = vcmp.eq.s32.totalorder %v14973_v42, %v9319_v60  ;;  %vm1452_vm8 = vcmp.eq.s32.totalorder %v14973_v42, %v9323_v54 }
 0x2d7   : > { %vm2272_vm14 = vcmp.eq.s32.totalorder %v14973_v42, %v9328_v61  ;;  %v5890_v29 = vadd.f32 %v5634_v44, %v5084_v5  ;;  %v3532_v2 = vadd.f32 %v3276_v9, %v2730_v1  ;;  %v5690_v32 = vsel %vm5420_vm13, %v9373_v55, 0.0 }
 0x2d8   : > { %v904_v57 = vsel %vm634_vm4, %v9321_v10, 0.0  ;;  %v1722_v4 = vsel %vm1452_vm8, %v9326_v39, 0.0  ;;  %v2542_v34 = vsel %vm2272_vm14, %v9334_v48, 0.0  ;;  %vm3074_vm0 = vcmp.eq.s32.totalorder %v14973_v42, %v9342_v59 }
 0x2d9   : > { %vm3880_vm2 = vcmp.eq.s32.totalorder %v14973_v42, %v9353_v30  ;;  %v6692_v19 = vadd.f32 %v6436_v58, %v5890_v29  ;;  %v4338_v50 = vadd.f32 %v4082_v45, %v3532_v2  ;;  %v6492_v38 = vsel %vm6222_vm15, %v9393_v8, 0.0  ;;  %v14974_v58 = vld [vmem:[#allocation46_spill] sm:$0xff] }
 0x2da   : > { %v1978_v44 = vadd.f32 %v1722_v4, %v904_v57  ;;  %v3344_v9 = vsel %vm3074_vm0, %v9350_v35, 0.0  ;;  %v4150_v5 = vsel %vm3880_vm2, %v9355_v28, 0.0  ;;  %vm4682_vm7 = vcmp.eq.s32.totalorder %v14973_v42, %v9357_v20 }
 0x2db   : > { %vm5488_vm1 = vcmp.eq.s32.totalorder %v14973_v42, %v9371_v33  ;;  %6991 = vmatpush.msrb.mxu1 %v6692_v19  ;;  %v5140_v1 = vadd.f32 %v4884_v43, %v4338_v50  ;;  %v4952_v53 = vsel %vm4682_vm7, %v9360_v25, 0.0  ;;  %vm6290_vm5 = vcmp.eq.s32.totalorder %v14973_v42, %v9375_v52 }
 0x2dc   : > { %v2798_v23 = vadd.f32 %v2542_v34, %v1978_v44  ;;  %v5758_v45 = vsel %vm5488_vm1, %v9373_v55, 0.0  ;;  %vm442_vm6 = vcmp.eq.s32.totalorder %v14974_v58, %v9319_v60  ;;  %vm1260_vm9 = vcmp.eq.s32.totalorder %v14974_v58, %v9323_v54 }
 0x2dd   : > { %vm2080_vm10 = vcmp.eq.s32.totalorder %v14974_v58, %v9328_v61  ;;  %v5946_v29 = vadd.f32 %v5690_v32, %v5140_v1  ;;  %v712_v43 = vsel %vm442_vm6, %v9321_v10, 0.0  ;;  %v1530_v57 = vsel %vm1260_vm9, %v9326_v39, 0.0 }
 0x2de   : > { %v3600_v2 = vadd.f32 %v3344_v9, %v2798_v23  ;;  %v1786_v4 = vadd.f32 %v1530_v57, %v712_v43  ;;  %v2350_v34 = vsel %vm2080_vm10, %v9334_v48, 0.0  ;;  %vm2882_vm3 = vcmp.eq.s32.totalorder %v14974_v58, %v9342_v59 }
 0x2df   : > { %vm3688_vm12 = vcmp.eq.s32.totalorder %v14974_v58, %v9353_v30  ;;  %v6748_v19 = vadd.f32 %v6492_v38, %v5946_v29  ;;  %v6560_v44 = vsel %vm6290_vm5, %v9393_v8, 0.0  ;;  %v3152_v32 = vsel %vm2882_vm3, %v9350_v35, 0.0  ;;  %v14975_v29 = vld [vmem:[#allocation47_spill] sm:$0xff] }
 0x2e0   : > { %v4406_v50 = vadd.f32 %v4150_v5, %v3600_v2  ;;  %v2606_v23 = vadd.f32 %v2350_v34, %v1786_v4  ;;  %v3958_v9 = vsel %vm3688_vm12, %v9355_v28, 0.0  ;;  %vm4490_vm11 = vcmp.eq.s32.totalorder %v14974_v58, %v9357_v20 }
 0x2e1   : > { %vm5296_vm13 = vcmp.eq.s32.totalorder %v14974_v58, %v9371_v33  ;;  %7013 = vmatpush.msrb.mxu2 %v6748_v19  ;;  %v4760_v43 = vsel %vm4490_vm11, %v9360_v25, 0.0  ;;  %vm6098_vm15 = vcmp.eq.s32.totalorder %v14974_v58, %v9375_v52  ;;  %vm506_vm4 = vcmp.eq.s32.totalorder %v14975_v29, %v9319_v60 }
 0x2e2   : > { %v5208_v1 = vadd.f32 %v4952_v53, %v4406_v50  ;;  %v5566_v38 = vsel %vm5296_vm13, %v9373_v55, 0.0  ;;  %v3408_v5 = vadd.f32 %v3152_v32, %v2606_v23  ;;  %vm1324_vm8 = vcmp.eq.s32.totalorder %v14975_v29, %v9323_v54 }
 0x2e3   : > { %vm2144_vm14 = vcmp.eq.s32.totalorder %v14975_v29, %v9328_v61  ;;  %v776_v53 = vsel %vm506_vm4, %v9321_v10, 0.0  ;;  %v1594_v57 = vsel %vm1324_vm8, %v9326_v39, 0.0  ;;  %vm2946_vm0 = vcmp.eq.s32.totalorder %v14975_v29, %v9342_v59 }
 0x2e4   : > { %v6014_v2 = vadd.f32 %v5758_v45, %v5208_v1  ;;  %v2414_v4 = vsel %vm2144_vm14, %v9334_v48, 0.0  ;;  %v4214_v34 = vadd.f32 %v3958_v9, %v3408_v5  ;;  %v1850_v19 = vadd.f32 %v1594_v57, %v776_v53 }
 0x2e5   : > { %vm3752_vm2 = vcmp.eq.s32.totalorder %v14975_v29, %v9353_v30  ;;  %v6368_v32 = vsel %vm6098_vm15, %v9393_v8, 0.0  ;;  %v3216_v23 = vsel %vm2946_vm0, %v9350_v35, 0.0  ;;  %vm4554_vm7 = vcmp.eq.s32.totalorder %v14975_v29, %v9357_v20 }
 0x2e6   : > { %v6816_v50 = vadd.f32 %v6560_v44, %v6014_v2  ;;  %v5016_v45 = vadd.f32 %v4760_v43, %v4214_v34  ;;  %v2670_v1 = vadd.f32 %v2414_v4, %v1850_v19  ;;  %v4022_v58 = vsel %vm3752_vm2, %v9355_v28, 0.0  ;;  %v14976_v44 = vld [vmem:[#allocation48_spill] sm:$0xff] }
 0x2e7   : > { %vm5360_vm1 = vcmp.eq.s32.totalorder %v14975_v29, %v9371_v33  ;;  %v4824_v9 = vsel %vm4554_vm7, %v9360_v25, 0.0  ;;  %vm562_vm5 = vcmp.eq.s32.totalorder %v14976_v44, %v9319_v60  ;;  %vm1380_vm6 = vcmp.eq.s32.totalorder %v14976_v44, %v9323_v54 }
 0x2e8   : > { %7032 = vmatpush.msrb.mxu3 %v6816_v50  ;;  %v5630_v5 = vsel %vm5360_vm1, %v9373_v55, 0.0  ;;  %v5822_v2 = vadd.f32 %v5566_v38, %v5016_v45  ;;  %v3472_v53 = vadd.f32 %v3216_v23, %v2670_v1  ;;  %vm6162_vm9 = vcmp.eq.s32.totalorder %v14975_v29, %v9375_v52 }
 0x2e9   : > { %v832_v43 = vsel %vm562_vm5, %v9321_v10, 0.0  ;;  %v1650_v57 = vsel %vm1380_vm6, %v9326_v39, 0.0  ;;  %vm2200_vm10 = vcmp.eq.s32.totalorder %v14976_v44, %v9328_v61  ;;  %vm3002_vm3 = vcmp.eq.s32.totalorder %v14976_v44, %v9342_v59 }
 0x2ea   : > { %vm3808_vm12 = vcmp.eq.s32.totalorder %v14976_v44, %v9353_v30  ;;  %v6624_v4 = vadd.f32 %v6368_v32, %v5822_v2  ;;  %v4278_v34 = vadd.f32 %v4022_v58, %v3472_v53  ;;  %v1906_v38 = vadd.f32 %v1650_v57, %v832_v43  ;;  %v14977_v32 = vld [vmem:[#allocation49_spill] sm:$0xff] }
 0x2eb   : > { %v2470_v19 = vsel %vm2200_vm10, %v9334_v48, 0.0  ;;  %v6432_v50 = vsel %vm6162_vm9, %v9393_v8, 0.0  ;;  %v3272_v23 = vsel %vm3002_vm3, %v9350_v35, 0.0  ;;  %vm4610_vm11 = vcmp.eq.s32.totalorder %v14976_v44, %v9357_v20 }
 0x2ec   : > { %vm5416_vm13 = vcmp.eq.s32.totalorder %v14976_v44, %v9371_v33  ;;  %6972 = vmatpush.msrb.mxu0 %v6624_v4  ;;  %v5080_v45 = vadd.f32 %v4824_v9, %v4278_v34  ;;  %v2726_v1 = vadd.f32 %v2470_v19, %v1906_v38  ;;  %v4078_v29 = vsel %vm3808_vm12, %v9355_v28, 0.0 }
 0x2ed   : > { %v4880_v58 = vsel %vm4610_vm11, %v9360_v25, 0.0  ;;  %vm6218_vm15 = vcmp.eq.s32.totalorder %v14976_v44, %v9375_v52  ;;  %vm630_vm4 = vcmp.eq.s32.totalorder %v14977_v32, %v9319_v60  ;;  %vm1448_vm8 = vcmp.eq.s32.totalorder %v14977_v32, %v9323_v54 }
 0x2ee   : > { %vm2268_vm14 = vcmp.eq.s32.totalorder %v14977_v32, %v9328_v61  ;;  %v5886_v2 = vadd.f32 %v5630_v5, %v5080_v45  ;;  %v3528_v53 = vadd.f32 %v3272_v23, %v2726_v1  ;;  %v5686_v9 = vsel %vm5416_vm13, %v9373_v55, 0.0 }
 0x2ef   : > { %v900_v43 = vsel %vm630_vm4, %v9321_v10, 0.0  ;;  %v1718_v57 = vsel %vm1448_vm8, %v9326_v39, 0.0  ;;  %v2538_v4 = vsel %vm2268_vm14, %v9334_v48, 0.0  ;;  %vm3070_vm0 = vcmp.eq.s32.totalorder %v14977_v32, %v9342_v59 }
 0x2f0   : > { %vm3876_vm2 = vcmp.eq.s32.totalorder %v14977_v32, %v9353_v30  ;;  %v6688_v34 = vadd.f32 %v6432_v50, %v5886_v2  ;;  %v4334_v38 = vadd.f32 %v4078_v29, %v3528_v53  ;;  %v6488_v19 = vsel %vm6218_vm15, %v9393_v8, 0.0  ;;  %v14978_v50 = vld [vmem:[#allocation50_spill] sm:$0xff] }
 0x2f1   : > { %v1974_v5 = vadd.f32 %v1718_v57, %v900_v43  ;;  %v3340_v23 = vsel %vm3070_vm0, %v9350_v35, 0.0  ;;  %v4146_v45 = vsel %vm3876_vm2, %v9355_v28, 0.0  ;;  %vm4678_vm7 = vcmp.eq.s32.totalorder %v14977_v32, %v9357_v20 }
 0x2f2   : > { %vm5484_vm1 = vcmp.eq.s32.totalorder %v14977_v32, %v9371_v33  ;;  %6992 = vmatpush.msrb.mxu1 %v6688_v34  ;;  %v5136_v1 = vadd.f32 %v4880_v58, %v4334_v38  ;;  %v4948_v42 = vsel %vm4678_vm7, %v9360_v25, 0.0  ;;  %vm6286_vm5 = vcmp.eq.s32.totalorder %v14977_v32, %v9375_v52 }
 0x2f3   : > { %v2794_v44 = vadd.f32 %v2538_v4, %v1974_v5  ;;  %v5754_v29 = vsel %vm5484_vm1, %v9373_v55, 0.0  ;;  %vm438_vm6 = vcmp.eq.s32.totalorder %v14978_v50, %v9319_v60  ;;  %vm1256_vm9 = vcmp.eq.s32.totalorder %v14978_v50, %v9323_v54 }
 0x2f4   : > { %vm2076_vm10 = vcmp.eq.s32.totalorder %v14978_v50, %v9328_v61  ;;  %v5942_v2 = vadd.f32 %v5686_v9, %v5136_v1  ;;  %v708_v58 = vsel %vm438_vm6, %v9321_v10, 0.0  ;;  %v1526_v43 = vsel %vm1256_vm9, %v9326_v39, 0.0 }
 0x2f5   : > { %v3596_v53 = vadd.f32 %v3340_v23, %v2794_v44  ;;  %v1782_v57 = vadd.f32 %v1526_v43, %v708_v58  ;;  %v2346_v4 = vsel %vm2076_vm10, %v9334_v48, 0.0  ;;  %vm2878_vm3 = vcmp.eq.s32.totalorder %v14978_v50, %v9342_v59 }
 0x2f6   : > { %vm3684_vm12 = vcmp.eq.s32.totalorder %v14978_v50, %v9353_v30  ;;  %v6744_v34 = vadd.f32 %v6488_v19, %v5942_v2  ;;  %v6556_v5 = vsel %vm6286_vm5, %v9393_v8, 0.0  ;;  %v3148_v9 = vsel %vm2878_vm3, %v9350_v35, 0.0  ;;  %v14979_v2 = vld [vmem:[#allocation51_spill] sm:$0xff] }
 0x2f7   : > { %v4402_v38 = vadd.f32 %v4146_v45, %v3596_v53  ;;  %v2602_v44 = vadd.f32 %v2346_v4, %v1782_v57  ;;  %v3954_v23 = vsel %vm3684_vm12, %v9355_v28, 0.0  ;;  %vm4486_vm11 = vcmp.eq.s32.totalorder %v14978_v50, %v9357_v20 }
 0x2f8   : > { %vm5292_vm13 = vcmp.eq.s32.totalorder %v14978_v50, %v9371_v33  ;;  %7014 = vmatpush.msrb.mxu2 %v6744_v34  ;;  %v4756_v58 = vsel %vm4486_vm11, %v9360_v25, 0.0  ;;  %vm6094_vm15 = vcmp.eq.s32.totalorder %v14978_v50, %v9375_v52  ;;  %vm502_vm4 = vcmp.eq.s32.totalorder %v14979_v2, %v9319_v60 }
 0x2f9   : > { %v5204_v1 = vadd.f32 %v4948_v42, %v4402_v38  ;;  %v5562_v19 = vsel %vm5292_vm13, %v9373_v55, 0.0  ;;  %v3404_v45 = vadd.f32 %v3148_v9, %v2602_v44  ;;  %vm1320_vm8 = vcmp.eq.s32.totalorder %v14979_v2, %v9323_v54 }
 0x2fa   : > { %vm2140_vm14 = vcmp.eq.s32.totalorder %v14979_v2, %v9328_v61  ;;  %v772_v42 = vsel %vm502_vm4, %v9321_v10, 0.0  ;;  %v1590_v43 = vsel %vm1320_vm8, %v9326_v39, 0.0  ;;  %vm2942_vm0 = vcmp.eq.s32.totalorder %v14979_v2, %v9342_v59 }
 0x2fb   : > { %v6010_v53 = vadd.f32 %v5754_v29, %v5204_v1  ;;  %v2410_v57 = vsel %vm2140_vm14, %v9334_v48, 0.0  ;;  %v4210_v4 = vadd.f32 %v3954_v23, %v3404_v45  ;;  %v1846_v34 = vadd.f32 %v1590_v43, %v772_v42 }
 0x2fc   : > { %vm3748_vm2 = vcmp.eq.s32.totalorder %v14979_v2, %v9353_v30  ;;  %v6364_v9 = vsel %vm6094_vm15, %v9393_v8, 0.0  ;;  %v3212_v44 = vsel %vm2942_vm0, %v9350_v35, 0.0  ;;  %vm4550_vm7 = vcmp.eq.s32.totalorder %v14979_v2, %v9357_v20 }
 0x2fd   : > { %v6812_v38 = vadd.f32 %v6556_v5, %v6010_v53  ;;  %v5012_v29 = vadd.f32 %v4756_v58, %v4210_v4  ;;  %v2666_v1 = vadd.f32 %v2410_v57, %v1846_v34  ;;  %v4018_v50 = vsel %vm3748_vm2, %v9355_v28, 0.0  ;;  %v14980_v5 = vld [vmem:[#allocation52_spill] sm:$0xff] }
 0x2fe   : > { %vm5356_vm1 = vcmp.eq.s32.totalorder %v14979_v2, %v9371_v33  ;;  %v4820_v23 = vsel %vm4550_vm7, %v9360_v25, 0.0  ;;  %vm558_vm5 = vcmp.eq.s32.totalorder %v14980_v5, %v9319_v60  ;;  %vm1376_vm6 = vcmp.eq.s32.totalorder %v14980_v5, %v9323_v54 }
 0x2ff   : > { %7033 = vmatpush.msrb.mxu3 %v6812_v38  ;;  %v5626_v45 = vsel %vm5356_vm1, %v9373_v55, 0.0  ;;  %v5818_v53 = vadd.f32 %v5562_v19, %v5012_v29  ;;  %v3468_v42 = vadd.f32 %v3212_v44, %v2666_v1  ;;  %vm6158_vm9 = vcmp.eq.s32.totalorder %v14979_v2, %v9375_v52 }
 0x300   : > { %v828_v58 = vsel %vm558_vm5, %v9321_v10, 0.0  ;;  %v1646_v43 = vsel %vm1376_vm6, %v9326_v39, 0.0  ;;  %vm2196_vm10 = vcmp.eq.s32.totalorder %v14980_v5, %v9328_v61  ;;  %vm2998_vm3 = vcmp.eq.s32.totalorder %v14980_v5, %v9342_v59 }
 0x301   : > { %vm3804_vm12 = vcmp.eq.s32.totalorder %v14980_v5, %v9353_v30  ;;  %v6620_v57 = vadd.f32 %v6364_v9, %v5818_v53  ;;  %v4274_v4 = vadd.f32 %v4018_v50, %v3468_v42  ;;  %v1902_v19 = vadd.f32 %v1646_v43, %v828_v58  ;;  %v14981_v9 = vld [vmem:[#allocation53_spill] sm:$0xff] }
 0x302   : > { %v2466_v34 = vsel %vm2196_vm10, %v9334_v48, 0.0  ;;  %v6428_v38 = vsel %vm6158_vm9, %v9393_v8, 0.0  ;;  %v3268_v44 = vsel %vm2998_vm3, %v9350_v35, 0.0  ;;  %vm4606_vm11 = vcmp.eq.s32.totalorder %v14980_v5, %v9357_v20 }
 0x303   : > { %vm5412_vm13 = vcmp.eq.s32.totalorder %v14980_v5, %v9371_v33  ;;  %6973 = vmatpush.msrb.mxu0 %v6620_v57  ;;  %v5076_v29 = vadd.f32 %v4820_v23, %v4274_v4  ;;  %v2722_v1 = vadd.f32 %v2466_v34, %v1902_v19  ;;  %v4074_v2 = vsel %vm3804_vm12, %v9355_v28, 0.0 }
 0x304   : > { %v4876_v50 = vsel %vm4606_vm11, %v9360_v25, 0.0  ;;  %vm6214_vm15 = vcmp.eq.s32.totalorder %v14980_v5, %v9375_v52  ;;  %vm626_vm4 = vcmp.eq.s32.totalorder %v14981_v9, %v9319_v60  ;;  %vm1444_vm8 = vcmp.eq.s32.totalorder %v14981_v9, %v9323_v54 }
 0x305   : > { %vm2264_vm14 = vcmp.eq.s32.totalorder %v14981_v9, %v9328_v61  ;;  %v5882_v53 = vadd.f32 %v5626_v45, %v5076_v29  ;;  %v3524_v42 = vadd.f32 %v3268_v44, %v2722_v1  ;;  %v5682_v23 = vsel %vm5412_vm13, %v9373_v55, 0.0 }
 0x306   : > { %v896_v58 = vsel %vm626_vm4, %v9321_v10, 0.0  ;;  %v1714_v43 = vsel %vm1444_vm8, %v9326_v39, 0.0  ;;  %v2534_v57 = vsel %vm2264_vm14, %v9334_v48, 0.0  ;;  %vm3066_vm0 = vcmp.eq.s32.totalorder %v14981_v9, %v9342_v59 }
 0x307   : > { %vm3872_vm2 = vcmp.eq.s32.totalorder %v14981_v9, %v9353_v30  ;;  %v6684_v4 = vadd.f32 %v6428_v38, %v5882_v53  ;;  %v4330_v19 = vadd.f32 %v4074_v2, %v3524_v42  ;;  %v6484_v34 = vsel %vm6214_vm15, %v9393_v8, 0.0 }
 0x308   : > { %v1970_v45 = vadd.f32 %v1714_v43, %v896_v58  ;;  %v3336_v44 = vsel %vm3066_vm0, %v9350_v35, 0.0  ;;  %vm4674_vm7 = vcmp.eq.s32.totalorder %v14981_v9, %v9357_v20  ;;  %vm5480_vm1 = vcmp.eq.s32.totalorder %v14981_v9, %v9371_v33 }
 0x309   : > { %vm6282_vm5 = vcmp.eq.s32.totalorder %v14981_v9, %v9375_v52  ;;  %6993 = vmatpush.msrb.mxu1 %v6684_v4  ;;  %v5132_v29 = vadd.f32 %v4876_v50, %v4330_v19  ;;  %v4142_v38 = vsel %vm3872_vm2, %v9355_v28, 0.0  ;;  %v4944_v2 = vsel %vm4674_vm7, %v9360_v25, 0.0 }
 0x30a   : > { %v2790_v1 = vadd.f32 %v2534_v57, %v1970_v45  ;;  %v5750_v53 = vsel %vm5480_vm1, %v9373_v55, 0.0  ;;  %v14982_v42 = vfloor.f32 %v7491_v7  ;;  %v269_v43 = vmul.u32 128, %v9383_v47 }
 0x30b   : > { %v271_v5 = vmul.u32 16, %v9383_v47  ;;  %v5938_v32 = vadd.f32 %v5682_v23, %v5132_v29  ;;  %v6552_v50 = vsel %vm6282_vm5, %v9393_v8, 0.0  ;;  %v7342_v57 = vrot.slane %v9383_v47, 10 }
 0x30c   : > { %v10951_v58 = vsub.f32 %v7491_v7, %v14982_v42  ;;  %v3592_v9 = vadd.f32 %v3336_v44, %v2790_v1  ;;  %vm285_vm6 = vcmp.ge.s32.totalorder %v9383_v47, 0  ;;  %vm287_vm9 = vcmp.lt.s32.totalorder %v9383_v47, 4 }
 0x30d   : > { %v7340_v19 = vrot.slane %v271_v5, 9  ;;  %v6740_v45 = vadd.f32 %v6484_v34, %v5938_v32  ;;  %vm293_vm10 = vcmp.lt.s32.totalorder %v9383_v47, 3  ;;  %vm297_vm3 = vcmp.lt.s32.totalorder %v9383_v47, 8  ;;  %vm10964_vm12 = vmand %vm285_vm6, %vm287_vm9 }
 0x30e   : > { %v267_v4 = vsub.f32 1.0, %v10951_v58  ;;  %v4398_v7 = vadd.f32 %v4142_v38, %v3592_v9  ;;  %vm291_vm11 = vcmp.ge.s32.totalorder %v9383_v47, 4294967295  ;;  %vm305_vm13 = vcmp.lt.s32.totalorder %v9383_v47, 16  ;;  %vm299_vm4 = vmand %vm285_vm6, %vm297_vm3 }
 0x30f   : > { %v277_v42 = vadd.s32 %v7340_v19, %v269_v43  ;;  %vm309_vm15 = vcmp.lt.s32.totalorder %v9383_v47, 15  ;;  %7015 = vmatpush.msrb.mxu2 %v6740_v45  ;;  %v1215_v34 = vrot.slane %v10951_v58, 6  ;;  %vm10981_vm8 = vmand %vm291_vm11, %vm293_vm10  ;;  %vm301_vm14 = vcmp.lt.s32.totalorder %v9383_v47, 7 }
 0x310   : > { %v5200_v32 = vadd.f32 %v4944_v2, %v4398_v7  ;;  %v381_v5 = vrot.slane %v267_v4, 5  ;;  %v389_v9 = vrot.slane %v267_v4, 6  ;;  %7016 = vmatmul.f32.vlgmr.msrb.gmra.mxu2 %v10465_v14  ;;  %v14988_v1 = vmov 0   ;;  %vm307_vm0 = vmand %vm285_vm6, %vm305_vm13 }
 0x311   : > { %v10975_v44 = vadd.s32 %v7342_v57, %v277_v42  ;;  %v396_v38 = vsel %vm299_vm4, 1, %v14988_v1  ;;  %v2031_v2 = vrot.slane %v10951_v58, 5  ;;  %vm311_vm2 = vmand %vm291_vm11, %vm309_vm15  ;;  %v406_v45 = vsel %vm307_vm0, 1, %v14988_v1 }
 0x312   : > { %v6006_v43 = vadd.f32 %v5750_v53, %v5200_v32  ;;  %v382_v14 = vrot.slane %v381_v5, 4  ;;  %v10992_v57 = vrot.slane %v389_v9, 4  ;;  %v7344_v19 = vrot.slane %v396_v38, 9  ;;  %vm11007_vm7 = vmand %vm291_vm11, %vm301_vm14 }
 0x313   : > { %14985 = vst [vmem:[#allocation3_spill] sm:$0xff] %v10975_v44  ;;  %v423_v7 = vperm.slane %v10975_v44, 0  ;;  %v11000_v42 = vrot.slane %v1215_v34, 4  ;;  %v11003_v53 = vadd.s32 1, %v10975_v44  ;;  %v7346_v56 = vrot.slane %v406_v45, 10 }
 0x314   : > { %v6808_v32 = vadd.f32 %v6552_v50, %v6006_v43  ;;  %v386_v9 = vmul.f32 %v382_v14, %v267_v4  ;;  %vm11011_vm1 = vcmp.ne.s32.totalorder %v7344_v19, 0  ;;  %v1222_v50 = vsel %vm311_vm2, 1, %v14988_v1 }
 0x315   : > { %14989 = vst [vmem:[#allocation4_spill] sm:$0xff] %v11003_v53  ;;  %vm404_vm5 = vmand %vm10964_vm12, %vm11011_vm1  ;;  %v11019_v34 = vperm.slane %v423_v7, 0  ;;  %v1241_v47 = vperm.slane %v11003_v53, 0  ;;  %v11023_v43 = vrot.slane %v2031_v2, 4  ;;  %vm11026_vm6 = vcmp.ne.s32.totalorder %v7346_v56, 0 }
 0x316   : > { %7034 = vmatpush.msrb.mxu3 %v6808_v32  ;;  %v394_v19 = vmul.f32 %v10992_v57, %v386_v9  ;;  %v1220_v45 = vmul.f32 %v11000_v42, %v386_v9  ;;  %v7350_v18 = vrot.slane %v1222_v50, 10  ;;  %vm3656_vm9 = vmand %vm10981_vm8, %vm11011_vm1  ;;  %v2040_v7 = vsel %vm11007_vm7, 1, %v14988_v1 }
 0x317   : > { %vm414_vm10 = vmand %vm404_vm5, %vm11026_vm6  ;;  %vm619_vm3 = vcmp.eq.s32.totalorder %v7496_v11, %v11019_v34  ;;  %v11044_v56 = vperm.slane %v1241_v47, 0  ;;  %v2036_v2 = vmul.f32 %v11023_v43, %v267_v4  ;;  %v14996_v32 = vmov 0.0  }
 0x318   : > { %v7348_v9 = vsel %vm414_vm10, 1.0, %v14996_v32  ;;  %vm11051_vm11 = vcmp.ne.s32.totalorder %v7350_v18, 0  ;;  %v7354_v53 = vrot.slane %v2040_v7, 9  ;;  %v11056_v31 = vadd.s32 16, %v10975_v44  ;;  %vm3658_vm13 = vmand %vm3656_vm9, %vm11026_vm6 }
 0x319   : > { %v11065_v4 = vmul.f32 %v7348_v9, %v394_v19  ;;  %vm1230_vm15 = vmand %vm404_vm5, %vm11051_vm11  ;;  %vm1437_vm4 = vcmp.eq.s32.totalorder %v7496_v11, %v11044_v56  ;;  %v2038_v18 = vmul.f32 %v2036_v2, %v10992_v57  ;;  %v2850_v1 = vmul.f32 %v2036_v2, %v11000_v42 }
 0x31a   : > { %14999 = vst [vmem:[#allocation5_spill] sm:$0xff] %v11056_v31  ;;  %v7352_v5 = vsel %vm1230_vm15, 1.0, %v14996_v32  ;;  %vm11079_vm14 = vcmp.ne.s32.totalorder %v7354_v53, 0  ;;  %v2061_v19 = vperm.slane %v11056_v31, 0  ;;  %v11085_v7 = vadd.s32 17, %v10975_v44  ;;  %vm4460_vm0 = vmand %vm3656_vm9, %vm11051_vm11 }
 0x31b   : > { %15000 = vst [vmem:[#allocation57_spill] sm:$0xff] %v11065_v4  ;;  %v689_v2 = vperm.slane %v11065_v4, 0  ;;  %v11095_v9 = vmul.f32 %v7352_v5, %v1220_v45  ;;  %vm2048_vm2 = vmand %vm10964_vm12, %vm11079_vm14  ;;  %v3652_v53 = vmul.f32 %v382_v14, %v10951_v58  ;;  %v7360_v31 = vsel %vm3658_vm13, 1.0, %v14996_v32 }
 0x31c   : > { %15003 = vst [vmem:[#allocation58_spill] sm:$0xff] %v11085_v7  ;;  %vm2050_vm7 = vmand %vm2048_vm2, %vm11026_vm6  ;;  %v11105_v41 = vperm.slane %v2061_v19, 0  ;;  %v2863_v38 = vperm.slane %v11085_v7, 0  ;;  %v11109_v4 = vadd.s32 128, %v10975_v44  ;;  %v7362_v45 = vsel %vm4460_vm0, 1.0, %v14996_v32 }
 0x31d   : > { %15004 = vst [vmem:[#allocation59_spill] sm:$0xff] %v11095_v9  ;;  %v11112_v5 = vperm.slane %v689_v2, 0  ;;  %v1507_v23 = vperm.slane %v11095_v9, 0  ;;  %v7356_v14 = vsel %vm2050_vm7, 1.0, %v14996_v32  ;;  %vm2852_vm12 = vmand %vm2048_vm2, %vm11051_vm11  ;;  %v3654_v37 = vmul.f32 %v3652_v53, %v10992_v57 }
 0x31e   : > { %15005 = vst [vmem:[#allocation60_spill] sm:$0xff] %v11109_v4  ;;  %v11119_v19 = vmul.f32 %v7356_v14, %v2038_v18  ;;  %vm2257_vm1 = vcmp.eq.s32.totalorder %v7496_v11, %v11105_v41  ;;  %v7358_v7 = vsel %vm2852_vm12, 1.0, %v14996_v32  ;;  %v11124_v51 = vperm.slane %v2863_v38, 0  ;;  %vm5264_vm5 = vmand %vm10981_vm8, %vm11079_vm14 }
 0x31f   : > { %vm434_vm9 = vcmp.eq.s32.totalorder %v9379_v16, %v9319_v60  ;;  %v889_v18 = vsel %vm619_vm3, %v11112_v5, 0.0  ;;  %v11136_v2 = vperm.slane %v1507_v23, 0  ;;  %v11138_v14 = vmul.f32 %v7358_v7, %v2850_v1  ;;  %vm5266_vm3 = vmand %vm5264_vm5, %vm11026_vm6 }
 0x320   : > { %15006 = vst [vmem:[#allocation61_spill] sm:$0xff] %v11119_v19  ;;  %v11140_v9 = vmul.f32 %v7360_v31, %v3654_v37  ;;  %v2327_v38 = vperm.slane %v11119_v19, 0  ;;  %vm3059_vm10 = vcmp.eq.s32.totalorder %v7496_v11, %v11124_v51  ;;  %v3669_v63 = vperm.slane %v11109_v4, 0  ;;  %vm6068_vm13 = vmand %vm5264_vm5, %vm11051_vm11 }
 0x321   : > { %15007 = vst [vmem:[#allocation62_spill] sm:$0xff] %v11138_v14  ;;  %v4458_v0 = vmul.f32 %v3652_v53, %v11000_v42  ;;  %v1707_v46 = vsel %vm1437_vm4, %v11136_v2, 0.0  ;;  %v3129_v23 = vperm.slane %v11138_v14, 0  ;;  %v11154_v37 = vadd.s32 129, %v10975_v44 }
 0x322   : > { %15008 = vst [vmem:[#allocation63_spill] sm:$0xff] %v11140_v9  ;;  %v3935_v1 = vperm.slane %v11140_v9, 0  ;;  %v1963_v31 = vadd.f32 %v1707_v46, %v889_v18  ;;  %v11163_v7 = vperm.slane %v2327_v38, 0  ;;  %v11165_v53 = vperm.slane %v3669_v63, 0 }
 0x323   : > { %15009 = vst [vmem:[#allocation64_spill] sm:$0xff] %v11154_v37  ;;  %v11167_v4 = vmul.f32 %v7362_v45, %v4458_v0  ;;  %v11169_v14 = vperm.slane %v3129_v23, 0  ;;  %v4471_v19 = vperm.slane %v11154_v37, 0  ;;  %v5260_v49 = vmul.f32 %v11023_v43, %v10951_v58 }
 0x324   : > { %v11171_v9 = vperm.slane %v3935_v1, 0  ;;  %v2527_v46 = vsel %vm2257_vm1, %v11163_v7, 0.0  ;;  %vm3865_vm6 = vcmp.eq.s32.totalorder %v7496_v11, %v11165_v53  ;;  %v7364_v63 = vsel %vm5266_vm3, 1.0, %v14996_v32 }
 0x325   : > { %15010 = vst [vmem:[#allocation65_spill] sm:$0xff] %v11167_v4  ;;  %v4737_v0 = vperm.slane %v11167_v4, 0  ;;  %v2783_v58 = vadd.f32 %v2527_v46, %v1963_v31  ;;  %v3329_v43 = vsel %vm3059_vm10, %v11169_v14, 0.0  ;;  %v11196_v18 = vperm.slane %v4471_v19, 0 }
 0x326   : > { %v4135_v45 = vsel %vm3865_vm6, %v11171_v9, 0.0  ;;  %v5262_v50 = vmul.f32 %v5260_v49, %v10992_v57  ;;  %v11202_v29 = vadd.s32 144, %v10975_v44  ;;  %v6066_v47 = vmul.f32 %v5260_v49, %v11000_v42 }
 0x327   : > { %v11198_v38 = vperm.slane %v4737_v0, 0  ;;  %v3585_v23 = vadd.f32 %v3329_v43, %v2783_v58  ;;  %vm4667_vm8 = vcmp.eq.s32.totalorder %v7496_v11, %v11196_v18  ;;  %v7366_v1 = vsel %vm6068_vm13, 1.0, %v14996_v32 }
 0x328   : > { %15011 = vst [vmem:[#allocation66_spill] sm:$0xff] %v11202_v29  ;;  %v11209_v31 = vadd.s32 145, %v10975_v44  ;;  %v11212_v46 = vmul.f32 %v7364_v63, %v5262_v50  ;;  %v5277_v57 = vperm.slane %v11202_v29, 0  ;;  %v11215_v0 = vmul.f32 %v7366_v1, %v6066_v47 }
 0x329   : > { %v4937_v19 = vsel %vm4667_vm8, %v11198_v38, 0.0  ;;  %v4391_v4 = vadd.f32 %v4135_v45, %v3585_v23  ;;  %v704_v49 = vsel %vm434_vm9, %v9321_v10, 0.0  ;;  %vm1252_vm11 = vcmp.eq.s32.totalorder %v9379_v16, %v9323_v54 }
 0x32a   : > { %15012 = vst [vmem:[#allocation67_spill] sm:$0xff] %v11209_v31  ;;  %v6079_v42 = vperm.slane %v11209_v31, 0  ;;  %v11224_v32 = vperm.slane %v5277_v57, 0  ;;  %v5543_v63 = vperm.slane %v11212_v46, 0  ;;  %v6345_v58 = vperm.slane %v11215_v0, 0 }
 0x32b   : > { %15013 = vst [vmem:[#allocation68_spill] sm:$0xff] %v11212_v46  ;;  %v1522_v43 = vsel %vm1252_vm11, %v9326_v39, 0.0  ;;  %v5193_v50 = vadd.f32 %v4937_v19, %v4391_v4  ;;  %vm2072_vm15 = vcmp.eq.s32.totalorder %v9379_v16, %v9328_v61  ;;  %vm2874_vm0 = vcmp.eq.s32.totalorder %v9379_v16, %v9342_v59 }
 0x32c   : > { %15014 = vst [vmem:[#allocation69_spill] sm:$0xff] %v11215_v0  ;;  %v11229_v45 = vperm.slane %v6079_v42, 0  ;;  %v1778_v47 = vadd.f32 %v1522_v43, %v704_v49  ;;  %vm5473_vm4 = vcmp.eq.s32.totalorder %v7496_v11, %v11224_v32  ;;  %v11235_v23 = vperm.slane %v5543_v63, 0 }
 0x32d   : > { %v11237_v1 = vperm.slane %v6345_v58, 0  ;;  %v2342_v57 = vsel %vm2072_vm15, %v9334_v48, 0.0  ;;  %vm3680_vm2 = vcmp.eq.s32.totalorder %v9379_v16, %v9353_v30  ;;  %v3144_v42 = vsel %vm2874_vm0, %v9350_v35, 0.0 }
 0x32e   : > { %vm6275_vm14 = vcmp.eq.s32.totalorder %v7496_v11, %v11229_v45  ;;  %v2598_v0 = vadd.f32 %v2342_v57, %v1778_v47  ;;  %v5743_v4 = vsel %vm5473_vm4, %v11235_v23, 0.0  ;;  %v3950_v49 = vsel %vm3680_vm2, %v9355_v28, 0.0 }
 0x32f   : > { %v6545_v19 = vsel %vm6275_vm14, %v11237_v1, 0.0  ;;  %v5999_v63 = vadd.f32 %v5743_v4, %v5193_v50  ;;  %vm4482_vm7 = vcmp.eq.s32.totalorder %v9379_v16, %v9357_v20  ;;  %vm5288_vm12 = vcmp.eq.s32.totalorder %v9379_v16, %v9371_v33 }
 0x330   : > { %v3400_v58 = vadd.f32 %v3144_v42, %v2598_v0  ;;  %v4752_v43 = vsel %vm4482_vm7, %v9360_v25, 0.0  ;;  %v5558_v47 = vsel %vm5288_vm12, %v9373_v55, 0.0  ;;  %vm6090_vm1 = vcmp.eq.s32.totalorder %v9379_v16, %v9375_v52 }
 0x331   : > { %vm498_vm5 = vcmp.eq.s32.totalorder %v9388_v3, %v9319_v60  ;;  %v6801_v57 = vadd.f32 %v6545_v19, %v5999_v63  ;;  %v6360_v0 = vsel %vm6090_vm1, %v9393_v8, 0.0  ;;  %vm1316_vm9 = vcmp.eq.s32.totalorder %v9388_v3, %v9323_v54 }
 0x332   : > { %v4206_v31 = vadd.f32 %v3950_v49, %v3400_v58  ;;  %v768_v50 = vsel %vm498_vm5, %v9321_v10, 0.0  ;;  %vm2136_vm10 = vcmp.eq.s32.totalorder %v9388_v3, %v9328_v61  ;;  %vm2938_vm3 = vcmp.eq.s32.totalorder %v9388_v3, %v9342_v59 }
 0x333   : > { %vm3744_vm6 = vcmp.eq.s32.totalorder %v9388_v3, %v9353_v30  ;;  %7080 = vmatpush.msra.mxu2 %v6801_v57  ;;  %v1586_v19 = vsel %vm1316_vm9, %v9326_v39, 0.0  ;;  %v2406_v42 = vsel %vm2136_vm10, %v9334_v48, 0.0  ;;  %v3208_v49 = vsel %vm2938_vm3, %v9350_v35, 0.0 }
 0x334   : > { %v5008_v4 = vadd.f32 %v4752_v43, %v4206_v31  ;;  %v1842_v63 = vadd.f32 %v1586_v19, %v768_v50  ;;  %v4014_v58 = vsel %vm3744_vm6, %v9355_v28, 0.0  ;;  %vm4546_vm13 = vcmp.eq.s32.totalorder %v9388_v3, %v9357_v20 }
 0x335   : > { %vm5352_vm8 = vcmp.eq.s32.totalorder %v9388_v3, %v9371_v33  ;;  %v4816_v46 = vsel %vm4546_vm13, %v9360_v25, 0.0  ;;  %vm6154_vm11 = vcmp.eq.s32.totalorder %v9388_v3, %v9375_v52  ;;  %vm622_vm15 = vcmp.eq.s32.totalorder %v9410_v26, %v9319_v60 }
 0x336   : > { %v5814_v16 = vadd.f32 %v5558_v47, %v5008_v4  ;;  %v5622_v31 = vsel %vm5352_vm8, %v9373_v55, 0.0  ;;  %v2662_v43 = vadd.f32 %v2406_v42, %v1842_v63  ;;  %v6424_v57 = vsel %vm6154_vm11, %v9393_v8, 0.0 }
 0x337   : > { %vm1440_vm4 = vcmp.eq.s32.totalorder %v9410_v26, %v9323_v54  ;;  %v892_v19 = vsel %vm622_vm15, %v9321_v10, 0.0  ;;  %vm2260_vm14 = vcmp.eq.s32.totalorder %v9410_v26, %v9328_v61  ;;  %vm3062_vm0 = vcmp.eq.s32.totalorder %v9410_v26, %v9342_v59 }
 0x338   : > { %v6616_v50 = vadd.f32 %v6360_v0, %v5814_v16  ;;  %v1710_v47 = vsel %vm1440_vm4, %v9326_v39, 0.0  ;;  %v3464_v4 = vadd.f32 %v3208_v49, %v2662_v43  ;;  %v2530_v42 = vsel %vm2260_vm14, %v9334_v48, 0.0 }
 0x339   : > { %v1966_v29 = vadd.f32 %v1710_v47, %v892_v19  ;;  %v3332_v63 = vsel %vm3062_vm0, %v9350_v35, 0.0  ;;  %vm3868_vm2 = vcmp.eq.s32.totalorder %v9410_v26, %v9353_v30  ;;  %vm4670_vm7 = vcmp.eq.s32.totalorder %v9410_v26, %v9357_v20 }
 0x33a   : > { %6974 = vmatpush.msrb.mxu0 %v6616_v50  ;;  %vm5476_vm12 = vcmp.eq.s32.totalorder %v9410_v26, %v9371_v33  ;;  %v4270_v16 = vadd.f32 %v4014_v58, %v3464_v4  ;;  %v4138_v49 = vsel %vm3868_vm2, %v9355_v28, 0.0  ;;  %v4940_v43 = vsel %vm4670_vm7, %v9360_v25, 0.0 }
 0x33b   : > { %v2786_v0 = vadd.f32 %v2530_v42, %v1966_v29  ;;  %v5746_v19 = vsel %vm5476_vm12, %v9373_v55, 0.0  ;;  %vm6278_vm1 = vcmp.eq.s32.totalorder %v9410_v26, %v9375_v52  ;;  %vm615_vm5 = vcmp.eq.s32.totalorder %v7499_v12, %v11019_v34 }
 0x33c   : > { %vm1433_vm9 = vcmp.eq.s32.totalorder %v7499_v12, %v11044_v56  ;;  %v5072_v50 = vadd.f32 %v4816_v46, %v4270_v16  ;;  %v6548_v58 = vsel %vm6278_vm1, %v9393_v8, 0.0  ;;  %v885_v29 = vsel %vm615_vm5, %v11112_v5, 0.0 }
 0x33d   : > { %v3588_v47 = vadd.f32 %v3332_v63, %v2786_v0  ;;  %v1703_v4 = vsel %vm1433_vm9, %v11136_v2, 0.0  ;;  %vm2253_vm10 = vcmp.eq.s32.totalorder %v7499_v12, %v11105_v41  ;;  %vm3055_vm3 = vcmp.eq.s32.totalorder %v7499_v12, %v11124_v51 }
 0x33e   : > { %vm3861_vm6 = vcmp.eq.s32.totalorder %v7499_v12, %v11165_v53  ;;  %v5878_v42 = vadd.f32 %v5622_v31, %v5072_v50  ;;  %v1959_v3 = vadd.f32 %v1703_v4, %v885_v29  ;;  %v2523_v46 = vsel %vm2253_vm10, %v11163_v7, 0.0 }
 0x33f   : > { %v4394_v26 = vadd.f32 %v4138_v49, %v3588_v47  ;;  %v3325_v63 = vsel %vm3055_vm3, %v11169_v14, 0.0  ;;  %v4131_v16 = vsel %vm3861_vm6, %v11171_v9, 0.0  ;;  %vm4663_vm13 = vcmp.eq.s32.totalorder %v7499_v12, %v11196_v18 }
 0x340   : > { %vm5469_vm8 = vcmp.eq.s32.totalorder %v7499_v12, %v11224_v32  ;;  %v6680_v0 = vadd.f32 %v6424_v57, %v5878_v42  ;;  %v2779_v11 = vadd.f32 %v2523_v46, %v1959_v3  ;;  %v4933_v44 = vsel %vm4663_vm13, %v11198_v38, 0.0 }
 0x341   : > { %v5196_v37 = vadd.f32 %v4940_v43, %v4394_v26  ;;  %v5739_v31 = vsel %vm5469_vm8, %v11235_v23, 0.0  ;;  %vm6271_vm11 = vcmp.eq.s32.totalorder %v7499_v12, %v11229_v45  ;;  %vm683_vm15 = vcmp.eq.s32.totalorder %v7502_v13, %v11019_v34 }
 0x342   : > { %vm1501_vm4 = vcmp.eq.s32.totalorder %v7502_v13, %v11044_v56  ;;  %6994 = vmatpush.msrb.mxu1 %v6680_v0  ;;  %v3581_v50 = vadd.f32 %v3325_v63, %v2779_v11  ;;  %v6541_v57 = vsel %vm6271_vm11, %v11237_v1, 0.0  ;;  %v953_v3 = vsel %vm683_vm15, %v11112_v5, 0.0  ;;  %v7402_v63 = vld.sshfl [vmem:[#allocation1 + $0x18] sm:$0xff pattern:$0x75316420] }
 0x343   : > { %v6002_v49 = vadd.f32 %v5746_v19, %v5196_v37  ;;  %v1771_v26 = vsel %vm1501_vm4, %v11136_v2, 0.0  ;;  %vm2321_vm14 = vcmp.eq.s32.totalorder %v7502_v13, %v11105_v41  ;;  %vm3123_vm0 = vcmp.eq.s32.totalorder %v7502_v13, %v11124_v51 }
 0x344   : > { %vm3929_vm2 = vcmp.eq.s32.totalorder %v7502_v13, %v11165_v53  ;;  %v4387_v47 = vadd.f32 %v4131_v16, %v3581_v50  ;;  %v2027_v29 = vadd.f32 %v1771_v26, %v953_v3  ;;  %v2591_v11 = vsel %vm2321_vm14, %v11163_v7, 0.0 }
 0x345   : > { %v6804_v43 = vadd.f32 %v6548_v58, %v6002_v49  ;;  %v3393_v37 = vsel %vm3123_vm0, %v11169_v14, 0.0  ;;  %v4199_v19 = vsel %vm3929_vm2, %v11171_v9, 0.0  ;;  %vm4731_vm7 = vcmp.eq.s32.totalorder %v7502_v13, %v11196_v18 }
 0x346   : > { %vm5537_vm12 = vcmp.eq.s32.totalorder %v7502_v13, %v11224_v32  ;;  %v5189_v4 = vadd.f32 %v4933_v44, %v4387_v47  ;;  %v2847_v42 = vadd.f32 %v2591_v11, %v2027_v29  ;;  %v5001_v46 = vsel %vm4731_vm7, %v11198_v38, 0.0 }
 0x347   : > { %7035 = vmatpush.msrb.mxu3 %v6804_v43  ;;  %v5807_v58 = vsel %vm5537_vm12, %v11235_v23, 0.0  ;;  %vm6339_vm1 = vcmp.eq.s32.totalorder %v7502_v13, %v11229_v45  ;;  %vm430_vm5 = vcmp.eq.s32.totalorder %v7489_v6, %v9319_v60  ;;  %vm1248_vm9 = vcmp.eq.s32.totalorder %v7489_v6, %v9323_v54 }
 0x348   : > { %7036 = vmatmul.f32.vlgmr.msrb.gmra.mxu3 %v7402_v63  ;;  %vm2068_vm10 = vcmp.eq.s32.totalorder %v7489_v6, %v9328_v61  ;;  %v5995_v44 = vadd.f32 %v5739_v31, %v5189_v4  ;;  %v3649_v16 = vadd.f32 %v3393_v37, %v2847_v42  ;;  %v6609_v0 = vsel %vm6339_vm1, %v11237_v1, 0.0 }
 0x349   : > { %v700_v49 = vsel %vm430_vm5, %v9321_v10, 0.0  ;;  %v1518_v50 = vsel %vm1248_vm9, %v9326_v39, 0.0  ;;  %v2338_v3 = vsel %vm2068_vm10, %v9334_v48, 0.0  ;;  %vm2870_vm3 = vcmp.eq.s32.totalorder %v7489_v6, %v9342_v59 }
 0x34a   : > { %vm3676_vm6 = vcmp.eq.s32.totalorder %v7489_v6, %v9353_v30  ;;  %v6797_v26 = vadd.f32 %v6541_v57, %v5995_v44  ;;  %v4455_v43 = vadd.f32 %v4199_v19, %v3649_v16  ;;  %v1774_v47 = vadd.f32 %v1518_v50, %v700_v49 }
 0x34b   : > { %v3140_v31 = vsel %vm2870_vm3, %v9350_v35, 0.0  ;;  %v3946_v29 = vsel %vm3676_vm6, %v9355_v28, 0.0  ;;  %vm4478_vm13 = vcmp.eq.s32.totalorder %v7489_v6, %v9357_v20  ;;  %vm5284_vm8 = vcmp.eq.s32.totalorder %v7489_v6, %v9371_v33 }
 0x34c   : > { %vm6086_vm11 = vcmp.eq.s32.totalorder %v7489_v6, %v9375_v52  ;;  %7081 = vmatpush.msra.mxu2 %v6797_v26  ;;  %v5257_v11 = vadd.f32 %v5001_v46, %v4455_v43  ;;  %v2594_v37 = vadd.f32 %v2338_v3, %v1774_v47  ;;  %v4748_v57 = vsel %vm4478_vm13, %v9360_v25, 0.0 }
 0x34d   : > { %v5554_v19 = vsel %vm5284_vm8, %v9373_v55, 0.0  ;;  %v6356_v4 = vsel %vm6086_vm11, %v9393_v8, 0.0  ;;  %vm494_vm15 = vcmp.eq.s32.totalorder %v9547_v40, %v9319_v60  ;;  %vm1312_vm4 = vcmp.eq.s32.totalorder %v9547_v40, %v9323_v54 }
 0x34e   : > { %vm2132_vm14 = vcmp.eq.s32.totalorder %v9547_v40, %v9328_v61  ;;  %v6063_v42 = vadd.f32 %v5807_v58, %v5257_v11  ;;  %v3396_v63 = vadd.f32 %v3140_v31, %v2594_v37  ;;  %v764_v46 = vsel %vm494_vm15, %v9321_v10, 0.0 }
 0x34f   : > { %v1582_v44 = vsel %vm1312_vm4, %v9326_v39, 0.0  ;;  %v2402_v49 = vsel %vm2132_vm14, %v9334_v48, 0.0  ;;  %vm2934_vm0 = vcmp.eq.s32.totalorder %v9547_v40, %v9342_v59  ;;  %vm3740_vm2 = vcmp.eq.s32.totalorder %v9547_v40, %v9353_v30 }
 0x350   : > { %v1838_v16 = vadd.f32 %v1582_v44, %v764_v46  ;;  %v6865_v60 = vadd.f32 %v6609_v0, %v6063_v42  ;;  %v4202_v54 = vadd.f32 %v3946_v29, %v3396_v63  ;;  %v3204_v50 = vsel %vm2934_vm0, %v9350_v35, 0.0  ;;  %v7403_v29 = vld.sshfl [vmem:[#allocation1] sm:$0xff pattern:$0x75316420] }
 0x351   : > { %v4010_v61 = vsel %vm3740_vm2, %v9355_v28, 0.0  ;;  %vm4542_vm7 = vcmp.eq.s32.totalorder %v9547_v40, %v9357_v20  ;;  %vm5348_vm12 = vcmp.eq.s32.totalorder %v9547_v40, %v9371_v33  ;;  %vm6150_vm1 = vcmp.eq.s32.totalorder %v9547_v40, %v9375_v52 }
 0x352   : > { %v2658_v58 = vadd.f32 %v2402_v49, %v1838_v16  ;;  %7100 = vmatpush.msra.mxu3 %v6865_v60  ;;  %v5004_v39 = vadd.f32 %v4748_v57, %v4202_v54  ;;  %v4812_v10 = vsel %vm4542_vm7, %v9360_v25, 0.0  ;;  %v5618_v48 = vsel %vm5348_vm12, %v9373_v55, 0.0 }
 0x353   : > { %v6420_v59 = vsel %vm6150_vm1, %v9393_v8, 0.0  ;;  %vm491_vm5 = vcmp.eq.s32.totalorder %v7520_v27, %v11019_v34  ;;  %vm1309_vm9 = vcmp.eq.s32.totalorder %v7520_v27, %v11044_v56  ;;  %vm2129_vm10 = vcmp.eq.s32.totalorder %v7520_v27, %v11105_v41 }
 0x354   : > { %v3460_v35 = vadd.f32 %v3204_v50, %v2658_v58  ;;  %v5810_v30 = vadd.f32 %v5554_v19, %v5004_v39  ;;  %v761_v28 = vsel %vm491_vm5, %v11112_v5, 0.0  ;;  %v1579_v20 = vsel %vm1309_vm9, %v11136_v2, 0.0 }
 0x355   : > { %v2399_v25 = vsel %vm2129_vm10, %v11163_v7, 0.0  ;;  %v1835_v55 = vadd.f32 %v1579_v20, %v761_v28  ;;  %vm2931_vm3 = vcmp.eq.s32.totalorder %v7520_v27, %v11124_v51  ;;  %vm3737_vm6 = vcmp.eq.s32.totalorder %v7520_v27, %v11165_v53 }
 0x356   : > { %v4266_v33 = vadd.f32 %v4010_v61, %v3460_v35  ;;  %v6612_v52 = vadd.f32 %v6356_v4, %v5810_v30  ;;  %v3201_v8 = vsel %vm2931_vm3, %v11169_v14, 0.0  ;;  %v4007_v0 = vsel %vm3737_vm6, %v11171_v9, 0.0  ;;  %v7404_v61 = vld.sshfl [vmem:[#allocation1 + $0x8] sm:$0xff pattern:$0x75316420] }
 0x357   : > { %vm4539_vm13 = vcmp.eq.s32.totalorder %v7520_v27, %v11196_v18  ;;  %v2655_v26 = vadd.f32 %v2399_v25, %v1835_v55  ;;  %vm5345_vm8 = vcmp.eq.s32.totalorder %v7520_v27, %v11224_v32  ;;  %vm6147_vm11 = vcmp.eq.s32.totalorder %v7520_v27, %v11229_v45 }
 0x358   : > { %v5068_v3 = vadd.f32 %v4812_v10, %v4266_v33  ;;  %v4809_v43 = vsel %vm4539_vm13, %v11198_v38, 0.0  ;;  %6975 = vmatpush.msrb.mxu0 %v6612_v52  ;;  %v5615_v47 = vsel %vm5345_vm8, %v11235_v23, 0.0  ;;  %vm555_vm15 = vcmp.eq.s32.totalorder %v7830_v15, %v11019_v34 }
 0x359   : > { %vm1373_vm4 = vcmp.eq.s32.totalorder %v7830_v15, %v11044_v56  ;;  %6976 = vmatmul.f32.vlgmr.msrb.gmra.mxu0 %v7403_v29  ;;  %v3457_v11 = vadd.f32 %v3201_v8, %v2655_v26  ;;  %v6417_v37 = vsel %vm6147_vm11, %v11237_v1, 0.0  ;;  %v825_v57 = vsel %vm555_vm15, %v11112_v5, 0.0 }
 0x35a   : > { %v5874_v31 = vadd.f32 %v5618_v48, %v5068_v3  ;;  %v1643_v19 = vsel %vm1373_vm4, %v11136_v2, 0.0  ;;  %vm2193_vm14 = vcmp.eq.s32.totalorder %v7830_v15, %v11105_v41  ;;  %vm2995_vm0 = vcmp.eq.s32.totalorder %v7830_v15, %v11124_v51 }
 0x35b   : > { %vm3801_vm2 = vcmp.eq.s32.totalorder %v7830_v15, %v11165_v53  ;;  %v4263_v42 = vadd.f32 %v4007_v0, %v3457_v11  ;;  %v1899_v63 = vadd.f32 %v1643_v19, %v825_v57  ;;  %v2463_v46 = vsel %vm2193_vm14, %v11163_v7, 0.0 }
 0x35c   : > { %v6676_v4 = vadd.f32 %v6420_v59, %v5874_v31  ;;  %v3265_v44 = vsel %vm2995_vm0, %v11169_v14, 0.0  ;;  %v4071_v16 = vsel %vm3801_vm2, %v11171_v9, 0.0  ;;  %vm4603_vm7 = vcmp.eq.s32.totalorder %v7830_v15, %v11196_v18 }
 0x35d   : > { %vm5409_vm12 = vcmp.eq.s32.totalorder %v7830_v15, %v11224_v32  ;;  %v5065_v49 = vadd.f32 %v4809_v43, %v4263_v42  ;;  %v2719_v60 = vadd.f32 %v2463_v46, %v1899_v63  ;;  %v4873_v54 = vsel %vm4603_vm7, %v11198_v38, 0.0 }
 0x35e   : > { %6995 = vmatpush.msrb.mxu1 %v6676_v4  ;;  %v5679_v50 = vsel %vm5409_vm12, %v11235_v23, 0.0  ;;  %vm6211_vm1 = vcmp.eq.s32.totalorder %v7830_v15, %v11229_v45  ;;  %vm611_vm5 = vcmp.eq.s32.totalorder %v7833_v17, %v11019_v34  ;;  %vm1429_vm9 = vcmp.eq.s32.totalorder %v7833_v17, %v11044_v56 }
 0x35f   : > { %6996 = vmatmul.f32.vlgmr.msrb.gmra.mxu1 %v7404_v61  ;;  %vm2249_vm10 = vcmp.eq.s32.totalorder %v7833_v17, %v11105_v41  ;;  %v5871_v58 = vadd.f32 %v5615_v47, %v5065_v49  ;;  %v3521_v39 = vadd.f32 %v3265_v44, %v2719_v60  ;;  %v6481_v10 = vsel %vm6211_vm1, %v11237_v1, 0.0 }
 0x360   : > { %v881_v48 = vsel %vm611_vm5, %v11112_v5, 0.0  ;;  %v1699_v59 = vsel %vm1429_vm9, %v11136_v2, 0.0  ;;  %v2519_v35 = vsel %vm2249_vm10, %v11163_v7, 0.0  ;;  %vm3051_vm3 = vcmp.eq.s32.totalorder %v7833_v17, %v11124_v51 }
 0x361   : > { %vm3857_vm6 = vcmp.eq.s32.totalorder %v7833_v17, %v11165_v53  ;;  %v6673_v30 = vadd.f32 %v6417_v37, %v5871_v58  ;;  %v4327_v28 = vadd.f32 %v4071_v16, %v3521_v39  ;;  %v1955_v20 = vadd.f32 %v1699_v59, %v881_v48 }
 0x362   : > { %v3321_v25 = vsel %vm3051_vm3, %v11169_v14, 0.0  ;;  %v4127_v33 = vsel %vm3857_vm6, %v11171_v9, 0.0  ;;  %vm4659_vm13 = vcmp.eq.s32.totalorder %v7833_v17, %v11196_v18  ;;  %vm5465_vm8 = vcmp.eq.s32.totalorder %v7833_v17, %v11224_v32 }
 0x363   : > { %vm6267_vm11 = vcmp.eq.s32.totalorder %v7833_v17, %v11229_v45  ;;  %7040 = vmatpush.msra.mxu0 %v6673_v30  ;;  %v5129_v55 = vadd.f32 %v4873_v54, %v4327_v28  ;;  %v2775_v52 = vadd.f32 %v2519_v35, %v1955_v20  ;;  %v4929_v8 = vsel %vm4659_vm13, %v11198_v38, 0.0 }
 0x364   : > { %v5735_v0 = vsel %vm5465_vm8, %v11235_v23, 0.0  ;;  %v6537_v3 = vsel %vm6267_vm11, %v11237_v1, 0.0  ;;  %vm679_vm15 = vcmp.eq.s32.totalorder %v7836_v22, %v11019_v34  ;;  %vm1497_vm4 = vcmp.eq.s32.totalorder %v7836_v22, %v11044_v56 }
 0x365   : > { %vm2317_vm14 = vcmp.eq.s32.totalorder %v7836_v22, %v11105_v41  ;;  %v5935_v26 = vadd.f32 %v5679_v50, %v5129_v55  ;;  %v3577_v43 = vadd.f32 %v3321_v25, %v2775_v52  ;;  %v949_v47 = vsel %vm679_vm15, %v11112_v5, 0.0 }
 0x366   : > { %v1767_v31 = vsel %vm1497_vm4, %v11136_v2, 0.0  ;;  %v2587_v11 = vsel %vm2317_vm14, %v11163_v7, 0.0  ;;  %vm3119_vm0 = vcmp.eq.s32.totalorder %v7836_v22, %v11124_v51  ;;  %vm3925_vm2 = vcmp.eq.s32.totalorder %v7836_v22, %v11165_v53 }
 0x367   : > { %v2023_v29 = vadd.f32 %v1767_v31, %v949_v47  ;;  %v6737_v37 = vadd.f32 %v6481_v10, %v5935_v26  ;;  %v4383_v57 = vadd.f32 %v4127_v33, %v3577_v43  ;;  %v3389_v19 = vsel %vm3119_vm0, %v11169_v14, 0.0 }
 0x368   : > { %v4195_v4 = vsel %vm3925_vm2, %v11171_v9, 0.0  ;;  %vm4727_vm7 = vcmp.eq.s32.totalorder %v7836_v22, %v11196_v18  ;;  %vm5533_vm12 = vcmp.eq.s32.totalorder %v7836_v22, %v11224_v32  ;;  %vm6335_vm1 = vcmp.eq.s32.totalorder %v7836_v22, %v11229_v45 }
 0x369   : > { %v2843_v42 = vadd.f32 %v2587_v11, %v2023_v29  ;;  %7060 = vmatpush.msra.mxu1 %v6737_v37  ;;  %v5185_v63 = vadd.f32 %v4929_v8, %v4383_v57  ;;  %v4997_v46 = vsel %vm4727_vm7, %v11198_v38, 0.0  ;;  %v5803_v44 = vsel %vm5533_vm12, %v11235_v23, 0.0 }
 0x36a   : > { %v6605_v16 = vsel %vm6335_vm1, %v11237_v1, 0.0  ;;  %vm487_vm5 = vcmp.eq.s32.totalorder %v7839_v36, %v11019_v34  ;;  %vm1305_vm9 = vcmp.eq.s32.totalorder %v7839_v36, %v11044_v56  ;;  %vm2125_vm10 = vcmp.eq.s32.totalorder %v7839_v36, %v11105_v41 }
 0x36b   : > { %v3645_v49 = vadd.f32 %v3389_v19, %v2843_v42  ;;  %v5991_v60 = vadd.f32 %v5735_v0, %v5185_v63  ;;  %v757_v54 = vsel %vm487_vm5, %v11112_v5, 0.0  ;;  %v1575_v50 = vsel %vm1305_vm9, %v11136_v2, 0.0 }
 0x36c   : > { %v2395_v61 = vsel %vm2125_vm10, %v11163_v7, 0.0  ;;  %v1831_v39 = vadd.f32 %v1575_v50, %v757_v54  ;;  %vm2927_vm3 = vcmp.eq.s32.totalorder %v7839_v36, %v11124_v51  ;;  %vm3733_vm6 = vcmp.eq.s32.totalorder %v7839_v36, %v11165_v53 }
 0x36d   : > { %v4451_v58 = vadd.f32 %v4195_v4, %v3645_v49  ;;  %v6793_v10 = vadd.f32 %v6537_v3, %v5991_v60  ;;  %v3197_v48 = vsel %vm2927_vm3, %v11169_v14, 0.0  ;;  %v4003_v59 = vsel %vm3733_vm6, %v11171_v9, 0.0 }
 0x36e   : > { %vm4535_vm13 = vcmp.eq.s32.totalorder %v7839_v36, %v11196_v18  ;;  %v2651_v30 = vadd.f32 %v2395_v61, %v1831_v39  ;;  %vm5341_vm8 = vcmp.eq.s32.totalorder %v7839_v36, %v11224_v32  ;;  %vm6143_vm11 = vcmp.eq.s32.totalorder %v7839_v36, %v11229_v45 }
 0x36f   : > { %v5253_v35 = vadd.f32 %v4997_v46, %v4451_v58  ;;  %v4805_v28 = vsel %vm4535_vm13, %v11198_v38, 0.0  ;;  %7082 = vmatpush.msra.mxu2 %v6793_v10  ;;  %v5611_v20 = vsel %vm5341_vm8, %v11235_v23, 0.0  ;;  %vm551_vm15 = vcmp.eq.s32.totalorder %v14931_v24, %v11019_v34 }
 0x370   : > { %vm1369_vm4 = vcmp.eq.s32.totalorder %v14931_v24, %v11044_v56  ;;  %v3453_v33 = vadd.f32 %v3197_v48, %v2651_v30  ;;  %v6413_v55 = vsel %vm6143_vm11, %v11237_v1, 0.0  ;;  %v821_v52 = vsel %vm551_vm15, %v11112_v5, 0.0 }
 0x371   : > { %v6059_v25 = vadd.f32 %v5803_v44, %v5253_v35  ;;  %v1639_v8 = vsel %vm1369_vm4, %v11136_v2, 0.0  ;;  %vm2189_vm14 = vcmp.eq.s32.totalorder %v14931_v24, %v11105_v41  ;;  %vm2991_vm0 = vcmp.eq.s32.totalorder %v14931_v24, %v11124_v51 }
 0x372   : > { %vm3797_vm2 = vcmp.eq.s32.totalorder %v14931_v24, %v11165_v53  ;;  %v4259_v3 = vadd.f32 %v4003_v59, %v3453_v33  ;;  %v1895_v26 = vadd.f32 %v1639_v8, %v821_v52  ;;  %v2459_v43 = vsel %vm2189_vm14, %v11163_v7, 0.0 }
 0x373   : > { %v6861_v0 = vadd.f32 %v6605_v16, %v6059_v25  ;;  %v3261_v47 = vsel %vm2991_vm0, %v11169_v14, 0.0  ;;  %v4067_v31 = vsel %vm3797_vm2, %v11171_v9, 0.0  ;;  %vm4599_vm7 = vcmp.eq.s32.totalorder %v14931_v24, %v11196_v18 }
 0x374   : > { %vm5405_vm12 = vcmp.eq.s32.totalorder %v14931_v24, %v11224_v32  ;;  %v5061_v29 = vadd.f32 %v4805_v28, %v4259_v3  ;;  %v2715_v11 = vadd.f32 %v2459_v43, %v1895_v26  ;;  %v4869_v37 = vsel %vm4599_vm7, %v11198_v38, 0.0 }
 0x375   : > { %7101 = vmatpush.msra.mxu3 %v6861_v0  ;;  %v5675_v57 = vsel %vm5405_vm12, %v11235_v23, 0.0  ;;  %vm6207_vm1 = vcmp.eq.s32.totalorder %v14931_v24, %v11229_v45  ;;  %vm607_vm5 = vcmp.eq.s32.totalorder %v14932_v21, %v11019_v34  ;;  %vm1425_vm9 = vcmp.eq.s32.totalorder %v14932_v21, %v11044_v56 }
 0x376   : > { %vm2245_vm10 = vcmp.eq.s32.totalorder %v14932_v21, %v11105_v41  ;;  %v5867_v19 = vadd.f32 %v5611_v20, %v5061_v29  ;;  %v3517_v4 = vadd.f32 %v3261_v47, %v2715_v11  ;;  %v6477_v42 = vsel %vm6207_vm1, %v11237_v1, 0.0  ;;  %v15015_v29 = vld [vmem:[#allocation6_spill] sm:$0xff] }
 0x377   : > { %v877_v63 = vsel %vm607_vm5, %v11112_v5, 0.0  ;;  %v1695_v46 = vsel %vm1425_vm9, %v11136_v2, 0.0  ;;  %v2515_v44 = vsel %vm2245_vm10, %v11163_v7, 0.0  ;;  %vm3047_vm3 = vcmp.eq.s32.totalorder %v14932_v21, %v11124_v51 }
 0x378   : > { %vm3853_vm6 = vcmp.eq.s32.totalorder %v14932_v21, %v11165_v53  ;;  %v6669_v16 = vadd.f32 %v6413_v55, %v5867_v19  ;;  %v4323_v49 = vadd.f32 %v4067_v31, %v3517_v4  ;;  %v1951_v60 = vadd.f32 %v1695_v46, %v877_v63 }
 0x379   : > { %v3317_v54 = vsel %vm3047_vm3, %v11169_v14, 0.0  ;;  %v4123_v50 = vsel %vm3853_vm6, %v11171_v9, 0.0  ;;  %vm4655_vm13 = vcmp.eq.s32.totalorder %v14932_v21, %v11196_v18  ;;  %vm5461_vm8 = vcmp.eq.s32.totalorder %v14932_v21, %v11224_v32 }
 0x37a   : > { %vm6263_vm11 = vcmp.eq.s32.totalorder %v14932_v21, %v11229_v45  ;;  %7041 = vmatpush.msra.mxu0 %v6669_v16  ;;  %v5125_v61 = vadd.f32 %v4869_v37, %v4323_v49  ;;  %v2771_v58 = vadd.f32 %v2515_v44, %v1951_v60  ;;  %v4925_v39 = vsel %vm4655_vm13, %v11198_v38, 0.0 }
 0x37b   : > { %v5731_v10 = vsel %vm5461_vm8, %v11235_v23, 0.0  ;;  %v6533_v48 = vsel %vm6263_vm11, %v11237_v1, 0.0  ;;  %vm675_vm15 = vcmp.eq.s32.totalorder %v14933_v62, %v11019_v34  ;;  %vm1493_vm4 = vcmp.eq.s32.totalorder %v14933_v62, %v11044_v56 }
 0x37c   : > { %vm2313_vm14 = vcmp.eq.s32.totalorder %v14933_v62, %v11105_v41  ;;  %v5931_v59 = vadd.f32 %v5675_v57, %v5125_v61  ;;  %v3573_v35 = vadd.f32 %v3317_v54, %v2771_v58  ;;  %v945_v30 = vsel %vm675_vm15, %v11112_v5, 0.0 }
 0x37d   : > { %v1763_v28 = vsel %vm1493_vm4, %v11136_v2, 0.0  ;;  %v2583_v25 = vsel %vm2313_vm14, %v11163_v7, 0.0  ;;  %vm3115_vm0 = vcmp.eq.s32.totalorder %v14933_v62, %v11124_v51  ;;  %vm3921_vm2 = vcmp.eq.s32.totalorder %v14933_v62, %v11165_v53 }
 0x37e   : > { %v2019_v20 = vadd.f32 %v1763_v28, %v945_v30  ;;  %v6733_v33 = vadd.f32 %v6477_v42, %v5931_v59  ;;  %v4379_v55 = vadd.f32 %v4123_v50, %v3573_v35  ;;  %v3385_v52 = vsel %vm3115_vm0, %v11169_v14, 0.0  ;;  %v15016_v50 = vld [vmem:[#allocation7_spill] sm:$0xff] }
 0x37f   : > { %v4191_v8 = vsel %vm3921_vm2, %v11171_v9, 0.0  ;;  %vm4723_vm7 = vcmp.eq.s32.totalorder %v14933_v62, %v11196_v18  ;;  %vm5529_vm12 = vcmp.eq.s32.totalorder %v14933_v62, %v11224_v32  ;;  %vm6331_vm1 = vcmp.eq.s32.totalorder %v14933_v62, %v11229_v45 }
 0x380   : > { %v2839_v0 = vadd.f32 %v2583_v25, %v2019_v20  ;;  %7061 = vmatpush.msra.mxu1 %v6733_v33  ;;  %v5181_v3 = vadd.f32 %v4925_v39, %v4379_v55  ;;  %v4993_v26 = vsel %vm4723_vm7, %v11198_v38, 0.0  ;;  %v5799_v43 = vsel %vm5529_vm12, %v11235_v23, 0.0 }
 0x381   : > { %v6601_v47 = vsel %vm6331_vm1, %v11237_v1, 0.0  ;;  %vm483_vm5 = vcmp.eq.s32.totalorder %v15015_v29, %v11019_v34  ;;  %vm1301_vm9 = vcmp.eq.s32.totalorder %v15015_v29, %v11044_v56  ;;  %vm2121_vm10 = vcmp.eq.s32.totalorder %v15015_v29, %v11105_v41 }
 0x382   : > { %v3641_v31 = vadd.f32 %v3385_v52, %v2839_v0  ;;  %v5987_v11 = vadd.f32 %v5731_v10, %v5181_v3  ;;  %v753_v37 = vsel %vm483_vm5, %v11112_v5, 0.0  ;;  %v1571_v57 = vsel %vm1301_vm9, %v11136_v2, 0.0  ;;  %v15017_v0 = vld [vmem:[#allocation8_spill] sm:$0xff] }
 0x383   : > { %v2391_v19 = vsel %vm2121_vm10, %v11163_v7, 0.0  ;;  %v1827_v42 = vadd.f32 %v1571_v57, %v753_v37  ;;  %vm2923_vm3 = vcmp.eq.s32.totalorder %v15015_v29, %v11124_v51  ;;  %vm3729_vm6 = vcmp.eq.s32.totalorder %v15015_v29, %v11165_v53 }
 0x384   : > { %v4447_v4 = vadd.f32 %v4191_v8, %v3641_v31  ;;  %v6789_v63 = vadd.f32 %v6533_v48, %v5987_v11  ;;  %v3193_v46 = vsel %vm2923_vm3, %v11169_v14, 0.0  ;;  %v3999_v44 = vsel %vm3729_vm6, %v11171_v9, 0.0 }
 0x385   : > { %vm4531_vm13 = vcmp.eq.s32.totalorder %v15015_v29, %v11196_v18  ;;  %v2647_v49 = vadd.f32 %v2391_v19, %v1827_v42  ;;  %vm5337_vm8 = vcmp.eq.s32.totalorder %v15015_v29, %v11224_v32  ;;  %vm6139_vm11 = vcmp.eq.s32.totalorder %v15015_v29, %v11229_v45 }
 0x386   : > { %v5249_v16 = vadd.f32 %v4993_v26, %v4447_v4  ;;  %v4801_v60 = vsel %vm4531_vm13, %v11198_v38, 0.0  ;;  %7083 = vmatpush.msra.mxu2 %v6789_v63  ;;  %v5607_v54 = vsel %vm5337_vm8, %v11235_v23, 0.0  ;;  %vm547_vm15 = vcmp.eq.s32.totalorder %v15016_v50, %v11019_v34 }
 0x387   : > { %vm1365_vm4 = vcmp.eq.s32.totalorder %v15016_v50, %v11044_v56  ;;  %v3449_v58 = vadd.f32 %v3193_v46, %v2647_v49  ;;  %v6409_v39 = vsel %vm6139_vm11, %v11237_v1, 0.0  ;;  %v817_v10 = vsel %vm547_vm15, %v11112_v5, 0.0 }
 0x388   : > { %v6055_v61 = vadd.f32 %v5799_v43, %v5249_v16  ;;  %v1635_v48 = vsel %vm1365_vm4, %v11136_v2, 0.0  ;;  %vm2185_vm14 = vcmp.eq.s32.totalorder %v15016_v50, %v11105_v41  ;;  %vm2987_vm0 = vcmp.eq.s32.totalorder %v15016_v50, %v11124_v51 }
 0x389   : > { %vm3793_vm2 = vcmp.eq.s32.totalorder %v15016_v50, %v11165_v53  ;;  %v4255_v35 = vadd.f32 %v3999_v44, %v3449_v58  ;;  %v1891_v30 = vadd.f32 %v1635_v48, %v817_v10  ;;  %v2455_v28 = vsel %vm2185_vm14, %v11163_v7, 0.0 }
 0x38a   : > { %v6857_v59 = vadd.f32 %v6601_v47, %v6055_v61  ;;  %v3257_v20 = vsel %vm2987_vm0, %v11169_v14, 0.0  ;;  %v4063_v25 = vsel %vm3793_vm2, %v11171_v9, 0.0  ;;  %vm4595_vm7 = vcmp.eq.s32.totalorder %v15016_v50, %v11196_v18 }
 0x38b   : > { %vm5401_vm12 = vcmp.eq.s32.totalorder %v15016_v50, %v11224_v32  ;;  %v5057_v33 = vadd.f32 %v4801_v60, %v4255_v35  ;;  %v2711_v55 = vadd.f32 %v2455_v28, %v1891_v30  ;;  %v4865_v52 = vsel %vm4595_vm7, %v11198_v38, 0.0  ;;  %v15018_v60 = vld [vmem:[#allocation9_spill] sm:$0xff] }
 0x38c   : > { %7102 = vmatpush.msra.mxu3 %v6857_v59  ;;  %v5671_v8 = vsel %vm5401_vm12, %v11235_v23, 0.0  ;;  %vm6203_vm1 = vcmp.eq.s32.totalorder %v15016_v50, %v11229_v45  ;;  %vm603_vm5 = vcmp.eq.s32.totalorder %v15017_v0, %v11019_v34  ;;  %vm1421_vm9 = vcmp.eq.s32.totalorder %v15017_v0, %v11044_v56 }
 0x38d   : > { %vm2241_vm10 = vcmp.eq.s32.totalorder %v15017_v0, %v11105_v41  ;;  %v5863_v3 = vadd.f32 %v5607_v54, %v5057_v33  ;;  %v3513_v26 = vadd.f32 %v3257_v20, %v2711_v55  ;;  %v6473_v43 = vsel %vm6203_vm1, %v11237_v1, 0.0 }
 0x38e   : > { %v873_v47 = vsel %vm603_vm5, %v11112_v5, 0.0  ;;  %v1691_v31 = vsel %vm1421_vm9, %v11136_v2, 0.0  ;;  %v2511_v11 = vsel %vm2241_vm10, %v11163_v7, 0.0  ;;  %vm3043_vm3 = vcmp.eq.s32.totalorder %v15017_v0, %v11124_v51 }
 0x38f   : > { %vm3849_vm6 = vcmp.eq.s32.totalorder %v15017_v0, %v11165_v53  ;;  %v6665_v37 = vadd.f32 %v6409_v39, %v5863_v3  ;;  %v4319_v57 = vadd.f32 %v4063_v25, %v3513_v26  ;;  %v1947_v19 = vadd.f32 %v1691_v31, %v873_v47  ;;  %v15019_v3 = vld [vmem:[#allocation10_spill] sm:$0xff] }
 0x390   : > { %v3313_v4 = vsel %vm3043_vm3, %v11169_v14, 0.0  ;;  %v4119_v42 = vsel %vm3849_vm6, %v11171_v9, 0.0  ;;  %vm4651_vm13 = vcmp.eq.s32.totalorder %v15017_v0, %v11196_v18  ;;  %vm5457_vm8 = vcmp.eq.s32.totalorder %v15017_v0, %v11224_v32 }
 0x391   : > { %vm6259_vm11 = vcmp.eq.s32.totalorder %v15017_v0, %v11229_v45  ;;  %7042 = vmatpush.msra.mxu0 %v6665_v37  ;;  %v5121_v63 = vadd.f32 %v4865_v52, %v4319_v57  ;;  %v2767_v46 = vadd.f32 %v2511_v11, %v1947_v19  ;;  %v4921_v44 = vsel %vm4651_vm13, %v11198_v38, 0.0 }
 0x392   : > { %v5727_v16 = vsel %vm5457_vm8, %v11235_v23, 0.0  ;;  %v6529_v49 = vsel %vm6259_vm11, %v11237_v1, 0.0  ;;  %vm671_vm15 = vcmp.eq.s32.totalorder %v15018_v60, %v11019_v34  ;;  %vm1489_vm4 = vcmp.eq.s32.totalorder %v15018_v60, %v11044_v56 }
 0x393   : > { %vm2309_vm14 = vcmp.eq.s32.totalorder %v15018_v60, %v11105_v41  ;;  %v5927_v54 = vadd.f32 %v5671_v8, %v5121_v63  ;;  %v3569_v61 = vadd.f32 %v3313_v4, %v2767_v46  ;;  %v941_v58 = vsel %vm671_vm15, %v11112_v5, 0.0 }
 0x394   : > { %v1759_v39 = vsel %vm1489_vm4, %v11136_v2, 0.0  ;;  %v2579_v48 = vsel %vm2309_vm14, %v11163_v7, 0.0  ;;  %vm3111_vm0 = vcmp.eq.s32.totalorder %v15018_v60, %v11124_v51  ;;  %vm3917_vm2 = vcmp.eq.s32.totalorder %v15018_v60, %v11165_v53 }
 0x395   : > { %v2015_v10 = vadd.f32 %v1759_v39, %v941_v58  ;;  %v6729_v59 = vadd.f32 %v6473_v43, %v5927_v54  ;;  %v4375_v35 = vadd.f32 %v4119_v42, %v3569_v61  ;;  %v3381_v30 = vsel %vm3111_vm0, %v11169_v14, 0.0 }
 0x396   : > { %v4187_v28 = vsel %vm3917_vm2, %v11171_v9, 0.0  ;;  %vm4719_vm7 = vcmp.eq.s32.totalorder %v15018_v60, %v11196_v18  ;;  %vm5525_vm12 = vcmp.eq.s32.totalorder %v15018_v60, %v11224_v32  ;;  %vm6327_vm1 = vcmp.eq.s32.totalorder %v15018_v60, %v11229_v45 }
 0x397   : > { %v2835_v20 = vadd.f32 %v2579_v48, %v2015_v10  ;;  %7062 = vmatpush.msra.mxu1 %v6729_v59  ;;  %v5177_v25 = vadd.f32 %v4921_v44, %v4375_v35  ;;  %v4989_v33 = vsel %vm4719_vm7, %v11198_v38, 0.0  ;;  %v5795_v55 = vsel %vm5525_vm12, %v11235_v23, 0.0 }
 0x398   : > { %v6597_v52 = vsel %vm6327_vm1, %v11237_v1, 0.0  ;;  %vm479_vm5 = vcmp.eq.s32.totalorder %v15019_v3, %v11019_v34  ;;  %vm1297_vm9 = vcmp.eq.s32.totalorder %v15019_v3, %v11044_v56  ;;  %vm2117_vm10 = vcmp.eq.s32.totalorder %v15019_v3, %v11105_v41 }
 0x399   : > { %v3637_v8 = vadd.f32 %v3381_v30, %v2835_v20  ;;  %v5983_v26 = vadd.f32 %v5727_v16, %v5177_v25  ;;  %v749_v43 = vsel %vm479_vm5, %v11112_v5, 0.0  ;;  %v1567_v47 = vsel %vm1297_vm9, %v11136_v2, 0.0  ;;  %v15020_v16 = vld [vmem:[#allocation11_spill] sm:$0xff] }
 0x39a   : > { %v2387_v31 = vsel %vm2117_vm10, %v11163_v7, 0.0  ;;  %v1823_v37 = vadd.f32 %v1567_v47, %v749_v43  ;;  %vm2919_vm3 = vcmp.eq.s32.totalorder %v15019_v3, %v11124_v51  ;;  %vm3725_vm6 = vcmp.eq.s32.totalorder %v15019_v3, %v11165_v53 }
 0x39b   : > { %v4443_v11 = vadd.f32 %v4187_v28, %v3637_v8  ;;  %v6785_v57 = vadd.f32 %v6529_v49, %v5983_v26  ;;  %v3189_v19 = vsel %vm2919_vm3, %v11169_v14, 0.0  ;;  %v3995_v4 = vsel %vm3725_vm6, %v11171_v9, 0.0 }
 0x39c   : > { %vm4527_vm13 = vcmp.eq.s32.totalorder %v15019_v3, %v11196_v18  ;;  %v2643_v63 = vadd.f32 %v2387_v31, %v1823_v37  ;;  %vm5333_vm8 = vcmp.eq.s32.totalorder %v15019_v3, %v11224_v32  ;;  %vm6135_vm11 = vcmp.eq.s32.totalorder %v15019_v3, %v11229_v45 }
 0x39d   : > { %v5245_v42 = vadd.f32 %v4989_v33, %v4443_v11  ;;  %v4797_v46 = vsel %vm4527_vm13, %v11198_v38, 0.0  ;;  %7084 = vmatpush.msra.mxu2 %v6785_v57  ;;  %v5603_v44 = vsel %vm5333_vm8, %v11235_v23, 0.0  ;;  %vm543_vm15 = vcmp.eq.s32.totalorder %v15020_v16, %v11019_v34 }
 0x39e   : > { %vm1361_vm4 = vcmp.eq.s32.totalorder %v15020_v16, %v11044_v56  ;;  %v3445_v54 = vadd.f32 %v3189_v19, %v2643_v63  ;;  %v6405_v61 = vsel %vm6135_vm11, %v11237_v1, 0.0  ;;  %v813_v58 = vsel %vm543_vm15, %v11112_v5, 0.0 }
 0x39f   : > { %v6051_v49 = vadd.f32 %v5795_v55, %v5245_v42  ;;  %v1631_v39 = vsel %vm1361_vm4, %v11136_v2, 0.0  ;;  %vm2181_vm14 = vcmp.eq.s32.totalorder %v15020_v16, %v11105_v41  ;;  %vm2983_vm0 = vcmp.eq.s32.totalorder %v15020_v16, %v11124_v51 }
 0x3a0   : > { %vm3789_vm2 = vcmp.eq.s32.totalorder %v15020_v16, %v11165_v53  ;;  %v4251_v48 = vadd.f32 %v3995_v4, %v3445_v54  ;;  %v1887_v59 = vadd.f32 %v1631_v39, %v813_v58  ;;  %v2451_v35 = vsel %vm2181_vm14, %v11163_v7, 0.0 }
 0x3a1   : > { %v6853_v10 = vadd.f32 %v6597_v52, %v6051_v49  ;;  %v3253_v30 = vsel %vm2983_vm0, %v11169_v14, 0.0  ;;  %v4059_v28 = vsel %vm3789_vm2, %v11171_v9, 0.0  ;;  %vm4591_vm7 = vcmp.eq.s32.totalorder %v15020_v16, %v11196_v18  ;;  %v15021_v52 = vld [vmem:[#allocation12_spill] sm:$0xff] }
 0x3a2   : > { %vm5397_vm12 = vcmp.eq.s32.totalorder %v15020_v16, %v11224_v32  ;;  %v5053_v20 = vadd.f32 %v4797_v46, %v4251_v48  ;;  %v2707_v25 = vadd.f32 %v2451_v35, %v1887_v59  ;;  %v4861_v33 = vsel %vm4591_vm7, %v11198_v38, 0.0 }
 0x3a3   : > { %7103 = vmatpush.msra.mxu3 %v6853_v10  ;;  %v5667_v55 = vsel %vm5397_vm12, %v11235_v23, 0.0  ;;  %vm6199_vm1 = vcmp.eq.s32.totalorder %v15020_v16, %v11229_v45  ;;  %vm599_vm5 = vcmp.eq.s32.totalorder %v15021_v52, %v11019_v34  ;;  %vm1417_vm9 = vcmp.eq.s32.totalorder %v15021_v52, %v11044_v56 }
 0x3a4   : > { %vm2237_vm10 = vcmp.eq.s32.totalorder %v15021_v52, %v11105_v41  ;;  %v5859_v8 = vadd.f32 %v5603_v44, %v5053_v20  ;;  %v3509_v26 = vadd.f32 %v3253_v30, %v2707_v25  ;;  %v6469_v43 = vsel %vm6199_vm1, %v11237_v1, 0.0 }
 0x3a5   : > { %v869_v47 = vsel %vm599_vm5, %v11112_v5, 0.0  ;;  %v1687_v31 = vsel %vm1417_vm9, %v11136_v2, 0.0  ;;  %v2507_v11 = vsel %vm2237_vm10, %v11163_v7, 0.0  ;;  %vm3039_vm3 = vcmp.eq.s32.totalorder %v15021_v52, %v11124_v51 }
 0x3a6   : > { %vm3845_vm6 = vcmp.eq.s32.totalorder %v15021_v52, %v11165_v53  ;;  %v6661_v37 = vadd.f32 %v6405_v61, %v5859_v8  ;;  %v4315_v57 = vadd.f32 %v4059_v28, %v3509_v26  ;;  %v1943_v19 = vadd.f32 %v1687_v31, %v869_v47  ;;  %v15022_v61 = vld [vmem:[#allocation13_spill] sm:$0xff]  ;;  %v15023_v31 = vld [vmem:[#allocation14_spill] sm:$0xff] }
 0x3a7   : > { %v3309_v4 = vsel %vm3039_vm3, %v11169_v14, 0.0  ;;  %v4115_v42 = vsel %vm3845_vm6, %v11171_v9, 0.0  ;;  %vm4647_vm13 = vcmp.eq.s32.totalorder %v15021_v52, %v11196_v18  ;;  %vm5453_vm8 = vcmp.eq.s32.totalorder %v15021_v52, %v11224_v32 }
 0x3a8   : > { %vm6255_vm11 = vcmp.eq.s32.totalorder %v15021_v52, %v11229_v45  ;;  %7043 = vmatpush.msra.mxu0 %v6661_v37  ;;  %v5117_v63 = vadd.f32 %v4861_v33, %v4315_v57  ;;  %v2763_v46 = vadd.f32 %v2507_v11, %v1943_v19  ;;  %v4917_v44 = vsel %vm4647_vm13, %v11198_v38, 0.0 }
 0x3a9   : > { %v5723_v49 = vsel %vm5453_vm8, %v11235_v23, 0.0  ;;  %v6525_v54 = vsel %vm6255_vm11, %v11237_v1, 0.0  ;;  %vm667_vm15 = vcmp.eq.s32.totalorder %v15022_v61, %v11019_v34  ;;  %vm1485_vm4 = vcmp.eq.s32.totalorder %v15022_v61, %v11044_v56 }
 0x3aa   : > { %vm2305_vm14 = vcmp.eq.s32.totalorder %v15022_v61, %v11105_v41  ;;  %v5923_v58 = vadd.f32 %v5667_v55, %v5117_v63  ;;  %v3565_v39 = vadd.f32 %v3309_v4, %v2763_v46  ;;  %v937_v10 = vsel %vm667_vm15, %v11112_v5, 0.0 }
 0x3ab   : > { %v1755_v48 = vsel %vm1485_vm4, %v11136_v2, 0.0  ;;  %v2575_v35 = vsel %vm2305_vm14, %v11163_v7, 0.0  ;;  %vm3107_vm0 = vcmp.eq.s32.totalorder %v15022_v61, %v11124_v51  ;;  %vm3913_vm2 = vcmp.eq.s32.totalorder %v15022_v61, %v11165_v53 }
 0x3ac   : > { %v2011_v59 = vadd.f32 %v1755_v48, %v937_v10  ;;  %v6725_v30 = vadd.f32 %v6469_v43, %v5923_v58  ;;  %v4371_v28 = vadd.f32 %v4115_v42, %v3565_v39  ;;  %v3377_v20 = vsel %vm3107_vm0, %v11169_v14, 0.0 }
 0x3ad   : > { %v4183_v25 = vsel %vm3913_vm2, %v11171_v9, 0.0  ;;  %vm4715_vm7 = vcmp.eq.s32.totalorder %v15022_v61, %v11196_v18  ;;  %vm5521_vm12 = vcmp.eq.s32.totalorder %v15022_v61, %v11224_v32  ;;  %vm6323_vm1 = vcmp.eq.s32.totalorder %v15022_v61, %v11229_v45 }
 0x3ae   : > { %v2831_v33 = vadd.f32 %v2575_v35, %v2011_v59  ;;  %7063 = vmatpush.msra.mxu1 %v6725_v30  ;;  %v5173_v55 = vadd.f32 %v4917_v44, %v4371_v28  ;;  %v4985_v8 = vsel %vm4715_vm7, %v11198_v38, 0.0  ;;  %v5791_v26 = vsel %vm5521_vm12, %v11235_v23, 0.0 }
 0x3af   : > { %v6593_v43 = vsel %vm6323_vm1, %v11237_v1, 0.0  ;;  %vm475_vm5 = vcmp.eq.s32.totalorder %v15023_v31, %v11019_v34  ;;  %vm1293_vm9 = vcmp.eq.s32.totalorder %v15023_v31, %v11044_v56  ;;  %vm2113_vm10 = vcmp.eq.s32.totalorder %v15023_v31, %v11105_v41 }
 0x3b0   : > { %v3633_v47 = vadd.f32 %v3377_v20, %v2831_v33  ;;  %v5979_v11 = vadd.f32 %v5723_v49, %v5173_v55  ;;  %v745_v37 = vsel %vm475_vm5, %v11112_v5, 0.0  ;;  %v1563_v57 = vsel %vm1293_vm9, %v11136_v2, 0.0 }
 0x3b1   : > { %v2383_v19 = vsel %vm2113_vm10, %v11163_v7, 0.0  ;;  %v1819_v42 = vadd.f32 %v1563_v57, %v745_v37  ;;  %vm2915_vm3 = vcmp.eq.s32.totalorder %v15023_v31, %v11124_v51  ;;  %vm3721_vm6 = vcmp.eq.s32.totalorder %v15023_v31, %v11165_v53  ;;  %v15025_v57 = vld [vmem:[#allocation16_spill] sm:$0xff] }
 0x3b2   : > { %v4439_v4 = vadd.f32 %v4183_v25, %v3633_v47  ;;  %v6781_v63 = vadd.f32 %v6525_v54, %v5979_v11  ;;  %v3185_v46 = vsel %vm2915_vm3, %v11169_v14, 0.0  ;;  %v3991_v44 = vsel %vm3721_vm6, %v11171_v9, 0.0  ;;  %v15024_v54 = vld [vmem:[#allocation15_spill] sm:$0xff] }
 0x3b3   : > { %vm4523_vm13 = vcmp.eq.s32.totalorder %v15023_v31, %v11196_v18  ;;  %v2639_v58 = vadd.f32 %v2383_v19, %v1819_v42  ;;  %vm5329_vm8 = vcmp.eq.s32.totalorder %v15023_v31, %v11224_v32  ;;  %vm6131_vm11 = vcmp.eq.s32.totalorder %v15023_v31, %v11229_v45 }
 0x3b4   : > { %v5241_v49 = vadd.f32 %v4985_v8, %v4439_v4  ;;  %v4793_v39 = vsel %vm4523_vm13, %v11198_v38, 0.0  ;;  %7085 = vmatpush.msra.mxu2 %v6781_v63  ;;  %v5599_v10 = vsel %vm5329_vm8, %v11235_v23, 0.0  ;;  %vm539_vm15 = vcmp.eq.s32.totalorder %v15024_v54, %v11019_v34 }
 0x3b5   : > { %vm1357_vm4 = vcmp.eq.s32.totalorder %v15024_v54, %v11044_v56  ;;  %v3441_v59 = vadd.f32 %v3185_v46, %v2639_v58  ;;  %v6401_v35 = vsel %vm6131_vm11, %v11237_v1, 0.0  ;;  %v809_v30 = vsel %vm539_vm15, %v11112_v5, 0.0 }
 0x3b6   : > { %v6047_v48 = vadd.f32 %v5791_v26, %v5241_v49  ;;  %v1627_v28 = vsel %vm1357_vm4, %v11136_v2, 0.0  ;;  %vm2177_vm14 = vcmp.eq.s32.totalorder %v15024_v54, %v11105_v41  ;;  %vm2979_vm0 = vcmp.eq.s32.totalorder %v15024_v54, %v11124_v51 }
 0x3b7   : > { %vm3785_vm2 = vcmp.eq.s32.totalorder %v15024_v54, %v11165_v53  ;;  %v4247_v25 = vadd.f32 %v3991_v44, %v3441_v59  ;;  %v1883_v33 = vadd.f32 %v1627_v28, %v809_v30  ;;  %v2447_v55 = vsel %vm2177_vm14, %v11163_v7, 0.0 }
 0x3b8   : > { %v6849_v20 = vadd.f32 %v6593_v43, %v6047_v48  ;;  %v3249_v8 = vsel %vm2979_vm0, %v11169_v14, 0.0  ;;  %v4055_v26 = vsel %vm3785_vm2, %v11171_v9, 0.0  ;;  %vm4587_vm7 = vcmp.eq.s32.totalorder %v15024_v54, %v11196_v18 }
 0x3b9   : > { %vm5393_vm12 = vcmp.eq.s32.totalorder %v15024_v54, %v11224_v32  ;;  %v5049_v47 = vadd.f32 %v4793_v39, %v4247_v25  ;;  %v2703_v11 = vadd.f32 %v2447_v55, %v1883_v33  ;;  %v4857_v37 = vsel %vm4587_vm7, %v11198_v38, 0.0  ;;  %v15026_v25 = vld [vmem:[#allocation17_spill] sm:$0xff] }
 0x3ba   : > { %7104 = vmatpush.msra.mxu3 %v6849_v20  ;;  %v5663_v43 = vsel %vm5393_vm12, %v11235_v23, 0.0  ;;  %vm6195_vm1 = vcmp.eq.s32.totalorder %v15024_v54, %v11229_v45  ;;  %vm595_vm5 = vcmp.eq.s32.totalorder %v15025_v57, %v11019_v34  ;;  %vm1413_vm9 = vcmp.eq.s32.totalorder %v15025_v57, %v11044_v56 }
 0x3bb   : > { %vm2233_vm10 = vcmp.eq.s32.totalorder %v15025_v57, %v11105_v41  ;;  %v5855_v19 = vadd.f32 %v5599_v10, %v5049_v47  ;;  %v3505_v4 = vadd.f32 %v3249_v8, %v2703_v11  ;;  %v6465_v42 = vsel %vm6195_vm1, %v11237_v1, 0.0 }
 0x3bc   : > { %v865_v63 = vsel %vm595_vm5, %v11112_v5, 0.0  ;;  %v1683_v46 = vsel %vm1413_vm9, %v11136_v2, 0.0  ;;  %v2503_v44 = vsel %vm2233_vm10, %v11163_v7, 0.0  ;;  %vm3035_vm3 = vcmp.eq.s32.totalorder %v15025_v57, %v11124_v51 }
 0x3bd   : > { %vm3841_vm6 = vcmp.eq.s32.totalorder %v15025_v57, %v11165_v53  ;;  %v6657_v49 = vadd.f32 %v6401_v35, %v5855_v19  ;;  %v4311_v58 = vadd.f32 %v4055_v26, %v3505_v4  ;;  %v1939_v39 = vadd.f32 %v1683_v46, %v865_v63 }
 0x3be   : > { %v3305_v10 = vsel %vm3035_vm3, %v11169_v14, 0.0  ;;  %v4111_v48 = vsel %vm3841_vm6, %v11171_v9, 0.0  ;;  %vm4643_vm13 = vcmp.eq.s32.totalorder %v15025_v57, %v11196_v18  ;;  %vm5449_vm8 = vcmp.eq.s32.totalorder %v15025_v57, %v11224_v32 }
 0x3bf   : > { %vm6251_vm11 = vcmp.eq.s32.totalorder %v15025_v57, %v11229_v45  ;;  %7044 = vmatpush.msra.mxu0 %v6657_v49  ;;  %v5113_v59 = vadd.f32 %v4857_v37, %v4311_v58  ;;  %v2759_v30 = vadd.f32 %v2503_v44, %v1939_v39  ;;  %v4913_v35 = vsel %vm4643_vm13, %v11198_v38, 0.0  ;;  %v15027_v39 = vld [vmem:[#allocation18_spill] sm:$0xff] }
 0x3c0   : > { %v5719_v28 = vsel %vm5449_vm8, %v11235_v23, 0.0  ;;  %v6521_v20 = vsel %vm6251_vm11, %v11237_v1, 0.0  ;;  %vm663_vm15 = vcmp.eq.s32.totalorder %v15026_v25, %v11019_v34  ;;  %vm1481_vm4 = vcmp.eq.s32.totalorder %v15026_v25, %v11044_v56 }
 0x3c1   : > { %vm2301_vm14 = vcmp.eq.s32.totalorder %v15026_v25, %v11105_v41  ;;  %v5919_v33 = vadd.f32 %v5663_v43, %v5113_v59  ;;  %v3561_v55 = vadd.f32 %v3305_v10, %v2759_v30  ;;  %v933_v8 = vsel %vm663_vm15, %v11112_v5, 0.0 }
 0x3c2   : > { %v1751_v26 = vsel %vm1481_vm4, %v11136_v2, 0.0  ;;  %v2571_v11 = vsel %vm2301_vm14, %v11163_v7, 0.0  ;;  %vm3103_vm0 = vcmp.eq.s32.totalorder %v15026_v25, %v11124_v51  ;;  %vm3909_vm2 = vcmp.eq.s32.totalorder %v15026_v25, %v11165_v53 }
 0x3c3   : > { %v2007_v47 = vadd.f32 %v1751_v26, %v933_v8  ;;  %v6721_v37 = vadd.f32 %v6465_v42, %v5919_v33  ;;  %v4367_v19 = vadd.f32 %v4111_v48, %v3561_v55  ;;  %v3373_v4 = vsel %vm3103_vm0, %v11169_v14, 0.0 }
 0x3c4   : > { %v4179_v43 = vsel %vm3909_vm2, %v11171_v9, 0.0  ;;  %vm4711_vm7 = vcmp.eq.s32.totalorder %v15026_v25, %v11196_v18  ;;  %vm5517_vm12 = vcmp.eq.s32.totalorder %v15026_v25, %v11224_v32  ;;  %vm6319_vm1 = vcmp.eq.s32.totalorder %v15026_v25, %v11229_v45 }
 0x3c5   : > { %v2827_v63 = vadd.f32 %v2571_v11, %v2007_v47  ;;  %7064 = vmatpush.msra.mxu1 %v6721_v37  ;;  %v5169_v46 = vadd.f32 %v4913_v35, %v4367_v19  ;;  %v4981_v44 = vsel %vm4711_vm7, %v11198_v38, 0.0  ;;  %v5787_v42 = vsel %vm5517_vm12, %v11235_v23, 0.0 }
 0x3c6   : > { %v6589_v49 = vsel %vm6319_vm1, %v11237_v1, 0.0  ;;  %vm471_vm5 = vcmp.eq.s32.totalorder %v15027_v39, %v11019_v34  ;;  %vm1289_vm9 = vcmp.eq.s32.totalorder %v15027_v39, %v11044_v56  ;;  %vm2109_vm10 = vcmp.eq.s32.totalorder %v15027_v39, %v11105_v41 }
 0x3c7   : > { %v3629_v58 = vadd.f32 %v3373_v4, %v2827_v63  ;;  %v5975_v10 = vadd.f32 %v5719_v28, %v5169_v46  ;;  %v741_v48 = vsel %vm471_vm5, %v11112_v5, 0.0  ;;  %v1559_v59 = vsel %vm1289_vm9, %v11136_v2, 0.0 }
 0x3c8   : > { %v2379_v30 = vsel %vm2109_vm10, %v11163_v7, 0.0  ;;  %v1815_v33 = vadd.f32 %v1559_v59, %v741_v48  ;;  %vm2911_vm3 = vcmp.eq.s32.totalorder %v15027_v39, %v11124_v51  ;;  %vm3717_vm6 = vcmp.eq.s32.totalorder %v15027_v39, %v11165_v53 }
 0x3c9   : > { %v4435_v35 = vadd.f32 %v4179_v43, %v3629_v58  ;;  %v6777_v55 = vadd.f32 %v6521_v20, %v5975_v10  ;;  %v3181_v8 = vsel %vm2911_vm3, %v11169_v14, 0.0  ;;  %v3987_v26 = vsel %vm3717_vm6, %v11171_v9, 0.0  ;;  %v15028_v20 = vld [vmem:[#allocation19_spill] sm:$0xff] }
 0x3ca   : > { %vm4519_vm13 = vcmp.eq.s32.totalorder %v15027_v39, %v11196_v18  ;;  %v2635_v47 = vadd.f32 %v2379_v30, %v1815_v33  ;;  %vm5325_vm8 = vcmp.eq.s32.totalorder %v15027_v39, %v11224_v32  ;;  %vm6127_vm11 = vcmp.eq.s32.totalorder %v15027_v39, %v11229_v45  ;;  %v15067_v39 = vld [vmem:[#allocation5_spill] sm:$0xff] }
 0x3cb   : > { %v5237_v28 = vadd.f32 %v4981_v44, %v4435_v35  ;;  %v4789_v11 = vsel %vm4519_vm13, %v11198_v38, 0.0  ;;  %7086 = vmatpush.msra.mxu2 %v6777_v55  ;;  %v5595_v37 = vsel %vm5325_vm8, %v11235_v23, 0.0  ;;  %vm535_vm15 = vcmp.eq.s32.totalorder %v15028_v20, %v11019_v34  ;;  %v15029_v55 = vld [vmem:[#allocation20_spill] sm:$0xff] }
 0x3cc   : > { %vm1353_vm4 = vcmp.eq.s32.totalorder %v15028_v20, %v11044_v56  ;;  %v3437_v4 = vadd.f32 %v3181_v8, %v2635_v47  ;;  %v6397_v43 = vsel %vm6127_vm11, %v11237_v1, 0.0  ;;  %v805_v63 = vsel %vm535_vm15, %v11112_v5, 0.0 }
 0x3cd   : > { %v6043_v19 = vadd.f32 %v5787_v42, %v5237_v28  ;;  %v1623_v46 = vsel %vm1353_vm4, %v11136_v2, 0.0  ;;  %vm2173_vm14 = vcmp.eq.s32.totalorder %v15028_v20, %v11105_v41  ;;  %vm2975_vm0 = vcmp.eq.s32.totalorder %v15028_v20, %v11124_v51 }
 0x3ce   : > { %vm3781_vm2 = vcmp.eq.s32.totalorder %v15028_v20, %v11165_v53  ;;  %v4243_v58 = vadd.f32 %v3987_v26, %v3437_v4  ;;  %v1879_v10 = vadd.f32 %v1623_v46, %v805_v63  ;;  %v2443_v42 = vsel %vm2173_vm14, %v11163_v7, 0.0 }
 0x3cf   : > { %v6845_v44 = vadd.f32 %v6589_v49, %v6043_v19  ;;  %v3245_v48 = vsel %vm2975_vm0, %v11169_v14, 0.0  ;;  %v4051_v59 = vsel %vm3781_vm2, %v11171_v9, 0.0  ;;  %vm4583_vm7 = vcmp.eq.s32.totalorder %v15028_v20, %v11196_v18 }
 0x3d0   : > { %vm5389_vm12 = vcmp.eq.s32.totalorder %v15028_v20, %v11224_v32  ;;  %v5045_v30 = vadd.f32 %v4789_v11, %v4243_v58  ;;  %v2699_v35 = vadd.f32 %v2443_v42, %v1879_v10  ;;  %v4853_v33 = vsel %vm4583_vm7, %v11198_v38, 0.0 }
 0x3d1   : > { %7105 = vmatpush.msra.mxu3 %v6845_v44  ;;  %v5659_v49 = vsel %vm5389_vm12, %v11235_v23, 0.0  ;;  %vm6191_vm1 = vcmp.eq.s32.totalorder %v15028_v20, %v11229_v45  ;;  %vm591_vm5 = vcmp.eq.s32.totalorder %v15029_v55, %v11019_v34  ;;  %vm1409_vm9 = vcmp.eq.s32.totalorder %v15029_v55, %v11044_v56 }
 0x3d2   : > { %vm2229_vm10 = vcmp.eq.s32.totalorder %v15029_v55, %v11105_v41  ;;  %v5851_v8 = vadd.f32 %v5595_v37, %v5045_v30  ;;  %v3501_v26 = vadd.f32 %v3245_v48, %v2699_v35  ;;  %v6461_v28 = vsel %vm6191_vm1, %v11237_v1, 0.0 }
 0x3d3   : > { %v861_v47 = vsel %vm591_vm5, %v11112_v5, 0.0  ;;  %v1679_v11 = vsel %vm1409_vm9, %v11136_v2, 0.0  ;;  %v2499_v19 = vsel %vm2229_vm10, %v11163_v7, 0.0  ;;  %vm3031_vm3 = vcmp.eq.s32.totalorder %v15029_v55, %v11124_v51 }
 0x3d4   : > { %vm3837_vm6 = vcmp.eq.s32.totalorder %v15029_v55, %v11165_v53  ;;  %v6653_v4 = vadd.f32 %v6397_v43, %v5851_v8  ;;  %v4307_v63 = vadd.f32 %v4051_v59, %v3501_v26  ;;  %v1935_v46 = vadd.f32 %v1679_v11, %v861_v47  ;;  %v15030_v59 = vld [vmem:[#allocation21_spill] sm:$0xff] }
 0x3d5   : > { %v3301_v37 = vsel %vm3031_vm3, %v11169_v14, 0.0  ;;  %v4107_v44 = vsel %vm3837_vm6, %v11171_v9, 0.0  ;;  %vm4639_vm13 = vcmp.eq.s32.totalorder %v15029_v55, %v11196_v18  ;;  %vm5445_vm8 = vcmp.eq.s32.totalorder %v15029_v55, %v11224_v32 }
 0x3d6   : > { %vm6247_vm11 = vcmp.eq.s32.totalorder %v15029_v55, %v11229_v45  ;;  %7045 = vmatpush.msra.mxu0 %v6653_v4  ;;  %v5109_v58 = vadd.f32 %v4853_v33, %v4307_v63  ;;  %v2755_v10 = vadd.f32 %v2499_v19, %v1935_v46  ;;  %v4909_v43 = vsel %vm4639_vm13, %v11198_v38, 0.0  ;;  %v15066_v55 = vld [vmem:[#allocation59_spill] sm:$0xff] }
 0x3d7   : > { %v5715_v42 = vsel %vm5445_vm8, %v11235_v23, 0.0  ;;  %v6517_v48 = vsel %vm6247_vm11, %v11237_v1, 0.0  ;;  %vm659_vm15 = vcmp.eq.s32.totalorder %v15030_v59, %v11019_v34  ;;  %vm1477_vm4 = vcmp.eq.s32.totalorder %v15030_v59, %v11044_v56 }
 0x3d8   : > { %vm2297_vm14 = vcmp.eq.s32.totalorder %v15030_v59, %v11105_v41  ;;  %v5915_v30 = vadd.f32 %v5659_v49, %v5109_v58  ;;  %v3557_v35 = vadd.f32 %v3301_v37, %v2755_v10  ;;  %v929_v33 = vsel %vm659_vm15, %v11112_v5, 0.0  ;;  %v15031_v10 = vld [vmem:[#allocation22_spill] sm:$0xff] }
 0x3d9   : > { %v1747_v8 = vsel %vm1477_vm4, %v11136_v2, 0.0  ;;  %v2567_v47 = vsel %vm2297_vm14, %v11163_v7, 0.0  ;;  %vm3099_vm0 = vcmp.eq.s32.totalorder %v15030_v59, %v11124_v51  ;;  %vm3905_vm2 = vcmp.eq.s32.totalorder %v15030_v59, %v11165_v53 }
 0x3da   : > { %v2003_v26 = vadd.f32 %v1747_v8, %v929_v33  ;;  %v6717_v11 = vadd.f32 %v6461_v28, %v5915_v30  ;;  %v4363_v19 = vadd.f32 %v4107_v44, %v3557_v35  ;;  %v3369_v4 = vsel %vm3099_vm0, %v11169_v14, 0.0 }
 0x3db   : > { %v4175_v49 = vsel %vm3905_vm2, %v11171_v9, 0.0  ;;  %vm4707_vm7 = vcmp.eq.s32.totalorder %v15030_v59, %v11196_v18  ;;  %vm5513_vm12 = vcmp.eq.s32.totalorder %v15030_v59, %v11224_v32  ;;  %vm6315_vm1 = vcmp.eq.s32.totalorder %v15030_v59, %v11229_v45 }
 0x3dc   : > { %v2823_v63 = vadd.f32 %v2567_v47, %v2003_v26  ;;  %7065 = vmatpush.msra.mxu1 %v6717_v11  ;;  %v5165_v46 = vadd.f32 %v4909_v43, %v4363_v19  ;;  %v4977_v37 = vsel %vm4707_vm7, %v11198_v38, 0.0  ;;  %v5783_v28 = vsel %vm5513_vm12, %v11235_v23, 0.0 }
 0x3dd   : > { %v6585_v44 = vsel %vm6315_vm1, %v11237_v1, 0.0  ;;  %vm467_vm5 = vcmp.eq.s32.totalorder %v15031_v10, %v11019_v34  ;;  %vm1285_vm9 = vcmp.eq.s32.totalorder %v15031_v10, %v11044_v56  ;;  %vm2105_vm10 = vcmp.eq.s32.totalorder %v15031_v10, %v11105_v41 }
 0x3de   : > { %v3625_v58 = vadd.f32 %v3369_v4, %v2823_v63  ;;  %v5971_v30 = vadd.f32 %v5715_v42, %v5165_v46  ;;  %v737_v35 = vsel %vm467_vm5, %v11112_v5, 0.0  ;;  %v1555_v43 = vsel %vm1285_vm9, %v11136_v2, 0.0 }
 0x3df   : > { %v2375_v33 = vsel %vm2105_vm10, %v11163_v7, 0.0  ;;  %v1811_v26 = vadd.f32 %v1555_v43, %v737_v35  ;;  %vm2907_vm3 = vcmp.eq.s32.totalorder %v15031_v10, %v11124_v51  ;;  %vm3713_vm6 = vcmp.eq.s32.totalorder %v15031_v10, %v11165_v53 }
 0x3e0   : > { %v4431_v8 = vadd.f32 %v4175_v49, %v3625_v58  ;;  %v6773_v47 = vadd.f32 %v6517_v48, %v5971_v30  ;;  %v3177_v11 = vsel %vm2907_vm3, %v11169_v14, 0.0  ;;  %v3983_v19 = vsel %vm3713_vm6, %v11171_v9, 0.0  ;;  %v15032_v48 = vld [vmem:[#allocation23_spill] sm:$0xff] }
 0x3e1   : > { %vm4515_vm13 = vcmp.eq.s32.totalorder %v15031_v10, %v11196_v18  ;;  %v2631_v4 = vadd.f32 %v2375_v33, %v1811_v26  ;;  %vm5321_vm8 = vcmp.eq.s32.totalorder %v15031_v10, %v11224_v32  ;;  %vm6123_vm11 = vcmp.eq.s32.totalorder %v15031_v10, %v11229_v45 }
 0x3e2   : > { %v5233_v42 = vadd.f32 %v4977_v37, %v4431_v8  ;;  %v4785_v63 = vsel %vm4515_vm13, %v11198_v38, 0.0  ;;  %7087 = vmatpush.msra.mxu2 %v6773_v47  ;;  %v5591_v49 = vsel %vm5321_vm8, %v11235_v23, 0.0  ;;  %vm531_vm15 = vcmp.eq.s32.totalorder %v15032_v48, %v11019_v34 }
 0x3e3   : > { %vm1349_vm4 = vcmp.eq.s32.totalorder %v15032_v48, %v11044_v56  ;;  %v3433_v37 = vadd.f32 %v3177_v11, %v2631_v4  ;;  %v6393_v58 = vsel %vm6123_vm11, %v11237_v1, 0.0  ;;  %v801_v30 = vsel %vm531_vm15, %v11112_v5, 0.0 }
 0x3e4   : > { %v6039_v46 = vadd.f32 %v5783_v28, %v5233_v42  ;;  %v1619_v35 = vsel %vm1349_vm4, %v11136_v2, 0.0  ;;  %vm2169_vm14 = vcmp.eq.s32.totalorder %v15032_v48, %v11105_v41  ;;  %vm2971_vm0 = vcmp.eq.s32.totalorder %v15032_v48, %v11124_v51 }
 0x3e5   : > { %vm3777_vm2 = vcmp.eq.s32.totalorder %v15032_v48, %v11165_v53  ;;  %v4239_v33 = vadd.f32 %v3983_v19, %v3433_v37  ;;  %v1875_v8 = vadd.f32 %v1619_v35, %v801_v30  ;;  %v2439_v28 = vsel %vm2169_vm14, %v11163_v7, 0.0  ;;  %v15033_v19 = vld [vmem:[#allocation24_spill] sm:$0xff] }
 0x3e6   : > { %v6841_v43 = vadd.f32 %v6585_v44, %v6039_v46  ;;  %v3241_v26 = vsel %vm2971_vm0, %v11169_v14, 0.0  ;;  %v4047_v47 = vsel %vm3777_vm2, %v11171_v9, 0.0  ;;  %vm4579_vm7 = vcmp.eq.s32.totalorder %v15032_v48, %v11196_v18 }
 0x3e7   : > { %vm5385_vm12 = vcmp.eq.s32.totalorder %v15032_v48, %v11224_v32  ;;  %v5041_v11 = vadd.f32 %v4785_v63, %v4239_v33  ;;  %v2695_v42 = vadd.f32 %v2439_v28, %v1875_v8  ;;  %v4849_v4 = vsel %vm4579_vm7, %v11198_v38, 0.0 }
 0x3e8   : > { %7106 = vmatpush.msra.mxu3 %v6841_v43  ;;  %v5655_v44 = vsel %vm5385_vm12, %v11235_v23, 0.0  ;;  %vm6187_vm1 = vcmp.eq.s32.totalorder %v15032_v48, %v11229_v45  ;;  %vm587_vm5 = vcmp.eq.s32.totalorder %v15033_v19, %v11019_v34  ;;  %vm1405_vm9 = vcmp.eq.s32.totalorder %v15033_v19, %v11044_v56 }
 0x3e9   : > { %vm2225_vm10 = vcmp.eq.s32.totalorder %v15033_v19, %v11105_v41  ;;  %v5847_v46 = vadd.f32 %v5591_v49, %v5041_v11  ;;  %v3497_v37 = vadd.f32 %v3241_v26, %v2695_v42  ;;  %v6457_v63 = vsel %vm6187_vm1, %v11237_v1, 0.0 }
 0x3ea   : > { %v857_v30 = vsel %vm587_vm5, %v11112_v5, 0.0  ;;  %v1675_v35 = vsel %vm1405_vm9, %v11136_v2, 0.0  ;;  %v2495_v43 = vsel %vm2225_vm10, %v11163_v7, 0.0  ;;  %vm3027_vm3 = vcmp.eq.s32.totalorder %v15033_v19, %v11124_v51 }
 0x3eb   : > { %vm3833_vm6 = vcmp.eq.s32.totalorder %v15033_v19, %v11165_v53  ;;  %v6649_v33 = vadd.f32 %v6393_v58, %v5847_v46  ;;  %v4303_v8 = vadd.f32 %v4047_v47, %v3497_v37  ;;  %v1931_v28 = vadd.f32 %v1675_v35, %v857_v30  ;;  %v15034_v37 = vld [vmem:[#allocation25_spill] sm:$0xff] }
 0x3ec   : > { %v3297_v49 = vsel %vm3027_vm3, %v11169_v14, 0.0  ;;  %v4103_v26 = vsel %vm3833_vm6, %v11171_v9, 0.0  ;;  %vm4635_vm13 = vcmp.eq.s32.totalorder %v15033_v19, %v11196_v18  ;;  %vm5441_vm8 = vcmp.eq.s32.totalorder %v15033_v19, %v11224_v32 }
 0x3ed   : > { %vm6243_vm11 = vcmp.eq.s32.totalorder %v15033_v19, %v11229_v45  ;;  %7046 = vmatpush.msra.mxu0 %v6649_v33  ;;  %v5105_v11 = vadd.f32 %v4849_v4, %v4303_v8  ;;  %v2751_v42 = vadd.f32 %v2495_v43, %v1931_v28  ;;  %v4905_v58 = vsel %vm4635_vm13, %v11198_v38, 0.0 }
 0x3ee   : > { %v5711_v47 = vsel %vm5441_vm8, %v11235_v23, 0.0  ;;  %v6513_v46 = vsel %vm6243_vm11, %v11237_v1, 0.0  ;;  %vm655_vm15 = vcmp.eq.s32.totalorder %v15034_v37, %v11019_v34  ;;  %vm1473_vm4 = vcmp.eq.s32.totalorder %v15034_v37, %v11044_v56 }
 0x3ef   : > { %vm2293_vm14 = vcmp.eq.s32.totalorder %v15034_v37, %v11105_v41  ;;  %v5911_v30 = vadd.f32 %v5655_v44, %v5105_v11  ;;  %v3553_v35 = vadd.f32 %v3297_v49, %v2751_v42  ;;  %v925_v4 = vsel %vm655_vm15, %v11112_v5, 0.0 }
 0x3f0   : > { %v1743_v43 = vsel %vm1473_vm4, %v11136_v2, 0.0  ;;  %v2563_v8 = vsel %vm2293_vm14, %v11163_v7, 0.0  ;;  %vm3095_vm0 = vcmp.eq.s32.totalorder %v15034_v37, %v11124_v51  ;;  %vm3901_vm2 = vcmp.eq.s32.totalorder %v15034_v37, %v11165_v53 }
 0x3f1   : > { %v1999_v33 = vadd.f32 %v1743_v43, %v925_v4  ;;  %v6713_v28 = vadd.f32 %v6457_v63, %v5911_v30  ;;  %v4359_v19 = vadd.f32 %v4103_v26, %v3553_v35  ;;  %v3365_v48 = vsel %vm3095_vm0, %v11169_v14, 0.0  ;;  %v15035_v35 = vld [vmem:[#allocation26_spill] sm:$0xff] }
 0x3f2   : > { %v4171_v44 = vsel %vm3901_vm2, %v11171_v9, 0.0  ;;  %vm4703_vm7 = vcmp.eq.s32.totalorder %v15034_v37, %v11196_v18  ;;  %vm5509_vm12 = vcmp.eq.s32.totalorder %v15034_v37, %v11224_v32  ;;  %vm6311_vm1 = vcmp.eq.s32.totalorder %v15034_v37, %v11229_v45 }
 0x3f3   : > { %v2819_v49 = vadd.f32 %v2563_v8, %v1999_v33  ;;  %7066 = vmatpush.msra.mxu1 %v6713_v28  ;;  %v5161_v11 = vadd.f32 %v4905_v58, %v4359_v19  ;;  %v4973_v42 = vsel %vm4703_vm7, %v11198_v38, 0.0  ;;  %v5779_v63 = vsel %vm5509_vm12, %v11235_v23, 0.0 }
 0x3f4   : > { %v6581_v26 = vsel %vm6311_vm1, %v11237_v1, 0.0  ;;  %vm463_vm5 = vcmp.eq.s32.totalorder %v15035_v35, %v11019_v34  ;;  %vm1281_vm9 = vcmp.eq.s32.totalorder %v15035_v35, %v11044_v56  ;;  %vm2101_vm10 = vcmp.eq.s32.totalorder %v15035_v35, %v11105_v41 }
 0x3f5   : > { %v3621_v30 = vadd.f32 %v3365_v48, %v2819_v49  ;;  %v5967_v4 = vadd.f32 %v5711_v47, %v5161_v11  ;;  %v733_v43 = vsel %vm463_vm5, %v11112_v5, 0.0  ;;  %v1551_v19 = vsel %vm1281_vm9, %v11136_v2, 0.0 }
 0x3f6   : > { %v2371_v58 = vsel %vm2101_vm10, %v11163_v7, 0.0  ;;  %v1807_v8 = vadd.f32 %v1551_v19, %v733_v43  ;;  %vm2903_vm3 = vcmp.eq.s32.totalorder %v15035_v35, %v11124_v51  ;;  %vm3709_vm6 = vcmp.eq.s32.totalorder %v15035_v35, %v11165_v53 }
 0x3f7   : > { %v4427_v33 = vadd.f32 %v4171_v44, %v3621_v30  ;;  %v6769_v48 = vadd.f32 %v6513_v46, %v5967_v4  ;;  %v3173_v28 = vsel %vm2903_vm3, %v11169_v14, 0.0  ;;  %v3979_v49 = vsel %vm3709_vm6, %v11171_v9, 0.0  ;;  %v15036_v46 = vld [vmem:[#allocation27_spill] sm:$0xff] }
 0x3f8   : > { %vm4511_vm13 = vcmp.eq.s32.totalorder %v15035_v35, %v11196_v18  ;;  %v2627_v11 = vadd.f32 %v2371_v58, %v1807_v8  ;;  %vm5317_vm8 = vcmp.eq.s32.totalorder %v15035_v35, %v11224_v32  ;;  %vm6119_vm11 = vcmp.eq.s32.totalorder %v15035_v35, %v11229_v45 }
 0x3f9   : > { %v5229_v47 = vadd.f32 %v4973_v42, %v4427_v33  ;;  %v4781_v37 = vsel %vm4511_vm13, %v11198_v38, 0.0  ;;  %7088 = vmatpush.msra.mxu2 %v6769_v48  ;;  %v5587_v44 = vsel %vm5317_vm8, %v11235_v23, 0.0  ;;  %vm527_vm15 = vcmp.eq.s32.totalorder %v15036_v46, %v11019_v34 }
 0x3fa   : > { %vm1345_vm4 = vcmp.eq.s32.totalorder %v15036_v46, %v11044_v56  ;;  %v3429_v42 = vadd.f32 %v3173_v28, %v2627_v11  ;;  %v6389_v4 = vsel %vm6119_vm11, %v11237_v1, 0.0  ;;  %v797_v43 = vsel %vm527_vm15, %v11112_v5, 0.0 }
 0x3fb   : > { %v6035_v30 = vadd.f32 %v5779_v63, %v5229_v47  ;;  %v1615_v19 = vsel %vm1345_vm4, %v11136_v2, 0.0  ;;  %vm2165_vm14 = vcmp.eq.s32.totalorder %v15036_v46, %v11105_v41  ;;  %vm2967_vm0 = vcmp.eq.s32.totalorder %v15036_v46, %v11124_v51 }
 0x3fc   : > { %vm3773_vm2 = vcmp.eq.s32.totalorder %v15036_v46, %v11165_v53  ;;  %v4235_v33 = vadd.f32 %v3979_v49, %v3429_v42  ;;  %v1871_v8 = vadd.f32 %v1615_v19, %v797_v43  ;;  %v2435_v63 = vsel %vm2165_vm14, %v11163_v7, 0.0  ;;  %v15037_v49 = vld [vmem:[#allocation28_spill] sm:$0xff] }
 0x3fd   : > { %v6837_v58 = vadd.f32 %v6581_v26, %v6035_v30  ;;  %v3237_v48 = vsel %vm2967_vm0, %v11169_v14, 0.0  ;;  %v4043_v28 = vsel %vm3773_vm2, %v11171_v9, 0.0  ;;  %vm4575_vm7 = vcmp.eq.s32.totalorder %v15036_v46, %v11196_v18 }
 0x3fe   : > { %vm5381_vm12 = vcmp.eq.s32.totalorder %v15036_v46, %v11224_v32  ;;  %v5037_v47 = vadd.f32 %v4781_v37, %v4235_v33  ;;  %v2691_v11 = vadd.f32 %v2435_v63, %v1871_v8  ;;  %v4845_v35 = vsel %vm4575_vm7, %v11198_v38, 0.0 }
 0x3ff   : > { %7107 = vmatpush.msra.mxu3 %v6837_v58  ;;  %v5651_v26 = vsel %vm5381_vm12, %v11235_v23, 0.0  ;;  %vm6183_vm1 = vcmp.eq.s32.totalorder %v15036_v46, %v11229_v45  ;;  %vm583_vm5 = vcmp.eq.s32.totalorder %v15037_v49, %v11019_v34  ;;  %vm1401_vm9 = vcmp.eq.s32.totalorder %v15037_v49, %v11044_v56 }
 0x400   : > { %vm2221_vm10 = vcmp.eq.s32.totalorder %v15037_v49, %v11105_v41  ;;  %v5843_v30 = vadd.f32 %v5587_v44, %v5037_v47  ;;  %v3493_v42 = vadd.f32 %v3237_v48, %v2691_v11  ;;  %v6453_v37 = vsel %vm6183_vm1, %v11237_v1, 0.0 }
 0x401   : > { %v853_v43 = vsel %vm583_vm5, %v11112_v5, 0.0  ;;  %v1671_v19 = vsel %vm1401_vm9, %v11136_v2, 0.0  ;;  %v2491_v58 = vsel %vm2221_vm10, %v11163_v7, 0.0  ;;  %vm3023_vm3 = vcmp.eq.s32.totalorder %v15037_v49, %v11124_v51 }
 0x402   : > { %vm3829_vm6 = vcmp.eq.s32.totalorder %v15037_v49, %v11165_v53  ;;  %v6645_v33 = vadd.f32 %v6389_v4, %v5843_v30  ;;  %v4299_v8 = vadd.f32 %v4043_v28, %v3493_v42  ;;  %v1927_v63 = vadd.f32 %v1671_v19, %v853_v43  ;;  %v15038_v42 = vld [vmem:[#allocation29_spill] sm:$0xff] }
 0x403   : > { %v3293_v44 = vsel %vm3023_vm3, %v11169_v14, 0.0  ;;  %v4099_v48 = vsel %vm3829_vm6, %v11171_v9, 0.0  ;;  %vm4631_vm13 = vcmp.eq.s32.totalorder %v15037_v49, %v11196_v18  ;;  %vm5437_vm8 = vcmp.eq.s32.totalorder %v15037_v49, %v11224_v32 }
 0x404   : > { %vm6239_vm11 = vcmp.eq.s32.totalorder %v15037_v49, %v11229_v45  ;;  %7047 = vmatpush.msra.mxu0 %v6645_v33  ;;  %v5101_v47 = vadd.f32 %v4845_v35, %v4299_v8  ;;  %v2747_v11 = vadd.f32 %v2491_v58, %v1927_v63  ;;  %v4901_v4 = vsel %vm4631_vm13, %v11198_v38, 0.0 }
 0x405   : > { %v5707_v28 = vsel %vm5437_vm8, %v11235_v23, 0.0  ;;  %v6509_v30 = vsel %vm6239_vm11, %v11237_v1, 0.0  ;;  %vm651_vm15 = vcmp.eq.s32.totalorder %v15038_v42, %v11019_v34  ;;  %vm1469_vm4 = vcmp.eq.s32.totalorder %v15038_v42, %v11044_v56 }
 0x406   : > { %vm2289_vm14 = vcmp.eq.s32.totalorder %v15038_v42, %v11105_v41  ;;  %v5907_v43 = vadd.f32 %v5651_v26, %v5101_v47  ;;  %v3549_v19 = vadd.f32 %v3293_v44, %v2747_v11  ;;  %v921_v35 = vsel %vm651_vm15, %v11112_v5, 0.0 }
 0x407   : > { %v1739_v58 = vsel %vm1469_vm4, %v11136_v2, 0.0  ;;  %v2559_v8 = vsel %vm2289_vm14, %v11163_v7, 0.0  ;;  %vm3091_vm0 = vcmp.eq.s32.totalorder %v15038_v42, %v11124_v51  ;;  %vm3897_vm2 = vcmp.eq.s32.totalorder %v15038_v42, %v11165_v53 }
 0x408   : > { %v1995_v33 = vadd.f32 %v1739_v58, %v921_v35  ;;  %v6709_v63 = vadd.f32 %v6453_v37, %v5907_v43  ;;  %v4355_v49 = vadd.f32 %v4099_v48, %v3549_v19  ;;  %v3361_v46 = vsel %vm3091_vm0, %v11169_v14, 0.0  ;;  %v15039_v19 = vld [vmem:[#allocation30_spill] sm:$0xff] }
 0x409   : > { %v4167_v26 = vsel %vm3897_vm2, %v11171_v9, 0.0  ;;  %vm4699_vm7 = vcmp.eq.s32.totalorder %v15038_v42, %v11196_v18  ;;  %vm5505_vm12 = vcmp.eq.s32.totalorder %v15038_v42, %v11224_v32  ;;  %vm6307_vm1 = vcmp.eq.s32.totalorder %v15038_v42, %v11229_v45 }
 0x40a   : > { %v2815_v44 = vadd.f32 %v2559_v8, %v1995_v33  ;;  %7067 = vmatpush.msra.mxu1 %v6709_v63  ;;  %v5157_v47 = vadd.f32 %v4901_v4, %v4355_v49  ;;  %v4969_v11 = vsel %vm4699_vm7, %v11198_v38, 0.0  ;;  %v5775_v37 = vsel %vm5505_vm12, %v11235_v23, 0.0 }
 0x40b   : > { %v6577_v48 = vsel %vm6307_vm1, %v11237_v1, 0.0  ;;  %vm459_vm5 = vcmp.eq.s32.totalorder %v15039_v19, %v11019_v34  ;;  %vm1277_vm9 = vcmp.eq.s32.totalorder %v15039_v19, %v11044_v56  ;;  %vm2097_vm10 = vcmp.eq.s32.totalorder %v15039_v19, %v11105_v41 }
 0x40c   : > { %v3617_v43 = vadd.f32 %v3361_v46, %v2815_v44  ;;  %v5963_v35 = vadd.f32 %v5707_v28, %v5157_v47  ;;  %v729_v58 = vsel %vm459_vm5, %v11112_v5, 0.0  ;;  %v1547_v49 = vsel %vm1277_vm9, %v11136_v2, 0.0 }
 0x40d   : > { %v2367_v4 = vsel %vm2097_vm10, %v11163_v7, 0.0  ;;  %v1803_v8 = vadd.f32 %v1547_v49, %v729_v58  ;;  %vm2899_vm3 = vcmp.eq.s32.totalorder %v15039_v19, %v11124_v51  ;;  %vm3705_vm6 = vcmp.eq.s32.totalorder %v15039_v19, %v11165_v53 }
 0x40e   : > { %v4423_v33 = vadd.f32 %v4167_v26, %v3617_v43  ;;  %v6765_v46 = vadd.f32 %v6509_v30, %v5963_v35  ;;  %v3169_v63 = vsel %vm2899_vm3, %v11169_v14, 0.0  ;;  %v3975_v44 = vsel %vm3705_vm6, %v11171_v9, 0.0  ;;  %v15040_v30 = vld [vmem:[#allocation31_spill] sm:$0xff] }
 0x40f   : > { %vm4507_vm13 = vcmp.eq.s32.totalorder %v15039_v19, %v11196_v18  ;;  %v2623_v47 = vadd.f32 %v2367_v4, %v1803_v8  ;;  %vm5313_vm8 = vcmp.eq.s32.totalorder %v15039_v19, %v11224_v32  ;;  %vm6115_vm11 = vcmp.eq.s32.totalorder %v15039_v19, %v11229_v45 }
 0x410   : > { %v5225_v28 = vadd.f32 %v4969_v11, %v4423_v33  ;;  %v4777_v42 = vsel %vm4507_vm13, %v11198_v38, 0.0  ;;  %7089 = vmatpush.msra.mxu2 %v6765_v46  ;;  %v5583_v26 = vsel %vm5313_vm8, %v11235_v23, 0.0  ;;  %vm523_vm15 = vcmp.eq.s32.totalorder %v15040_v30, %v11019_v34 }
 0x411   : > { %vm1341_vm4 = vcmp.eq.s32.totalorder %v15040_v30, %v11044_v56  ;;  %v3425_v11 = vadd.f32 %v3169_v63, %v2623_v47  ;;  %v6385_v35 = vsel %vm6115_vm11, %v11237_v1, 0.0  ;;  %v793_v58 = vsel %vm523_vm15, %v11112_v5, 0.0 }
 0x412   : > { %v6031_v43 = vadd.f32 %v5775_v37, %v5225_v28  ;;  %v1611_v49 = vsel %vm1341_vm4, %v11136_v2, 0.0  ;;  %vm2161_vm14 = vcmp.eq.s32.totalorder %v15040_v30, %v11105_v41  ;;  %vm2963_vm0 = vcmp.eq.s32.totalorder %v15040_v30, %v11124_v51 }
 0x413   : > { %vm3769_vm2 = vcmp.eq.s32.totalorder %v15040_v30, %v11165_v53  ;;  %v4231_v33 = vadd.f32 %v3975_v44, %v3425_v11  ;;  %v1867_v8 = vadd.f32 %v1611_v49, %v793_v58  ;;  %v2431_v37 = vsel %vm2161_vm14, %v11163_v7, 0.0  ;;  %v15041_v44 = vld [vmem:[#allocation32_spill] sm:$0xff] }
 0x414   : > { %v6833_v4 = vadd.f32 %v6577_v48, %v6031_v43  ;;  %v3233_v46 = vsel %vm2963_vm0, %v11169_v14, 0.0  ;;  %v4039_v63 = vsel %vm3769_vm2, %v11171_v9, 0.0  ;;  %vm4571_vm7 = vcmp.eq.s32.totalorder %v15040_v30, %v11196_v18 }
 0x415   : > { %vm5377_vm12 = vcmp.eq.s32.totalorder %v15040_v30, %v11224_v32  ;;  %v5033_v28 = vadd.f32 %v4777_v42, %v4231_v33  ;;  %v2687_v47 = vadd.f32 %v2431_v37, %v1867_v8  ;;  %v4841_v19 = vsel %vm4571_vm7, %v11198_v38, 0.0 }
 0x416   : > { %7108 = vmatpush.msra.mxu3 %v6833_v4  ;;  %v5647_v48 = vsel %vm5377_vm12, %v11235_v23, 0.0  ;;  %vm6179_vm1 = vcmp.eq.s32.totalorder %v15040_v30, %v11229_v45  ;;  %vm579_vm5 = vcmp.eq.s32.totalorder %v15041_v44, %v11019_v34  ;;  %vm1397_vm9 = vcmp.eq.s32.totalorder %v15041_v44, %v11044_v56 }
 0x417   : > { %vm2217_vm10 = vcmp.eq.s32.totalorder %v15041_v44, %v11105_v41  ;;  %v5839_v43 = vadd.f32 %v5583_v26, %v5033_v28  ;;  %v3489_v11 = vadd.f32 %v3233_v46, %v2687_v47  ;;  %v6449_v42 = vsel %vm6179_vm1, %v11237_v1, 0.0 }
 0x418   : > { %v849_v58 = vsel %vm579_vm5, %v11112_v5, 0.0  ;;  %v1667_v49 = vsel %vm1397_vm9, %v11136_v2, 0.0  ;;  %v2487_v4 = vsel %vm2217_vm10, %v11163_v7, 0.0  ;;  %vm3019_vm3 = vcmp.eq.s32.totalorder %v15041_v44, %v11124_v51 }
 0x419   : > { %vm3825_vm6 = vcmp.eq.s32.totalorder %v15041_v44, %v11165_v53  ;;  %v6641_v33 = vadd.f32 %v6385_v35, %v5839_v43  ;;  %v4295_v8 = vadd.f32 %v4039_v63, %v3489_v11  ;;  %v1923_v37 = vadd.f32 %v1667_v49, %v849_v58  ;;  %v15042_v11 = vld [vmem:[#allocation33_spill] sm:$0xff] }
 0x41a   : > { %v3289_v26 = vsel %vm3019_vm3, %v11169_v14, 0.0  ;;  %v4095_v46 = vsel %vm3825_vm6, %v11171_v9, 0.0  ;;  %vm4627_vm13 = vcmp.eq.s32.totalorder %v15041_v44, %v11196_v18  ;;  %vm5433_vm8 = vcmp.eq.s32.totalorder %v15041_v44, %v11224_v32 }
 0x41b   : > { %vm6235_vm11 = vcmp.eq.s32.totalorder %v15041_v44, %v11229_v45  ;;  %7048 = vmatpush.msra.mxu0 %v6641_v33  ;;  %v5097_v28 = vadd.f32 %v4841_v19, %v4295_v8  ;;  %v2743_v47 = vadd.f32 %v2487_v4, %v1923_v37  ;;  %v4897_v35 = vsel %vm4627_vm13, %v11198_v38, 0.0 }
 0x41c   : > { %v5703_v63 = vsel %vm5433_vm8, %v11235_v23, 0.0  ;;  %v6505_v43 = vsel %vm6235_vm11, %v11237_v1, 0.0  ;;  %vm647_vm15 = vcmp.eq.s32.totalorder %v15042_v11, %v11019_v34  ;;  %vm1465_vm4 = vcmp.eq.s32.totalorder %v15042_v11, %v11044_v56 }
 0x41d   : > { %vm2285_vm14 = vcmp.eq.s32.totalorder %v15042_v11, %v11105_v41  ;;  %v5903_v58 = vadd.f32 %v5647_v48, %v5097_v28  ;;  %v3545_v49 = vadd.f32 %v3289_v26, %v2743_v47  ;;  %v917_v19 = vsel %vm647_vm15, %v11112_v5, 0.0 }
 0x41e   : > { %v1735_v4 = vsel %vm1465_vm4, %v11136_v2, 0.0  ;;  %v2555_v8 = vsel %vm2285_vm14, %v11163_v7, 0.0  ;;  %vm3087_vm0 = vcmp.eq.s32.totalorder %v15042_v11, %v11124_v51  ;;  %vm3893_vm2 = vcmp.eq.s32.totalorder %v15042_v11, %v11165_v53 }
 0x41f   : > { %v1991_v33 = vadd.f32 %v1735_v4, %v917_v19  ;;  %v6705_v37 = vadd.f32 %v6449_v42, %v5903_v58  ;;  %v4351_v44 = vadd.f32 %v4095_v46, %v3545_v49  ;;  %v3357_v30 = vsel %vm3087_vm0, %v11169_v14, 0.0  ;;  %v15043_v49 = vld [vmem:[#allocation34_spill] sm:$0xff] }
 0x420   : > { %v4163_v48 = vsel %vm3893_vm2, %v11171_v9, 0.0  ;;  %vm4695_vm7 = vcmp.eq.s32.totalorder %v15042_v11, %v11196_v18  ;;  %vm5501_vm12 = vcmp.eq.s32.totalorder %v15042_v11, %v11224_v32  ;;  %vm6303_vm1 = vcmp.eq.s32.totalorder %v15042_v11, %v11229_v45 }
 0x421   : > { %v2811_v26 = vadd.f32 %v2555_v8, %v1991_v33  ;;  %7068 = vmatpush.msra.mxu1 %v6705_v37  ;;  %v5153_v28 = vadd.f32 %v4897_v35, %v4351_v44  ;;  %v4965_v47 = vsel %vm4695_vm7, %v11198_v38, 0.0  ;;  %v5771_v42 = vsel %vm5501_vm12, %v11235_v23, 0.0 }
 0x422   : > { %v6573_v46 = vsel %vm6303_vm1, %v11237_v1, 0.0  ;;  %vm455_vm5 = vcmp.eq.s32.totalorder %v15043_v49, %v11019_v34  ;;  %vm1273_vm9 = vcmp.eq.s32.totalorder %v15043_v49, %v11044_v56  ;;  %vm2093_vm10 = vcmp.eq.s32.totalorder %v15043_v49, %v11105_v41 }
 0x423   : > { %v3613_v58 = vadd.f32 %v3357_v30, %v2811_v26  ;;  %v5959_v19 = vadd.f32 %v5703_v63, %v5153_v28  ;;  %v725_v4 = vsel %vm455_vm5, %v11112_v5, 0.0  ;;  %v1543_v44 = vsel %vm1273_vm9, %v11136_v2, 0.0 }
 0x424   : > { %v2363_v35 = vsel %vm2093_vm10, %v11163_v7, 0.0  ;;  %v1799_v8 = vadd.f32 %v1543_v44, %v725_v4  ;;  %vm2895_vm3 = vcmp.eq.s32.totalorder %v15043_v49, %v11124_v51  ;;  %vm3701_vm6 = vcmp.eq.s32.totalorder %v15043_v49, %v11165_v53 }
 0x425   : > { %v4419_v33 = vadd.f32 %v4163_v48, %v3613_v58  ;;  %v6761_v30 = vadd.f32 %v6505_v43, %v5959_v19  ;;  %v3165_v37 = vsel %vm2895_vm3, %v11169_v14, 0.0  ;;  %v3971_v26 = vsel %vm3701_vm6, %v11171_v9, 0.0  ;;  %v15044_v43 = vld [vmem:[#allocation35_spill] sm:$0xff] }
 0x426   : > { %vm4503_vm13 = vcmp.eq.s32.totalorder %v15043_v49, %v11196_v18  ;;  %v2619_v28 = vadd.f32 %v2363_v35, %v1799_v8  ;;  %vm5309_vm8 = vcmp.eq.s32.totalorder %v15043_v49, %v11224_v32  ;;  %vm6111_vm11 = vcmp.eq.s32.totalorder %v15043_v49, %v11229_v45 }
 0x427   : > { %v5221_v63 = vadd.f32 %v4965_v47, %v4419_v33  ;;  %v4773_v11 = vsel %vm4503_vm13, %v11198_v38, 0.0  ;;  %7090 = vmatpush.msra.mxu2 %v6761_v30  ;;  %v5579_v48 = vsel %vm5309_vm8, %v11235_v23, 0.0  ;;  %vm519_vm15 = vcmp.eq.s32.totalorder %v15044_v43, %v11019_v34 }
 0x428   : > { %vm1337_vm4 = vcmp.eq.s32.totalorder %v15044_v43, %v11044_v56  ;;  %v3421_v47 = vadd.f32 %v3165_v37, %v2619_v28  ;;  %v6381_v19 = vsel %vm6111_vm11, %v11237_v1, 0.0  ;;  %v789_v4 = vsel %vm519_vm15, %v11112_v5, 0.0 }
 0x429   : > { %v6027_v58 = vadd.f32 %v5771_v42, %v5221_v63  ;;  %v1607_v44 = vsel %vm1337_vm4, %v11136_v2, 0.0  ;;  %vm2157_vm14 = vcmp.eq.s32.totalorder %v15044_v43, %v11105_v41  ;;  %vm2959_vm0 = vcmp.eq.s32.totalorder %v15044_v43, %v11124_v51 }
 0x42a   : > { %vm3765_vm2 = vcmp.eq.s32.totalorder %v15044_v43, %v11165_v53  ;;  %v4227_v33 = vadd.f32 %v3971_v26, %v3421_v47  ;;  %v1863_v8 = vadd.f32 %v1607_v44, %v789_v4  ;;  %v2427_v42 = vsel %vm2157_vm14, %v11163_v7, 0.0  ;;  %v15045_v26 = vld [vmem:[#allocation36_spill] sm:$0xff] }
 0x42b   : > { %v6829_v35 = vadd.f32 %v6573_v46, %v6027_v58  ;;  %v3229_v30 = vsel %vm2959_vm0, %v11169_v14, 0.0  ;;  %v4035_v37 = vsel %vm3765_vm2, %v11171_v9, 0.0  ;;  %vm4567_vm7 = vcmp.eq.s32.totalorder %v15044_v43, %v11196_v18 }
 0x42c   : > { %vm5373_vm12 = vcmp.eq.s32.totalorder %v15044_v43, %v11224_v32  ;;  %v5029_v63 = vadd.f32 %v4773_v11, %v4227_v33  ;;  %v2683_v28 = vadd.f32 %v2427_v42, %v1863_v8  ;;  %v4837_v49 = vsel %vm4567_vm7, %v11198_v38, 0.0 }
 0x42d   : > { %7109 = vmatpush.msra.mxu3 %v6829_v35  ;;  %v5643_v46 = vsel %vm5373_vm12, %v11235_v23, 0.0  ;;  %vm6175_vm1 = vcmp.eq.s32.totalorder %v15044_v43, %v11229_v45  ;;  %vm575_vm5 = vcmp.eq.s32.totalorder %v15045_v26, %v11019_v34  ;;  %vm1393_vm9 = vcmp.eq.s32.totalorder %v15045_v26, %v11044_v56 }
 0x42e   : > { %vm2213_vm10 = vcmp.eq.s32.totalorder %v15045_v26, %v11105_v41  ;;  %v5835_v58 = vadd.f32 %v5579_v48, %v5029_v63  ;;  %v3485_v47 = vadd.f32 %v3229_v30, %v2683_v28  ;;  %v6445_v11 = vsel %vm6175_vm1, %v11237_v1, 0.0 }
 0x42f   : > { %v845_v4 = vsel %vm575_vm5, %v11112_v5, 0.0  ;;  %v1663_v44 = vsel %vm1393_vm9, %v11136_v2, 0.0  ;;  %v2483_v35 = vsel %vm2213_vm10, %v11163_v7, 0.0  ;;  %vm3015_vm3 = vcmp.eq.s32.totalorder %v15045_v26, %v11124_v51 }
 0x430   : > { %vm3821_vm6 = vcmp.eq.s32.totalorder %v15045_v26, %v11165_v53  ;;  %v6637_v33 = vadd.f32 %v6381_v19, %v5835_v58  ;;  %v4291_v8 = vadd.f32 %v4035_v37, %v3485_v47  ;;  %v1919_v42 = vadd.f32 %v1663_v44, %v845_v4  ;;  %v15046_v47 = vld [vmem:[#allocation37_spill] sm:$0xff] }
 0x431   : > { %v3285_v48 = vsel %vm3015_vm3, %v11169_v14, 0.0  ;;  %v4091_v30 = vsel %vm3821_vm6, %v11171_v9, 0.0  ;;  %vm4623_vm13 = vcmp.eq.s32.totalorder %v15045_v26, %v11196_v18  ;;  %vm5429_vm8 = vcmp.eq.s32.totalorder %v15045_v26, %v11224_v32 }
 0x432   : > { %vm6231_vm11 = vcmp.eq.s32.totalorder %v15045_v26, %v11229_v45  ;;  %7049 = vmatpush.msra.mxu0 %v6637_v33  ;;  %v5093_v63 = vadd.f32 %v4837_v49, %v4291_v8  ;;  %v2739_v28 = vadd.f32 %v2483_v35, %v1919_v42  ;;  %v4893_v19 = vsel %vm4623_vm13, %v11198_v38, 0.0 }
 0x433   : > { %v5699_v37 = vsel %vm5429_vm8, %v11235_v23, 0.0  ;;  %v6501_v58 = vsel %vm6231_vm11, %v11237_v1, 0.0  ;;  %vm643_vm15 = vcmp.eq.s32.totalorder %v15046_v47, %v11019_v34  ;;  %vm1461_vm4 = vcmp.eq.s32.totalorder %v15046_v47, %v11044_v56 }
 0x434   : > { %vm2281_vm14 = vcmp.eq.s32.totalorder %v15046_v47, %v11105_v41  ;;  %v5899_v4 = vadd.f32 %v5643_v46, %v5093_v63  ;;  %v3541_v44 = vadd.f32 %v3285_v48, %v2739_v28  ;;  %v913_v49 = vsel %vm643_vm15, %v11112_v5, 0.0 }
 0x435   : > { %v1731_v35 = vsel %vm1461_vm4, %v11136_v2, 0.0  ;;  %v2551_v8 = vsel %vm2281_vm14, %v11163_v7, 0.0  ;;  %vm3083_vm0 = vcmp.eq.s32.totalorder %v15046_v47, %v11124_v51  ;;  %vm3889_vm2 = vcmp.eq.s32.totalorder %v15046_v47, %v11165_v53 }
 0x436   : > { %v1987_v33 = vadd.f32 %v1731_v35, %v913_v49  ;;  %v6701_v42 = vadd.f32 %v6445_v11, %v5899_v4  ;;  %v4347_v26 = vadd.f32 %v4091_v30, %v3541_v44  ;;  %v3353_v43 = vsel %vm3083_vm0, %v11169_v14, 0.0  ;;  %v15047_v44 = vld [vmem:[#allocation38_spill] sm:$0xff] }
 0x437   : > { %v4159_v46 = vsel %vm3889_vm2, %v11171_v9, 0.0  ;;  %vm4691_vm7 = vcmp.eq.s32.totalorder %v15046_v47, %v11196_v18  ;;  %vm5497_vm12 = vcmp.eq.s32.totalorder %v15046_v47, %v11224_v32  ;;  %vm6299_vm1 = vcmp.eq.s32.totalorder %v15046_v47, %v11229_v45 }
 0x438   : > { %v2807_v48 = vadd.f32 %v2551_v8, %v1987_v33  ;;  %7069 = vmatpush.msra.mxu1 %v6701_v42  ;;  %v5149_v63 = vadd.f32 %v4893_v19, %v4347_v26  ;;  %v4961_v28 = vsel %vm4691_vm7, %v11198_v38, 0.0  ;;  %v5767_v11 = vsel %vm5497_vm12, %v11235_v23, 0.0 }
 0x439   : > { %v6569_v30 = vsel %vm6299_vm1, %v11237_v1, 0.0  ;;  %vm451_vm5 = vcmp.eq.s32.totalorder %v15047_v44, %v11019_v34  ;;  %vm1269_vm9 = vcmp.eq.s32.totalorder %v15047_v44, %v11044_v56  ;;  %vm2089_vm10 = vcmp.eq.s32.totalorder %v15047_v44, %v11105_v41 }
 0x43a   : > { %v3609_v4 = vadd.f32 %v3353_v43, %v2807_v48  ;;  %v5955_v49 = vadd.f32 %v5699_v37, %v5149_v63  ;;  %v721_v35 = vsel %vm451_vm5, %v11112_v5, 0.0  ;;  %v1539_v26 = vsel %vm1269_vm9, %v11136_v2, 0.0 }
 0x43b   : > { %v2359_v19 = vsel %vm2089_vm10, %v11163_v7, 0.0  ;;  %v1795_v8 = vadd.f32 %v1539_v26, %v721_v35  ;;  %vm2891_vm3 = vcmp.eq.s32.totalorder %v15047_v44, %v11124_v51  ;;  %vm3697_vm6 = vcmp.eq.s32.totalorder %v15047_v44, %v11165_v53 }
 0x43c   : > { %v4415_v33 = vadd.f32 %v4159_v46, %v3609_v4  ;;  %v6757_v43 = vadd.f32 %v6501_v58, %v5955_v49  ;;  %v3161_v42 = vsel %vm2891_vm3, %v11169_v14, 0.0  ;;  %v3967_v48 = vsel %vm3697_vm6, %v11171_v9, 0.0  ;;  %v15048_v58 = vld [vmem:[#allocation39_spill] sm:$0xff] }
 0x43d   : > { %vm4499_vm13 = vcmp.eq.s32.totalorder %v15047_v44, %v11196_v18  ;;  %v2615_v63 = vadd.f32 %v2359_v19, %v1795_v8  ;;  %vm5305_vm8 = vcmp.eq.s32.totalorder %v15047_v44, %v11224_v32  ;;  %vm6107_vm11 = vcmp.eq.s32.totalorder %v15047_v44, %v11229_v45 }
 0x43e   : > { %v5217_v37 = vadd.f32 %v4961_v28, %v4415_v33  ;;  %v4769_v47 = vsel %vm4499_vm13, %v11198_v38, 0.0  ;;  %7091 = vmatpush.msra.mxu2 %v6757_v43  ;;  %v5575_v46 = vsel %vm5305_vm8, %v11235_v23, 0.0  ;;  %vm515_vm15 = vcmp.eq.s32.totalorder %v15048_v58, %v11019_v34 }
 0x43f   : > { %vm1333_vm4 = vcmp.eq.s32.totalorder %v15048_v58, %v11044_v56  ;;  %v3417_v28 = vadd.f32 %v3161_v42, %v2615_v63  ;;  %v6377_v49 = vsel %vm6107_vm11, %v11237_v1, 0.0  ;;  %v785_v35 = vsel %vm515_vm15, %v11112_v5, 0.0 }
 0x440   : > { %v6023_v4 = vadd.f32 %v5767_v11, %v5217_v37  ;;  %v1603_v26 = vsel %vm1333_vm4, %v11136_v2, 0.0  ;;  %vm2153_vm14 = vcmp.eq.s32.totalorder %v15048_v58, %v11105_v41  ;;  %vm2955_vm0 = vcmp.eq.s32.totalorder %v15048_v58, %v11124_v51 }
 0x441   : > { %vm3761_vm2 = vcmp.eq.s32.totalorder %v15048_v58, %v11165_v53  ;;  %v4223_v33 = vadd.f32 %v3967_v48, %v3417_v28  ;;  %v1859_v8 = vadd.f32 %v1603_v26, %v785_v35  ;;  %v2423_v11 = vsel %vm2153_vm14, %v11163_v7, 0.0  ;;  %v15049_v48 = vld [vmem:[#allocation40_spill] sm:$0xff] }
 0x442   : > { %v6825_v19 = vadd.f32 %v6569_v30, %v6023_v4  ;;  %v3225_v43 = vsel %vm2955_vm0, %v11169_v14, 0.0  ;;  %v4031_v42 = vsel %vm3761_vm2, %v11171_v9, 0.0  ;;  %vm4563_vm7 = vcmp.eq.s32.totalorder %v15048_v58, %v11196_v18 }
 0x443   : > { %vm5369_vm12 = vcmp.eq.s32.totalorder %v15048_v58, %v11224_v32  ;;  %v5025_v37 = vadd.f32 %v4769_v47, %v4223_v33  ;;  %v2679_v63 = vadd.f32 %v2423_v11, %v1859_v8  ;;  %v4833_v44 = vsel %vm4563_vm7, %v11198_v38, 0.0 }
 0x444   : > { %7110 = vmatpush.msra.mxu3 %v6825_v19  ;;  %v5639_v30 = vsel %vm5369_vm12, %v11235_v23, 0.0  ;;  %vm6171_vm1 = vcmp.eq.s32.totalorder %v15048_v58, %v11229_v45  ;;  %vm571_vm5 = vcmp.eq.s32.totalorder %v15049_v48, %v11019_v34  ;;  %vm1389_vm9 = vcmp.eq.s32.totalorder %v15049_v48, %v11044_v56 }
 0x445   : > { %vm2209_vm10 = vcmp.eq.s32.totalorder %v15049_v48, %v11105_v41  ;;  %v5831_v4 = vadd.f32 %v5575_v46, %v5025_v37  ;;  %v3481_v28 = vadd.f32 %v3225_v43, %v2679_v63  ;;  %v6441_v47 = vsel %vm6171_vm1, %v11237_v1, 0.0 }
 0x446   : > { %v841_v35 = vsel %vm571_vm5, %v11112_v5, 0.0  ;;  %v1659_v26 = vsel %vm1389_vm9, %v11136_v2, 0.0  ;;  %v2479_v19 = vsel %vm2209_vm10, %v11163_v7, 0.0  ;;  %vm3011_vm3 = vcmp.eq.s32.totalorder %v15049_v48, %v11124_v51 }
 0x447   : > { %vm3817_vm6 = vcmp.eq.s32.totalorder %v15049_v48, %v11165_v53  ;;  %v6633_v33 = vadd.f32 %v6377_v49, %v5831_v4  ;;  %v4287_v8 = vadd.f32 %v4031_v42, %v3481_v28  ;;  %v1915_v11 = vadd.f32 %v1659_v26, %v841_v35  ;;  %v15050_v28 = vld [vmem:[#allocation41_spill] sm:$0xff] }
 0x448   : > { %v3281_v46 = vsel %vm3011_vm3, %v11169_v14, 0.0  ;;  %v4087_v43 = vsel %vm3817_vm6, %v11171_v9, 0.0  ;;  %vm4619_vm13 = vcmp.eq.s32.totalorder %v15049_v48, %v11196_v18  ;;  %vm5425_vm8 = vcmp.eq.s32.totalorder %v15049_v48, %v11224_v32 }
 0x449   : > { %vm6227_vm11 = vcmp.eq.s32.totalorder %v15049_v48, %v11229_v45  ;;  %7050 = vmatpush.msra.mxu0 %v6633_v33  ;;  %v5089_v37 = vadd.f32 %v4833_v44, %v4287_v8  ;;  %v2735_v63 = vadd.f32 %v2479_v19, %v1915_v11  ;;  %v4889_v49 = vsel %vm4619_vm13, %v11198_v38, 0.0 }
 0x44a   : > { %v5695_v42 = vsel %vm5425_vm8, %v11235_v23, 0.0  ;;  %v6497_v4 = vsel %vm6227_vm11, %v11237_v1, 0.0  ;;  %vm639_vm15 = vcmp.eq.s32.totalorder %v15050_v28, %v11019_v34  ;;  %vm1457_vm4 = vcmp.eq.s32.totalorder %v15050_v28, %v11044_v56 }
 0x44b   : > { %vm2277_vm14 = vcmp.eq.s32.totalorder %v15050_v28, %v11105_v41  ;;  %v5895_v35 = vadd.f32 %v5639_v30, %v5089_v37  ;;  %v3537_v26 = vadd.f32 %v3281_v46, %v2735_v63  ;;  %v909_v44 = vsel %vm639_vm15, %v11112_v5, 0.0 }
 0x44c   : > { %v1727_v19 = vsel %vm1457_vm4, %v11136_v2, 0.0  ;;  %v2547_v8 = vsel %vm2277_vm14, %v11163_v7, 0.0  ;;  %vm3079_vm0 = vcmp.eq.s32.totalorder %v15050_v28, %v11124_v51  ;;  %vm3885_vm2 = vcmp.eq.s32.totalorder %v15050_v28, %v11165_v53 }
 0x44d   : > { %v1983_v33 = vadd.f32 %v1727_v19, %v909_v44  ;;  %v6697_v11 = vadd.f32 %v6441_v47, %v5895_v35  ;;  %v4343_v48 = vadd.f32 %v4087_v43, %v3537_v26  ;;  %v3349_v58 = vsel %vm3079_vm0, %v11169_v14, 0.0  ;;  %v15051_v26 = vld [vmem:[#allocation42_spill] sm:$0xff] }
 0x44e   : > { %v4155_v30 = vsel %vm3885_vm2, %v11171_v9, 0.0  ;;  %vm4687_vm7 = vcmp.eq.s32.totalorder %v15050_v28, %v11196_v18  ;;  %vm5493_vm12 = vcmp.eq.s32.totalorder %v15050_v28, %v11224_v32  ;;  %vm6295_vm1 = vcmp.eq.s32.totalorder %v15050_v28, %v11229_v45 }
 0x44f   : > { %v2803_v46 = vadd.f32 %v2547_v8, %v1983_v33  ;;  %7070 = vmatpush.msra.mxu1 %v6697_v11  ;;  %v5145_v37 = vadd.f32 %v4889_v49, %v4343_v48  ;;  %v4957_v63 = vsel %vm4687_vm7, %v11198_v38, 0.0  ;;  %v5763_v47 = vsel %vm5493_vm12, %v11235_v23, 0.0 }
 0x450   : > { %v6565_v43 = vsel %vm6295_vm1, %v11237_v1, 0.0  ;;  %vm447_vm5 = vcmp.eq.s32.totalorder %v15051_v26, %v11019_v34  ;;  %vm1265_vm9 = vcmp.eq.s32.totalorder %v15051_v26, %v11044_v56  ;;  %vm2085_vm10 = vcmp.eq.s32.totalorder %v15051_v26, %v11105_v41 }
 0x451   : > { %v3605_v35 = vadd.f32 %v3349_v58, %v2803_v46  ;;  %v5951_v44 = vadd.f32 %v5695_v42, %v5145_v37  ;;  %v717_v19 = vsel %vm447_vm5, %v11112_v5, 0.0  ;;  %v1535_v48 = vsel %vm1265_vm9, %v11136_v2, 0.0 }
 0x452   : > { %v2355_v49 = vsel %vm2085_vm10, %v11163_v7, 0.0  ;;  %v1791_v8 = vadd.f32 %v1535_v48, %v717_v19  ;;  %vm2887_vm3 = vcmp.eq.s32.totalorder %v15051_v26, %v11124_v51  ;;  %vm3693_vm6 = vcmp.eq.s32.totalorder %v15051_v26, %v11165_v53 }
 0x453   : > { %v4411_v33 = vadd.f32 %v4155_v30, %v3605_v35  ;;  %v6753_v58 = vadd.f32 %v6497_v4, %v5951_v44  ;;  %v3157_v11 = vsel %vm2887_vm3, %v11169_v14, 0.0  ;;  %v3963_v46 = vsel %vm3693_vm6, %v11171_v9, 0.0  ;;  %v15052_v4 = vld [vmem:[#allocation43_spill] sm:$0xff] }
 0x454   : > { %vm4495_vm13 = vcmp.eq.s32.totalorder %v15051_v26, %v11196_v18  ;;  %v2611_v37 = vadd.f32 %v2355_v49, %v1791_v8  ;;  %vm5301_vm8 = vcmp.eq.s32.totalorder %v15051_v26, %v11224_v32  ;;  %vm6103_vm11 = vcmp.eq.s32.totalorder %v15051_v26, %v11229_v45 }
 0x455   : > { %v5213_v42 = vadd.f32 %v4957_v63, %v4411_v33  ;;  %v4765_v28 = vsel %vm4495_vm13, %v11198_v38, 0.0  ;;  %7092 = vmatpush.msra.mxu2 %v6753_v58  ;;  %v5571_v30 = vsel %vm5301_vm8, %v11235_v23, 0.0  ;;  %vm511_vm15 = vcmp.eq.s32.totalorder %v15052_v4, %v11019_v34 }
 0x456   : > { %vm1329_vm4 = vcmp.eq.s32.totalorder %v15052_v4, %v11044_v56  ;;  %v3413_v63 = vadd.f32 %v3157_v11, %v2611_v37  ;;  %v6373_v44 = vsel %vm6103_vm11, %v11237_v1, 0.0  ;;  %v781_v19 = vsel %vm511_vm15, %v11112_v5, 0.0 }
 0x457   : > { %v6019_v35 = vadd.f32 %v5763_v47, %v5213_v42  ;;  %v1599_v48 = vsel %vm1329_vm4, %v11136_v2, 0.0  ;;  %vm2149_vm14 = vcmp.eq.s32.totalorder %v15052_v4, %v11105_v41  ;;  %vm2951_vm0 = vcmp.eq.s32.totalorder %v15052_v4, %v11124_v51 }
 0x458   : > { %vm3757_vm2 = vcmp.eq.s32.totalorder %v15052_v4, %v11165_v53  ;;  %v4219_v33 = vadd.f32 %v3963_v46, %v3413_v63  ;;  %v1855_v8 = vadd.f32 %v1599_v48, %v781_v19  ;;  %v2419_v47 = vsel %vm2149_vm14, %v11163_v7, 0.0  ;;  %v15053_v46 = vld [vmem:[#allocation44_spill] sm:$0xff] }
 0x459   : > { %v6821_v49 = vadd.f32 %v6565_v43, %v6019_v35  ;;  %v3221_v58 = vsel %vm2951_vm0, %v11169_v14, 0.0  ;;  %v4027_v11 = vsel %vm3757_vm2, %v11171_v9, 0.0  ;;  %vm4559_vm7 = vcmp.eq.s32.totalorder %v15052_v4, %v11196_v18 }
 0x45a   : > { %vm5365_vm12 = vcmp.eq.s32.totalorder %v15052_v4, %v11224_v32  ;;  %v5021_v42 = vadd.f32 %v4765_v28, %v4219_v33  ;;  %v2675_v37 = vadd.f32 %v2419_v47, %v1855_v8  ;;  %v4829_v26 = vsel %vm4559_vm7, %v11198_v38, 0.0 }
 0x45b   : > { %7111 = vmatpush.msra.mxu3 %v6821_v49  ;;  %v5635_v43 = vsel %vm5365_vm12, %v11235_v23, 0.0  ;;  %vm6167_vm1 = vcmp.eq.s32.totalorder %v15052_v4, %v11229_v45  ;;  %vm567_vm5 = vcmp.eq.s32.totalorder %v15053_v46, %v11019_v34  ;;  %vm1385_vm9 = vcmp.eq.s32.totalorder %v15053_v46, %v11044_v56 }
 0x45c   : > { %vm2205_vm10 = vcmp.eq.s32.totalorder %v15053_v46, %v11105_v41  ;;  %v5827_v35 = vadd.f32 %v5571_v30, %v5021_v42  ;;  %v3477_v63 = vadd.f32 %v3221_v58, %v2675_v37  ;;  %v6437_v28 = vsel %vm6167_vm1, %v11237_v1, 0.0 }
 0x45d   : > { %v837_v19 = vsel %vm567_vm5, %v11112_v5, 0.0  ;;  %v1655_v48 = vsel %vm1385_vm9, %v11136_v2, 0.0  ;;  %v2475_v49 = vsel %vm2205_vm10, %v11163_v7, 0.0  ;;  %vm3007_vm3 = vcmp.eq.s32.totalorder %v15053_v46, %v11124_v51 }
 0x45e   : > { %vm3813_vm6 = vcmp.eq.s32.totalorder %v15053_v46, %v11165_v53  ;;  %v6629_v33 = vadd.f32 %v6373_v44, %v5827_v35  ;;  %v4283_v8 = vadd.f32 %v4027_v11, %v3477_v63  ;;  %v1911_v47 = vadd.f32 %v1655_v48, %v837_v19  ;;  %v15054_v63 = vld [vmem:[#allocation45_spill] sm:$0xff] }
 0x45f   : > { %v3277_v30 = vsel %vm3007_vm3, %v11169_v14, 0.0  ;;  %v4083_v58 = vsel %vm3813_vm6, %v11171_v9, 0.0  ;;  %vm4615_vm13 = vcmp.eq.s32.totalorder %v15053_v46, %v11196_v18  ;;  %vm5421_vm8 = vcmp.eq.s32.totalorder %v15053_v46, %v11224_v32 }
 0x460   : > { %vm6223_vm11 = vcmp.eq.s32.totalorder %v15053_v46, %v11229_v45  ;;  %7051 = vmatpush.msra.mxu0 %v6629_v33  ;;  %v5085_v42 = vadd.f32 %v4829_v26, %v4283_v8  ;;  %v2731_v37 = vadd.f32 %v2475_v49, %v1911_v47  ;;  %v4885_v44 = vsel %vm4615_vm13, %v11198_v38, 0.0 }
 0x461   : > { %v5691_v11 = vsel %vm5421_vm8, %v11235_v23, 0.0  ;;  %v6493_v35 = vsel %vm6223_vm11, %v11237_v1, 0.0  ;;  %vm635_vm15 = vcmp.eq.s32.totalorder %v15054_v63, %v11019_v34  ;;  %vm1453_vm4 = vcmp.eq.s32.totalorder %v15054_v63, %v11044_v56 }
 0x462   : > { %vm2273_vm14 = vcmp.eq.s32.totalorder %v15054_v63, %v11105_v41  ;;  %v5891_v19 = vadd.f32 %v5635_v43, %v5085_v42  ;;  %v3533_v48 = vadd.f32 %v3277_v30, %v2731_v37  ;;  %v905_v26 = vsel %vm635_vm15, %v11112_v5, 0.0 }
 0x463   : > { %v1723_v49 = vsel %vm1453_vm4, %v11136_v2, 0.0  ;;  %v2543_v8 = vsel %vm2273_vm14, %v11163_v7, 0.0  ;;  %vm3075_vm0 = vcmp.eq.s32.totalorder %v15054_v63, %v11124_v51  ;;  %vm3881_vm2 = vcmp.eq.s32.totalorder %v15054_v63, %v11165_v53 }
 0x464   : > { %v1979_v33 = vadd.f32 %v1723_v49, %v905_v26  ;;  %v6693_v47 = vadd.f32 %v6437_v28, %v5891_v19  ;;  %v4339_v46 = vadd.f32 %v4083_v58, %v3533_v48  ;;  %v3345_v4 = vsel %vm3075_vm0, %v11169_v14, 0.0  ;;  %v15055_v48 = vld [vmem:[#allocation46_spill] sm:$0xff] }
 0x465   : > { %v4151_v43 = vsel %vm3881_vm2, %v11171_v9, 0.0  ;;  %vm4683_vm7 = vcmp.eq.s32.totalorder %v15054_v63, %v11196_v18  ;;  %vm5489_vm12 = vcmp.eq.s32.totalorder %v15054_v63, %v11224_v32  ;;  %vm6291_vm1 = vcmp.eq.s32.totalorder %v15054_v63, %v11229_v45 }
 0x466   : > { %v2799_v30 = vadd.f32 %v2543_v8, %v1979_v33  ;;  %7071 = vmatpush.msra.mxu1 %v6693_v47  ;;  %v5141_v42 = vadd.f32 %v4885_v44, %v4339_v46  ;;  %v4953_v37 = vsel %vm4683_vm7, %v11198_v38, 0.0  ;;  %v5759_v28 = vsel %vm5489_vm12, %v11235_v23, 0.0 }
 0x467   : > { %v6561_v58 = vsel %vm6291_vm1, %v11237_v1, 0.0  ;;  %vm443_vm5 = vcmp.eq.s32.totalorder %v15055_v48, %v11019_v34  ;;  %vm1261_vm9 = vcmp.eq.s32.totalorder %v15055_v48, %v11044_v56  ;;  %vm2081_vm10 = vcmp.eq.s32.totalorder %v15055_v48, %v11105_v41 }
 0x468   : > { %v3601_v19 = vadd.f32 %v3345_v4, %v2799_v30  ;;  %v5947_v26 = vadd.f32 %v5691_v11, %v5141_v42  ;;  %v713_v49 = vsel %vm443_vm5, %v11112_v5, 0.0  ;;  %v1531_v46 = vsel %vm1261_vm9, %v11136_v2, 0.0 }
 0x469   : > { %v2351_v44 = vsel %vm2081_vm10, %v11163_v7, 0.0  ;;  %v1787_v8 = vadd.f32 %v1531_v46, %v713_v49  ;;  %vm2883_vm3 = vcmp.eq.s32.totalorder %v15055_v48, %v11124_v51  ;;  %vm3689_vm6 = vcmp.eq.s32.totalorder %v15055_v48, %v11165_v53 }
 0x46a   : > { %v4407_v33 = vadd.f32 %v4151_v43, %v3601_v19  ;;  %v6749_v4 = vadd.f32 %v6493_v35, %v5947_v26  ;;  %v3153_v47 = vsel %vm2883_vm3, %v11169_v14, 0.0  ;;  %v3959_v30 = vsel %vm3689_vm6, %v11171_v9, 0.0  ;;  %v15056_v35 = vld [vmem:[#allocation47_spill] sm:$0xff] }
 0x46b   : > { %vm4491_vm13 = vcmp.eq.s32.totalorder %v15055_v48, %v11196_v18  ;;  %v2607_v42 = vadd.f32 %v2351_v44, %v1787_v8  ;;  %vm5297_vm8 = vcmp.eq.s32.totalorder %v15055_v48, %v11224_v32  ;;  %vm6099_vm11 = vcmp.eq.s32.totalorder %v15055_v48, %v11229_v45 }
 0x46c   : > { %v5209_v11 = vadd.f32 %v4953_v37, %v4407_v33  ;;  %v4761_v63 = vsel %vm4491_vm13, %v11198_v38, 0.0  ;;  %7093 = vmatpush.msra.mxu2 %v6749_v4  ;;  %v5567_v43 = vsel %vm5297_vm8, %v11235_v23, 0.0  ;;  %vm507_vm15 = vcmp.eq.s32.totalorder %v15056_v35, %v11019_v34 }
 0x46d   : > { %vm1325_vm4 = vcmp.eq.s32.totalorder %v15056_v35, %v11044_v56  ;;  %v3409_v37 = vadd.f32 %v3153_v47, %v2607_v42  ;;  %v6369_v26 = vsel %vm6099_vm11, %v11237_v1, 0.0  ;;  %v777_v49 = vsel %vm507_vm15, %v11112_v5, 0.0 }
 0x46e   : > { %v6015_v19 = vadd.f32 %v5759_v28, %v5209_v11  ;;  %v1595_v46 = vsel %vm1325_vm4, %v11136_v2, 0.0  ;;  %vm2145_vm14 = vcmp.eq.s32.totalorder %v15056_v35, %v11105_v41  ;;  %vm2947_vm0 = vcmp.eq.s32.totalorder %v15056_v35, %v11124_v51 }
 0x46f   : > { %vm3753_vm2 = vcmp.eq.s32.totalorder %v15056_v35, %v11165_v53  ;;  %v4215_v33 = vadd.f32 %v3959_v30, %v3409_v37  ;;  %v1851_v8 = vadd.f32 %v1595_v46, %v777_v49  ;;  %v2415_v28 = vsel %vm2145_vm14, %v11163_v7, 0.0  ;;  %v15057_v30 = vld [vmem:[#allocation48_spill] sm:$0xff] }
 0x470   : > { %v6817_v44 = vadd.f32 %v6561_v58, %v6015_v19  ;;  %v3217_v4 = vsel %vm2947_vm0, %v11169_v14, 0.0  ;;  %v4023_v47 = vsel %vm3753_vm2, %v11171_v9, 0.0  ;;  %vm4555_vm7 = vcmp.eq.s32.totalorder %v15056_v35, %v11196_v18 }
 0x471   : > { %vm5361_vm12 = vcmp.eq.s32.totalorder %v15056_v35, %v11224_v32  ;;  %v5017_v11 = vadd.f32 %v4761_v63, %v4215_v33  ;;  %v2671_v42 = vadd.f32 %v2415_v28, %v1851_v8  ;;  %v4825_v48 = vsel %vm4555_vm7, %v11198_v38, 0.0 }
 0x472   : > { %7112 = vmatpush.msra.mxu3 %v6817_v44  ;;  %v5631_v58 = vsel %vm5361_vm12, %v11235_v23, 0.0  ;;  %vm6163_vm1 = vcmp.eq.s32.totalorder %v15056_v35, %v11229_v45  ;;  %vm563_vm5 = vcmp.eq.s32.totalorder %v15057_v30, %v11019_v34  ;;  %vm1381_vm9 = vcmp.eq.s32.totalorder %v15057_v30, %v11044_v56 }
 0x473   : > { %vm2201_vm10 = vcmp.eq.s32.totalorder %v15057_v30, %v11105_v41  ;;  %v5823_v19 = vadd.f32 %v5567_v43, %v5017_v11  ;;  %v3473_v37 = vadd.f32 %v3217_v4, %v2671_v42  ;;  %v6433_v63 = vsel %vm6163_vm1, %v11237_v1, 0.0 }
 0x474   : > { %v833_v49 = vsel %vm563_vm5, %v11112_v5, 0.0  ;;  %v1651_v46 = vsel %vm1381_vm9, %v11136_v2, 0.0  ;;  %v2471_v44 = vsel %vm2201_vm10, %v11163_v7, 0.0  ;;  %vm3003_vm3 = vcmp.eq.s32.totalorder %v15057_v30, %v11124_v51 }
 0x475   : > { %vm3809_vm6 = vcmp.eq.s32.totalorder %v15057_v30, %v11165_v53  ;;  %v6625_v33 = vadd.f32 %v6369_v26, %v5823_v19  ;;  %v4279_v8 = vadd.f32 %v4023_v47, %v3473_v37  ;;  %v1907_v28 = vadd.f32 %v1651_v46, %v833_v49  ;;  %v15058_v37 = vld [vmem:[#allocation49_spill] sm:$0xff] }
 0x476   : > { %v3273_v43 = vsel %vm3003_vm3, %v11169_v14, 0.0  ;;  %v4079_v4 = vsel %vm3809_vm6, %v11171_v9, 0.0  ;;  %vm4611_vm13 = vcmp.eq.s32.totalorder %v15057_v30, %v11196_v18  ;;  %vm5417_vm8 = vcmp.eq.s32.totalorder %v15057_v30, %v11224_v32 }
 0x477   : > { %vm6219_vm11 = vcmp.eq.s32.totalorder %v15057_v30, %v11229_v45  ;;  %7052 = vmatpush.msra.mxu0 %v6625_v33  ;;  %v5081_v11 = vadd.f32 %v4825_v48, %v4279_v8  ;;  %v2727_v42 = vadd.f32 %v2471_v44, %v1907_v28  ;;  %v4881_v26 = vsel %vm4611_vm13, %v11198_v38, 0.0 }
 0x478   : > { %v5687_v47 = vsel %vm5417_vm8, %v11235_v23, 0.0  ;;  %v6489_v19 = vsel %vm6219_vm11, %v11237_v1, 0.0  ;;  %vm631_vm15 = vcmp.eq.s32.totalorder %v15058_v37, %v11019_v34  ;;  %vm1449_vm4 = vcmp.eq.s32.totalorder %v15058_v37, %v11044_v56 }
 0x479   : > { %vm2269_vm14 = vcmp.eq.s32.totalorder %v15058_v37, %v11105_v41  ;;  %v5887_v49 = vadd.f32 %v5631_v58, %v5081_v11  ;;  %v3529_v46 = vadd.f32 %v3273_v43, %v2727_v42  ;;  %v901_v48 = vsel %vm631_vm15, %v11112_v5, 0.0 }
 0x47a   : > { %v1719_v44 = vsel %vm1449_vm4, %v11136_v2, 0.0  ;;  %v2539_v8 = vsel %vm2269_vm14, %v11163_v7, 0.0  ;;  %vm3071_vm0 = vcmp.eq.s32.totalorder %v15058_v37, %v11124_v51  ;;  %vm3877_vm2 = vcmp.eq.s32.totalorder %v15058_v37, %v11165_v53 }
 0x47b   : > { %v1975_v33 = vadd.f32 %v1719_v44, %v901_v48  ;;  %v6689_v28 = vadd.f32 %v6433_v63, %v5887_v49  ;;  %v4335_v30 = vadd.f32 %v4079_v4, %v3529_v46  ;;  %v3341_v35 = vsel %vm3071_vm0, %v11169_v14, 0.0  ;;  %v15059_v46 = vld [vmem:[#allocation50_spill] sm:$0xff] }
 0x47c   : > { %v4147_v58 = vsel %vm3877_vm2, %v11171_v9, 0.0  ;;  %vm4679_vm7 = vcmp.eq.s32.totalorder %v15058_v37, %v11196_v18  ;;  %vm5485_vm12 = vcmp.eq.s32.totalorder %v15058_v37, %v11224_v32  ;;  %vm6287_vm1 = vcmp.eq.s32.totalorder %v15058_v37, %v11229_v45 }
 0x47d   : > { %v2795_v43 = vadd.f32 %v2539_v8, %v1975_v33  ;;  %7072 = vmatpush.msra.mxu1 %v6689_v28  ;;  %v5137_v11 = vadd.f32 %v4881_v26, %v4335_v30  ;;  %v4949_v42 = vsel %vm4679_vm7, %v11198_v38, 0.0  ;;  %v5755_v63 = vsel %vm5485_vm12, %v11235_v23, 0.0 }
 0x47e   : > { %v6557_v4 = vsel %vm6287_vm1, %v11237_v1, 0.0  ;;  %vm439_vm5 = vcmp.eq.s32.totalorder %v15059_v46, %v11019_v34  ;;  %vm1257_vm9 = vcmp.eq.s32.totalorder %v15059_v46, %v11044_v56  ;;  %vm2077_vm10 = vcmp.eq.s32.totalorder %v15059_v46, %v11105_v41 }
 0x47f   : > { %v3597_v49 = vadd.f32 %v3341_v35, %v2795_v43  ;;  %v5943_v48 = vadd.f32 %v5687_v47, %v5137_v11  ;;  %v709_v44 = vsel %vm439_vm5, %v11112_v5, 0.0  ;;  %v1527_v30 = vsel %vm1257_vm9, %v11136_v2, 0.0 }
 0x480   : > { %v2347_v26 = vsel %vm2077_vm10, %v11163_v7, 0.0  ;;  %v1783_v8 = vadd.f32 %v1527_v30, %v709_v44  ;;  %vm2879_vm3 = vcmp.eq.s32.totalorder %v15059_v46, %v11124_v51  ;;  %vm3685_vm6 = vcmp.eq.s32.totalorder %v15059_v46, %v11165_v53 }
 0x481   : > { %v4403_v33 = vadd.f32 %v4147_v58, %v3597_v49  ;;  %v6745_v35 = vadd.f32 %v6489_v19, %v5943_v48  ;;  %v3149_v28 = vsel %vm2879_vm3, %v11169_v14, 0.0  ;;  %v3955_v43 = vsel %vm3685_vm6, %v11171_v9, 0.0  ;;  %v15060_v19 = vld [vmem:[#allocation51_spill] sm:$0xff] }
 0x482   : > { %vm4487_vm13 = vcmp.eq.s32.totalorder %v15059_v46, %v11196_v18  ;;  %v2603_v11 = vadd.f32 %v2347_v26, %v1783_v8  ;;  %vm5293_vm8 = vcmp.eq.s32.totalorder %v15059_v46, %v11224_v32  ;;  %vm6095_vm11 = vcmp.eq.s32.totalorder %v15059_v46, %v11229_v45 }
 0x483   : > { %v5205_v47 = vadd.f32 %v4949_v42, %v4403_v33  ;;  %v4757_v37 = vsel %vm4487_vm13, %v11198_v38, 0.0  ;;  %7094 = vmatpush.msra.mxu2 %v6745_v35  ;;  %v5563_v58 = vsel %vm5293_vm8, %v11235_v23, 0.0  ;;  %vm503_vm15 = vcmp.eq.s32.totalorder %v15060_v19, %v11019_v34 }
 0x484   : > { %vm1321_vm4 = vcmp.eq.s32.totalorder %v15060_v19, %v11044_v56  ;;  %v3405_v42 = vadd.f32 %v3149_v28, %v2603_v11  ;;  %v6365_v48 = vsel %vm6095_vm11, %v11237_v1, 0.0  ;;  %v773_v44 = vsel %vm503_vm15, %v11112_v5, 0.0 }
 0x485   : > { %v6011_v49 = vadd.f32 %v5755_v63, %v5205_v47  ;;  %v1591_v30 = vsel %vm1321_vm4, %v11136_v2, 0.0  ;;  %vm2141_vm14 = vcmp.eq.s32.totalorder %v15060_v19, %v11105_v41  ;;  %vm2943_vm0 = vcmp.eq.s32.totalorder %v15060_v19, %v11124_v51 }
 0x486   : > { %vm3749_vm2 = vcmp.eq.s32.totalorder %v15060_v19, %v11165_v53  ;;  %v4211_v33 = vadd.f32 %v3955_v43, %v3405_v42  ;;  %v1847_v8 = vadd.f32 %v1591_v30, %v773_v44  ;;  %v2411_v63 = vsel %vm2141_vm14, %v11163_v7, 0.0  ;;  %v15061_v43 = vld [vmem:[#allocation52_spill] sm:$0xff] }
 0x487   : > { %v6813_v26 = vadd.f32 %v6557_v4, %v6011_v49  ;;  %v3213_v35 = vsel %vm2943_vm0, %v11169_v14, 0.0  ;;  %v4019_v28 = vsel %vm3749_vm2, %v11171_v9, 0.0  ;;  %vm4551_vm7 = vcmp.eq.s32.totalorder %v15060_v19, %v11196_v18 }
 0x488   : > { %vm5357_vm12 = vcmp.eq.s32.totalorder %v15060_v19, %v11224_v32  ;;  %v5013_v47 = vadd.f32 %v4757_v37, %v4211_v33  ;;  %v2667_v11 = vadd.f32 %v2411_v63, %v1847_v8  ;;  %v4821_v46 = vsel %vm4551_vm7, %v11198_v38, 0.0 }
 0x489   : > { %7113 = vmatpush.msra.mxu3 %v6813_v26  ;;  %v5627_v4 = vsel %vm5357_vm12, %v11235_v23, 0.0  ;;  %vm6159_vm1 = vcmp.eq.s32.totalorder %v15060_v19, %v11229_v45  ;;  %vm559_vm5 = vcmp.eq.s32.totalorder %v15061_v43, %v11019_v34  ;;  %vm1377_vm9 = vcmp.eq.s32.totalorder %v15061_v43, %v11044_v56 }
 0x48a   : > { %vm2197_vm10 = vcmp.eq.s32.totalorder %v15061_v43, %v11105_v41  ;;  %v5819_v49 = vadd.f32 %v5563_v58, %v5013_v47  ;;  %v3469_v42 = vadd.f32 %v3213_v35, %v2667_v11  ;;  %v6429_v37 = vsel %vm6159_vm1, %v11237_v1, 0.0 }
 0x48b   : > { %v829_v44 = vsel %vm559_vm5, %v11112_v5, 0.0  ;;  %v1647_v30 = vsel %vm1377_vm9, %v11136_v2, 0.0  ;;  %v2467_v26 = vsel %vm2197_vm10, %v11163_v7, 0.0  ;;  %vm2999_vm3 = vcmp.eq.s32.totalorder %v15061_v43, %v11124_v51 }
 0x48c   : > { %vm3805_vm6 = vcmp.eq.s32.totalorder %v15061_v43, %v11165_v53  ;;  %v6621_v33 = vadd.f32 %v6365_v48, %v5819_v49  ;;  %v4275_v8 = vadd.f32 %v4019_v28, %v3469_v42  ;;  %v1903_v63 = vadd.f32 %v1647_v30, %v829_v44  ;;  %v15062_v42 = vld [vmem:[#allocation53_spill] sm:$0xff] }
 0x48d   : > { %v3269_v58 = vsel %vm2999_vm3, %v11169_v14, 0.0  ;;  %v4075_v35 = vsel %vm3805_vm6, %v11171_v9, 0.0  ;;  %vm4607_vm13 = vcmp.eq.s32.totalorder %v15061_v43, %v11196_v18  ;;  %vm5413_vm8 = vcmp.eq.s32.totalorder %v15061_v43, %v11224_v32 }
 0x48e   : > { %vm6215_vm11 = vcmp.eq.s32.totalorder %v15061_v43, %v11229_v45  ;;  %7053 = vmatpush.msra.mxu0 %v6621_v33  ;;  %v5077_v47 = vadd.f32 %v4821_v46, %v4275_v8  ;;  %v2723_v11 = vadd.f32 %v2467_v26, %v1903_v63  ;;  %v4877_v48 = vsel %vm4607_vm13, %v11198_v38, 0.0 }
 0x48f   : > { %v5683_v28 = vsel %vm5413_vm8, %v11235_v23, 0.0  ;;  %v6485_v49 = vsel %vm6215_vm11, %v11237_v1, 0.0  ;;  %vm627_vm15 = vcmp.eq.s32.totalorder %v15062_v42, %v11019_v34  ;;  %vm1445_vm4 = vcmp.eq.s32.totalorder %v15062_v42, %v11044_v56 }
 0x490   : > { %vm2265_vm14 = vcmp.eq.s32.totalorder %v15062_v42, %v11105_v41  ;;  %v5883_v44 = vadd.f32 %v5627_v4, %v5077_v47  ;;  %v3525_v30 = vadd.f32 %v3269_v58, %v2723_v11  ;;  %v897_v46 = vsel %vm627_vm15, %v11112_v5, 0.0 }
 0x491   : > { %v1715_v26 = vsel %vm1445_vm4, %v11136_v2, 0.0  ;;  %v2535_v8 = vsel %vm2265_vm14, %v11163_v7, 0.0  ;;  %vm3067_vm0 = vcmp.eq.s32.totalorder %v15062_v42, %v11124_v51  ;;  %vm3873_vm2 = vcmp.eq.s32.totalorder %v15062_v42, %v11165_v53 }
 0x492   : > { %v1971_v33 = vadd.f32 %v1715_v26, %v897_v46  ;;  %v6685_v63 = vadd.f32 %v6429_v37, %v5883_v44  ;;  %v4331_v43 = vadd.f32 %v4075_v35, %v3525_v30  ;;  %v3337_v19 = vsel %vm3067_vm0, %v11169_v14, 0.0  ;;  %v15063_v30 = vld [vmem:[#allocation3_spill] sm:$0xff]  ;;  %v15064_v26 = vld [vmem:[#allocation57_spill] sm:$0xff] }
 0x493   : > { %v4143_v4 = vsel %vm3873_vm2, %v11171_v9, 0.0  ;;  %vm4675_vm7 = vcmp.eq.s32.totalorder %v15062_v42, %v11196_v18  ;;  %vm5481_vm12 = vcmp.eq.s32.totalorder %v15062_v42, %v11224_v32  ;;  %vm6283_vm1 = vcmp.eq.s32.totalorder %v15062_v42, %v11229_v45 }
 0x494   : > { %v2791_v58 = vadd.f32 %v2535_v8, %v1971_v33  ;;  %7073 = vmatpush.msra.mxu1 %v6685_v63  ;;  %v5133_v47 = vadd.f32 %v4877_v48, %v4331_v43  ;;  %v4945_v11 = vsel %vm4675_vm7, %v11198_v38, 0.0  ;;  %v5751_v37 = vsel %vm5481_vm12, %v11235_v23, 0.0  ;;  %v15065_v8 = vld [vmem:[#allocation4_spill] sm:$0xff]  ;;  %v15068_v63 = vld [vmem:[#allocation61_spill] sm:$0xff] }
 0x495   : > { %v6553_v35 = vsel %vm6283_vm1, %v11237_v1, 0.0  ;;  %v424_v46 = vperm.slane %v15063_v30, 4  ;;  %v690_v33 = vperm.slane %v15064_v26, 4  ;;  %v1242_v10 = vperm.slane %v15065_v8, 4  ;;  %v15072_v8 = vld [vmem:[#allocation60_spill] sm:$0xff] }
 0x496   : > { %v3593_v44 = vadd.f32 %v3337_v19, %v2791_v58  ;;  %v5939_v59 = vadd.f32 %v5683_v28, %v5133_v47  ;;  %v1508_v20 = vperm.slane %v15066_v55, 4  ;;  %v2062_v42 = vperm.slane %v15067_v39, 4  ;;  %v15069_v55 = vld [vmem:[#allocation2_spill] sm:$0xff] }
 0x497   : > { %v2328_v43 = vperm.slane %v15068_v63, 4  ;;  %v12753_v25 = vperm.slane %v424_v46, 0  ;;  %v12755_v57 = vperm.slane %v690_v33, 0  ;;  %v12757_v54 = vperm.slane %v1242_v10, 0  ;;  %v15070_v39 = vld [vmem:[#allocation58_spill] sm:$0xff] }
 0x498   : > { %v4399_v48 = vadd.f32 %v4143_v4, %v3593_v44  ;;  %v6741_v19 = vadd.f32 %v6485_v49, %v5939_v59  ;;  %v12759_v58 = vperm.slane %v1508_v20, 0  ;;  %v12761_v30 = vperm.slane %v2062_v42, 0  ;;  %v15071_v20 = vld [vmem:[#allocation62_spill] sm:$0xff]  ;;  %v7405_v46 = vld.sshfl [vmem:[#allocation1 + $0x10] sm:$0xff pattern:$0x75316420] }
 0x499   : > { %v12763_v26 = vperm.slane %v2328_v43, 0  ;;  %vm620_vm5 = vcmp.eq.s32.totalorder %v15069_v55, %v12753_v25  ;;  %vm1438_vm9 = vcmp.eq.s32.totalorder %v15069_v55, %v12757_v54  ;;  %v2864_v4 = vperm.slane %v15070_v39, 4  ;;  %v15073_v43 = vld [vmem:[#allocation63_spill] sm:$0xff] }
 0x49a   : > { %v5201_v28 = vadd.f32 %v4945_v11, %v4399_v48  ;;  %7095 = vmatpush.msra.mxu2 %v6741_v19  ;;  %v890_v10 = vsel %vm620_vm5, %v12755_v57, 0.0  ;;  %v1708_v59 = vsel %vm1438_vm9, %v12759_v58, 0.0  ;;  %vm2258_vm10 = vcmp.eq.s32.totalorder %v15069_v55, %v12761_v30  ;;  %v15074_v19 = vld [vmem:[#allocation64_spill] sm:$0xff] }
 0x49b   : > { %v3130_v49 = vperm.slane %v15071_v20, 4  ;;  %v1964_v47 = vadd.f32 %v1708_v59, %v890_v10  ;;  %v2528_v11 = vsel %vm2258_vm10, %v12763_v26, 0.0  ;;  %v12776_v44 = vperm.slane %v2864_v4, 0  ;;  %7096 = vmatmul.f32.vlgmr.msra.gmra.mxu2 %v7405_v46 }
 0x49c   : > { %v6007_v42 = vadd.f32 %v5751_v37, %v5201_v28  ;;  %v3670_v63 = vperm.slane %v15072_v8, 4  ;;  %v3936_v48 = vperm.slane %v15073_v43, 4  ;;  %v4472_v39 = vperm.slane %v15074_v19, 4  ;;  %v15075_v37 = vld [vmem:[#allocation65_spill] sm:$0xff]  ;;  %v15076_v8 = vld [vmem:[#allocation66_spill] sm:$0xff] }
 0x49d   : > { %v12778_v33 = vperm.slane %v3130_v49, 0  ;;  %v2784_v61 = vadd.f32 %v2528_v11, %v1964_v47  ;;  %vm3060_vm3 = vcmp.eq.s32.totalorder %v15069_v55, %v12776_v44  ;;  %v4738_v28 = vperm.slane %v15075_v37, 4  ;;  %v15078_v11 = vld [vmem:[#allocation67_spill] sm:$0xff]  ;;  %v15079_v43 = vld [vmem:[#allocation69_spill] sm:$0xff] }
 0x49e   : > { %v6809_v31 = vadd.f32 %v6553_v35, %v6007_v42  ;;  %v12787_v10 = vperm.slane %v3670_v63, 0  ;;  %v12789_v59 = vperm.slane %v3936_v48, 0  ;;  %v12791_v20 = vperm.slane %v4472_v39, 0  ;;  %v15077_v42 = vld [vmem:[#allocation68_spill] sm:$0xff] }
 0x49f   : > { %v3330_v4 = vsel %vm3060_vm3, %v12778_v33, 0.0  ;;  %v12793_v46 = vperm.slane %v4738_v28, 0  ;;  %v5278_v35 = vperm.slane %v15076_v8, 4  ;;  %v5544_v47 = vperm.slane %v15077_v42, 4  ;;  %v15080_v8 = vld [vmem:[#allocation54_spill] sm:$0xff] }
 0x4a0   : > { %7114 = vmatpush.msra.mxu3 %v6809_v31  ;;  %v3586_v49 = vadd.f32 %v3330_v4, %v2784_v61  ;;  %vm3866_vm6 = vcmp.eq.s32.totalorder %v15069_v55, %v12787_v10  ;;  %vm4668_vm13 = vcmp.eq.s32.totalorder %v15069_v55, %v12791_v20  ;;  %v6080_v63 = vperm.slane %v15078_v11, 4 }
 0x4a1   : > { %v6346_v48 = vperm.slane %v15079_v43, 4  ;;  %v4136_v19 = vsel %vm3866_vm6, %v12789_v59, 0.0  ;;  %v4938_v61 = vsel %vm4668_vm13, %v12793_v46, 0.0  ;;  %v12805_v31 = vperm.slane %v5278_v35, 0 }
 0x4a2   : > { %v12807_v39 = vperm.slane %v5544_v47, 0  ;;  %v4392_v37 = vadd.f32 %v4136_v19, %v3586_v49  ;;  %v12809_v28 = vperm.slane %v6080_v63, 0  ;;  %vm435_vm8 = vcmp.eq.s32.totalorder %v15080_v8, %v11019_v34 }
 0x4a3   : > { %v12811_v4 = vperm.slane %v6346_v48, 0  ;;  %vm5474_vm11 = vcmp.eq.s32.totalorder %v15069_v55, %v12805_v31  ;;  %v705_v42 = vsel %vm435_vm8, %v11112_v5, 0.0  ;;  %vm1253_vm15 = vcmp.eq.s32.totalorder %v15080_v8, %v11044_v56 }
 0x4a4   : > { %vm2073_vm4 = vcmp.eq.s32.totalorder %v15080_v8, %v11105_v41  ;;  %v5194_v35 = vadd.f32 %v4938_v61, %v4392_v37  ;;  %v5744_v49 = vsel %vm5474_vm11, %v12807_v39, 0.0  ;;  %vm6276_vm14 = vcmp.eq.s32.totalorder %v15069_v55, %v12809_v28 }
 0x4a5   : > { %v1523_v47 = vsel %vm1253_vm15, %v11136_v2, 0.0  ;;  %v6546_v11 = vsel %vm6276_vm14, %v12811_v4, 0.0  ;;  %v2343_v43 = vsel %vm2073_vm4, %v11163_v7, 0.0  ;;  %vm2875_vm0 = vcmp.eq.s32.totalorder %v15080_v8, %v11124_v51 }
 0x4a6   : > { %v1779_v63 = vadd.f32 %v1523_v47, %v705_v42  ;;  %v6000_v48 = vadd.f32 %v5744_v49, %v5194_v35  ;;  %v3145_v19 = vsel %vm2875_vm0, %v11169_v14, 0.0  ;;  %vm3681_vm2 = vcmp.eq.s32.totalorder %v15080_v8, %v11165_v53  ;;  %v15081_v47 = vld [vmem:[#allocation55_spill] sm:$0xff] }
 0x4a7   : > { %vm4483_vm7 = vcmp.eq.s32.totalorder %v15080_v8, %v11196_v18  ;;  %v3951_v61 = vsel %vm3681_vm2, %v11171_v9, 0.0  ;;  %vm5289_vm12 = vcmp.eq.s32.totalorder %v15080_v8, %v11224_v32  ;;  %vm499_vm1 = vcmp.eq.s32.totalorder %v15081_v47, %v11019_v34 }
 0x4a8   : > { %v2599_v55 = vadd.f32 %v2343_v43, %v1779_v63  ;;  %v6802_v37 = vadd.f32 %v6546_v11, %v6000_v48  ;;  %v4753_v42 = vsel %vm4483_vm7, %v11198_v38, 0.0  ;;  %vm6091_vm5 = vcmp.eq.s32.totalorder %v15080_v8, %v11229_v45 }
 0x4a9   : > { %v769_v49 = vsel %vm499_vm1, %v11112_v5, 0.0  ;;  %vm1317_vm9 = vcmp.eq.s32.totalorder %v15081_v47, %v11044_v56  ;;  %vm2137_vm10 = vcmp.eq.s32.totalorder %v15081_v47, %v11105_v41  ;;  %vm2939_vm3 = vcmp.eq.s32.totalorder %v15081_v47, %v11124_v51 }
 0x4aa   : > { %v3401_v35 = vadd.f32 %v3145_v19, %v2599_v55  ;;  %7160 = vmatpush.msrb.mxu2 %v6802_v37  ;;  %v1587_v11 = vsel %vm1317_vm9, %v11136_v2, 0.0  ;;  %vm3745_vm6 = vcmp.eq.s32.totalorder %v15081_v47, %v11165_v53  ;;  %v5559_v43 = vsel %vm5289_vm12, %v11235_v23, 0.0 }
 0x4ab   : > { %v1843_v48 = vadd.f32 %v1587_v11, %v769_v49  ;;  %v2407_v19 = vsel %vm2137_vm10, %v11163_v7, 0.0  ;;  %v6361_v55 = vsel %vm6091_vm5, %v11237_v1, 0.0  ;;  %v3209_v37 = vsel %vm2939_vm3, %v11169_v14, 0.0 }
 0x4ac   : > { %v4207_v63 = vadd.f32 %v3951_v61, %v3401_v35  ;;  %v4015_v8 = vsel %vm3745_vm6, %v11171_v9, 0.0  ;;  %vm4547_vm13 = vcmp.eq.s32.totalorder %v15081_v47, %v11196_v18  ;;  %vm5353_vm8 = vcmp.eq.s32.totalorder %v15081_v47, %v11224_v32  ;;  %v15082_v35 = vld [vmem:[#allocation56_spill] sm:$0xff] }
 0x4ad   : > { %v2663_v16 = vadd.f32 %v2407_v19, %v1843_v48  ;;  %vm6155_vm11 = vcmp.eq.s32.totalorder %v15081_v47, %v11229_v45  ;;  %v4817_v61 = vsel %vm4547_vm13, %v11198_v38, 0.0  ;;  %vm623_vm15 = vcmp.eq.s32.totalorder %v15082_v35, %v11019_v34 }
 0x4ae   : > { %v5009_v52 = vadd.f32 %v4753_v42, %v4207_v63  ;;  %vm1441_vm4 = vcmp.eq.s32.totalorder %v15082_v35, %v11044_v56  ;;  %vm2261_vm14 = vcmp.eq.s32.totalorder %v15082_v35, %v11105_v41  ;;  %v893_v11 = vsel %vm623_vm15, %v11112_v5, 0.0 }
 0x4af   : > { %v3465_v42 = vadd.f32 %v3209_v37, %v2663_v16  ;;  %v1711_v63 = vsel %vm1441_vm4, %v11136_v2, 0.0  ;;  %v2531_v19 = vsel %vm2261_vm14, %v11163_v7, 0.0  ;;  %vm3063_vm0 = vcmp.eq.s32.totalorder %v15082_v35, %v11124_v51 }
 0x4b0   : > { %v5815_v49 = vadd.f32 %v5559_v43, %v5009_v52  ;;  %v1967_v48 = vadd.f32 %v1711_v63, %v893_v11  ;;  %vm3869_vm2 = vcmp.eq.s32.totalorder %v15082_v35, %v11165_v53  ;;  %v5623_v16 = vsel %vm5353_vm8, %v11235_v23, 0.0 }
 0x4b1   : > { %v4271_v60 = vadd.f32 %v4015_v8, %v3465_v42  ;;  %v3333_v52 = vsel %vm3063_vm0, %v11169_v14, 0.0  ;;  %v6425_v43 = vsel %vm6155_vm11, %v11237_v1, 0.0  ;;  %v4139_v11 = vsel %vm3869_vm2, %v11171_v9, 0.0 }
 0x4b2   : > { %v6617_v3 = vadd.f32 %v6361_v55, %v5815_v49  ;;  %v2787_v37 = vadd.f32 %v2531_v19, %v1967_v48  ;;  %vm4671_vm7 = vcmp.eq.s32.totalorder %v15082_v35, %v11196_v18  ;;  %vm5477_vm12 = vcmp.eq.s32.totalorder %v15082_v35, %v11224_v32 }
 0x4b3   : > { %v5073_v8 = vadd.f32 %v4817_v61, %v4271_v60  ;;  %v4941_v55 = vsel %vm4671_vm7, %v11198_v38, 0.0  ;;  %vm6279_vm1 = vcmp.eq.s32.totalorder %v15082_v35, %v11229_v45  ;;  %vm616_vm5 = vcmp.eq.s32.totalorder %v7499_v12, %v12753_v25 }
 0x4b4   : > { %7054 = vmatpush.msra.mxu0 %v6617_v3  ;;  %v3589_v49 = vadd.f32 %v3333_v52, %v2787_v37  ;;  %vm1434_vm9 = vcmp.eq.s32.totalorder %v7499_v12, %v12757_v54  ;;  %vm2254_vm10 = vcmp.eq.s32.totalorder %v7499_v12, %v12761_v30  ;;  %v886_v60 = vsel %vm616_vm5, %v12755_v57, 0.0 }
 0x4b5   : > { %v5879_v3 = vadd.f32 %v5623_v16, %v5073_v8  ;;  %v1704_v61 = vsel %vm1434_vm9, %v12759_v58, 0.0  ;;  %v2524_v42 = vsel %vm2254_vm10, %v12763_v26, 0.0  ;;  %vm3056_vm3 = vcmp.eq.s32.totalorder %v7499_v12, %v12776_v44 }
 0x4b6   : > { %v4395_v63 = vadd.f32 %v4139_v11, %v3589_v49  ;;  %v1960_v48 = vadd.f32 %v1704_v61, %v886_v60  ;;  %vm3862_vm6 = vcmp.eq.s32.totalorder %v7499_v12, %v12787_v10  ;;  %v5747_v52 = vsel %vm5477_vm12, %v11235_v23, 0.0 }
 0x4b7   : > { %v6681_v19 = vadd.f32 %v6425_v43, %v5879_v3  ;;  %v3326_v37 = vsel %vm3056_vm3, %v12778_v33, 0.0  ;;  %vm4664_vm13 = vcmp.eq.s32.totalorder %v7499_v12, %v12791_v20  ;;  %v6549_v11 = vsel %vm6279_vm1, %v11237_v1, 0.0 }
 0x4b8   : > { %v5197_v16 = vadd.f32 %v4941_v55, %v4395_v63  ;;  %v2780_v8 = vadd.f32 %v2524_v42, %v1960_v48  ;;  %v4132_v49 = vsel %vm3862_vm6, %v12789_v59, 0.0  ;;  %v4934_v60 = vsel %vm4664_vm13, %v12793_v46, 0.0 }
 0x4b9   : > { %7074 = vmatpush.msra.mxu1 %v6681_v19  ;;  %vm5470_vm8 = vcmp.eq.s32.totalorder %v7499_v12, %v12805_v31  ;;  %vm684_vm11 = vcmp.eq.s32.totalorder %v7502_v13, %v12753_v25  ;;  %vm1502_vm15 = vcmp.eq.s32.totalorder %v7502_v13, %v12757_v54  ;;  %vm6272_vm4 = vcmp.eq.s32.totalorder %v7499_v12, %v12809_v28 }
 0x4ba   : > { %v6003_v43 = vadd.f32 %v5747_v52, %v5197_v16  ;;  %v3582_v55 = vadd.f32 %v3326_v37, %v2780_v8  ;;  %v954_v3 = vsel %vm684_vm11, %v12755_v57, 0.0  ;;  %v1772_v61 = vsel %vm1502_vm15, %v12759_v58, 0.0 }
 0x4bb   : > { %vm2322_vm14 = vcmp.eq.s32.totalorder %v7502_v13, %v12761_v30  ;;  %vm3124_vm0 = vcmp.eq.s32.totalorder %v7502_v13, %v12776_v44  ;;  %vm3930_vm2 = vcmp.eq.s32.totalorder %v7502_v13, %v12787_v10  ;;  %v2028_v48 = vadd.f32 %v1772_v61, %v954_v3 }
 0x4bc   : > { %v6805_v42 = vadd.f32 %v6549_v11, %v6003_v43  ;;  %v4388_v63 = vadd.f32 %v4132_v49, %v3582_v55  ;;  %v2592_v19 = vsel %vm2322_vm14, %v12763_v26, 0.0  ;;  %v5740_v12 = vsel %vm5470_vm8, %v12807_v39, 0.0  ;;  %v7406_v49 = vld.sshfl [vmem:[#allocation1 + $0x18] sm:$0xff pattern:$0x75316420] }
 0x4bd   : > { %v6542_v52 = vsel %vm6272_vm4, %v12811_v4, 0.0  ;;  %v3394_v37 = vsel %vm3124_vm0, %v12778_v33, 0.0  ;;  %vm4732_vm7 = vcmp.eq.s32.totalorder %v7502_v13, %v12791_v20  ;;  %v2848_v8 = vadd.f32 %v2592_v19, %v2028_v48 }
 0x4be   : > { %7115 = vmatpush.msra.mxu3 %v6805_v42  ;;  %v5190_v16 = vadd.f32 %v4934_v60, %v4388_v63  ;;  %v4200_v35 = vsel %vm3930_vm2, %v12789_v59, 0.0  ;;  %vm5538_vm12 = vcmp.eq.s32.totalorder %v7502_v13, %v12805_v31  ;;  %v5002_v11 = vsel %vm4732_vm7, %v12793_v46, 0.0 }
 0x4bf   : > { %vm431_vm1 = vcmp.eq.s32.totalorder %v7489_v6, %v11019_v34  ;;  %vm1249_vm5 = vcmp.eq.s32.totalorder %v7489_v6, %v11044_v56  ;;  %vm2069_vm9 = vcmp.eq.s32.totalorder %v7489_v6, %v11105_v41  ;;  %7116 = vmatmul.f32.vlgmr.msra.gmra.mxu3 %v7406_v49  ;;  %v3650_v43 = vadd.f32 %v3394_v37, %v2848_v8 }
 0x4c0   : > { %v5996_v60 = vadd.f32 %v5740_v12, %v5190_v16  ;;  %vm6340_vm10 = vcmp.eq.s32.totalorder %v7502_v13, %v12809_v28  ;;  %v701_v55 = vsel %vm431_vm1, %v11112_v5, 0.0  ;;  %v1519_v3 = vsel %vm1249_vm5, %v11136_v2, 0.0 }
 0x4c1   : > { %v2339_v61 = vsel %vm2069_vm9, %v11163_v7, 0.0  ;;  %vm2871_vm3 = vcmp.eq.s32.totalorder %v7489_v6, %v11124_v51  ;;  %vm3677_vm6 = vcmp.eq.s32.totalorder %v7489_v6, %v11165_v53  ;;  %v4456_v63 = vadd.f32 %v4200_v35, %v3650_v43 }
 0x4c2   : > { %v6798_v42 = vadd.f32 %v6542_v52, %v5996_v60  ;;  %v5808_v48 = vsel %vm5538_vm12, %v12807_v39, 0.0  ;;  %v1775_v19 = vadd.f32 %v1519_v3, %v701_v55  ;;  %v6610_v12 = vsel %vm6340_vm10, %v12811_v4, 0.0 }
 0x4c3   : > { %v3141_v37 = vsel %vm2871_vm3, %v11169_v14, 0.0  ;;  %v3947_v16 = vsel %vm3677_vm6, %v11171_v9, 0.0  ;;  %vm4479_vm13 = vcmp.eq.s32.totalorder %v7489_v6, %v11196_v18  ;;  %v5258_v8 = vadd.f32 %v5002_v11, %v4456_v63 }
 0x4c4   : > { %7161 = vmatpush.msrb.mxu2 %v6798_v42  ;;  %v2595_v49 = vadd.f32 %v2339_v61, %v1775_v19  ;;  %vm5285_vm8 = vcmp.eq.s32.totalorder %v7489_v6, %v11224_v32  ;;  %vm6087_vm11 = vcmp.eq.s32.totalorder %v7489_v6, %v11229_v45  ;;  %v4749_v13 = vsel %vm4479_vm13, %v11198_v38, 0.0 }
 0x4c5   : > { %vm495_vm15 = vcmp.eq.s32.totalorder %v9547_v40, %v11019_v34  ;;  %vm1313_vm4 = vcmp.eq.s32.totalorder %v9547_v40, %v11044_v56  ;;  %vm2133_vm14 = vcmp.eq.s32.totalorder %v9547_v40, %v11105_v41  ;;  %v6064_v35 = vadd.f32 %v5808_v48, %v5258_v8 }
 0x4c6   : > { %v3397_v52 = vadd.f32 %v3141_v37, %v2595_v49  ;;  %v765_v11 = vsel %vm495_vm15, %v11112_v5, 0.0  ;;  %v1583_v60 = vsel %vm1313_vm4, %v11136_v2, 0.0  ;;  %v2403_v55 = vsel %vm2133_vm14, %v11163_v7, 0.0 }
 0x4c7   : > { %v1839_v43 = vadd.f32 %v1583_v60, %v765_v11  ;;  %vm2935_vm0 = vcmp.eq.s32.totalorder %v9547_v40, %v11124_v51  ;;  %vm3741_vm2 = vcmp.eq.s32.totalorder %v9547_v40, %v11165_v53  ;;  %v6866_v34 = vadd.f32 %v6610_v12, %v6064_v35 }
 0x4c8   : > { %v4203_v56 = vadd.f32 %v3947_v16, %v3397_v52  ;;  %v5555_v41 = vsel %vm5285_vm8, %v11235_v23, 0.0  ;;  %v3205_v5 = vsel %vm2935_vm0, %v11169_v14, 0.0  ;;  %v6357_v2 = vsel %vm6087_vm11, %v11237_v1, 0.0 }
 0x4c9   : > { %v2659_v7 = vadd.f32 %v2403_v55, %v1839_v43  ;;  %v4011_v51 = vsel %vm3741_vm2, %v11171_v9, 0.0  ;;  %vm4543_vm7 = vcmp.eq.s32.totalorder %v9547_v40, %v11196_v18  ;;  %7180 = vmatpush.msrb.mxu3 %v6866_v34  ;;  %vm5349_vm12 = vcmp.eq.s32.totalorder %v9547_v40, %v11224_v32 }
 0x4ca   : > { %v5005_v53 = vadd.f32 %v4749_v13, %v4203_v56  ;;  %v4813_v3 = vsel %vm4543_vm7, %v11198_v38, 0.0  ;;  %vm6151_vm1 = vcmp.eq.s32.totalorder %v9547_v40, %v11229_v45  ;;  %vm492_vm5 = vcmp.eq.s32.totalorder %v7520_v27, %v12753_v25 }
 0x4cb   : > { %v3461_v14 = vadd.f32 %v3205_v5, %v2659_v7  ;;  %vm1310_vm9 = vcmp.eq.s32.totalorder %v7520_v27, %v12757_v54  ;;  %vm2130_vm10 = vcmp.eq.s32.totalorder %v7520_v27, %v12761_v30  ;;  %v762_v18 = vsel %vm492_vm5, %v12755_v57, 0.0 }
 0x4cc   : > { %v5811_v9 = vadd.f32 %v5555_v41, %v5005_v53  ;;  %v1580_v38 = vsel %vm1310_vm9, %v12759_v58, 0.0  ;;  %v2400_v32 = vsel %vm2130_vm10, %v12763_v26, 0.0  ;;  %vm2932_vm3 = vcmp.eq.s32.totalorder %v7520_v27, %v12776_v44 }
 0x4cd   : > { %v4267_v61 = vadd.f32 %v4011_v51, %v3461_v14  ;;  %v1836_v42 = vadd.f32 %v1580_v38, %v762_v18  ;;  %vm3738_vm6 = vcmp.eq.s32.totalorder %v7520_v27, %v12787_v10  ;;  %v5619_v48 = vsel %vm5349_vm12, %v11235_v23, 0.0 }
 0x4ce   : > { %v6613_v63 = vadd.f32 %v6357_v2, %v5811_v9  ;;  %v3202_v19 = vsel %vm2932_vm3, %v12778_v33, 0.0  ;;  %vm4540_vm13 = vcmp.eq.s32.totalorder %v7520_v27, %v12791_v20  ;;  %v6421_v37 = vsel %vm6151_vm1, %v11237_v1, 0.0  ;;  %v7407_v1 = vld.sshfl [vmem:[#allocation1] sm:$0xff pattern:$0x75316420] }
 0x4cf   : > { %v5069_v12 = vadd.f32 %v4813_v3, %v4267_v61  ;;  %v2656_v16 = vadd.f32 %v2400_v32, %v1836_v42  ;;  %v4008_v8 = vsel %vm3738_vm6, %v12789_v59, 0.0  ;;  %v4810_v49 = vsel %vm4540_vm13, %v12793_v46, 0.0 }
 0x4d0   : > { %7055 = vmatpush.msra.mxu0 %v6613_v63  ;;  %vm5346_vm8 = vcmp.eq.s32.totalorder %v7520_v27, %v12805_v31  ;;  %vm556_vm11 = vcmp.eq.s32.totalorder %v7830_v15, %v12753_v25  ;;  %vm1374_vm15 = vcmp.eq.s32.totalorder %v7830_v15, %v12757_v54  ;;  %vm6148_vm4 = vcmp.eq.s32.totalorder %v7520_v27, %v12809_v28  ;;  %v7408_v27 = vld.sshfl [vmem:[#allocation1 + $0x8] sm:$0xff pattern:$0x75316420] }
 0x4d1   : > { %v5875_v23 = vadd.f32 %v5619_v48, %v5069_v12  ;;  %v3458_v13 = vadd.f32 %v3202_v19, %v2656_v16  ;;  %v826_v45 = vsel %vm556_vm11, %v12755_v57, 0.0  ;;  %7056 = vmatmul.f32.vlgmr.msra.gmra.mxu0 %v7407_v1  ;;  %v1644_v35 = vsel %vm1374_vm15, %v12759_v58, 0.0 }
 0x4d2   : > { %vm2194_vm14 = vcmp.eq.s32.totalorder %v7830_v15, %v12761_v30  ;;  %vm2996_vm0 = vcmp.eq.s32.totalorder %v7830_v15, %v12776_v44  ;;  %vm3802_vm2 = vcmp.eq.s32.totalorder %v7830_v15, %v12787_v10  ;;  %v1900_v60 = vadd.f32 %v1644_v35, %v826_v45 }
 0x4d3   : > { %v6677_v52 = vadd.f32 %v6421_v37, %v5875_v23  ;;  %v4264_v11 = vadd.f32 %v4008_v8, %v3458_v13  ;;  %v2464_v43 = vsel %vm2194_vm14, %v12763_v26, 0.0  ;;  %v5616_v55 = vsel %vm5346_vm8, %v12807_v39, 0.0 }
 0x4d4   : > { %v6418_v34 = vsel %vm6148_vm4, %v12811_v4, 0.0  ;;  %v3266_v56 = vsel %vm2996_vm0, %v12778_v33, 0.0  ;;  %vm4604_vm7 = vcmp.eq.s32.totalorder %v7830_v15, %v12791_v20  ;;  %v2720_v5 = vadd.f32 %v2464_v43, %v1900_v60 }
 0x4d5   : > { %7075 = vmatpush.msra.mxu1 %v6677_v52  ;;  %v5066_v41 = vadd.f32 %v4810_v49, %v4264_v11  ;;  %v4072_v2 = vsel %vm3802_vm2, %v12789_v59, 0.0  ;;  %vm5410_vm12 = vcmp.eq.s32.totalorder %v7830_v15, %v12805_v31  ;;  %v4874_v7 = vsel %vm4604_vm7, %v12793_v46, 0.0 }
 0x4d6   : > { %vm612_vm1 = vcmp.eq.s32.totalorder %v7833_v17, %v12753_v25  ;;  %vm1430_vm5 = vcmp.eq.s32.totalorder %v7833_v17, %v12757_v54  ;;  %vm2250_vm9 = vcmp.eq.s32.totalorder %v7833_v17, %v12761_v30  ;;  %7076 = vmatmul.f32.vlgmr.msra.gmra.mxu1 %v7408_v27  ;;  %v3522_v53 = vadd.f32 %v3266_v56, %v2720_v5 }
 0x4d7   : > { %v5872_v51 = vadd.f32 %v5616_v55, %v5066_v41  ;;  %vm6212_vm10 = vcmp.eq.s32.totalorder %v7830_v15, %v12809_v28  ;;  %v882_v3 = vsel %vm612_vm1, %v12755_v57, 0.0  ;;  %v1700_v14 = vsel %vm1430_vm5, %v12759_v58, 0.0 }
 0x4d8   : > { %v2520_v9 = vsel %vm2250_vm9, %v12763_v26, 0.0  ;;  %vm3052_vm3 = vcmp.eq.s32.totalorder %v7833_v17, %v12776_v44  ;;  %vm3858_vm6 = vcmp.eq.s32.totalorder %v7833_v17, %v12787_v10  ;;  %v4328_v38 = vadd.f32 %v4072_v2, %v3522_v53 }
 0x4d9   : > { %v6674_v18 = vadd.f32 %v6418_v34, %v5872_v51  ;;  %v5680_v32 = vsel %vm5410_vm12, %v12807_v39, 0.0  ;;  %v1956_v61 = vadd.f32 %v1700_v14, %v882_v3  ;;  %v6482_v42 = vsel %vm6212_vm10, %v12811_v4, 0.0 }
 0x4da   : > { %v3322_v63 = vsel %vm3052_vm3, %v12778_v33, 0.0  ;;  %v4128_v48 = vsel %vm3858_vm6, %v12789_v59, 0.0  ;;  %vm4660_vm13 = vcmp.eq.s32.totalorder %v7833_v17, %v12791_v20  ;;  %v5130_v19 = vadd.f32 %v4874_v7, %v4328_v38 }
 0x4db   : > { %7120 = vmatpush.msrb.mxu0 %v6674_v18  ;;  %v2776_v12 = vadd.f32 %v2520_v9, %v1956_v61  ;;  %vm5466_vm8 = vcmp.eq.s32.totalorder %v7833_v17, %v12805_v31  ;;  %vm6268_vm11 = vcmp.eq.s32.totalorder %v7833_v17, %v12809_v28  ;;  %v4930_v15 = vsel %vm4660_vm13, %v12793_v46, 0.0 }
 0x4dc   : > { %vm680_vm15 = vcmp.eq.s32.totalorder %v7836_v22, %v12753_v25  ;;  %vm1498_vm4 = vcmp.eq.s32.totalorder %v7836_v22, %v12757_v54  ;;  %vm2318_vm14 = vcmp.eq.s32.totalorder %v7836_v22, %v12761_v30  ;;  %v5936_v37 = vadd.f32 %v5680_v32, %v5130_v19 }
 0x4dd   : > { %v3578_v16 = vadd.f32 %v3322_v63, %v2776_v12  ;;  %v950_v8 = vsel %vm680_vm15, %v12755_v57, 0.0  ;;  %v1768_v49 = vsel %vm1498_vm4, %v12759_v58, 0.0  ;;  %v2588_v13 = vsel %vm2318_vm14, %v12763_v26, 0.0 }
 0x4de   : > { %v2024_v23 = vadd.f32 %v1768_v49, %v950_v8  ;;  %vm3120_vm0 = vcmp.eq.s32.totalorder %v7836_v22, %v12776_v44  ;;  %vm3926_vm2 = vcmp.eq.s32.totalorder %v7836_v22, %v12787_v10  ;;  %v6738_v45 = vadd.f32 %v6482_v42, %v5936_v37 }
 0x4df   : > { %v4384_v1 = vadd.f32 %v4128_v48, %v3578_v16  ;;  %v5736_v35 = vsel %vm5466_vm8, %v12807_v39, 0.0  ;;  %v3390_v52 = vsel %vm3120_vm0, %v12778_v33, 0.0  ;;  %v6538_v11 = vsel %vm6268_vm11, %v12811_v4, 0.0 }
 0x4e0   : > { %v2844_v60 = vadd.f32 %v2588_v13, %v2024_v23  ;;  %v4196_v43 = vsel %vm3926_vm2, %v12789_v59, 0.0  ;;  %vm4728_vm7 = vcmp.eq.s32.totalorder %v7836_v22, %v12791_v20  ;;  %7140 = vmatpush.msrb.mxu1 %v6738_v45  ;;  %vm5534_vm12 = vcmp.eq.s32.totalorder %v7836_v22, %v12805_v31 }
 0x4e1   : > { %v5186_v55 = vadd.f32 %v4930_v15, %v4384_v1  ;;  %v4998_v34 = vsel %vm4728_vm7, %v12793_v46, 0.0  ;;  %vm6336_vm1 = vcmp.eq.s32.totalorder %v7836_v22, %v12809_v28  ;;  %vm488_vm5 = vcmp.eq.s32.totalorder %v7839_v36, %v12753_v25 }
 0x4e2   : > { %v3646_v56 = vadd.f32 %v3390_v52, %v2844_v60  ;;  %vm1306_vm9 = vcmp.eq.s32.totalorder %v7839_v36, %v12757_v54  ;;  %vm2126_vm10 = vcmp.eq.s32.totalorder %v7839_v36, %v12761_v30  ;;  %v758_v41 = vsel %vm488_vm5, %v12755_v57, 0.0 }
 0x4e3   : > { %v5992_v17 = vadd.f32 %v5736_v35, %v5186_v55  ;;  %v1576_v5 = vsel %vm1306_vm9, %v12759_v58, 0.0  ;;  %v2396_v2 = vsel %vm2126_vm10, %v12763_v26, 0.0  ;;  %vm2928_vm3 = vcmp.eq.s32.totalorder %v7839_v36, %v12776_v44 }
 0x4e4   : > { %v4452_v7 = vadd.f32 %v4196_v43, %v3646_v56  ;;  %v1832_v27 = vadd.f32 %v1576_v5, %v758_v41  ;;  %vm3734_vm6 = vcmp.eq.s32.totalorder %v7839_v36, %v12787_v10  ;;  %v5804_v53 = vsel %vm5534_vm12, %v12807_v39, 0.0 }
 0x4e5   : > { %v6794_v51 = vadd.f32 %v6538_v11, %v5992_v17  ;;  %v3198_v3 = vsel %vm2928_vm3, %v12778_v33, 0.0  ;;  %vm4536_vm13 = vcmp.eq.s32.totalorder %v7839_v36, %v12791_v20  ;;  %v6606_v9 = vsel %vm6336_vm1, %v12811_v4, 0.0 }
 0x4e6   : > { %v5254_v14 = vadd.f32 %v4998_v34, %v4452_v7  ;;  %v2652_v18 = vadd.f32 %v2396_v2, %v1832_v27  ;;  %v4004_v38 = vsel %vm3734_vm6, %v12789_v59, 0.0  ;;  %v4806_v32 = vsel %vm4536_vm13, %v12793_v46, 0.0 }
 0x4e7   : > { %7162 = vmatpush.msrb.mxu2 %v6794_v51  ;;  %vm5342_vm8 = vcmp.eq.s32.totalorder %v7839_v36, %v12805_v31  ;;  %vm552_vm11 = vcmp.eq.s32.totalorder %v14931_v24, %v12753_v25  ;;  %vm1370_vm15 = vcmp.eq.s32.totalorder %v14931_v24, %v12757_v54  ;;  %vm6144_vm4 = vcmp.eq.s32.totalorder %v7839_v36, %v12809_v28 }
 0x4e8   : > { %v6060_v61 = vadd.f32 %v5804_v53, %v5254_v14  ;;  %v3454_v42 = vadd.f32 %v3198_v3, %v2652_v18  ;;  %v822_v22 = vsel %vm552_vm11, %v12755_v57, 0.0  ;;  %v1640_v63 = vsel %vm1370_vm15, %v12759_v58, 0.0 }
 0x4e9   : > { %vm2190_vm14 = vcmp.eq.s32.totalorder %v14931_v24, %v12761_v30  ;;  %vm2992_vm0 = vcmp.eq.s32.totalorder %v14931_v24, %v12776_v44  ;;  %vm3798_vm2 = vcmp.eq.s32.totalorder %v14931_v24, %v12787_v10  ;;  %v1896_v12 = vadd.f32 %v1640_v63, %v822_v22 }
 0x4ea   : > { %v6862_v48 = vadd.f32 %v6606_v9, %v6060_v61  ;;  %v4260_v19 = vadd.f32 %v4004_v38, %v3454_v42  ;;  %v2460_v15 = vsel %vm2190_vm14, %v12763_v26, 0.0  ;;  %v5612_v36 = vsel %vm5342_vm8, %v12807_v39, 0.0 }
 0x4eb   : > { %v6414_v37 = vsel %vm6144_vm4, %v12811_v4, 0.0  ;;  %v3262_v16 = vsel %vm2992_vm0, %v12778_v33, 0.0  ;;  %vm4600_vm7 = vcmp.eq.s32.totalorder %v14931_v24, %v12791_v20  ;;  %v2716_v49 = vadd.f32 %v2460_v15, %v1896_v12 }
 0x4ec   : > { %7181 = vmatpush.msrb.mxu3 %v6862_v48  ;;  %v5062_v8 = vadd.f32 %v4806_v32, %v4260_v19  ;;  %v4068_v23 = vsel %vm3798_vm2, %v12789_v59, 0.0  ;;  %vm5406_vm12 = vcmp.eq.s32.totalorder %v14931_v24, %v12805_v31  ;;  %v4870_v13 = vsel %vm4600_vm7, %v12793_v46, 0.0 }
 0x4ed   : > { %vm608_vm1 = vcmp.eq.s32.totalorder %v14932_v21, %v12753_v25  ;;  %vm1426_vm5 = vcmp.eq.s32.totalorder %v14932_v21, %v12757_v54  ;;  %vm2246_vm9 = vcmp.eq.s32.totalorder %v14932_v21, %v12761_v30  ;;  %v3518_v1 = vadd.f32 %v3262_v16, %v2716_v49 }
 0x4ee   : > { %v5868_v45 = vadd.f32 %v5612_v36, %v5062_v8  ;;  %vm6208_vm10 = vcmp.eq.s32.totalorder %v14931_v24, %v12809_v28  ;;  %v878_v35 = vsel %vm608_vm1, %v12755_v57, 0.0  ;;  %v1696_v52 = vsel %vm1426_vm5, %v12759_v58, 0.0 }
 0x4ef   : > { %v2516_v11 = vsel %vm2246_vm9, %v12763_v26, 0.0  ;;  %vm3048_vm3 = vcmp.eq.s32.totalorder %v14932_v21, %v12776_v44  ;;  %vm3854_vm6 = vcmp.eq.s32.totalorder %v14932_v21, %v12787_v10  ;;  %v4324_v43 = vadd.f32 %v4068_v23, %v3518_v1 }
 0x4f0   : > { %v6670_v60 = vadd.f32 %v6414_v37, %v5868_v45  ;;  %v5676_v55 = vsel %vm5406_vm12, %v12807_v39, 0.0  ;;  %v1952_v34 = vadd.f32 %v1696_v52, %v878_v35  ;;  %v6478_v56 = vsel %vm6208_vm10, %v12811_v4, 0.0 }
 0x4f1   : > { %v3318_v24 = vsel %vm3048_vm3, %v12778_v33, 0.0  ;;  %v4124_v17 = vsel %vm3854_vm6, %v12789_v59, 0.0  ;;  %vm4656_vm13 = vcmp.eq.s32.totalorder %v14932_v21, %v12791_v20  ;;  %v5126_v41 = vadd.f32 %v4870_v13, %v4324_v43 }
 0x4f2   : > { %7121 = vmatpush.msrb.mxu0 %v6670_v60  ;;  %v2772_v5 = vadd.f32 %v2516_v11, %v1952_v34  ;;  %vm5462_vm8 = vcmp.eq.s32.totalorder %v14932_v21, %v12805_v31  ;;  %vm6264_vm11 = vcmp.eq.s32.totalorder %v14932_v21, %v12809_v28  ;;  %v4926_v2 = vsel %vm4656_vm13, %v12793_v46, 0.0 }
 0x4f3   : > { %vm676_vm15 = vcmp.eq.s32.totalorder %v14933_v62, %v12753_v25  ;;  %vm1494_vm4 = vcmp.eq.s32.totalorder %v14933_v62, %v12757_v54  ;;  %vm2314_vm14 = vcmp.eq.s32.totalorder %v14933_v62, %v12761_v30  ;;  %v5932_v7 = vadd.f32 %v5676_v55, %v5126_v41 }
 0x4f4   : > { %v3574_v27 = vadd.f32 %v3318_v24, %v2772_v5  ;;  %v946_v51 = vsel %vm676_vm15, %v12755_v57, 0.0  ;;  %v1764_v53 = vsel %vm1494_vm4, %v12759_v58, 0.0  ;;  %v2584_v14 = vsel %vm2314_vm14, %v12763_v26, 0.0 }
 0x4f5   : > { %v2020_v3 = vadd.f32 %v1764_v53, %v946_v51  ;;  %vm3116_vm0 = vcmp.eq.s32.totalorder %v14933_v62, %v12776_v44  ;;  %vm3922_vm2 = vcmp.eq.s32.totalorder %v14933_v62, %v12787_v10  ;;  %v6734_v9 = vadd.f32 %v6478_v56, %v5932_v7 }
 0x4f6   : > { %v4380_v18 = vadd.f32 %v4124_v17, %v3574_v27  ;;  %v5732_v38 = vsel %vm5462_vm8, %v12807_v39, 0.0  ;;  %v3386_v32 = vsel %vm3116_vm0, %v12778_v33, 0.0  ;;  %v6534_v61 = vsel %vm6264_vm11, %v12811_v4, 0.0 }
 0x4f7   : > { %v2840_v42 = vadd.f32 %v2584_v14, %v2020_v3  ;;  %v4192_v22 = vsel %vm3922_vm2, %v12789_v59, 0.0  ;;  %vm4724_vm7 = vcmp.eq.s32.totalorder %v14933_v62, %v12791_v20  ;;  %7141 = vmatpush.msrb.mxu1 %v6734_v9  ;;  %vm5530_vm12 = vcmp.eq.s32.totalorder %v14933_v62, %v12805_v31 }
 0x4f8   : > { %v5182_v63 = vadd.f32 %v4926_v2, %v4380_v18  ;;  %v4994_v48 = vsel %vm4724_vm7, %v12793_v46, 0.0  ;;  %vm6332_vm1 = vcmp.eq.s32.totalorder %v14933_v62, %v12809_v28  ;;  %vm484_vm5 = vcmp.eq.s32.totalorder %v15015_v29, %v12753_v25 }
 0x4f9   : > { %v3642_v19 = vadd.f32 %v3386_v32, %v2840_v42  ;;  %vm1302_vm9 = vcmp.eq.s32.totalorder %v15015_v29, %v12757_v54  ;;  %vm2122_vm10 = vcmp.eq.s32.totalorder %v15015_v29, %v12761_v30  ;;  %v754_v12 = vsel %vm484_vm5, %v12755_v57, 0.0 }
 0x4fa   : > { %v5988_v21 = vadd.f32 %v5732_v38, %v5182_v63  ;;  %v1572_v15 = vsel %vm1302_vm9, %v12759_v58, 0.0  ;;  %v2392_v36 = vsel %vm2122_vm10, %v12763_v26, 0.0  ;;  %vm2924_vm3 = vcmp.eq.s32.totalorder %v15015_v29, %v12776_v44 }
 0x4fb   : > { %v4448_v37 = vadd.f32 %v4192_v22, %v3642_v19  ;;  %v1828_v16 = vadd.f32 %v1572_v15, %v754_v12  ;;  %vm3730_vm6 = vcmp.eq.s32.totalorder %v15015_v29, %v12787_v10  ;;  %v5800_v49 = vsel %vm5530_vm12, %v12807_v39, 0.0 }
 0x4fc   : > { %v6790_v8 = vadd.f32 %v6534_v61, %v5988_v21  ;;  %v3194_v23 = vsel %vm2924_vm3, %v12778_v33, 0.0  ;;  %vm4532_vm13 = vcmp.eq.s32.totalorder %v15015_v29, %v12791_v20  ;;  %v6602_v45 = vsel %vm6332_vm1, %v12811_v4, 0.0  ;;  %v15083_v21 = vld [vmem:[#allocation9_spill] sm:$0xff] }
 0x4fd   : > { %v5250_v13 = vadd.f32 %v4994_v48, %v4448_v37  ;;  %v2648_v1 = vadd.f32 %v2392_v36, %v1828_v16  ;;  %v4000_v35 = vsel %vm3730_vm6, %v12789_v59, 0.0  ;;  %v4802_v52 = vsel %vm4532_vm13, %v12793_v46, 0.0 }
 0x4fe   : > { %7163 = vmatpush.msrb.mxu2 %v6790_v8  ;;  %vm5338_vm8 = vcmp.eq.s32.totalorder %v15015_v29, %v12805_v31  ;;  %vm548_vm11 = vcmp.eq.s32.totalorder %v15016_v50, %v12753_v25  ;;  %vm1366_vm15 = vcmp.eq.s32.totalorder %v15016_v50, %v12757_v54  ;;  %vm6140_vm4 = vcmp.eq.s32.totalorder %v15015_v29, %v12809_v28 }
 0x4ff   : > { %v6056_v11 = vadd.f32 %v5800_v49, %v5250_v13  ;;  %v3450_v60 = vadd.f32 %v3194_v23, %v2648_v1  ;;  %v818_v62 = vsel %vm548_vm11, %v12755_v57, 0.0  ;;  %v1636_v43 = vsel %vm1366_vm15, %v12759_v58, 0.0 }
 0x500   : > { %vm2186_vm14 = vcmp.eq.s32.totalorder %v15016_v50, %v12761_v30  ;;  %vm2988_vm0 = vcmp.eq.s32.totalorder %v15016_v50, %v12776_v44  ;;  %vm3794_vm2 = vcmp.eq.s32.totalorder %v15016_v50, %v12787_v10  ;;  %v1892_v56 = vadd.f32 %v1636_v43, %v818_v62 }
 0x501   : > { %v6858_v55 = vadd.f32 %v6602_v45, %v6056_v11  ;;  %v4256_v34 = vadd.f32 %v4000_v35, %v3450_v60  ;;  %v2456_v24 = vsel %vm2186_vm14, %v12763_v26, 0.0  ;;  %v5608_v29 = vsel %vm5338_vm8, %v12807_v39, 0.0 }
 0x502   : > { %v6410_v17 = vsel %vm6140_vm4, %v12811_v4, 0.0  ;;  %v3258_v41 = vsel %vm2988_vm0, %v12778_v33, 0.0  ;;  %vm4596_vm7 = vcmp.eq.s32.totalorder %v15016_v50, %v12791_v20  ;;  %v2712_v2 = vadd.f32 %v2456_v24, %v1892_v56 }
 0x503   : > { %7182 = vmatpush.msrb.mxu3 %v6858_v55  ;;  %v5058_v5 = vadd.f32 %v4802_v52, %v4256_v34  ;;  %v4064_v7 = vsel %vm3794_vm2, %v12789_v59, 0.0  ;;  %vm5402_vm12 = vcmp.eq.s32.totalorder %v15016_v50, %v12805_v31  ;;  %v4866_v27 = vsel %vm4596_vm7, %v12793_v46, 0.0 }
 0x504   : > { %vm604_vm1 = vcmp.eq.s32.totalorder %v15017_v0, %v12753_v25  ;;  %vm1422_vm5 = vcmp.eq.s32.totalorder %v15017_v0, %v12757_v54  ;;  %vm2242_vm9 = vcmp.eq.s32.totalorder %v15017_v0, %v12761_v30  ;;  %v3514_v53 = vadd.f32 %v3258_v41, %v2712_v2 }
 0x505   : > { %v5864_v51 = vadd.f32 %v5608_v29, %v5058_v5  ;;  %vm6204_vm10 = vcmp.eq.s32.totalorder %v15016_v50, %v12809_v28  ;;  %v874_v3 = vsel %vm604_vm1, %v12755_v57, 0.0  ;;  %v1692_v14 = vsel %vm1422_vm5, %v12759_v58, 0.0 }
 0x506   : > { %v2512_v9 = vsel %vm2242_vm9, %v12763_v26, 0.0  ;;  %vm3044_vm3 = vcmp.eq.s32.totalorder %v15017_v0, %v12776_v44  ;;  %vm3850_vm6 = vcmp.eq.s32.totalorder %v15017_v0, %v12787_v10  ;;  %v4320_v38 = vadd.f32 %v4064_v7, %v3514_v53 }
 0x507   : > { %v6666_v18 = vadd.f32 %v6410_v17, %v5864_v51  ;;  %v5672_v32 = vsel %vm5402_vm12, %v12807_v39, 0.0  ;;  %v1948_v61 = vadd.f32 %v1692_v14, %v874_v3  ;;  %v6474_v42 = vsel %vm6204_vm10, %v12811_v4, 0.0  ;;  %v15085_v3 = vld [vmem:[#allocation11_spill] sm:$0xff] }
 0x508   : > { %v3314_v50 = vsel %vm3044_vm3, %v12778_v33, 0.0  ;;  %v4120_v22 = vsel %vm3850_vm6, %v12789_v59, 0.0  ;;  %vm4652_vm13 = vcmp.eq.s32.totalorder %v15017_v0, %v12791_v20  ;;  %v5122_v63 = vadd.f32 %v4866_v27, %v4320_v38 }
 0x509   : > { %7122 = vmatpush.msrb.mxu0 %v6666_v18  ;;  %v2768_v48 = vadd.f32 %v2512_v9, %v1948_v61  ;;  %vm5458_vm8 = vcmp.eq.s32.totalorder %v15017_v0, %v12805_v31  ;;  %vm6260_vm11 = vcmp.eq.s32.totalorder %v15017_v0, %v12809_v28  ;;  %v4922_v19 = vsel %vm4652_vm13, %v12793_v46, 0.0  ;;  %v15084_v0 = vld [vmem:[#allocation10_spill] sm:$0xff] }
 0x50a   : > { %vm672_vm15 = vcmp.eq.s32.totalorder %v15083_v21, %v12753_v25  ;;  %vm1490_vm4 = vcmp.eq.s32.totalorder %v15083_v21, %v12757_v54  ;;  %vm2310_vm14 = vcmp.eq.s32.totalorder %v15083_v21, %v12761_v30  ;;  %v5928_v12 = vadd.f32 %v5672_v32, %v5122_v63 }
 0x50b   : > { %v3570_v15 = vadd.f32 %v3314_v50, %v2768_v48  ;;  %v942_v36 = vsel %vm672_vm15, %v12755_v57, 0.0  ;;  %v1760_v37 = vsel %vm1490_vm4, %v12759_v58, 0.0  ;;  %v2580_v8 = vsel %vm2310_vm14, %v12763_v26, 0.0 }
 0x50c   : > { %v2016_v16 = vadd.f32 %v1760_v37, %v942_v36  ;;  %vm3112_vm0 = vcmp.eq.s32.totalorder %v15083_v21, %v12776_v44  ;;  %vm3918_vm2 = vcmp.eq.s32.totalorder %v15083_v21, %v12787_v10  ;;  %v6730_v49 = vadd.f32 %v6474_v42, %v5928_v12  ;;  %v15086_v36 = vld [vmem:[#allocation12_spill] sm:$0xff] }
 0x50d   : > { %v4376_v23 = vadd.f32 %v4120_v22, %v3570_v15  ;;  %v5728_v13 = vsel %vm5458_vm8, %v12807_v39, 0.0  ;;  %v3382_v45 = vsel %vm3112_vm0, %v12778_v33, 0.0  ;;  %v6530_v1 = vsel %vm6260_vm11, %v12811_v4, 0.0 }
 0x50e   : > { %v2836_v35 = vadd.f32 %v2580_v8, %v2016_v16  ;;  %v4188_v52 = vsel %vm3918_vm2, %v12789_v59, 0.0  ;;  %vm4720_vm7 = vcmp.eq.s32.totalorder %v15083_v21, %v12791_v20  ;;  %7142 = vmatpush.msrb.mxu1 %v6730_v49  ;;  %vm5526_vm12 = vcmp.eq.s32.totalorder %v15083_v21, %v12805_v31 }
 0x50f   : > { %v5178_v11 = vadd.f32 %v4922_v19, %v4376_v23  ;;  %v4990_v60 = vsel %vm4720_vm7, %v12793_v46, 0.0  ;;  %vm6328_vm1 = vcmp.eq.s32.totalorder %v15083_v21, %v12809_v28  ;;  %vm480_vm5 = vcmp.eq.s32.totalorder %v15084_v0, %v12753_v25 }
 0x510   : > { %v3638_v62 = vadd.f32 %v3382_v45, %v2836_v35  ;;  %vm1298_vm9 = vcmp.eq.s32.totalorder %v15084_v0, %v12757_v54  ;;  %vm2118_vm10 = vcmp.eq.s32.totalorder %v15084_v0, %v12761_v30  ;;  %v750_v55 = vsel %vm480_vm5, %v12755_v57, 0.0 }
 0x511   : > { %v5984_v43 = vadd.f32 %v5728_v13, %v5178_v11  ;;  %v1568_v34 = vsel %vm1298_vm9, %v12759_v58, 0.0  ;;  %v2388_v56 = vsel %vm2118_vm10, %v12763_v26, 0.0  ;;  %vm2920_vm3 = vcmp.eq.s32.totalorder %v15084_v0, %v12776_v44 }
 0x512   : > { %v4444_v24 = vadd.f32 %v4188_v52, %v3638_v62  ;;  %v1824_v29 = vadd.f32 %v1568_v34, %v750_v55  ;;  %vm3726_vm6 = vcmp.eq.s32.totalorder %v15084_v0, %v12787_v10  ;;  %v5796_v41 = vsel %vm5526_vm12, %v12807_v39, 0.0  ;;  %v15087_v55 = vld [vmem:[#allocation13_spill] sm:$0xff] }
 0x513   : > { %v6786_v17 = vadd.f32 %v6530_v1, %v5984_v43  ;;  %v3190_v5 = vsel %vm2920_vm3, %v12778_v33, 0.0  ;;  %vm4528_vm13 = vcmp.eq.s32.totalorder %v15084_v0, %v12791_v20  ;;  %v6598_v7 = vsel %vm6328_vm1, %v12811_v4, 0.0 }
 0x514   : > { %v5246_v2 = vadd.f32 %v4990_v60, %v4444_v24  ;;  %v2644_v27 = vadd.f32 %v2388_v56, %v1824_v29  ;;  %v3996_v51 = vsel %vm3726_vm6, %v12789_v59, 0.0  ;;  %v4798_v53 = vsel %vm4528_vm13, %v12793_v46, 0.0 }
 0x515   : > { %7164 = vmatpush.msrb.mxu2 %v6786_v17  ;;  %vm5334_vm8 = vcmp.eq.s32.totalorder %v15084_v0, %v12805_v31  ;;  %vm544_vm11 = vcmp.eq.s32.totalorder %v15085_v3, %v12753_v25  ;;  %vm1362_vm15 = vcmp.eq.s32.totalorder %v15085_v3, %v12757_v54  ;;  %vm6136_vm4 = vcmp.eq.s32.totalorder %v15084_v0, %v12809_v28 }
 0x516   : > { %v6052_v14 = vadd.f32 %v5796_v41, %v5246_v2  ;;  %v3446_v9 = vadd.f32 %v3190_v5, %v2644_v27  ;;  %v814_v18 = vsel %vm544_vm11, %v12755_v57, 0.0  ;;  %v1632_v38 = vsel %vm1362_vm15, %v12759_v58, 0.0 }
 0x517   : > { %vm2182_vm14 = vcmp.eq.s32.totalorder %v15085_v3, %v12761_v30  ;;  %vm2984_vm0 = vcmp.eq.s32.totalorder %v15085_v3, %v12776_v44  ;;  %vm3790_vm2 = vcmp.eq.s32.totalorder %v15085_v3, %v12787_v10  ;;  %v1888_v42 = vadd.f32 %v1632_v38, %v814_v18  ;;  %v15088_v38 = vld [vmem:[#allocation14_spill] sm:$0xff] }
 0x518   : > { %v6854_v32 = vadd.f32 %v6598_v7, %v6052_v14  ;;  %v4252_v61 = vadd.f32 %v3996_v51, %v3446_v9  ;;  %v2452_v50 = vsel %vm2182_vm14, %v12763_v26, 0.0  ;;  %v5604_v22 = vsel %vm5334_vm8, %v12807_v39, 0.0 }
 0x519   : > { %v6406_v63 = vsel %vm6136_vm4, %v12811_v4, 0.0  ;;  %v3254_v48 = vsel %vm2984_vm0, %v12778_v33, 0.0  ;;  %vm4592_vm7 = vcmp.eq.s32.totalorder %v15085_v3, %v12791_v20  ;;  %v2708_v21 = vadd.f32 %v2452_v50, %v1888_v42 }
 0x51a   : > { %7183 = vmatpush.msrb.mxu3 %v6854_v32  ;;  %v5054_v19 = vadd.f32 %v4798_v53, %v4252_v61  ;;  %v4060_v12 = vsel %vm3790_vm2, %v12789_v59, 0.0  ;;  %vm5398_vm12 = vcmp.eq.s32.totalorder %v15085_v3, %v12805_v31  ;;  %v4862_v15 = vsel %vm4592_vm7, %v12793_v46, 0.0 }
 0x51b   : > { %vm600_vm1 = vcmp.eq.s32.totalorder %v15086_v36, %v12753_v25  ;;  %vm1418_vm5 = vcmp.eq.s32.totalorder %v15086_v36, %v12757_v54  ;;  %vm2238_vm9 = vcmp.eq.s32.totalorder %v15086_v36, %v12761_v30  ;;  %v3510_v16 = vadd.f32 %v3254_v48, %v2708_v21 }
 0x51c   : > { %v5860_v37 = vadd.f32 %v5604_v22, %v5054_v19  ;;  %vm6200_vm10 = vcmp.eq.s32.totalorder %v15085_v3, %v12809_v28  ;;  %v870_v8 = vsel %vm600_vm1, %v12755_v57, 0.0  ;;  %v1688_v49 = vsel %vm1418_vm5, %v12759_v58, 0.0 }
 0x51d   : > { %v2508_v23 = vsel %vm2238_vm9, %v12763_v26, 0.0  ;;  %vm3040_vm3 = vcmp.eq.s32.totalorder %v15086_v36, %v12776_v44  ;;  %vm3846_vm6 = vcmp.eq.s32.totalorder %v15086_v36, %v12787_v10  ;;  %v4316_v45 = vadd.f32 %v4060_v12, %v3510_v16 }
 0x51e   : > { %v6662_v13 = vadd.f32 %v6406_v63, %v5860_v37  ;;  %v5668_v1 = vsel %vm5398_vm12, %v12807_v39, 0.0  ;;  %v1944_v35 = vadd.f32 %v1688_v49, %v870_v8  ;;  %v6470_v52 = vsel %vm6200_vm10, %v12811_v4, 0.0  ;;  %v15089_v8 = vld [vmem:[#allocation15_spill] sm:$0xff] }
 0x51f   : > { %v3310_v11 = vsel %vm3040_vm3, %v12778_v33, 0.0  ;;  %v4116_v60 = vsel %vm3846_vm6, %v12789_v59, 0.0  ;;  %vm4648_vm13 = vcmp.eq.s32.totalorder %v15086_v36, %v12791_v20  ;;  %v5118_v62 = vadd.f32 %v4862_v15, %v4316_v45 }
 0x520   : > { %7123 = vmatpush.msrb.mxu0 %v6662_v13  ;;  %v2764_v0 = vadd.f32 %v2508_v23, %v1944_v35  ;;  %vm5454_vm8 = vcmp.eq.s32.totalorder %v15086_v36, %v12805_v31  ;;  %vm6256_vm11 = vcmp.eq.s32.totalorder %v15086_v36, %v12809_v28  ;;  %v4918_v43 = vsel %vm4648_vm13, %v12793_v46, 0.0 }
 0x521   : > { %vm668_vm15 = vcmp.eq.s32.totalorder %v15087_v55, %v12753_v25  ;;  %vm1486_vm4 = vcmp.eq.s32.totalorder %v15087_v55, %v12757_v54  ;;  %vm2306_vm14 = vcmp.eq.s32.totalorder %v15087_v55, %v12761_v30  ;;  %v5924_v34 = vadd.f32 %v5668_v1, %v5118_v62 }
 0x522   : > { %v3566_v56 = vadd.f32 %v3310_v11, %v2764_v0  ;;  %v938_v24 = vsel %vm668_vm15, %v12755_v57, 0.0  ;;  %v1756_v29 = vsel %vm1486_vm4, %v12759_v58, 0.0  ;;  %v2576_v41 = vsel %vm2306_vm14, %v12763_v26, 0.0 }
 0x523   : > { %v2012_v17 = vadd.f32 %v1756_v29, %v938_v24  ;;  %vm3108_vm0 = vcmp.eq.s32.totalorder %v15087_v55, %v12776_v44  ;;  %vm3914_vm2 = vcmp.eq.s32.totalorder %v15087_v55, %v12787_v10  ;;  %v6726_v5 = vadd.f32 %v6470_v52, %v5924_v34  ;;  %v15090_v24 = vld [vmem:[#allocation16_spill] sm:$0xff] }
 0x524   : > { %v4372_v2 = vadd.f32 %v4116_v60, %v3566_v56  ;;  %v5724_v7 = vsel %vm5454_vm8, %v12807_v39, 0.0  ;;  %v3378_v27 = vsel %vm3108_vm0, %v12778_v33, 0.0  ;;  %v6526_v51 = vsel %vm6256_vm11, %v12811_v4, 0.0 }
 0x525   : > { %v2832_v53 = vadd.f32 %v2576_v41, %v2012_v17  ;;  %v4184_v3 = vsel %vm3914_vm2, %v12789_v59, 0.0  ;;  %vm4716_vm7 = vcmp.eq.s32.totalorder %v15087_v55, %v12791_v20  ;;  %7143 = vmatpush.msrb.mxu1 %v6726_v5  ;;  %vm5522_vm12 = vcmp.eq.s32.totalorder %v15087_v55, %v12805_v31 }
 0x526   : > { %v5174_v14 = vadd.f32 %v4918_v43, %v4372_v2  ;;  %v4986_v9 = vsel %vm4716_vm7, %v12793_v46, 0.0  ;;  %vm6324_vm1 = vcmp.eq.s32.totalorder %v15087_v55, %v12809_v28  ;;  %vm476_vm5 = vcmp.eq.s32.totalorder %v15088_v38, %v12753_v25 }
 0x527   : > { %v3634_v18 = vadd.f32 %v3378_v27, %v2832_v53  ;;  %vm1294_vm9 = vcmp.eq.s32.totalorder %v15088_v38, %v12757_v54  ;;  %vm2114_vm10 = vcmp.eq.s32.totalorder %v15088_v38, %v12761_v30  ;;  %v746_v61 = vsel %vm476_vm5, %v12755_v57, 0.0 }
 0x528   : > { %v5980_v32 = vadd.f32 %v5724_v7, %v5174_v14  ;;  %v1564_v42 = vsel %vm1294_vm9, %v12759_v58, 0.0  ;;  %v2384_v50 = vsel %vm2114_vm10, %v12763_v26, 0.0  ;;  %vm2916_vm3 = vcmp.eq.s32.totalorder %v15088_v38, %v12776_v44 }
 0x529   : > { %v4440_v22 = vadd.f32 %v4184_v3, %v3634_v18  ;;  %v1820_v63 = vadd.f32 %v1564_v42, %v746_v61  ;;  %vm3722_vm6 = vcmp.eq.s32.totalorder %v15088_v38, %v12787_v10  ;;  %v5792_v19 = vsel %vm5522_vm12, %v12807_v39, 0.0  ;;  %v15091_v61 = vld [vmem:[#allocation17_spill] sm:$0xff] }
 0x52a   : > { %v6782_v48 = vadd.f32 %v6526_v51, %v5980_v32  ;;  %v3186_v21 = vsel %vm2916_vm3, %v12778_v33, 0.0  ;;  %vm4524_vm13 = vcmp.eq.s32.totalorder %v15088_v38, %v12791_v20  ;;  %v6594_v15 = vsel %vm6324_vm1, %v12811_v4, 0.0 }
 0x52b   : > { %v5242_v12 = vadd.f32 %v4986_v9, %v4440_v22  ;;  %v2640_v36 = vadd.f32 %v2384_v50, %v1820_v63  ;;  %v3992_v37 = vsel %vm3722_vm6, %v12789_v59, 0.0  ;;  %v4794_v16 = vsel %vm4524_vm13, %v12793_v46, 0.0 }
 0x52c   : > { %7165 = vmatpush.msrb.mxu2 %v6782_v48  ;;  %vm5330_vm8 = vcmp.eq.s32.totalorder %v15088_v38, %v12805_v31  ;;  %vm540_vm11 = vcmp.eq.s32.totalorder %v15089_v8, %v12753_v25  ;;  %vm1358_vm15 = vcmp.eq.s32.totalorder %v15089_v8, %v12757_v54  ;;  %vm6132_vm4 = vcmp.eq.s32.totalorder %v15088_v38, %v12809_v28 }
 0x52d   : > { %v6048_v49 = vadd.f32 %v5792_v19, %v5242_v12  ;;  %v3442_v23 = vadd.f32 %v3186_v21, %v2640_v36  ;;  %v810_v13 = vsel %vm540_vm11, %v12755_v57, 0.0  ;;  %v1628_v45 = vsel %vm1358_vm15, %v12759_v58, 0.0 }
 0x52e   : > { %vm2178_vm14 = vcmp.eq.s32.totalorder %v15089_v8, %v12761_v30  ;;  %vm2980_vm0 = vcmp.eq.s32.totalorder %v15089_v8, %v12776_v44  ;;  %vm3786_vm2 = vcmp.eq.s32.totalorder %v15089_v8, %v12787_v10  ;;  %v1884_v52 = vadd.f32 %v1628_v45, %v810_v13  ;;  %v15092_v45 = vld [vmem:[#allocation18_spill] sm:$0xff] }
 0x52f   : > { %v6850_v1 = vadd.f32 %v6594_v15, %v6048_v49  ;;  %v4248_v35 = vadd.f32 %v3992_v37, %v3442_v23  ;;  %v2448_v11 = vsel %vm2178_vm14, %v12763_v26, 0.0  ;;  %v5600_v60 = vsel %vm5330_vm8, %v12807_v39, 0.0 }
 0x530   : > { %v6402_v62 = vsel %vm6132_vm4, %v12811_v4, 0.0  ;;  %v3250_v0 = vsel %vm2980_vm0, %v12778_v33, 0.0  ;;  %vm4588_vm7 = vcmp.eq.s32.totalorder %v15089_v8, %v12791_v20  ;;  %v2704_v55 = vadd.f32 %v2448_v11, %v1884_v52 }
 0x531   : > { %7184 = vmatpush.msrb.mxu3 %v6850_v1  ;;  %v5050_v43 = vadd.f32 %v4794_v16, %v4248_v35  ;;  %v4056_v34 = vsel %vm3786_vm2, %v12789_v59, 0.0  ;;  %vm5394_vm12 = vcmp.eq.s32.totalorder %v15089_v8, %v12805_v31  ;;  %v4858_v56 = vsel %vm4588_vm7, %v12793_v46, 0.0 }
 0x532   : > { %vm596_vm1 = vcmp.eq.s32.totalorder %v15090_v24, %v12753_v25  ;;  %vm1414_vm5 = vcmp.eq.s32.totalorder %v15090_v24, %v12757_v54  ;;  %vm2234_vm9 = vcmp.eq.s32.totalorder %v15090_v24, %v12761_v30  ;;  %v3506_v17 = vadd.f32 %v3250_v0, %v2704_v55 }
 0x533   : > { %v5856_v29 = vadd.f32 %v5600_v60, %v5050_v43  ;;  %vm6196_vm10 = vcmp.eq.s32.totalorder %v15089_v8, %v12809_v28  ;;  %v866_v41 = vsel %vm596_vm1, %v12755_v57, 0.0  ;;  %v1684_v5 = vsel %vm1414_vm5, %v12759_v58, 0.0 }
 0x534   : > { %v2504_v2 = vsel %vm2234_vm9, %v12763_v26, 0.0  ;;  %vm3036_vm3 = vcmp.eq.s32.totalorder %v15090_v24, %v12776_v44  ;;  %vm3842_vm6 = vcmp.eq.s32.totalorder %v15090_v24, %v12787_v10  ;;  %v4312_v27 = vadd.f32 %v4056_v34, %v3506_v17 }
 0x535   : > { %v6658_v7 = vadd.f32 %v6402_v62, %v5856_v29  ;;  %v5664_v51 = vsel %vm5394_vm12, %v12807_v39, 0.0  ;;  %v1940_v53 = vadd.f32 %v1684_v5, %v866_v41  ;;  %v6466_v3 = vsel %vm6196_vm10, %v12811_v4, 0.0  ;;  %v15093_v41 = vld [vmem:[#allocation19_spill] sm:$0xff] }
 0x536   : > { %v3306_v14 = vsel %vm3036_vm3, %v12778_v33, 0.0  ;;  %v4112_v9 = vsel %vm3842_vm6, %v12789_v59, 0.0  ;;  %vm4644_vm13 = vcmp.eq.s32.totalorder %v15090_v24, %v12791_v20  ;;  %v5114_v18 = vadd.f32 %v4858_v56, %v4312_v27 }
 0x537   : > { %7124 = vmatpush.msrb.mxu0 %v6658_v7  ;;  %v2760_v38 = vadd.f32 %v2504_v2, %v1940_v53  ;;  %vm5450_vm8 = vcmp.eq.s32.totalorder %v15090_v24, %v12805_v31  ;;  %vm6252_vm11 = vcmp.eq.s32.totalorder %v15090_v24, %v12809_v28  ;;  %v4914_v32 = vsel %vm4644_vm13, %v12793_v46, 0.0 }
 0x538   : > { %vm664_vm15 = vcmp.eq.s32.totalorder %v15091_v61, %v12753_v25  ;;  %vm1482_vm4 = vcmp.eq.s32.totalorder %v15091_v61, %v12757_v54  ;;  %vm2302_vm14 = vcmp.eq.s32.totalorder %v15091_v61, %v12761_v30  ;;  %v5920_v42 = vadd.f32 %v5664_v51, %v5114_v18 }
 0x539   : > { %v3562_v50 = vadd.f32 %v3306_v14, %v2760_v38  ;;  %v934_v22 = vsel %vm664_vm15, %v12755_v57, 0.0  ;;  %v1752_v63 = vsel %vm1482_vm4, %v12759_v58, 0.0  ;;  %v2572_v19 = vsel %vm2302_vm14, %v12763_v26, 0.0 }
 0x53a   : > { %v2008_v48 = vadd.f32 %v1752_v63, %v934_v22  ;;  %vm3104_vm0 = vcmp.eq.s32.totalorder %v15091_v61, %v12776_v44  ;;  %vm3910_vm2 = vcmp.eq.s32.totalorder %v15091_v61, %v12787_v10  ;;  %v6722_v21 = vadd.f32 %v6466_v3, %v5920_v42  ;;  %v15094_v22 = vld [vmem:[#allocation20_spill] sm:$0xff] }
 0x53b   : > { %v4368_v12 = vadd.f32 %v4112_v9, %v3562_v50  ;;  %v5720_v15 = vsel %vm5450_vm8, %v12807_v39, 0.0  ;;  %v3374_v36 = vsel %vm3104_vm0, %v12778_v33, 0.0  ;;  %v6522_v37 = vsel %vm6252_vm11, %v12811_v4, 0.0 }
 0x53c   : > { %v2828_v16 = vadd.f32 %v2572_v19, %v2008_v48  ;;  %v4180_v8 = vsel %vm3910_vm2, %v12789_v59, 0.0  ;;  %vm4712_vm7 = vcmp.eq.s32.totalorder %v15091_v61, %v12791_v20  ;;  %7144 = vmatpush.msrb.mxu1 %v6722_v21  ;;  %vm5518_vm12 = vcmp.eq.s32.totalorder %v15091_v61, %v12805_v31 }
 0x53d   : > { %v5170_v49 = vadd.f32 %v4914_v32, %v4368_v12  ;;  %v4982_v23 = vsel %vm4712_vm7, %v12793_v46, 0.0  ;;  %vm6320_vm1 = vcmp.eq.s32.totalorder %v15091_v61, %v12809_v28  ;;  %vm472_vm5 = vcmp.eq.s32.totalorder %v15092_v45, %v12753_v25 }
 0x53e   : > { %v3630_v13 = vadd.f32 %v3374_v36, %v2828_v16  ;;  %vm1290_vm9 = vcmp.eq.s32.totalorder %v15092_v45, %v12757_v54  ;;  %vm2110_vm10 = vcmp.eq.s32.totalorder %v15092_v45, %v12761_v30  ;;  %v742_v35 = vsel %vm472_vm5, %v12755_v57, 0.0 }
 0x53f   : > { %v5976_v1 = vadd.f32 %v5720_v15, %v5170_v49  ;;  %v1560_v52 = vsel %vm1290_vm9, %v12759_v58, 0.0  ;;  %v2380_v11 = vsel %vm2110_vm10, %v12763_v26, 0.0  ;;  %vm2912_vm3 = vcmp.eq.s32.totalorder %v15092_v45, %v12776_v44 }
 0x540   : > { %v4436_v60 = vadd.f32 %v4180_v8, %v3630_v13  ;;  %v1816_v62 = vadd.f32 %v1560_v52, %v742_v35  ;;  %vm3718_vm6 = vcmp.eq.s32.totalorder %v15092_v45, %v12787_v10  ;;  %v5788_v43 = vsel %vm5518_vm12, %v12807_v39, 0.0  ;;  %v15095_v35 = vld [vmem:[#allocation21_spill] sm:$0xff] }
 0x541   : > { %v6778_v0 = vadd.f32 %v6522_v37, %v5976_v1  ;;  %v3182_v55 = vsel %vm2912_vm3, %v12778_v33, 0.0  ;;  %vm4520_vm13 = vcmp.eq.s32.totalorder %v15092_v45, %v12791_v20  ;;  %v6590_v56 = vsel %vm6320_vm1, %v12811_v4, 0.0 }
 0x542   : > { %v5238_v34 = vadd.f32 %v4982_v23, %v4436_v60  ;;  %v2636_v24 = vadd.f32 %v2380_v11, %v1816_v62  ;;  %v3988_v29 = vsel %vm3718_vm6, %v12789_v59, 0.0  ;;  %v4790_v17 = vsel %vm4520_vm13, %v12793_v46, 0.0 }
 0x543   : > { %7166 = vmatpush.msrb.mxu2 %v6778_v0  ;;  %vm5326_vm8 = vcmp.eq.s32.totalorder %v15092_v45, %v12805_v31  ;;  %vm536_vm11 = vcmp.eq.s32.totalorder %v15093_v41, %v12753_v25  ;;  %vm1354_vm15 = vcmp.eq.s32.totalorder %v15093_v41, %v12757_v54  ;;  %vm6128_vm4 = vcmp.eq.s32.totalorder %v15092_v45, %v12809_v28 }
 0x544   : > { %v6044_v5 = vadd.f32 %v5788_v43, %v5238_v34  ;;  %v3438_v2 = vadd.f32 %v3182_v55, %v2636_v24  ;;  %v806_v7 = vsel %vm536_vm11, %v12755_v57, 0.0  ;;  %v1624_v27 = vsel %vm1354_vm15, %v12759_v58, 0.0 }
 0x545   : > { %vm2174_vm14 = vcmp.eq.s32.totalorder %v15093_v41, %v12761_v30  ;;  %vm2976_vm0 = vcmp.eq.s32.totalorder %v15093_v41, %v12776_v44  ;;  %vm3782_vm2 = vcmp.eq.s32.totalorder %v15093_v41, %v12787_v10  ;;  %v1880_v3 = vadd.f32 %v1624_v27, %v806_v7  ;;  %v15096_v27 = vld [vmem:[#allocation22_spill] sm:$0xff] }
 0x546   : > { %v6846_v51 = vadd.f32 %v6590_v56, %v6044_v5  ;;  %v4244_v53 = vadd.f32 %v3988_v29, %v3438_v2  ;;  %v2444_v14 = vsel %vm2174_vm14, %v12763_v26, 0.0  ;;  %v5596_v9 = vsel %vm5326_vm8, %v12807_v39, 0.0 }
 0x547   : > { %v6398_v18 = vsel %vm6128_vm4, %v12811_v4, 0.0  ;;  %v3246_v38 = vsel %vm2976_vm0, %v12778_v33, 0.0  ;;  %vm4584_vm7 = vcmp.eq.s32.totalorder %v15093_v41, %v12791_v20  ;;  %v2700_v61 = vadd.f32 %v2444_v14, %v1880_v3 }
 0x548   : > { %7185 = vmatpush.msrb.mxu3 %v6846_v51  ;;  %v5046_v32 = vadd.f32 %v4790_v17, %v4244_v53  ;;  %v4052_v42 = vsel %vm3782_vm2, %v12789_v59, 0.0  ;;  %vm5390_vm12 = vcmp.eq.s32.totalorder %v15093_v41, %v12805_v31  ;;  %v4854_v50 = vsel %vm4584_vm7, %v12793_v46, 0.0 }
 0x549   : > { %vm592_vm1 = vcmp.eq.s32.totalorder %v15094_v22, %v12753_v25  ;;  %vm1410_vm5 = vcmp.eq.s32.totalorder %v15094_v22, %v12757_v54  ;;  %vm2230_vm9 = vcmp.eq.s32.totalorder %v15094_v22, %v12761_v30  ;;  %v3502_v48 = vadd.f32 %v3246_v38, %v2700_v61 }
 0x54a   : > { %v5852_v63 = vadd.f32 %v5596_v9, %v5046_v32  ;;  %vm6192_vm10 = vcmp.eq.s32.totalorder %v15093_v41, %v12809_v28  ;;  %v862_v19 = vsel %vm592_vm1, %v12755_v57, 0.0  ;;  %v1680_v21 = vsel %vm1410_vm5, %v12759_v58, 0.0 }
 0x54b   : > { %v2500_v12 = vsel %vm2230_vm9, %v12763_v26, 0.0  ;;  %vm3032_vm3 = vcmp.eq.s32.totalorder %v15094_v22, %v12776_v44  ;;  %vm3838_vm6 = vcmp.eq.s32.totalorder %v15094_v22, %v12787_v10  ;;  %v4308_v36 = vadd.f32 %v4052_v42, %v3502_v48 }
 0x54c   : > { %v6654_v15 = vadd.f32 %v6398_v18, %v5852_v63  ;;  %v5660_v37 = vsel %vm5390_vm12, %v12807_v39, 0.0  ;;  %v1936_v16 = vadd.f32 %v1680_v21, %v862_v19  ;;  %v6462_v8 = vsel %vm6192_vm10, %v12811_v4, 0.0  ;;  %v15097_v19 = vld [vmem:[#allocation23_spill] sm:$0xff] }
 0x54d   : > { %v3302_v49 = vsel %vm3032_vm3, %v12778_v33, 0.0  ;;  %v4108_v23 = vsel %vm3838_vm6, %v12789_v59, 0.0  ;;  %vm4640_vm13 = vcmp.eq.s32.totalorder %v15094_v22, %v12791_v20  ;;  %v5110_v13 = vadd.f32 %v4854_v50, %v4308_v36 }
 0x54e   : > { %7125 = vmatpush.msrb.mxu0 %v6654_v15  ;;  %v2756_v45 = vadd.f32 %v2500_v12, %v1936_v16  ;;  %vm5446_vm8 = vcmp.eq.s32.totalorder %v15094_v22, %v12805_v31  ;;  %vm6248_vm11 = vcmp.eq.s32.totalorder %v15094_v22, %v12809_v28  ;;  %v4910_v1 = vsel %vm4640_vm13, %v12793_v46, 0.0 }
 0x54f   : > { %vm660_vm15 = vcmp.eq.s32.totalorder %v15095_v35, %v12753_v25  ;;  %vm1478_vm4 = vcmp.eq.s32.totalorder %v15095_v35, %v12757_v54  ;;  %vm2298_vm14 = vcmp.eq.s32.totalorder %v15095_v35, %v12761_v30  ;;  %v5916_v52 = vadd.f32 %v5660_v37, %v5110_v13 }
 0x550   : > { %v3558_v11 = vadd.f32 %v3302_v49, %v2756_v45  ;;  %v930_v60 = vsel %vm660_vm15, %v12755_v57, 0.0  ;;  %v1748_v62 = vsel %vm1478_vm4, %v12759_v58, 0.0  ;;  %v2568_v43 = vsel %vm2298_vm14, %v12763_v26, 0.0 }
 0x551   : > { %v2004_v0 = vadd.f32 %v1748_v62, %v930_v60  ;;  %vm3100_vm0 = vcmp.eq.s32.totalorder %v15095_v35, %v12776_v44  ;;  %vm3906_vm2 = vcmp.eq.s32.totalorder %v15095_v35, %v12787_v10  ;;  %v6718_v55 = vadd.f32 %v6462_v8, %v5916_v52  ;;  %v15098_v60 = vld [vmem:[#allocation24_spill] sm:$0xff] }
 0x552   : > { %v4364_v34 = vadd.f32 %v4108_v23, %v3558_v11  ;;  %v5716_v56 = vsel %vm5446_vm8, %v12807_v39, 0.0  ;;  %v3370_v24 = vsel %vm3100_vm0, %v12778_v33, 0.0  ;;  %v6518_v29 = vsel %vm6248_vm11, %v12811_v4, 0.0 }
 0x553   : > { %v2824_v17 = vadd.f32 %v2568_v43, %v2004_v0  ;;  %v4176_v41 = vsel %vm3906_vm2, %v12789_v59, 0.0  ;;  %vm4708_vm7 = vcmp.eq.s32.totalorder %v15095_v35, %v12791_v20  ;;  %7145 = vmatpush.msrb.mxu1 %v6718_v55  ;;  %vm5514_vm12 = vcmp.eq.s32.totalorder %v15095_v35, %v12805_v31 }
 0x554   : > { %v5166_v5 = vadd.f32 %v4910_v1, %v4364_v34  ;;  %v4978_v2 = vsel %vm4708_vm7, %v12793_v46, 0.0  ;;  %vm6316_vm1 = vcmp.eq.s32.totalorder %v15095_v35, %v12809_v28  ;;  %vm468_vm5 = vcmp.eq.s32.totalorder %v15096_v27, %v12753_v25 }
 0x555   : > { %v3626_v7 = vadd.f32 %v3370_v24, %v2824_v17  ;;  %vm1286_vm9 = vcmp.eq.s32.totalorder %v15096_v27, %v12757_v54  ;;  %vm2106_vm10 = vcmp.eq.s32.totalorder %v15096_v27, %v12761_v30  ;;  %v738_v53 = vsel %vm468_vm5, %v12755_v57, 0.0 }
 0x556   : > { %v5972_v51 = vadd.f32 %v5716_v56, %v5166_v5  ;;  %v1556_v3 = vsel %vm1286_vm9, %v12759_v58, 0.0  ;;  %v2376_v14 = vsel %vm2106_vm10, %v12763_v26, 0.0  ;;  %vm2908_vm3 = vcmp.eq.s32.totalorder %v15096_v27, %v12776_v44 }
 0x557   : > { %v4432_v9 = vadd.f32 %v4176_v41, %v3626_v7  ;;  %v1812_v18 = vadd.f32 %v1556_v3, %v738_v53  ;;  %vm3714_vm6 = vcmp.eq.s32.totalorder %v15096_v27, %v12787_v10  ;;  %v5784_v32 = vsel %vm5514_vm12, %v12807_v39, 0.0  ;;  %v15099_v53 = vld [vmem:[#allocation25_spill] sm:$0xff] }
 0x558   : > { %v6774_v38 = vadd.f32 %v6518_v29, %v5972_v51  ;;  %v3178_v61 = vsel %vm2908_vm3, %v12778_v33, 0.0  ;;  %vm4516_vm13 = vcmp.eq.s32.totalorder %v15096_v27, %v12791_v20  ;;  %v6586_v50 = vsel %vm6316_vm1, %v12811_v4, 0.0 }
 0x559   : > { %v5234_v42 = vadd.f32 %v4978_v2, %v4432_v9  ;;  %v2632_v22 = vadd.f32 %v2376_v14, %v1812_v18  ;;  %v3984_v63 = vsel %vm3714_vm6, %v12789_v59, 0.0  ;;  %v4786_v48 = vsel %vm4516_vm13, %v12793_v46, 0.0 }
 0x55a   : > { %7167 = vmatpush.msrb.mxu2 %v6774_v38  ;;  %vm5322_vm8 = vcmp.eq.s32.totalorder %v15096_v27, %v12805_v31  ;;  %vm532_vm11 = vcmp.eq.s32.totalorder %v15097_v19, %v12753_v25  ;;  %vm1350_vm15 = vcmp.eq.s32.totalorder %v15097_v19, %v12757_v54  ;;  %vm6124_vm4 = vcmp.eq.s32.totalorder %v15096_v27, %v12809_v28 }
 0x55b   : > { %v6040_v21 = vadd.f32 %v5784_v32, %v5234_v42  ;;  %v3434_v12 = vadd.f32 %v3178_v61, %v2632_v22  ;;  %v802_v15 = vsel %vm532_vm11, %v12755_v57, 0.0  ;;  %v1620_v36 = vsel %vm1350_vm15, %v12759_v58, 0.0 }
 0x55c   : > { %vm2170_vm14 = vcmp.eq.s32.totalorder %v15097_v19, %v12761_v30  ;;  %vm2972_vm0 = vcmp.eq.s32.totalorder %v15097_v19, %v12776_v44  ;;  %vm3778_vm2 = vcmp.eq.s32.totalorder %v15097_v19, %v12787_v10  ;;  %v1876_v8 = vadd.f32 %v1620_v36, %v802_v15  ;;  %v15100_v36 = vld [vmem:[#allocation26_spill] sm:$0xff] }
 0x55d   : > { %v6842_v37 = vadd.f32 %v6586_v50, %v6040_v21  ;;  %v4240_v16 = vadd.f32 %v3984_v63, %v3434_v12  ;;  %v2440_v49 = vsel %vm2170_vm14, %v12763_v26, 0.0  ;;  %v5592_v23 = vsel %vm5322_vm8, %v12807_v39, 0.0 }
 0x55e   : > { %v6394_v13 = vsel %vm6124_vm4, %v12811_v4, 0.0  ;;  %v3242_v45 = vsel %vm2972_vm0, %v12778_v33, 0.0  ;;  %vm4580_vm7 = vcmp.eq.s32.totalorder %v15097_v19, %v12791_v20  ;;  %v2696_v35 = vadd.f32 %v2440_v49, %v1876_v8 }
 0x55f   : > { %7186 = vmatpush.msrb.mxu3 %v6842_v37  ;;  %v5042_v1 = vadd.f32 %v4786_v48, %v4240_v16  ;;  %v4048_v52 = vsel %vm3778_vm2, %v12789_v59, 0.0  ;;  %vm5386_vm12 = vcmp.eq.s32.totalorder %v15097_v19, %v12805_v31  ;;  %v4850_v11 = vsel %vm4580_vm7, %v12793_v46, 0.0 }
 0x560   : > { %vm588_vm1 = vcmp.eq.s32.totalorder %v15098_v60, %v12753_v25  ;;  %vm1406_vm5 = vcmp.eq.s32.totalorder %v15098_v60, %v12757_v54  ;;  %vm2226_vm9 = vcmp.eq.s32.totalorder %v15098_v60, %v12761_v30  ;;  %v3498_v0 = vadd.f32 %v3242_v45, %v2696_v35 }
 0x561   : > { %v5848_v62 = vadd.f32 %v5592_v23, %v5042_v1  ;;  %vm6188_vm10 = vcmp.eq.s32.totalorder %v15097_v19, %v12809_v28  ;;  %v858_v43 = vsel %vm588_vm1, %v12755_v57, 0.0  ;;  %v1676_v55 = vsel %vm1406_vm5, %v12759_v58, 0.0 }
 0x562   : > { %v2496_v34 = vsel %vm2226_vm9, %v12763_v26, 0.0  ;;  %vm3028_vm3 = vcmp.eq.s32.totalorder %v15098_v60, %v12776_v44  ;;  %vm3834_vm6 = vcmp.eq.s32.totalorder %v15098_v60, %v12787_v10  ;;  %v4304_v24 = vadd.f32 %v4048_v52, %v3498_v0 }
 0x563   : > { %v6650_v56 = vadd.f32 %v6394_v13, %v5848_v62  ;;  %v5656_v29 = vsel %vm5386_vm12, %v12807_v39, 0.0  ;;  %v1932_v17 = vadd.f32 %v1676_v55, %v858_v43  ;;  %v6458_v41 = vsel %vm6188_vm10, %v12811_v4, 0.0  ;;  %v15101_v43 = vld [vmem:[#allocation27_spill] sm:$0xff] }
 0x564   : > { %v3298_v5 = vsel %vm3028_vm3, %v12778_v33, 0.0  ;;  %v4104_v2 = vsel %vm3834_vm6, %v12789_v59, 0.0  ;;  %vm4636_vm13 = vcmp.eq.s32.totalorder %v15098_v60, %v12791_v20  ;;  %v5106_v7 = vadd.f32 %v4850_v11, %v4304_v24 }
 0x565   : > { %7126 = vmatpush.msrb.mxu0 %v6650_v56  ;;  %v2752_v27 = vadd.f32 %v2496_v34, %v1932_v17  ;;  %vm5442_vm8 = vcmp.eq.s32.totalorder %v15098_v60, %v12805_v31  ;;  %vm6244_vm11 = vcmp.eq.s32.totalorder %v15098_v60, %v12809_v28  ;;  %v4906_v51 = vsel %vm4636_vm13, %v12793_v46, 0.0 }
 0x566   : > { %vm656_vm15 = vcmp.eq.s32.totalorder %v15099_v53, %v12753_v25  ;;  %vm1474_vm4 = vcmp.eq.s32.totalorder %v15099_v53, %v12757_v54  ;;  %vm2294_vm14 = vcmp.eq.s32.totalorder %v15099_v53, %v12761_v30  ;;  %v5912_v3 = vadd.f32 %v5656_v29, %v5106_v7 }
 0x567   : > { %v3554_v14 = vadd.f32 %v3298_v5, %v2752_v27  ;;  %v926_v9 = vsel %vm656_vm15, %v12755_v57, 0.0  ;;  %v1744_v18 = vsel %vm1474_vm4, %v12759_v58, 0.0  ;;  %v2564_v32 = vsel %vm2294_vm14, %v12763_v26, 0.0 }
 0x568   : > { %v2000_v38 = vadd.f32 %v1744_v18, %v926_v9  ;;  %vm3096_vm0 = vcmp.eq.s32.totalorder %v15099_v53, %v12776_v44  ;;  %vm3902_vm2 = vcmp.eq.s32.totalorder %v15099_v53, %v12787_v10  ;;  %v6714_v61 = vadd.f32 %v6458_v41, %v5912_v3  ;;  %v15102_v9 = vld [vmem:[#allocation28_spill] sm:$0xff] }
 0x569   : > { %v4360_v42 = vadd.f32 %v4104_v2, %v3554_v14  ;;  %v5712_v50 = vsel %vm5442_vm8, %v12807_v39, 0.0  ;;  %v3366_v22 = vsel %vm3096_vm0, %v12778_v33, 0.0  ;;  %v6514_v63 = vsel %vm6244_vm11, %v12811_v4, 0.0 }
 0x56a   : > { %v2820_v48 = vadd.f32 %v2564_v32, %v2000_v38  ;;  %v4172_v19 = vsel %vm3902_vm2, %v12789_v59, 0.0  ;;  %vm4704_vm7 = vcmp.eq.s32.totalorder %v15099_v53, %v12791_v20  ;;  %7146 = vmatpush.msrb.mxu1 %v6714_v61  ;;  %vm5510_vm12 = vcmp.eq.s32.totalorder %v15099_v53, %v12805_v31 }
 0x56b   : > { %v5162_v21 = vadd.f32 %v4906_v51, %v4360_v42  ;;  %v4974_v12 = vsel %vm4704_vm7, %v12793_v46, 0.0  ;;  %vm6312_vm1 = vcmp.eq.s32.totalorder %v15099_v53, %v12809_v28  ;;  %vm464_vm5 = vcmp.eq.s32.totalorder %v15100_v36, %v12753_v25 }
 0x56c   : > { %v3622_v15 = vadd.f32 %v3366_v22, %v2820_v48  ;;  %vm1282_vm9 = vcmp.eq.s32.totalorder %v15100_v36, %v12757_v54  ;;  %vm2102_vm10 = vcmp.eq.s32.totalorder %v15100_v36, %v12761_v30  ;;  %v734_v16 = vsel %vm464_vm5, %v12755_v57, 0.0 }
 0x56d   : > { %v5968_v37 = vadd.f32 %v5712_v50, %v5162_v21  ;;  %v1552_v8 = vsel %vm1282_vm9, %v12759_v58, 0.0  ;;  %v2372_v49 = vsel %vm2102_vm10, %v12763_v26, 0.0  ;;  %vm2904_vm3 = vcmp.eq.s32.totalorder %v15100_v36, %v12776_v44 }
 0x56e   : > { %v4428_v23 = vadd.f32 %v4172_v19, %v3622_v15  ;;  %v1808_v13 = vadd.f32 %v1552_v8, %v734_v16  ;;  %vm3710_vm6 = vcmp.eq.s32.totalorder %v15100_v36, %v12787_v10  ;;  %v5780_v1 = vsel %vm5510_vm12, %v12807_v39, 0.0  ;;  %v15103_v16 = vld [vmem:[#allocation29_spill] sm:$0xff] }
 0x56f   : > { %v6770_v45 = vadd.f32 %v6514_v63, %v5968_v37  ;;  %v3174_v35 = vsel %vm2904_vm3, %v12778_v33, 0.0  ;;  %vm4512_vm13 = vcmp.eq.s32.totalorder %v15100_v36, %v12791_v20  ;;  %v6582_v11 = vsel %vm6312_vm1, %v12811_v4, 0.0 }
 0x570   : > { %v5230_v52 = vadd.f32 %v4974_v12, %v4428_v23  ;;  %v2628_v60 = vadd.f32 %v2372_v49, %v1808_v13  ;;  %v3980_v62 = vsel %vm3710_vm6, %v12789_v59, 0.0  ;;  %v4782_v0 = vsel %vm4512_vm13, %v12793_v46, 0.0 }
 0x571   : > { %7168 = vmatpush.msrb.mxu2 %v6770_v45  ;;  %vm5318_vm8 = vcmp.eq.s32.totalorder %v15100_v36, %v12805_v31  ;;  %vm528_vm11 = vcmp.eq.s32.totalorder %v15101_v43, %v12753_v25  ;;  %vm1346_vm15 = vcmp.eq.s32.totalorder %v15101_v43, %v12757_v54  ;;  %vm6120_vm4 = vcmp.eq.s32.totalorder %v15100_v36, %v12809_v28 }
 0x572   : > { %v6036_v55 = vadd.f32 %v5780_v1, %v5230_v52  ;;  %v3430_v34 = vadd.f32 %v3174_v35, %v2628_v60  ;;  %v798_v56 = vsel %vm528_vm11, %v12755_v57, 0.0  ;;  %v1616_v24 = vsel %vm1346_vm15, %v12759_v58, 0.0 }
 0x573   : > { %vm2166_vm14 = vcmp.eq.s32.totalorder %v15101_v43, %v12761_v30  ;;  %vm2968_vm0 = vcmp.eq.s32.totalorder %v15101_v43, %v12776_v44  ;;  %vm3774_vm2 = vcmp.eq.s32.totalorder %v15101_v43, %v12787_v10  ;;  %v1872_v41 = vadd.f32 %v1616_v24, %v798_v56  ;;  %v15104_v24 = vld [vmem:[#allocation30_spill] sm:$0xff] }
 0x574   : > { %v6838_v29 = vadd.f32 %v6582_v11, %v6036_v55  ;;  %v4236_v17 = vadd.f32 %v3980_v62, %v3430_v34  ;;  %v2436_v5 = vsel %vm2166_vm14, %v12763_v26, 0.0  ;;  %v5588_v2 = vsel %vm5318_vm8, %v12807_v39, 0.0 }
 0x575   : > { %v6390_v7 = vsel %vm6120_vm4, %v12811_v4, 0.0  ;;  %v3238_v27 = vsel %vm2968_vm0, %v12778_v33, 0.0  ;;  %vm4576_vm7 = vcmp.eq.s32.totalorder %v15101_v43, %v12791_v20  ;;  %v2692_v53 = vadd.f32 %v2436_v5, %v1872_v41 }
 0x576   : > { %7187 = vmatpush.msrb.mxu3 %v6838_v29  ;;  %v5038_v51 = vadd.f32 %v4782_v0, %v4236_v17  ;;  %v4044_v3 = vsel %vm3774_vm2, %v12789_v59, 0.0  ;;  %vm5382_vm12 = vcmp.eq.s32.totalorder %v15101_v43, %v12805_v31  ;;  %v4846_v14 = vsel %vm4576_vm7, %v12793_v46, 0.0 }
 0x577   : > { %vm584_vm1 = vcmp.eq.s32.totalorder %v15102_v9, %v12753_v25  ;;  %vm1402_vm5 = vcmp.eq.s32.totalorder %v15102_v9, %v12757_v54  ;;  %vm2222_vm9 = vcmp.eq.s32.totalorder %v15102_v9, %v12761_v30  ;;  %v3494_v38 = vadd.f32 %v3238_v27, %v2692_v53 }
 0x578   : > { %v5844_v18 = vadd.f32 %v5588_v2, %v5038_v51  ;;  %vm6184_vm10 = vcmp.eq.s32.totalorder %v15101_v43, %v12809_v28  ;;  %v854_v32 = vsel %vm584_vm1, %v12755_v57, 0.0  ;;  %v1672_v61 = vsel %vm1402_vm5, %v12759_v58, 0.0 }
 0x579   : > { %v2492_v42 = vsel %vm2222_vm9, %v12763_v26, 0.0  ;;  %vm3024_vm3 = vcmp.eq.s32.totalorder %v15102_v9, %v12776_v44  ;;  %vm3830_vm6 = vcmp.eq.s32.totalorder %v15102_v9, %v12787_v10  ;;  %v4300_v22 = vadd.f32 %v4044_v3, %v3494_v38 }
 0x57a   : > { %v6646_v50 = vadd.f32 %v6390_v7, %v5844_v18  ;;  %v5652_v63 = vsel %vm5382_vm12, %v12807_v39, 0.0  ;;  %v1928_v48 = vadd.f32 %v1672_v61, %v854_v32  ;;  %v6454_v19 = vsel %vm6184_vm10, %v12811_v4, 0.0  ;;  %v15105_v32 = vld [vmem:[#allocation31_spill] sm:$0xff] }
 0x57b   : > { %v3294_v21 = vsel %vm3024_vm3, %v12778_v33, 0.0  ;;  %v4100_v12 = vsel %vm3830_vm6, %v12789_v59, 0.0  ;;  %vm4632_vm13 = vcmp.eq.s32.totalorder %v15102_v9, %v12791_v20  ;;  %v5102_v15 = vadd.f32 %v4846_v14, %v4300_v22 }
 0x57c   : > { %7127 = vmatpush.msrb.mxu0 %v6646_v50  ;;  %v2748_v36 = vadd.f32 %v2492_v42, %v1928_v48  ;;  %vm5438_vm8 = vcmp.eq.s32.totalorder %v15102_v9, %v12805_v31  ;;  %vm6240_vm11 = vcmp.eq.s32.totalorder %v15102_v9, %v12809_v28  ;;  %v4902_v37 = vsel %vm4632_vm13, %v12793_v46, 0.0 }
 0x57d   : > { %vm652_vm15 = vcmp.eq.s32.totalorder %v15103_v16, %v12753_v25  ;;  %vm1470_vm4 = vcmp.eq.s32.totalorder %v15103_v16, %v12757_v54  ;;  %vm2290_vm14 = vcmp.eq.s32.totalorder %v15103_v16, %v12761_v30  ;;  %v5908_v8 = vadd.f32 %v5652_v63, %v5102_v15 }
 0x57e   : > { %v3550_v49 = vadd.f32 %v3294_v21, %v2748_v36  ;;  %v922_v23 = vsel %vm652_vm15, %v12755_v57, 0.0  ;;  %v1740_v13 = vsel %vm1470_vm4, %v12759_v58, 0.0  ;;  %v2560_v1 = vsel %vm2290_vm14, %v12763_v26, 0.0 }
 0x57f   : > { %v1996_v45 = vadd.f32 %v1740_v13, %v922_v23  ;;  %vm3092_vm0 = vcmp.eq.s32.totalorder %v15103_v16, %v12776_v44  ;;  %vm3898_vm2 = vcmp.eq.s32.totalorder %v15103_v16, %v12787_v10  ;;  %v6710_v35 = vadd.f32 %v6454_v19, %v5908_v8  ;;  %v15106_v23 = vld [vmem:[#allocation32_spill] sm:$0xff] }
 0x580   : > { %v4356_v52 = vadd.f32 %v4100_v12, %v3550_v49  ;;  %v5708_v11 = vsel %vm5438_vm8, %v12807_v39, 0.0  ;;  %v3362_v60 = vsel %vm3092_vm0, %v12778_v33, 0.0  ;;  %v6510_v62 = vsel %vm6240_vm11, %v12811_v4, 0.0 }
 0x581   : > { %v2816_v0 = vadd.f32 %v2560_v1, %v1996_v45  ;;  %v4168_v43 = vsel %vm3898_vm2, %v12789_v59, 0.0  ;;  %vm4700_vm7 = vcmp.eq.s32.totalorder %v15103_v16, %v12791_v20  ;;  %7147 = vmatpush.msrb.mxu1 %v6710_v35  ;;  %vm5506_vm12 = vcmp.eq.s32.totalorder %v15103_v16, %v12805_v31 }
 0x582   : > { %v5158_v55 = vadd.f32 %v4902_v37, %v4356_v52  ;;  %v4970_v34 = vsel %vm4700_vm7, %v12793_v46, 0.0  ;;  %vm6308_vm1 = vcmp.eq.s32.totalorder %v15103_v16, %v12809_v28  ;;  %vm460_vm5 = vcmp.eq.s32.totalorder %v15104_v24, %v12753_v25 }
 0x583   : > { %v3618_v56 = vadd.f32 %v3362_v60, %v2816_v0  ;;  %vm1278_vm9 = vcmp.eq.s32.totalorder %v15104_v24, %v12757_v54  ;;  %vm2098_vm10 = vcmp.eq.s32.totalorder %v15104_v24, %v12761_v30  ;;  %v730_v17 = vsel %vm460_vm5, %v12755_v57, 0.0 }
 0x584   : > { %v5964_v29 = vadd.f32 %v5708_v11, %v5158_v55  ;;  %v1548_v41 = vsel %vm1278_vm9, %v12759_v58, 0.0  ;;  %v2368_v5 = vsel %vm2098_vm10, %v12763_v26, 0.0  ;;  %vm2900_vm3 = vcmp.eq.s32.totalorder %v15104_v24, %v12776_v44 }
 0x585   : > { %v4424_v2 = vadd.f32 %v4168_v43, %v3618_v56  ;;  %v1804_v7 = vadd.f32 %v1548_v41, %v730_v17  ;;  %vm3706_vm6 = vcmp.eq.s32.totalorder %v15104_v24, %v12787_v10  ;;  %v5776_v51 = vsel %vm5506_vm12, %v12807_v39, 0.0  ;;  %v15107_v17 = vld [vmem:[#allocation33_spill] sm:$0xff] }
 0x586   : > { %v6766_v27 = vadd.f32 %v6510_v62, %v5964_v29  ;;  %v3170_v53 = vsel %vm2900_vm3, %v12778_v33, 0.0  ;;  %vm4508_vm13 = vcmp.eq.s32.totalorder %v15104_v24, %v12791_v20  ;;  %v6578_v14 = vsel %vm6308_vm1, %v12811_v4, 0.0 }
 0x587   : > { %v5226_v3 = vadd.f32 %v4970_v34, %v4424_v2  ;;  %v2624_v9 = vadd.f32 %v2368_v5, %v1804_v7  ;;  %v3976_v18 = vsel %vm3706_vm6, %v12789_v59, 0.0  ;;  %v4778_v38 = vsel %vm4508_vm13, %v12793_v46, 0.0 }
 0x588   : > { %7169 = vmatpush.msrb.mxu2 %v6766_v27  ;;  %vm5314_vm8 = vcmp.eq.s32.totalorder %v15104_v24, %v12805_v31  ;;  %vm524_vm11 = vcmp.eq.s32.totalorder %v15105_v32, %v12753_v25  ;;  %vm1342_vm15 = vcmp.eq.s32.totalorder %v15105_v32, %v12757_v54  ;;  %vm6116_vm4 = vcmp.eq.s32.totalorder %v15104_v24, %v12809_v28 }
 0x589   : > { %v6032_v61 = vadd.f32 %v5776_v51, %v5226_v3  ;;  %v3426_v42 = vadd.f32 %v3170_v53, %v2624_v9  ;;  %v794_v50 = vsel %vm524_vm11, %v12755_v57, 0.0  ;;  %v1612_v22 = vsel %vm1342_vm15, %v12759_v58, 0.0 }
 0x58a   : > { %vm2162_vm14 = vcmp.eq.s32.totalorder %v15105_v32, %v12761_v30  ;;  %vm2964_vm0 = vcmp.eq.s32.totalorder %v15105_v32, %v12776_v44  ;;  %vm3770_vm2 = vcmp.eq.s32.totalorder %v15105_v32, %v12787_v10  ;;  %v1868_v19 = vadd.f32 %v1612_v22, %v794_v50  ;;  %v15108_v22 = vld [vmem:[#allocation34_spill] sm:$0xff] }
 0x58b   : > { %v6834_v63 = vadd.f32 %v6578_v14, %v6032_v61  ;;  %v4232_v48 = vadd.f32 %v3976_v18, %v3426_v42  ;;  %v2432_v21 = vsel %vm2162_vm14, %v12763_v26, 0.0  ;;  %v5584_v12 = vsel %vm5314_vm8, %v12807_v39, 0.0 }
 0x58c   : > { %v6386_v15 = vsel %vm6116_vm4, %v12811_v4, 0.0  ;;  %v3234_v36 = vsel %vm2964_vm0, %v12778_v33, 0.0  ;;  %vm4572_vm7 = vcmp.eq.s32.totalorder %v15105_v32, %v12791_v20  ;;  %v2688_v16 = vadd.f32 %v2432_v21, %v1868_v19 }
 0x58d   : > { %7188 = vmatpush.msrb.mxu3 %v6834_v63  ;;  %v5034_v37 = vadd.f32 %v4778_v38, %v4232_v48  ;;  %v4040_v8 = vsel %vm3770_vm2, %v12789_v59, 0.0  ;;  %vm5378_vm12 = vcmp.eq.s32.totalorder %v15105_v32, %v12805_v31  ;;  %v4842_v49 = vsel %vm4572_vm7, %v12793_v46, 0.0 }
 0x58e   : > { %vm580_vm1 = vcmp.eq.s32.totalorder %v15106_v23, %v12753_v25  ;;  %vm1398_vm5 = vcmp.eq.s32.totalorder %v15106_v23, %v12757_v54  ;;  %vm2218_vm9 = vcmp.eq.s32.totalorder %v15106_v23, %v12761_v30  ;;  %v3490_v45 = vadd.f32 %v3234_v36, %v2688_v16 }
 0x58f   : > { %v5840_v13 = vadd.f32 %v5584_v12, %v5034_v37  ;;  %vm6180_vm10 = vcmp.eq.s32.totalorder %v15105_v32, %v12809_v28  ;;  %v850_v1 = vsel %vm580_vm1, %v12755_v57, 0.0  ;;  %v1668_v35 = vsel %vm1398_vm5, %v12759_v58, 0.0 }
 0x590   : > { %v2488_v52 = vsel %vm2218_vm9, %v12763_v26, 0.0  ;;  %vm3020_vm3 = vcmp.eq.s32.totalorder %v15106_v23, %v12776_v44  ;;  %vm3826_vm6 = vcmp.eq.s32.totalorder %v15106_v23, %v12787_v10  ;;  %v4296_v60 = vadd.f32 %v4040_v8, %v3490_v45 }
 0x591   : > { %v6642_v11 = vadd.f32 %v6386_v15, %v5840_v13  ;;  %v5648_v62 = vsel %vm5378_vm12, %v12807_v39, 0.0  ;;  %v1924_v0 = vadd.f32 %v1668_v35, %v850_v1  ;;  %v6450_v43 = vsel %vm6180_vm10, %v12811_v4, 0.0  ;;  %v15109_v1 = vld [vmem:[#allocation35_spill] sm:$0xff] }
 0x592   : > { %v3290_v55 = vsel %vm3020_vm3, %v12778_v33, 0.0  ;;  %v4096_v34 = vsel %vm3826_vm6, %v12789_v59, 0.0  ;;  %vm4628_vm13 = vcmp.eq.s32.totalorder %v15106_v23, %v12791_v20  ;;  %v5098_v56 = vadd.f32 %v4842_v49, %v4296_v60 }
 0x593   : > { %7128 = vmatpush.msrb.mxu0 %v6642_v11  ;;  %v2744_v24 = vadd.f32 %v2488_v52, %v1924_v0  ;;  %vm5434_vm8 = vcmp.eq.s32.totalorder %v15106_v23, %v12805_v31  ;;  %vm6236_vm11 = vcmp.eq.s32.totalorder %v15106_v23, %v12809_v28  ;;  %v4898_v29 = vsel %vm4628_vm13, %v12793_v46, 0.0 }
 0x594   : > { %vm648_vm15 = vcmp.eq.s32.totalorder %v15107_v17, %v12753_v25  ;;  %vm1466_vm4 = vcmp.eq.s32.totalorder %v15107_v17, %v12757_v54  ;;  %vm2286_vm14 = vcmp.eq.s32.totalorder %v15107_v17, %v12761_v30  ;;  %v5904_v41 = vadd.f32 %v5648_v62, %v5098_v56 }
 0x595   : > { %v3546_v5 = vadd.f32 %v3290_v55, %v2744_v24  ;;  %v918_v2 = vsel %vm648_vm15, %v12755_v57, 0.0  ;;  %v1736_v7 = vsel %vm1466_vm4, %v12759_v58, 0.0  ;;  %v2556_v51 = vsel %vm2286_vm14, %v12763_v26, 0.0 }
 0x596   : > { %v1992_v27 = vadd.f32 %v1736_v7, %v918_v2  ;;  %vm3088_vm0 = vcmp.eq.s32.totalorder %v15107_v17, %v12776_v44  ;;  %vm3894_vm2 = vcmp.eq.s32.totalorder %v15107_v17, %v12787_v10  ;;  %v6706_v53 = vadd.f32 %v6450_v43, %v5904_v41  ;;  %v15110_v2 = vld [vmem:[#allocation36_spill] sm:$0xff] }
 0x597   : > { %v4352_v3 = vadd.f32 %v4096_v34, %v3546_v5  ;;  %v5704_v14 = vsel %vm5434_vm8, %v12807_v39, 0.0  ;;  %v3358_v9 = vsel %vm3088_vm0, %v12778_v33, 0.0  ;;  %v6506_v18 = vsel %vm6236_vm11, %v12811_v4, 0.0 }
 0x598   : > { %v2812_v38 = vadd.f32 %v2556_v51, %v1992_v27  ;;  %v4164_v32 = vsel %vm3894_vm2, %v12789_v59, 0.0  ;;  %vm4696_vm7 = vcmp.eq.s32.totalorder %v15107_v17, %v12791_v20  ;;  %7148 = vmatpush.msrb.mxu1 %v6706_v53  ;;  %vm5502_vm12 = vcmp.eq.s32.totalorder %v15107_v17, %v12805_v31 }
 0x599   : > { %v5154_v61 = vadd.f32 %v4898_v29, %v4352_v3  ;;  %v4966_v42 = vsel %vm4696_vm7, %v12793_v46, 0.0  ;;  %vm6304_vm1 = vcmp.eq.s32.totalorder %v15107_v17, %v12809_v28  ;;  %vm456_vm5 = vcmp.eq.s32.totalorder %v15108_v22, %v12753_v25 }
 0x59a   : > { %v3614_v50 = vadd.f32 %v3358_v9, %v2812_v38  ;;  %vm1274_vm9 = vcmp.eq.s32.totalorder %v15108_v22, %v12757_v54  ;;  %vm2094_vm10 = vcmp.eq.s32.totalorder %v15108_v22, %v12761_v30  ;;  %v726_v48 = vsel %vm456_vm5, %v12755_v57, 0.0 }
 0x59b   : > { %v5960_v63 = vadd.f32 %v5704_v14, %v5154_v61  ;;  %v1544_v19 = vsel %vm1274_vm9, %v12759_v58, 0.0  ;;  %v2364_v21 = vsel %vm2094_vm10, %v12763_v26, 0.0  ;;  %vm2896_vm3 = vcmp.eq.s32.totalorder %v15108_v22, %v12776_v44 }
 0x59c   : > { %v4420_v12 = vadd.f32 %v4164_v32, %v3614_v50  ;;  %v1800_v15 = vadd.f32 %v1544_v19, %v726_v48  ;;  %vm3702_vm6 = vcmp.eq.s32.totalorder %v15108_v22, %v12787_v10  ;;  %v5772_v37 = vsel %vm5502_vm12, %v12807_v39, 0.0  ;;  %v15111_v48 = vld [vmem:[#allocation37_spill] sm:$0xff] }
 0x59d   : > { %v6762_v36 = vadd.f32 %v6506_v18, %v5960_v63  ;;  %v3166_v16 = vsel %vm2896_vm3, %v12778_v33, 0.0  ;;  %vm4504_vm13 = vcmp.eq.s32.totalorder %v15108_v22, %v12791_v20  ;;  %v6574_v49 = vsel %vm6304_vm1, %v12811_v4, 0.0 }
 0x59e   : > { %v5222_v8 = vadd.f32 %v4966_v42, %v4420_v12  ;;  %v2620_v23 = vadd.f32 %v2364_v21, %v1800_v15  ;;  %v3972_v13 = vsel %vm3702_vm6, %v12789_v59, 0.0  ;;  %v4774_v45 = vsel %vm4504_vm13, %v12793_v46, 0.0 }
 0x59f   : > { %7170 = vmatpush.msrb.mxu2 %v6762_v36  ;;  %vm5310_vm8 = vcmp.eq.s32.totalorder %v15108_v22, %v12805_v31  ;;  %vm520_vm11 = vcmp.eq.s32.totalorder %v15109_v1, %v12753_v25  ;;  %vm1338_vm15 = vcmp.eq.s32.totalorder %v15109_v1, %v12757_v54  ;;  %vm6112_vm4 = vcmp.eq.s32.totalorder %v15108_v22, %v12809_v28 }
 0x5a0   : > { %v6028_v35 = vadd.f32 %v5772_v37, %v5222_v8  ;;  %v3422_v52 = vadd.f32 %v3166_v16, %v2620_v23  ;;  %v790_v11 = vsel %vm520_vm11, %v12755_v57, 0.0  ;;  %v1608_v60 = vsel %vm1338_vm15, %v12759_v58, 0.0 }
 0x5a1   : > { %vm2158_vm14 = vcmp.eq.s32.totalorder %v15109_v1, %v12761_v30  ;;  %vm2960_vm0 = vcmp.eq.s32.totalorder %v15109_v1, %v12776_v44  ;;  %vm3766_vm2 = vcmp.eq.s32.totalorder %v15109_v1, %v12787_v10  ;;  %v1864_v43 = vadd.f32 %v1608_v60, %v790_v11  ;;  %v15112_v60 = vld [vmem:[#allocation38_spill] sm:$0xff] }
 0x5a2   : > { %v6830_v62 = vadd.f32 %v6574_v49, %v6028_v35  ;;  %v4228_v0 = vadd.f32 %v3972_v13, %v3422_v52  ;;  %v2428_v55 = vsel %vm2158_vm14, %v12763_v26, 0.0  ;;  %v5580_v34 = vsel %vm5310_vm8, %v12807_v39, 0.0 }
 0x5a3   : > { %v6382_v56 = vsel %vm6112_vm4, %v12811_v4, 0.0  ;;  %v3230_v24 = vsel %vm2960_vm0, %v12778_v33, 0.0  ;;  %vm4568_vm7 = vcmp.eq.s32.totalorder %v15109_v1, %v12791_v20  ;;  %v2684_v17 = vadd.f32 %v2428_v55, %v1864_v43 }
 0x5a4   : > { %7189 = vmatpush.msrb.mxu3 %v6830_v62  ;;  %v5030_v29 = vadd.f32 %v4774_v45, %v4228_v0  ;;  %v4036_v41 = vsel %vm3766_vm2, %v12789_v59, 0.0  ;;  %vm5374_vm12 = vcmp.eq.s32.totalorder %v15109_v1, %v12805_v31  ;;  %v4838_v5 = vsel %vm4568_vm7, %v12793_v46, 0.0 }
 0x5a5   : > { %vm576_vm1 = vcmp.eq.s32.totalorder %v15110_v2, %v12753_v25  ;;  %vm1394_vm5 = vcmp.eq.s32.totalorder %v15110_v2, %v12757_v54  ;;  %vm2214_vm9 = vcmp.eq.s32.totalorder %v15110_v2, %v12761_v30  ;;  %v3486_v27 = vadd.f32 %v3230_v24, %v2684_v17 }
 0x5a6   : > { %v5836_v7 = vadd.f32 %v5580_v34, %v5030_v29  ;;  %vm6176_vm10 = vcmp.eq.s32.totalorder %v15109_v1, %v12809_v28  ;;  %v846_v51 = vsel %vm576_vm1, %v12755_v57, 0.0  ;;  %v1664_v53 = vsel %vm1394_vm5, %v12759_v58, 0.0 }
 0x5a7   : > { %v2484_v3 = vsel %vm2214_vm9, %v12763_v26, 0.0  ;;  %vm3016_vm3 = vcmp.eq.s32.totalorder %v15110_v2, %v12776_v44  ;;  %vm3822_vm6 = vcmp.eq.s32.totalorder %v15110_v2, %v12787_v10  ;;  %v4292_v9 = vadd.f32 %v4036_v41, %v3486_v27 }
 0x5a8   : > { %v6638_v14 = vadd.f32 %v6382_v56, %v5836_v7  ;;  %v5644_v18 = vsel %vm5374_vm12, %v12807_v39, 0.0  ;;  %v1920_v38 = vadd.f32 %v1664_v53, %v846_v51  ;;  %v6446_v32 = vsel %vm6176_vm10, %v12811_v4, 0.0  ;;  %v15113_v51 = vld [vmem:[#allocation39_spill] sm:$0xff] }
 0x5a9   : > { %v3286_v61 = vsel %vm3016_vm3, %v12778_v33, 0.0  ;;  %v4092_v42 = vsel %vm3822_vm6, %v12789_v59, 0.0  ;;  %vm4624_vm13 = vcmp.eq.s32.totalorder %v15110_v2, %v12791_v20  ;;  %v5094_v50 = vadd.f32 %v4838_v5, %v4292_v9 }
 0x5aa   : > { %7129 = vmatpush.msrb.mxu0 %v6638_v14  ;;  %v2740_v22 = vadd.f32 %v2484_v3, %v1920_v38  ;;  %vm5430_vm8 = vcmp.eq.s32.totalorder %v15110_v2, %v12805_v31  ;;  %vm6232_vm11 = vcmp.eq.s32.totalorder %v15110_v2, %v12809_v28  ;;  %v4894_v63 = vsel %vm4624_vm13, %v12793_v46, 0.0 }
 0x5ab   : > { %vm644_vm15 = vcmp.eq.s32.totalorder %v15111_v48, %v12753_v25  ;;  %vm1462_vm4 = vcmp.eq.s32.totalorder %v15111_v48, %v12757_v54  ;;  %vm2282_vm14 = vcmp.eq.s32.totalorder %v15111_v48, %v12761_v30  ;;  %v5900_v19 = vadd.f32 %v5644_v18, %v5094_v50 }
 0x5ac   : > { %v3542_v21 = vadd.f32 %v3286_v61, %v2740_v22  ;;  %v914_v12 = vsel %vm644_vm15, %v12755_v57, 0.0  ;;  %v1732_v15 = vsel %vm1462_vm4, %v12759_v58, 0.0  ;;  %v2552_v37 = vsel %vm2282_vm14, %v12763_v26, 0.0 }
 0x5ad   : > { %v1988_v36 = vadd.f32 %v1732_v15, %v914_v12  ;;  %vm3084_vm0 = vcmp.eq.s32.totalorder %v15111_v48, %v12776_v44  ;;  %vm3890_vm2 = vcmp.eq.s32.totalorder %v15111_v48, %v12787_v10  ;;  %v6702_v16 = vadd.f32 %v6446_v32, %v5900_v19  ;;  %v15114_v12 = vld [vmem:[#allocation40_spill] sm:$0xff] }
 0x5ae   : > { %v4348_v8 = vadd.f32 %v4092_v42, %v3542_v21  ;;  %v5700_v49 = vsel %vm5430_vm8, %v12807_v39, 0.0  ;;  %v3354_v23 = vsel %vm3084_vm0, %v12778_v33, 0.0  ;;  %v6502_v13 = vsel %vm6232_vm11, %v12811_v4, 0.0 }
 0x5af   : > { %v2808_v45 = vadd.f32 %v2552_v37, %v1988_v36  ;;  %v4160_v1 = vsel %vm3890_vm2, %v12789_v59, 0.0  ;;  %vm4692_vm7 = vcmp.eq.s32.totalorder %v15111_v48, %v12791_v20  ;;  %7149 = vmatpush.msrb.mxu1 %v6702_v16  ;;  %vm5498_vm12 = vcmp.eq.s32.totalorder %v15111_v48, %v12805_v31 }
 0x5b0   : > { %v5150_v35 = vadd.f32 %v4894_v63, %v4348_v8  ;;  %v4962_v52 = vsel %vm4692_vm7, %v12793_v46, 0.0  ;;  %vm6300_vm1 = vcmp.eq.s32.totalorder %v15111_v48, %v12809_v28  ;;  %vm452_vm5 = vcmp.eq.s32.totalorder %v15112_v60, %v12753_v25 }
 0x5b1   : > { %v3610_v11 = vadd.f32 %v3354_v23, %v2808_v45  ;;  %vm1270_vm9 = vcmp.eq.s32.totalorder %v15112_v60, %v12757_v54  ;;  %vm2090_vm10 = vcmp.eq.s32.totalorder %v15112_v60, %v12761_v30  ;;  %v722_v0 = vsel %vm452_vm5, %v12755_v57, 0.0 }
 0x5b2   : > { %v5956_v62 = vadd.f32 %v5700_v49, %v5150_v35  ;;  %v1540_v43 = vsel %vm1270_vm9, %v12759_v58, 0.0  ;;  %v2360_v55 = vsel %vm2090_vm10, %v12763_v26, 0.0  ;;  %vm2892_vm3 = vcmp.eq.s32.totalorder %v15112_v60, %v12776_v44 }
 0x5b3   : > { %v4416_v34 = vadd.f32 %v4160_v1, %v3610_v11  ;;  %v1796_v56 = vadd.f32 %v1540_v43, %v722_v0  ;;  %vm3698_vm6 = vcmp.eq.s32.totalorder %v15112_v60, %v12787_v10  ;;  %v5768_v29 = vsel %vm5498_vm12, %v12807_v39, 0.0  ;;  %v15115_v0 = vld [vmem:[#allocation41_spill] sm:$0xff] }
 0x5b4   : > { %v6758_v24 = vadd.f32 %v6502_v13, %v5956_v62  ;;  %v3162_v17 = vsel %vm2892_vm3, %v12778_v33, 0.0  ;;  %vm4500_vm13 = vcmp.eq.s32.totalorder %v15112_v60, %v12791_v20  ;;  %v6570_v5 = vsel %vm6300_vm1, %v12811_v4, 0.0 }
 0x5b5   : > { %v5218_v41 = vadd.f32 %v4962_v52, %v4416_v34  ;;  %v2616_v2 = vadd.f32 %v2360_v55, %v1796_v56  ;;  %v3968_v7 = vsel %vm3698_vm6, %v12789_v59, 0.0  ;;  %v4770_v27 = vsel %vm4500_vm13, %v12793_v46, 0.0 }
 0x5b6   : > { %7171 = vmatpush.msrb.mxu2 %v6758_v24  ;;  %vm5306_vm8 = vcmp.eq.s32.totalorder %v15112_v60, %v12805_v31  ;;  %vm516_vm11 = vcmp.eq.s32.totalorder %v15113_v51, %v12753_v25  ;;  %vm1334_vm15 = vcmp.eq.s32.totalorder %v15113_v51, %v12757_v54  ;;  %vm6108_vm4 = vcmp.eq.s32.totalorder %v15112_v60, %v12809_v28 }
 0x5b7   : > { %v6024_v53 = vadd.f32 %v5768_v29, %v5218_v41  ;;  %v3418_v3 = vadd.f32 %v3162_v17, %v2616_v2  ;;  %v786_v14 = vsel %vm516_vm11, %v12755_v57, 0.0  ;;  %v1604_v9 = vsel %vm1334_vm15, %v12759_v58, 0.0 }
 0x5b8   : > { %vm2154_vm14 = vcmp.eq.s32.totalorder %v15113_v51, %v12761_v30  ;;  %vm2956_vm0 = vcmp.eq.s32.totalorder %v15113_v51, %v12776_v44  ;;  %vm3762_vm2 = vcmp.eq.s32.totalorder %v15113_v51, %v12787_v10  ;;  %v1860_v32 = vadd.f32 %v1604_v9, %v786_v14  ;;  %v15116_v9 = vld [vmem:[#allocation42_spill] sm:$0xff] }
 0x5b9   : > { %v6826_v18 = vadd.f32 %v6570_v5, %v6024_v53  ;;  %v4224_v38 = vadd.f32 %v3968_v7, %v3418_v3  ;;  %v2424_v61 = vsel %vm2154_vm14, %v12763_v26, 0.0  ;;  %v5576_v42 = vsel %vm5306_vm8, %v12807_v39, 0.0 }
 0x5ba   : > { %v6378_v50 = vsel %vm6108_vm4, %v12811_v4, 0.0  ;;  %v3226_v22 = vsel %vm2956_vm0, %v12778_v33, 0.0  ;;  %vm4564_vm7 = vcmp.eq.s32.totalorder %v15113_v51, %v12791_v20  ;;  %v2680_v48 = vadd.f32 %v2424_v61, %v1860_v32 }
 0x5bb   : > { %7190 = vmatpush.msrb.mxu3 %v6826_v18  ;;  %v5026_v63 = vadd.f32 %v4770_v27, %v4224_v38  ;;  %v4032_v19 = vsel %vm3762_vm2, %v12789_v59, 0.0  ;;  %vm5370_vm12 = vcmp.eq.s32.totalorder %v15113_v51, %v12805_v31  ;;  %v4834_v21 = vsel %vm4564_vm7, %v12793_v46, 0.0 }
 0x5bc   : > { %vm572_vm1 = vcmp.eq.s32.totalorder %v15114_v12, %v12753_v25  ;;  %vm1390_vm5 = vcmp.eq.s32.totalorder %v15114_v12, %v12757_v54  ;;  %vm2210_vm9 = vcmp.eq.s32.totalorder %v15114_v12, %v12761_v30  ;;  %v3482_v36 = vadd.f32 %v3226_v22, %v2680_v48 }
 0x5bd   : > { %v5832_v15 = vadd.f32 %v5576_v42, %v5026_v63  ;;  %vm6172_vm10 = vcmp.eq.s32.totalorder %v15113_v51, %v12809_v28  ;;  %v842_v37 = vsel %vm572_vm1, %v12755_v57, 0.0  ;;  %v1660_v16 = vsel %vm1390_vm5, %v12759_v58, 0.0 }
 0x5be   : > { %v2480_v8 = vsel %vm2210_vm9, %v12763_v26, 0.0  ;;  %vm3012_vm3 = vcmp.eq.s32.totalorder %v15114_v12, %v12776_v44  ;;  %vm3818_vm6 = vcmp.eq.s32.totalorder %v15114_v12, %v12787_v10  ;;  %v4288_v23 = vadd.f32 %v4032_v19, %v3482_v36 }
 0x5bf   : > { %v6634_v49 = vadd.f32 %v6378_v50, %v5832_v15  ;;  %v5640_v13 = vsel %vm5370_vm12, %v12807_v39, 0.0  ;;  %v1916_v45 = vadd.f32 %v1660_v16, %v842_v37  ;;  %v6442_v1 = vsel %vm6172_vm10, %v12811_v4, 0.0  ;;  %v15117_v37 = vld [vmem:[#allocation43_spill] sm:$0xff] }
 0x5c0   : > { %v3282_v35 = vsel %vm3012_vm3, %v12778_v33, 0.0  ;;  %v4088_v52 = vsel %vm3818_vm6, %v12789_v59, 0.0  ;;  %vm4620_vm13 = vcmp.eq.s32.totalorder %v15114_v12, %v12791_v20  ;;  %v5090_v11 = vadd.f32 %v4834_v21, %v4288_v23 }
 0x5c1   : > { %7130 = vmatpush.msrb.mxu0 %v6634_v49  ;;  %v2736_v60 = vadd.f32 %v2480_v8, %v1916_v45  ;;  %vm5426_vm8 = vcmp.eq.s32.totalorder %v15114_v12, %v12805_v31  ;;  %vm6228_vm11 = vcmp.eq.s32.totalorder %v15114_v12, %v12809_v28  ;;  %v4890_v62 = vsel %vm4620_vm13, %v12793_v46, 0.0 }
 0x5c2   : > { %vm640_vm15 = vcmp.eq.s32.totalorder %v15115_v0, %v12753_v25  ;;  %vm1458_vm4 = vcmp.eq.s32.totalorder %v15115_v0, %v12757_v54  ;;  %vm2278_vm14 = vcmp.eq.s32.totalorder %v15115_v0, %v12761_v30  ;;  %v5896_v43 = vadd.f32 %v5640_v13, %v5090_v11 }
 0x5c3   : > { %v3538_v55 = vadd.f32 %v3282_v35, %v2736_v60  ;;  %v910_v34 = vsel %vm640_vm15, %v12755_v57, 0.0  ;;  %v1728_v56 = vsel %vm1458_vm4, %v12759_v58, 0.0  ;;  %v2548_v29 = vsel %vm2278_vm14, %v12763_v26, 0.0 }
 0x5c4   : > { %v1984_v24 = vadd.f32 %v1728_v56, %v910_v34  ;;  %vm3080_vm0 = vcmp.eq.s32.totalorder %v15115_v0, %v12776_v44  ;;  %vm3886_vm2 = vcmp.eq.s32.totalorder %v15115_v0, %v12787_v10  ;;  %v6698_v17 = vadd.f32 %v6442_v1, %v5896_v43  ;;  %v15118_v34 = vld [vmem:[#allocation44_spill] sm:$0xff] }
 0x5c5   : > { %v4344_v41 = vadd.f32 %v4088_v52, %v3538_v55  ;;  %v5696_v5 = vsel %vm5426_vm8, %v12807_v39, 0.0  ;;  %v3350_v2 = vsel %vm3080_vm0, %v12778_v33, 0.0  ;;  %v6498_v7 = vsel %vm6228_vm11, %v12811_v4, 0.0 }
 0x5c6   : > { %v2804_v27 = vadd.f32 %v2548_v29, %v1984_v24  ;;  %v4156_v51 = vsel %vm3886_vm2, %v12789_v59, 0.0  ;;  %vm4688_vm7 = vcmp.eq.s32.totalorder %v15115_v0, %v12791_v20  ;;  %7150 = vmatpush.msrb.mxu1 %v6698_v17  ;;  %vm5494_vm12 = vcmp.eq.s32.totalorder %v15115_v0, %v12805_v31 }
 0x5c7   : > { %v5146_v53 = vadd.f32 %v4890_v62, %v4344_v41  ;;  %v4958_v3 = vsel %vm4688_vm7, %v12793_v46, 0.0  ;;  %vm6296_vm1 = vcmp.eq.s32.totalorder %v15115_v0, %v12809_v28  ;;  %vm448_vm5 = vcmp.eq.s32.totalorder %v15116_v9, %v12753_v25 }
 0x5c8   : > { %v3606_v14 = vadd.f32 %v3350_v2, %v2804_v27  ;;  %vm1266_vm9 = vcmp.eq.s32.totalorder %v15116_v9, %v12757_v54  ;;  %vm2086_vm10 = vcmp.eq.s32.totalorder %v15116_v9, %v12761_v30  ;;  %v718_v38 = vsel %vm448_vm5, %v12755_v57, 0.0 }
 0x5c9   : > { %v5952_v18 = vadd.f32 %v5696_v5, %v5146_v53  ;;  %v1536_v32 = vsel %vm1266_vm9, %v12759_v58, 0.0  ;;  %v2356_v61 = vsel %vm2086_vm10, %v12763_v26, 0.0  ;;  %vm2888_vm3 = vcmp.eq.s32.totalorder %v15116_v9, %v12776_v44 }
 0x5ca   : > { %v4412_v42 = vadd.f32 %v4156_v51, %v3606_v14  ;;  %v1792_v50 = vadd.f32 %v1536_v32, %v718_v38  ;;  %vm3694_vm6 = vcmp.eq.s32.totalorder %v15116_v9, %v12787_v10  ;;  %v5764_v63 = vsel %vm5494_vm12, %v12807_v39, 0.0  ;;  %v15119_v38 = vld [vmem:[#allocation45_spill] sm:$0xff] }
 0x5cb   : > { %v6754_v22 = vadd.f32 %v6498_v7, %v5952_v18  ;;  %v3158_v48 = vsel %vm2888_vm3, %v12778_v33, 0.0  ;;  %vm4496_vm13 = vcmp.eq.s32.totalorder %v15116_v9, %v12791_v20  ;;  %v6566_v21 = vsel %vm6296_vm1, %v12811_v4, 0.0 }
 0x5cc   : > { %v5214_v19 = vadd.f32 %v4958_v3, %v4412_v42  ;;  %v2612_v12 = vadd.f32 %v2356_v61, %v1792_v50  ;;  %v3964_v15 = vsel %vm3694_vm6, %v12789_v59, 0.0  ;;  %v4766_v36 = vsel %vm4496_vm13, %v12793_v46, 0.0 }
 0x5cd   : > { %7172 = vmatpush.msrb.mxu2 %v6754_v22  ;;  %vm5302_vm8 = vcmp.eq.s32.totalorder %v15116_v9, %v12805_v31  ;;  %vm512_vm11 = vcmp.eq.s32.totalorder %v15117_v37, %v12753_v25  ;;  %vm1330_vm15 = vcmp.eq.s32.totalorder %v15117_v37, %v12757_v54  ;;  %vm6104_vm4 = vcmp.eq.s32.totalorder %v15116_v9, %v12809_v28 }
 0x5ce   : > { %v6020_v16 = vadd.f32 %v5764_v63, %v5214_v19  ;;  %v3414_v8 = vadd.f32 %v3158_v48, %v2612_v12  ;;  %v782_v49 = vsel %vm512_vm11, %v12755_v57, 0.0  ;;  %v1600_v23 = vsel %vm1330_vm15, %v12759_v58, 0.0 }
 0x5cf   : > { %vm2150_vm14 = vcmp.eq.s32.totalorder %v15117_v37, %v12761_v30  ;;  %vm2952_vm0 = vcmp.eq.s32.totalorder %v15117_v37, %v12776_v44  ;;  %vm3758_vm2 = vcmp.eq.s32.totalorder %v15117_v37, %v12787_v10  ;;  %v1856_v1 = vadd.f32 %v1600_v23, %v782_v49  ;;  %v15120_v23 = vld [vmem:[#allocation46_spill] sm:$0xff] }
 0x5d0   : > { %v6822_v13 = vadd.f32 %v6566_v21, %v6020_v16  ;;  %v4220_v45 = vadd.f32 %v3964_v15, %v3414_v8  ;;  %v2420_v35 = vsel %vm2150_vm14, %v12763_v26, 0.0  ;;  %v5572_v52 = vsel %vm5302_vm8, %v12807_v39, 0.0 }
 0x5d1   : > { %v6374_v11 = vsel %vm6104_vm4, %v12811_v4, 0.0  ;;  %v3222_v60 = vsel %vm2952_vm0, %v12778_v33, 0.0  ;;  %vm4560_vm7 = vcmp.eq.s32.totalorder %v15117_v37, %v12791_v20  ;;  %v2676_v0 = vadd.f32 %v2420_v35, %v1856_v1 }
 0x5d2   : > { %7191 = vmatpush.msrb.mxu3 %v6822_v13  ;;  %v5022_v62 = vadd.f32 %v4766_v36, %v4220_v45  ;;  %v4028_v43 = vsel %vm3758_vm2, %v12789_v59, 0.0  ;;  %vm5366_vm12 = vcmp.eq.s32.totalorder %v15117_v37, %v12805_v31  ;;  %v4830_v55 = vsel %vm4560_vm7, %v12793_v46, 0.0 }
 0x5d3   : > { %vm568_vm1 = vcmp.eq.s32.totalorder %v15118_v34, %v12753_v25  ;;  %vm1386_vm5 = vcmp.eq.s32.totalorder %v15118_v34, %v12757_v54  ;;  %vm2206_vm9 = vcmp.eq.s32.totalorder %v15118_v34, %v12761_v30  ;;  %v3478_v24 = vadd.f32 %v3222_v60, %v2676_v0 }
 0x5d4   : > { %v5828_v56 = vadd.f32 %v5572_v52, %v5022_v62  ;;  %vm6168_vm10 = vcmp.eq.s32.totalorder %v15117_v37, %v12809_v28  ;;  %v838_v29 = vsel %vm568_vm1, %v12755_v57, 0.0  ;;  %v1656_v17 = vsel %vm1386_vm5, %v12759_v58, 0.0 }
 0x5d5   : > { %v2476_v41 = vsel %vm2206_vm9, %v12763_v26, 0.0  ;;  %vm3008_vm3 = vcmp.eq.s32.totalorder %v15118_v34, %v12776_v44  ;;  %vm3814_vm6 = vcmp.eq.s32.totalorder %v15118_v34, %v12787_v10  ;;  %v4284_v2 = vadd.f32 %v4028_v43, %v3478_v24 }
 0x5d6   : > { %v6630_v5 = vadd.f32 %v6374_v11, %v5828_v56  ;;  %v5636_v7 = vsel %vm5366_vm12, %v12807_v39, 0.0  ;;  %v1912_v27 = vadd.f32 %v1656_v17, %v838_v29  ;;  %v6438_v51 = vsel %vm6168_vm10, %v12811_v4, 0.0  ;;  %v15121_v29 = vld [vmem:[#allocation47_spill] sm:$0xff] }
 0x5d7   : > { %v3278_v53 = vsel %vm3008_vm3, %v12778_v33, 0.0  ;;  %v4084_v3 = vsel %vm3814_vm6, %v12789_v59, 0.0  ;;  %vm4616_vm13 = vcmp.eq.s32.totalorder %v15118_v34, %v12791_v20  ;;  %v5086_v14 = vadd.f32 %v4830_v55, %v4284_v2 }
 0x5d8   : > { %7131 = vmatpush.msrb.mxu0 %v6630_v5  ;;  %v2732_v9 = vadd.f32 %v2476_v41, %v1912_v27  ;;  %vm5422_vm8 = vcmp.eq.s32.totalorder %v15118_v34, %v12805_v31  ;;  %vm6224_vm11 = vcmp.eq.s32.totalorder %v15118_v34, %v12809_v28  ;;  %v4886_v18 = vsel %vm4616_vm13, %v12793_v46, 0.0 }
 0x5d9   : > { %vm636_vm15 = vcmp.eq.s32.totalorder %v15119_v38, %v12753_v25  ;;  %vm1454_vm4 = vcmp.eq.s32.totalorder %v15119_v38, %v12757_v54  ;;  %vm2274_vm14 = vcmp.eq.s32.totalorder %v15119_v38, %v12761_v30  ;;  %v5892_v32 = vadd.f32 %v5636_v7, %v5086_v14 }
 0x5da   : > { %v3534_v61 = vadd.f32 %v3278_v53, %v2732_v9  ;;  %v906_v42 = vsel %vm636_vm15, %v12755_v57, 0.0  ;;  %v1724_v50 = vsel %vm1454_vm4, %v12759_v58, 0.0  ;;  %v2544_v63 = vsel %vm2274_vm14, %v12763_v26, 0.0 }
 0x5db   : > { %v1980_v22 = vadd.f32 %v1724_v50, %v906_v42  ;;  %vm3076_vm0 = vcmp.eq.s32.totalorder %v15119_v38, %v12776_v44  ;;  %vm3882_vm2 = vcmp.eq.s32.totalorder %v15119_v38, %v12787_v10  ;;  %v6694_v48 = vadd.f32 %v6438_v51, %v5892_v32  ;;  %v15122_v42 = vld [vmem:[#allocation48_spill] sm:$0xff] }
 0x5dc   : > { %v4340_v19 = vadd.f32 %v4084_v3, %v3534_v61  ;;  %v5692_v21 = vsel %vm5422_vm8, %v12807_v39, 0.0  ;;  %v3346_v12 = vsel %vm3076_vm0, %v12778_v33, 0.0  ;;  %v6494_v15 = vsel %vm6224_vm11, %v12811_v4, 0.0 }
 0x5dd   : > { %v2800_v36 = vadd.f32 %v2544_v63, %v1980_v22  ;;  %v4152_v37 = vsel %vm3882_vm2, %v12789_v59, 0.0  ;;  %vm4684_vm7 = vcmp.eq.s32.totalorder %v15119_v38, %v12791_v20  ;;  %7151 = vmatpush.msrb.mxu1 %v6694_v48  ;;  %vm5490_vm12 = vcmp.eq.s32.totalorder %v15119_v38, %v12805_v31 }
 0x5de   : > { %v5142_v16 = vadd.f32 %v4886_v18, %v4340_v19  ;;  %v4954_v8 = vsel %vm4684_vm7, %v12793_v46, 0.0  ;;  %vm6292_vm1 = vcmp.eq.s32.totalorder %v15119_v38, %v12809_v28  ;;  %vm444_vm5 = vcmp.eq.s32.totalorder %v15120_v23, %v12753_v25 }
 0x5df   : > { %v3602_v49 = vadd.f32 %v3346_v12, %v2800_v36  ;;  %vm1262_vm9 = vcmp.eq.s32.totalorder %v15120_v23, %v12757_v54  ;;  %vm2082_vm10 = vcmp.eq.s32.totalorder %v15120_v23, %v12761_v30  ;;  %v714_v45 = vsel %vm444_vm5, %v12755_v57, 0.0 }
 0x5e0   : > { %v5948_v13 = vadd.f32 %v5692_v21, %v5142_v16  ;;  %v1532_v1 = vsel %vm1262_vm9, %v12759_v58, 0.0  ;;  %v2352_v35 = vsel %vm2082_vm10, %v12763_v26, 0.0  ;;  %vm2884_vm3 = vcmp.eq.s32.totalorder %v15120_v23, %v12776_v44 }
 0x5e1   : > { %v4408_v52 = vadd.f32 %v4152_v37, %v3602_v49  ;;  %v1788_v11 = vadd.f32 %v1532_v1, %v714_v45  ;;  %vm3690_vm6 = vcmp.eq.s32.totalorder %v15120_v23, %v12787_v10  ;;  %v5760_v62 = vsel %vm5490_vm12, %v12807_v39, 0.0  ;;  %v15123_v45 = vld [vmem:[#allocation49_spill] sm:$0xff] }
 0x5e2   : > { %v6750_v60 = vadd.f32 %v6494_v15, %v5948_v13  ;;  %v3154_v0 = vsel %vm2884_vm3, %v12778_v33, 0.0  ;;  %vm4492_vm13 = vcmp.eq.s32.totalorder %v15120_v23, %v12791_v20  ;;  %v6562_v55 = vsel %vm6292_vm1, %v12811_v4, 0.0 }
 0x5e3   : > { %v5210_v43 = vadd.f32 %v4954_v8, %v4408_v52  ;;  %v2608_v34 = vadd.f32 %v2352_v35, %v1788_v11  ;;  %v3960_v56 = vsel %vm3690_vm6, %v12789_v59, 0.0  ;;  %v4762_v24 = vsel %vm4492_vm13, %v12793_v46, 0.0 }
 0x5e4   : > { %7173 = vmatpush.msrb.mxu2 %v6750_v60  ;;  %vm5298_vm8 = vcmp.eq.s32.totalorder %v15120_v23, %v12805_v31  ;;  %vm508_vm11 = vcmp.eq.s32.totalorder %v15121_v29, %v12753_v25  ;;  %vm1326_vm15 = vcmp.eq.s32.totalorder %v15121_v29, %v12757_v54  ;;  %vm6100_vm4 = vcmp.eq.s32.totalorder %v15120_v23, %v12809_v28 }
 0x5e5   : > { %v6016_v17 = vadd.f32 %v5760_v62, %v5210_v43  ;;  %v3410_v41 = vadd.f32 %v3154_v0, %v2608_v34  ;;  %v778_v5 = vsel %vm508_vm11, %v12755_v57, 0.0  ;;  %v1596_v2 = vsel %vm1326_vm15, %v12759_v58, 0.0 }
 0x5e6   : > { %vm2146_vm14 = vcmp.eq.s32.totalorder %v15121_v29, %v12761_v30  ;;  %vm2948_vm0 = vcmp.eq.s32.totalorder %v15121_v29, %v12776_v44  ;;  %vm3754_vm2 = vcmp.eq.s32.totalorder %v15121_v29, %v12787_v10  ;;  %v1852_v51 = vadd.f32 %v1596_v2, %v778_v5  ;;  %v15124_v2 = vld [vmem:[#allocation50_spill] sm:$0xff] }
 0x5e7   : > { %v6818_v7 = vadd.f32 %v6562_v55, %v6016_v17  ;;  %v4216_v27 = vadd.f32 %v3960_v56, %v3410_v41  ;;  %v2416_v53 = vsel %vm2146_vm14, %v12763_v26, 0.0  ;;  %v5568_v3 = vsel %vm5298_vm8, %v12807_v39, 0.0 }
 0x5e8   : > { %v6370_v14 = vsel %vm6100_vm4, %v12811_v4, 0.0  ;;  %v3218_v9 = vsel %vm2948_vm0, %v12778_v33, 0.0  ;;  %vm4556_vm7 = vcmp.eq.s32.totalorder %v15121_v29, %v12791_v20  ;;  %v2672_v38 = vadd.f32 %v2416_v53, %v1852_v51 }
 0x5e9   : > { %7192 = vmatpush.msrb.mxu3 %v6818_v7  ;;  %v5018_v18 = vadd.f32 %v4762_v24, %v4216_v27  ;;  %v4024_v32 = vsel %vm3754_vm2, %v12789_v59, 0.0  ;;  %vm5362_vm12 = vcmp.eq.s32.totalorder %v15121_v29, %v12805_v31  ;;  %v4826_v61 = vsel %vm4556_vm7, %v12793_v46, 0.0 }
 0x5ea   : > { %vm564_vm1 = vcmp.eq.s32.totalorder %v15122_v42, %v12753_v25  ;;  %vm1382_vm5 = vcmp.eq.s32.totalorder %v15122_v42, %v12757_v54  ;;  %vm2202_vm9 = vcmp.eq.s32.totalorder %v15122_v42, %v12761_v30  ;;  %v3474_v22 = vadd.f32 %v3218_v9, %v2672_v38 }
 0x5eb   : > { %v5824_v50 = vadd.f32 %v5568_v3, %v5018_v18  ;;  %vm6164_vm10 = vcmp.eq.s32.totalorder %v15121_v29, %v12809_v28  ;;  %v834_v63 = vsel %vm564_vm1, %v12755_v57, 0.0  ;;  %v1652_v48 = vsel %vm1382_vm5, %v12759_v58, 0.0 }
 0x5ec   : > { %v2472_v19 = vsel %vm2202_vm9, %v12763_v26, 0.0  ;;  %vm3004_vm3 = vcmp.eq.s32.totalorder %v15122_v42, %v12776_v44  ;;  %vm3810_vm6 = vcmp.eq.s32.totalorder %v15122_v42, %v12787_v10  ;;  %v4280_v12 = vadd.f32 %v4024_v32, %v3474_v22 }
 0x5ed   : > { %v6626_v21 = vadd.f32 %v6370_v14, %v5824_v50  ;;  %v5632_v15 = vsel %vm5362_vm12, %v12807_v39, 0.0  ;;  %v1908_v36 = vadd.f32 %v1652_v48, %v834_v63  ;;  %v6434_v37 = vsel %vm6164_vm10, %v12811_v4, 0.0  ;;  %v15125_v63 = vld [vmem:[#allocation51_spill] sm:$0xff] }
 0x5ee   : > { %v3274_v16 = vsel %vm3004_vm3, %v12778_v33, 0.0  ;;  %v4080_v8 = vsel %vm3810_vm6, %v12789_v59, 0.0  ;;  %vm4612_vm13 = vcmp.eq.s32.totalorder %v15122_v42, %v12791_v20  ;;  %v5082_v49 = vadd.f32 %v4826_v61, %v4280_v12 }
 0x5ef   : > { %7132 = vmatpush.msrb.mxu0 %v6626_v21  ;;  %v2728_v23 = vadd.f32 %v2472_v19, %v1908_v36  ;;  %vm5418_vm8 = vcmp.eq.s32.totalorder %v15122_v42, %v12805_v31  ;;  %vm6220_vm11 = vcmp.eq.s32.totalorder %v15122_v42, %v12809_v28  ;;  %v4882_v13 = vsel %vm4612_vm13, %v12793_v46, 0.0 }
 0x5f0   : > { %vm632_vm15 = vcmp.eq.s32.totalorder %v15123_v45, %v12753_v25  ;;  %vm1450_vm4 = vcmp.eq.s32.totalorder %v15123_v45, %v12757_v54  ;;  %vm2270_vm14 = vcmp.eq.s32.totalorder %v15123_v45, %v12761_v30  ;;  %v5888_v1 = vadd.f32 %v5632_v15, %v5082_v49 }
 0x5f1   : > { %v3530_v35 = vadd.f32 %v3274_v16, %v2728_v23  ;;  %v902_v52 = vsel %vm632_vm15, %v12755_v57, 0.0  ;;  %v1720_v11 = vsel %vm1450_vm4, %v12759_v58, 0.0  ;;  %v2540_v62 = vsel %vm2270_vm14, %v12763_v26, 0.0 }
 0x5f2   : > { %v1976_v60 = vadd.f32 %v1720_v11, %v902_v52  ;;  %vm3072_vm0 = vcmp.eq.s32.totalorder %v15123_v45, %v12776_v44  ;;  %vm3878_vm2 = vcmp.eq.s32.totalorder %v15123_v45, %v12787_v10  ;;  %v6690_v0 = vadd.f32 %v6434_v37, %v5888_v1  ;;  %v15126_v52 = vld [vmem:[#allocation52_spill] sm:$0xff] }
 0x5f3   : > { %v4336_v43 = vadd.f32 %v4080_v8, %v3530_v35  ;;  %v5688_v55 = vsel %vm5418_vm8, %v12807_v39, 0.0  ;;  %v3342_v34 = vsel %vm3072_vm0, %v12778_v33, 0.0  ;;  %v6490_v56 = vsel %vm6220_vm11, %v12811_v4, 0.0 }
 0x5f4   : > { %v2796_v24 = vadd.f32 %v2540_v62, %v1976_v60  ;;  %v4148_v29 = vsel %vm3878_vm2, %v12789_v59, 0.0  ;;  %vm4680_vm7 = vcmp.eq.s32.totalorder %v15123_v45, %v12791_v20  ;;  %7152 = vmatpush.msrb.mxu1 %v6690_v0  ;;  %vm5486_vm12 = vcmp.eq.s32.totalorder %v15123_v45, %v12805_v31 }
 0x5f5   : > { %v5138_v17 = vadd.f32 %v4882_v13, %v4336_v43  ;;  %v4950_v41 = vsel %vm4680_vm7, %v12793_v46, 0.0  ;;  %vm6288_vm1 = vcmp.eq.s32.totalorder %v15123_v45, %v12809_v28  ;;  %vm440_vm5 = vcmp.eq.s32.totalorder %v15124_v2, %v12753_v25 }
 0x5f6   : > { %v3598_v5 = vadd.f32 %v3342_v34, %v2796_v24  ;;  %vm1258_vm9 = vcmp.eq.s32.totalorder %v15124_v2, %v12757_v54  ;;  %vm2078_vm10 = vcmp.eq.s32.totalorder %v15124_v2, %v12761_v30  ;;  %v710_v27 = vsel %vm440_vm5, %v12755_v57, 0.0 }
 0x5f7   : > { %v5944_v7 = vadd.f32 %v5688_v55, %v5138_v17  ;;  %v1528_v51 = vsel %vm1258_vm9, %v12759_v58, 0.0  ;;  %v2348_v53 = vsel %vm2078_vm10, %v12763_v26, 0.0  ;;  %vm2880_vm3 = vcmp.eq.s32.totalorder %v15124_v2, %v12776_v44 }
 0x5f8   : > { %v4404_v3 = vadd.f32 %v4148_v29, %v3598_v5  ;;  %v1784_v14 = vadd.f32 %v1528_v51, %v710_v27  ;;  %vm3686_vm6 = vcmp.eq.s32.totalorder %v15124_v2, %v12787_v10  ;;  %v5756_v18 = vsel %vm5486_vm12, %v12807_v39, 0.0  ;;  %v15127_v27 = vld [vmem:[#allocation53_spill] sm:$0xff] }
 0x5f9   : > { %v6746_v9 = vadd.f32 %v6490_v56, %v5944_v7  ;;  %v3150_v38 = vsel %vm2880_vm3, %v12778_v33, 0.0  ;;  %vm4488_vm13 = vcmp.eq.s32.totalorder %v15124_v2, %v12791_v20  ;;  %v6558_v61 = vsel %vm6288_vm1, %v12811_v4, 0.0 }
 0x5fa   : > { %v5206_v32 = vadd.f32 %v4950_v41, %v4404_v3  ;;  %v2604_v42 = vadd.f32 %v2348_v53, %v1784_v14  ;;  %v3956_v50 = vsel %vm3686_vm6, %v12789_v59, 0.0  ;;  %v4758_v22 = vsel %vm4488_vm13, %v12793_v46, 0.0 }
 0x5fb   : > { %7174 = vmatpush.msrb.mxu2 %v6746_v9  ;;  %vm5294_vm8 = vcmp.eq.s32.totalorder %v15124_v2, %v12805_v31  ;;  %vm504_vm11 = vcmp.eq.s32.totalorder %v15125_v63, %v12753_v25  ;;  %vm1322_vm15 = vcmp.eq.s32.totalorder %v15125_v63, %v12757_v54  ;;  %vm6096_vm4 = vcmp.eq.s32.totalorder %v15124_v2, %v12809_v28 }
 0x5fc   : > { %v6012_v48 = vadd.f32 %v5756_v18, %v5206_v32  ;;  %v3406_v19 = vadd.f32 %v3150_v38, %v2604_v42  ;;  %v774_v21 = vsel %vm504_vm11, %v12755_v57, 0.0  ;;  %v1592_v12 = vsel %vm1322_vm15, %v12759_v58, 0.0 }
 0x5fd   : > { %vm2142_vm14 = vcmp.eq.s32.totalorder %v15125_v63, %v12761_v30  ;;  %vm2944_vm0 = vcmp.eq.s32.totalorder %v15125_v63, %v12776_v44  ;;  %vm3750_vm2 = vcmp.eq.s32.totalorder %v15125_v63, %v12787_v10  ;;  %v1848_v37 = vadd.f32 %v1592_v12, %v774_v21  ;;  %v15128_v12 = vld [vmem:[#allocation54_spill] sm:$0xff] }
 0x5fe   : > { %v6814_v15 = vadd.f32 %v6558_v61, %v6012_v48  ;;  %v4212_v36 = vadd.f32 %v3956_v50, %v3406_v19  ;;  %v2412_v16 = vsel %vm2142_vm14, %v12763_v26, 0.0  ;;  %v5564_v8 = vsel %vm5294_vm8, %v12807_v39, 0.0 }
 0x5ff   : > { %v6366_v49 = vsel %vm6096_vm4, %v12811_v4, 0.0  ;;  %v3214_v23 = vsel %vm2944_vm0, %v12778_v33, 0.0  ;;  %vm4552_vm7 = vcmp.eq.s32.totalorder %v15125_v63, %v12791_v20  ;;  %v2668_v45 = vadd.f32 %v2412_v16, %v1848_v37 }
 0x600   : > { %7193 = vmatpush.msrb.mxu3 %v6814_v15  ;;  %v5014_v13 = vadd.f32 %v4758_v22, %v4212_v36  ;;  %v4020_v1 = vsel %vm3750_vm2, %v12789_v59, 0.0  ;;  %vm5358_vm12 = vcmp.eq.s32.totalorder %v15125_v63, %v12805_v31  ;;  %v4822_v35 = vsel %vm4552_vm7, %v12793_v46, 0.0 }
 0x601   : > { %vm560_vm1 = vcmp.eq.s32.totalorder %v15126_v52, %v12753_v25  ;;  %vm1378_vm5 = vcmp.eq.s32.totalorder %v15126_v52, %v12757_v54  ;;  %vm2198_vm9 = vcmp.eq.s32.totalorder %v15126_v52, %v12761_v30  ;;  %v3470_v60 = vadd.f32 %v3214_v23, %v2668_v45 }
 0x602   : > { %v5820_v11 = vadd.f32 %v5564_v8, %v5014_v13  ;;  %vm6160_vm10 = vcmp.eq.s32.totalorder %v15125_v63, %v12809_v28  ;;  %v830_v62 = vsel %vm560_vm1, %v12755_v57, 0.0  ;;  %v1648_v0 = vsel %vm1378_vm5, %v12759_v58, 0.0 }
 0x603   : > { %v2468_v43 = vsel %vm2198_vm9, %v12763_v26, 0.0  ;;  %vm3000_vm3 = vcmp.eq.s32.totalorder %v15126_v52, %v12776_v44  ;;  %vm3806_vm6 = vcmp.eq.s32.totalorder %v15126_v52, %v12787_v10  ;;  %v4276_v34 = vadd.f32 %v4020_v1, %v3470_v60 }
 0x604   : > { %v6622_v55 = vadd.f32 %v6366_v49, %v5820_v11  ;;  %v5628_v56 = vsel %vm5358_vm12, %v12807_v39, 0.0  ;;  %v1904_v24 = vadd.f32 %v1648_v0, %v830_v62  ;;  %v6430_v29 = vsel %vm6160_vm10, %v12811_v4, 0.0  ;;  %v7409_v0 = vld.sshfl [vmem:[#allocation1 + $0x10] sm:$0xff pattern:$0x75316420] }
 0x605   : > { %v3270_v17 = vsel %vm3000_vm3, %v12778_v33, 0.0  ;;  %v4076_v41 = vsel %vm3806_vm6, %v12789_v59, 0.0  ;;  %vm4608_vm13 = vcmp.eq.s32.totalorder %v15126_v52, %v12791_v20  ;;  %v5078_v5 = vadd.f32 %v4822_v35, %v4276_v34 }
 0x606   : > { %7133 = vmatpush.msrb.mxu0 %v6622_v55  ;;  %v2724_v2 = vadd.f32 %v2468_v43, %v1904_v24  ;;  %vm5414_vm8 = vcmp.eq.s32.totalorder %v15126_v52, %v12805_v31  ;;  %vm6216_vm11 = vcmp.eq.s32.totalorder %v15126_v52, %v12809_v28  ;;  %v4878_v7 = vsel %vm4608_vm13, %v12793_v46, 0.0 }
 0x607   : > { %vm628_vm15 = vcmp.eq.s32.totalorder %v15127_v27, %v12753_v25  ;;  %vm1446_vm4 = vcmp.eq.s32.totalorder %v15127_v27, %v12757_v54  ;;  %vm2266_vm14 = vcmp.eq.s32.totalorder %v15127_v27, %v12761_v30  ;;  %v5884_v51 = vadd.f32 %v5628_v56, %v5078_v5 }
 0x608   : > { %v3526_v53 = vadd.f32 %v3270_v17, %v2724_v2  ;;  %v898_v3 = vsel %vm628_vm15, %v12755_v57, 0.0  ;;  %v1716_v14 = vsel %vm1446_vm4, %v12759_v58, 0.0  ;;  %v2536_v18 = vsel %vm2266_vm14, %v12763_v26, 0.0 }
 0x609   : > { %v1972_v9 = vadd.f32 %v1716_v14, %v898_v3  ;;  %vm3068_vm0 = vcmp.eq.s32.totalorder %v15127_v27, %v12776_v44  ;;  %vm3874_vm2 = vcmp.eq.s32.totalorder %v15127_v27, %v12787_v10  ;;  %v6686_v38 = vadd.f32 %v6430_v29, %v5884_v51  ;;  %v15129_v3 = vld [vmem:[#allocation56_spill] sm:$0xff] }
 0x60a   : > { %v4332_v32 = vadd.f32 %v4076_v41, %v3526_v53  ;;  %v5684_v61 = vsel %vm5414_vm8, %v12807_v39, 0.0  ;;  %v3338_v42 = vsel %vm3068_vm0, %v12778_v33, 0.0  ;;  %v6486_v50 = vsel %vm6216_vm11, %v12811_v4, 0.0 }
 0x60b   : > { %v2792_v22 = vadd.f32 %v2536_v18, %v1972_v9  ;;  %v4144_v63 = vsel %vm3874_vm2, %v12789_v59, 0.0  ;;  %vm4676_vm7 = vcmp.eq.s32.totalorder %v15127_v27, %v12791_v20  ;;  %7153 = vmatpush.msrb.mxu1 %v6686_v38  ;;  %vm5482_vm12 = vcmp.eq.s32.totalorder %v15127_v27, %v12805_v31 }
 0x60c   : > { %v5134_v48 = vadd.f32 %v4878_v7, %v4332_v32  ;;  %v4946_v19 = vsel %vm4676_vm7, %v12793_v46, 0.0  ;;  %vm6284_vm1 = vcmp.eq.s32.totalorder %v15127_v27, %v12809_v28  ;;  %vm436_vm5 = vcmp.eq.s32.totalorder %v15128_v12, %v12753_v25 }
 0x60d   : > { %v3594_v21 = vadd.f32 %v3338_v42, %v2792_v22  ;;  %vm1254_vm9 = vcmp.eq.s32.totalorder %v15128_v12, %v12757_v54  ;;  %vm2074_vm10 = vcmp.eq.s32.totalorder %v15128_v12, %v12761_v30  ;;  %v706_v36 = vsel %vm436_vm5, %v12755_v57, 0.0 }
 0x60e   : > { %v5940_v15 = vadd.f32 %v5684_v61, %v5134_v48  ;;  %v1524_v37 = vsel %vm1254_vm9, %v12759_v58, 0.0  ;;  %v2344_v16 = vsel %vm2074_vm10, %v12763_v26, 0.0  ;;  %vm2876_vm3 = vcmp.eq.s32.totalorder %v15128_v12, %v12776_v44 }
 0x60f   : > { %v4400_v8 = vadd.f32 %v4144_v63, %v3594_v21  ;;  %v1780_v49 = vadd.f32 %v1524_v37, %v706_v36  ;;  %vm3682_vm6 = vcmp.eq.s32.totalorder %v15128_v12, %v12787_v10  ;;  %v5752_v13 = vsel %vm5482_vm12, %v12807_v39, 0.0  ;;  %v6917_v21 = vpop.f32.mrf.mxu1  ;;  %v6937_v37 = vpop.f32.mrf.mxu2 }
 0x610   : > { %v6742_v23 = vadd.f32 %v6486_v50, %v5940_v15  ;;  %v3146_v45 = vsel %vm2876_vm3, %v12778_v33, 0.0  ;;  %vm4484_vm13 = vcmp.eq.s32.totalorder %v15128_v12, %v12791_v20  ;;  %v6554_v35 = vsel %vm6284_vm1, %v12811_v4, 0.0 }
 0x611   : > { %v5202_v1 = vadd.f32 %v4946_v19, %v4400_v8  ;;  %v2600_v52 = vadd.f32 %v2344_v16, %v1780_v49  ;;  %v3952_v11 = vsel %vm3682_vm6, %v12789_v59, 0.0  ;;  %v4754_v60 = vsel %vm4484_vm13, %v12793_v46, 0.0  ;;  %v6897_v19 = vpop.f32.mrf.mxu0 }
 0x612   : > { %7175 = vmatpush.msrb.mxu2 %v6742_v23  ;;  %vm5290_vm8 = vcmp.eq.s32.totalorder %v15128_v12, %v12805_v31  ;;  %vm500_vm11 = vcmp.eq.s32.totalorder %v15081_v47, %v12753_v25  ;;  %vm1318_vm15 = vcmp.eq.s32.totalorder %v15081_v47, %v12757_v54  ;;  %vm6092_vm4 = vcmp.eq.s32.totalorder %v15128_v12, %v12809_v28 }
 0x613   : > { %v6008_v62 = vadd.f32 %v5752_v13, %v5202_v1  ;;  %7176 = vmatmul.f32.vlgmr.msrb.gmra.mxu2 %v7409_v0  ;;  %v3402_v43 = vadd.f32 %v3146_v45, %v2600_v52  ;;  %v770_v55 = vsel %vm500_vm11, %v12755_v57, 0.0  ;;  %v1588_v34 = vsel %vm1318_vm15, %v12759_v58, 0.0  ;;  %v6957_v1 = vpop.f32.mrf.mxu3 }
 0x614   : > { %vm2138_vm14 = vcmp.eq.s32.totalorder %v15081_v47, %v12761_v30  ;;  %vm2940_vm0 = vcmp.eq.s32.totalorder %v15081_v47, %v12776_v44  ;;  %vm3746_vm2 = vcmp.eq.s32.totalorder %v15081_v47, %v12787_v10  ;;  %v1844_v29 = vadd.f32 %v1588_v34, %v770_v55 }
 0x615   : > { %v6810_v56 = vadd.f32 %v6554_v35, %v6008_v62  ;;  %v4208_v24 = vadd.f32 %v3952_v11, %v3402_v43  ;;  %v2408_v17 = vsel %vm2138_vm14, %v12763_v26, 0.0  ;;  %v5560_v41 = vsel %vm5290_vm8, %v12807_v39, 0.0 }
 0x616   : > { %v6362_v5 = vsel %vm6092_vm4, %v12811_v4, 0.0  ;;  %v3210_v2 = vsel %vm2940_vm0, %v12778_v33, 0.0  ;;  %vm4548_vm7 = vcmp.eq.s32.totalorder %v15081_v47, %v12791_v20  ;;  %v2664_v27 = vadd.f32 %v2408_v17, %v1844_v29 }
 0x617   : > { %7194 = vmatpush.msrb.mxu3 %v6810_v56  ;;  %v5010_v7 = vadd.f32 %v4754_v60, %v4208_v24  ;;  %v4016_v51 = vsel %vm3746_vm2, %v12789_v59, 0.0  ;;  %vm5354_vm12 = vcmp.eq.s32.totalorder %v15081_v47, %v12805_v31  ;;  %v4818_v53 = vsel %vm4548_vm7, %v12793_v46, 0.0 }
 0x618   : > { %vm624_vm1 = vcmp.eq.s32.totalorder %v15129_v3, %v12753_v25  ;;  %vm1442_vm5 = vcmp.eq.s32.totalorder %v15129_v3, %v12757_v54  ;;  %vm2262_vm9 = vcmp.eq.s32.totalorder %v15129_v3, %v12761_v30  ;;  %v3466_v9 = vadd.f32 %v3210_v2, %v2664_v27  ;;  %v7017_v27 = vpop.f32.mrf.mxu2 }
 0x619   : > { %v5816_v14 = vadd.f32 %v5560_v41, %v5010_v7  ;;  %vm6156_vm10 = vcmp.eq.s32.totalorder %v15081_v47, %v12809_v28  ;;  %v894_v18 = vsel %vm624_vm1, %v12755_v57, 0.0  ;;  %v1712_v38 = vsel %vm1442_vm5, %v12759_v58, 0.0 }
 0x61a   : > { %v2532_v32 = vsel %vm2262_vm9, %v12763_v26, 0.0  ;;  %vm3064_vm3 = vcmp.eq.s32.totalorder %v15129_v3, %v12776_v44  ;;  %vm3870_vm6 = vcmp.eq.s32.totalorder %v15129_v3, %v12787_v10  ;;  %v4272_v42 = vadd.f32 %v4016_v51, %v3466_v9 }
 0x61b   : > { %v6618_v61 = vadd.f32 %v6362_v5, %v5816_v14  ;;  %v5624_v50 = vsel %vm5354_vm12, %v12807_v39, 0.0  ;;  %v1968_v22 = vadd.f32 %v1712_v38, %v894_v18  ;;  %v6426_v63 = vsel %vm6156_vm10, %v12811_v4, 0.0  ;;  %v7037_v9 = vpop.f32.mrf.mxu3 }
 0x61c   : > { %v3334_v47 = vsel %vm3064_vm3, %v12778_v33, 0.0  ;;  %v4140_v48 = vsel %vm3870_vm6, %v12789_v59, 0.0  ;;  %vm4672_vm13 = vcmp.eq.s32.totalorder %v15129_v3, %v12791_v20  ;;  %v5074_v12 = vadd.f32 %v4818_v53, %v4272_v42 }
 0x61d   : > { %7134 = vmatpush.msrb.mxu0 %v6618_v61  ;;  %v2788_v15 = vadd.f32 %v2532_v32, %v1968_v22  ;;  %vm5478_vm8 = vcmp.eq.s32.totalorder %v15129_v3, %v12805_v31  ;;  %vm6280_vm11 = vcmp.eq.s32.totalorder %v15129_v3, %v12809_v28  ;;  %v4942_v36 = vsel %vm4672_vm13, %v12793_v46, 0.0  ;;  %v7410_v3 = vld.sshfl [vmem:[#allocation1 + $0x18] sm:$0xff pattern:$0x75316420] }
 0x61e   : > { %vm432_vm15 = vcmp.eq.s32.totalorder %v7489_v6, %v12753_v25  ;;  %vm1250_vm4 = vcmp.eq.s32.totalorder %v7489_v6, %v12757_v54  ;;  %vm2070_vm14 = vcmp.eq.s32.totalorder %v7489_v6, %v12761_v30  ;;  %v5880_v16 = vadd.f32 %v5624_v50, %v5074_v12 }
 0x61f   : > { %v3590_v8 = vadd.f32 %v3334_v47, %v2788_v15  ;;  %v702_v49 = vsel %vm432_vm15, %v12755_v57, 0.0  ;;  %v1520_v23 = vsel %vm1250_vm4, %v12759_v58, 0.0  ;;  %v2340_v45 = vsel %vm2070_vm14, %v12763_v26, 0.0 }
 0x620   : > { %v1776_v13 = vadd.f32 %v1520_v23, %v702_v49  ;;  %vm2872_vm0 = vcmp.eq.s32.totalorder %v7489_v6, %v12776_v44  ;;  %vm3678_vm2 = vcmp.eq.s32.totalorder %v7489_v6, %v12787_v10  ;;  %v6682_v35 = vadd.f32 %v6426_v63, %v5880_v16 }
 0x621   : > { %v4396_v52 = vadd.f32 %v4140_v48, %v3590_v8  ;;  %v5748_v11 = vsel %vm5478_vm8, %v12807_v39, 0.0  ;;  %v3142_v60 = vsel %vm2872_vm0, %v12778_v33, 0.0  ;;  %v6550_v62 = vsel %vm6280_vm11, %v12811_v4, 0.0 }
 0x622   : > { %v2596_v0 = vadd.f32 %v2340_v45, %v1776_v13  ;;  %v3948_v43 = vsel %vm3678_vm2, %v12789_v59, 0.0  ;;  %vm4480_vm7 = vcmp.eq.s32.totalorder %v7489_v6, %v12791_v20  ;;  %7154 = vmatpush.msrb.mxu1 %v6682_v35  ;;  %vm5286_vm12 = vcmp.eq.s32.totalorder %v7489_v6, %v12805_v31 }
 0x623   : > { %v5198_v55 = vadd.f32 %v4942_v36, %v4396_v52  ;;  %v4750_v34 = vsel %vm4480_vm7, %v12793_v46, 0.0  ;;  %vm6088_vm1 = vcmp.eq.s32.totalorder %v7489_v6, %v12809_v28  ;;  %vm496_vm5 = vcmp.eq.s32.totalorder %v9547_v40, %v12753_v25  ;;  %v6977_v25 = vpop.f32.mrf.mxu0 }
 0x624   : > { %v3398_v56 = vadd.f32 %v3142_v60, %v2596_v0  ;;  %vm1314_vm9 = vcmp.eq.s32.totalorder %v9547_v40, %v12757_v54  ;;  %vm2134_vm10 = vcmp.eq.s32.totalorder %v9547_v40, %v12761_v30  ;;  %v766_v29 = vsel %vm496_vm5, %v12755_v57, 0.0  ;;  %v6997_v54 = vpop.f32.mrf.mxu1 }
 0x625   : > { %v6004_v24 = vadd.f32 %v5748_v11, %v5198_v55  ;;  %v1584_v17 = vsel %vm1314_vm9, %v12759_v58, 0.0  ;;  %v2404_v41 = vsel %vm2134_vm10, %v12763_v26, 0.0  ;;  %vm2936_vm3 = vcmp.eq.s32.totalorder %v9547_v40, %v12776_v44 }
 0x626   : > { %v4204_v5 = vadd.f32 %v3948_v43, %v3398_v56  ;;  %v1840_v2 = vadd.f32 %v1584_v17, %v766_v29  ;;  %vm3742_vm6 = vcmp.eq.s32.totalorder %v9547_v40, %v12787_v10  ;;  %v5556_v57 = vsel %vm5286_vm12, %v12807_v39, 0.0 }
 0x627   : > { %v6806_v7 = vadd.f32 %v6550_v62, %v6004_v24  ;;  %v3206_v58 = vsel %vm2936_vm3, %v12778_v33, 0.0  ;;  %vm4544_vm13 = vcmp.eq.s32.totalorder %v9547_v40, %v12791_v20  ;;  %v6358_v44 = vsel %vm6088_vm1, %v12811_v4, 0.0 }
 0x628   : > { %v5006_v30 = vadd.f32 %v4750_v34, %v4204_v5  ;;  %v2660_v26 = vadd.f32 %v2404_v41, %v1840_v2  ;;  %v4012_v10 = vsel %vm3742_vm6, %v12789_v59, 0.0  ;;  %v6918_v51 = vadd.f32 %v6917_v21, %v6897_v19  ;;  %v7097_v19 = vpop.f32.mrf.mxu2 }
 0x629   : > { %7195 = vmatpush.msrb.mxu3 %v6806_v7  ;;  %v6998_v53 = vadd.f32 %v6997_v54, %v6977_v25  ;;  %vm5350_vm8 = vcmp.eq.s32.totalorder %v9547_v40, %v12805_v31  ;;  %v4814_v20 = vsel %vm4544_vm13, %v12793_v46, 0.0  ;;  %vm6152_vm11 = vcmp.eq.s32.totalorder %v9547_v40, %v12809_v28  ;;  %v7411_v31 = vld.sshfl [vmem:[#allocation1] sm:$0xff pattern:$0x75316420] }
 0x62a   : > { %7196 = vmatmul.f32.vlgmr.msrb.gmra.mxu3 %v7410_v3  ;;  %v5812_v14 = vadd.f32 %v5556_v57, %v5006_v30  ;;  %v3462_v33 = vadd.f32 %v3206_v58, %v2660_v26  ;;  %v6938_v18 = vadd.f32 %v6937_v37, %v6918_v51  ;;  %v5620_v59 = vsel %vm5350_vm8, %v12807_v39, 0.0  ;;  %v7412_v39 = vld.sshfl [vmem:[#allocation1 + $0x8] sm:$0xff pattern:$0x75316420] }
 0x62b   : > { %v7018_v38 = vadd.f32 %v7017_v27, %v6998_v53  ;;  %vm7206_vm15 = vcmask 1043456   ;;  %v6422_v50 = vsel %vm6152_vm11, %v12811_v4, 0.0  ;;  %v7057_v28 = vpop.f32.mrf.mxu0  ;;  %v7117_v4 = vpop.f32.mrf.mxu3 }
 0x62c   : > { %v6614_v32 = vadd.f32 %v6358_v44, %v5812_v14  ;;  %v4268_v6 = vadd.f32 %v4012_v10, %v3462_v33  ;;  %v6958_v22 = vadd.f32 %v6957_v1, %v6938_v18  ;;  %v7077_v48 = vpop.f32.mrf.mxu1 }
 0x62d   : > { %v7038_v61 = vadd.f32 %v7037_v9, %v7018_v38  ;;  %v7078_v12 = vadd.f32 %v7077_v48, %v7057_v28 }
 0x62e   : > { %7135 = vmatpush.msrb.mxu0 %v6614_v32  ;;  %v5070_v42 = vadd.f32 %v4814_v20, %v4268_v6 }
 0x62f   : > { %7136 = vmatmul.f32.vlgmr.msrb.gmra.mxu0 %v7411_v31  ;;  %v7204_v46 = vrot.slane %v7038_v61, 4  ;;  %v7098_v8 = vadd.f32 %v7097_v19, %v7078_v12 }
 0x630   : > { %v5876_v63 = vadd.f32 %v5620_v59, %v5070_v42 }
 0x631   : > { %v7207_v47 = vsel %vm7206_vm15, %v6958_v22, %v7204_v46  ;;  %v7118_v13 = vadd.f32 %v7117_v4, %v7098_v8 }
 0x632   : > { %v6678_v40 = vadd.f32 %v6422_v50, %v5876_v63  ;;  %7211 = vst [vmem:[%s250_s29] sm:$0x77] %v7207_v47 }
 0x634   : > { %7155 = vmatpush.msrb.mxu1 %v6678_v40 }
 0x635   : > { %7156 = vmatmul.f32.vlgmr.msrb.gmra.mxu1 %v7412_v39 }
 0x696   : > { %v7177_v36 = vpop.f32.mrf.mxu2 }
 0x6ac   : > { %v7137_v21 = vpop.f32.mrf.mxu0 }
 0x6ad   : > { %v7197_v16 = vpop.f32.mrf.mxu3 }
 0x6b2   : > { %v7157_v15 = vpop.f32.mrf.mxu1 }
 0x6b3   : > { %v7158_v37 = vadd.f32 %v7157_v15, %v7137_v21 }
 0x6b5   : > { %v7178_v49 = vadd.f32 %v7177_v36, %v7158_v37 }
 0x6b7   : > { %v7198_v23 = vadd.f32 %v7197_v16, %v7178_v49 }
 0x6b9   : > { %v7205_v45 = vrot.slane %v7198_v23, 4 }
 0x6bb   : > { %v7208_v1 = vsel %vm7206_vm15, %v7118_v13, %v7205_v45 }
 0x6bc   : > { %7212 = vst [vmem:[%s250_s29 + $0x8] sm:$0x77] %v7208_v1 }
 0x6bd PF: > { %s13_s14 = sadd.s32 1, %s7435_s14   ;;  %s15130_s12 = smov %s7431_s13 }
 0x6be   : > { %p10_p5 = scmp.ge.s32.totalorder %s13_s14, 4   ;;  %s15131_s13 = smov %s15133_s15 }
 0x6c0   :  { %12 = sbr.rel (!%p10_p5) target bundleno = 2 (0x2), region = 69 }

</bundles_post_ra>
